<compile_context>
chip_gen: v5e
topology: v5e:2x2
jax: 0.10.0
libtpu: 0.0.40
codegen_flags: <defaults>
</compile_context>

<pallas_src>
import jax
import jax.numpy as jnp
import numpy as np
from jax.experimental import pallas as pl
from jax.experimental.pallas import tpu as pltpu

N_INTERACTION_BLOCKS = 3


def turbulence_kernel(x_ref,
                      w1_ref, b1_ref,
                      wab_ref, bab_ref,
                      w5_ref, b5_ref,
                      wsab_ref, bsab_ref,
                      w2_ref,
                      o_ref):
    f32 = jnp.float32
    mm = w1_ref.dtype                        # matmul-operand dtype (bf16)
    H = w1_ref.shape[0]
    c_out = o_ref.shape[0]
    T = x_ref.shape[-1]

    # lin1: o3.Linear(irreps_in, hidden, biases=True) on scalars -> dense + bias
    x = x_ref[...].astype(mm)                                            # [c_in, T]
    h = jnp.dot(w1_ref[...], x, preferred_element_type=f32) + b1_ref[...]  # [H, T] f32

    # block1..block3: gated self-interaction (see TODO above); value + gate
    # branches fused into a single 2H-wide MXU matmul.
    for k in range(N_INTERACTION_BLOCKS):
        ag = (jnp.dot(wab_ref[k], h.astype(mm), preferred_element_type=f32)
              + bab_ref[k])                                              # [2H, T] f32
        a = ag[:H, :]
        g = jax.nn.sigmoid(ag[H:, :])
        t = a * g
        # NormActivation(silu) on l=0 irreps: t * silu(|t|)/|t| == t * sigmoid(|t|)
        t = t * jax.nn.sigmoid(jnp.abs(t))
        h = h + t

    # lin5
    h = jnp.dot(w5_ref[...], h.astype(mm), preferred_element_type=f32) + b5_ref[...]

    # split4: two biased linear branches fused into one 2H-wide matmul
    hs = (jnp.dot(wsab_ref[...], h.astype(mm), preferred_element_type=f32)
          + bsab_ref[...])                                               # [2H, T] f32
    ha = hs[:H, :]
    hb = hs[H:, :]

    # tp4: FullyConnectedTensorProduct on scalar irreps:
    #   ht[k, n] = sum_{i,j} (w_tp[k, j, i] / H) * ha[i, n] * hb[j, n]
    # Two-stage form: contract j on the MXU, then i on the VPU/XLU.
    #   M[(k, i), n] = sum_j W2[(k, i), j] * hb[j, n]     (1/H folded into W2)
    #   ht[k, n]     = sum_i M[(k, i), n] * ha[i, n]
    M = jnp.dot(w2_ref[...], hb.astype(mm), preferred_element_type=f32)  # [c_out*H, T]
    ht = jnp.sum(M.reshape(c_out, H, T) * ha[None, :, :], axis=1)        # [c_out, T]
    o_ref[...] = ht.astype(o_ref.dtype)


def pack_params(p, *, mm_dtype=jnp.bfloat16):
    """Host-side weight prep: feature-major transposes, fused pairs, folded norms."""
    H = p["w1"].shape[1]
    c_out = p["w_tp"].shape[0]
    f32 = jnp.float32
    return {
        "w1_t": p["w1"].T.astype(mm_dtype),                               # (H, c_in)
        "b1_c": p["b1"].T.astype(f32),                                    # (H, 1)
        "wab_t": jnp.concatenate([jnp.transpose(p["wa"], (0, 2, 1)),
                                  jnp.transpose(p["wb"], (0, 2, 1))],
                                 axis=1).astype(mm_dtype),                # (nb, 2H, H)
        "bab_c": jnp.concatenate([jnp.transpose(p["ba"], (0, 2, 1)),
                                  jnp.transpose(p["bb"], (0, 2, 1))],
                                 axis=1).astype(f32),                     # (nb, 2H, 1)
        "w5_t": p["w5"].T.astype(mm_dtype),                               # (H, H)
        "b5_c": p["b5"].T.astype(f32),                                    # (H, 1)
        "wsab_t": jnp.concatenate([p["wsa"].T, p["wsb"].T],
                                  axis=0).astype(mm_dtype),               # (2H, H)
        "bsab_c": jnp.concatenate([p["bsa"].T, p["bsb"].T],
                                  axis=0).astype(f32),                    # (2H, 1)
        # w_tp[k, j, i] -> W2[k*H + i, j], with the 1/H TP normalization folded in.
        "w2": (jnp.transpose(p["w_tp"], (0, 2, 1)).reshape(c_out * H, H)
               / H).astype(mm_dtype),                                     # (c_out*H, H)
    }


def _pick_tile_n(N):
    # Largest power-of-two tile (amortize ~0.35us per-grid-step overhead on the
    # single-TC v5e/v6e) that still leaves grid >= 2 (both v7x TensorCores busy).
    for t in (4096, 2048, 1024, 512, 256, 128):
        if N % t == 0 and N // t >= 2:
            return t
    return N


def turbulence_nn(x, params, *, tile_n=None):
    N, c_in = x.shape
    pk = pack_params(params)
    H = pk["w1_t"].shape[0]
    c_out = pk["w2"].shape[0] // H
    if tile_n is None:
        tile_n = _pick_tile_n(N)
    assert N % tile_n == 0, "N must be a multiple of tile_n"
    assert tile_n % 128 == 0 or tile_n == N, "tile_n should be a multiple of 128"

    # Kernel is feature-major; transpose at the boundary (module contract is (N, C)).
    x_t = x.T                                   # (c_in, N), nodes on lanes

    weight_order = ("w1_t", "b1_c", "wab_t", "bab_c", "w5_t", "b5_c",
                    "wsab_t", "bsab_c", "w2")
    weights = [pk[k] for k in weight_order]

    def full_spec(arr):
        nd = arr.ndim
        return pl.BlockSpec(arr.shape, lambda i, nd=nd: (0,) * nd)

    in_specs = [pl.BlockSpec((c_in, tile_n), lambda i: (0, i))]
    in_specs += [full_spec(w) for w in weights]

    nb = N_INTERACTION_BLOCKS
    flops = int(2 * N * (c_in * H + nb * 2 * H * H + H * H + 2 * H * H
                         + c_out * H * H + c_out * H) + 6 * nb * N * H)
    transcendentals = int(2 * nb * N * H)
    bytes_accessed = int(4 * N * (c_in + c_out)
                         + sum(int(np.prod(w.shape)) * w.dtype.itemsize
                               for w in weights))

    out_t = pl.pallas_call(
        turbulence_kernel,
        out_shape=jax.ShapeDtypeStruct((c_out, N), jnp.float32),
        grid_spec=pltpu.PrefetchScalarGridSpec(
            num_scalar_prefetch=0,
            grid=(N // tile_n,),
            in_specs=in_specs,
            out_specs=pl.BlockSpec((c_out, tile_n), lambda i: (0, i)),
        ),
        compiler_params=pltpu.CompilerParams(
            dimension_semantics=("parallel",)),
        cost_estimate=pl.CostEstimate(
            flops=flops,
            transcendentals=transcendentals,
            bytes_accessed=bytes_accessed),
    )(x_t, *weights)

    return out_t.T                              # (N, c_out)


def reference_forward(x, p, mm_dtype=jnp.float32):
    """Pure-JAX reference of the same forward pass.

    With mm_dtype=jnp.bfloat16 the matmul operands are rounded exactly as the
    kernel rounds them (f32 accumulation), giving a precision-matched check.
    """
    f32 = jnp.float32
    c = lambda a: a.astype(mm_dtype)
    dot = lambda a, b: jnp.dot(c(a), c(b), preferred_element_type=f32)

    h = dot(x, p["w1"]) + p["b1"]
    for k in range(N_INTERACTION_BLOCKS):
        a = dot(h, p["wa"][k]) + p["ba"][k]
        g = jax.nn.sigmoid(dot(h, p["wb"][k]) + p["bb"][k])
        t = a * g
        t = t * jax.nn.sigmoid(jnp.abs(t))
        h = h + t
    h = dot(h, p["w5"]) + p["b5"]
    ha = dot(h, p["wsa"]) + p["bsa"]
    hb = dot(h, p["wsb"]) + p["bsb"]
    H = ha.shape[-1]
    # e3nn 'element' normalization for Hx0e (x) Hx0e -> c_out x0e is 1/H.
    # Same two-stage contraction as the kernel (j on the "MXU", then i in f32):
    M = jnp.einsum("kji,nj->nki", c(p["w_tp"] / H), c(hb),
                   preferred_element_type=f32)                    # (N, c_out, H)
    ht = jnp.einsum("nki,ni->nk", M, ha)                          # (N, c_out) f32
    return ht


def init_params(key, c_in, hidden, c_out):
    ks = jax.random.split(key, 13)

    def dense(k, fan_in, shape, scale=1.0):
        return (jax.random.normal(k, shape, jnp.float32) * scale
                / jnp.sqrt(jnp.float32(fan_in)))

    nb = N_INTERACTION_BLOCKS
    return {
        "w1":  dense(ks[0], c_in, (c_in, hidden)),
        "b1":  dense(ks[1], 1, (1, hidden), 0.1),
        "wa":  dense(ks[2], hidden, (nb, hidden, hidden)),
        "ba":  dense(ks[3], 1, (nb, 1, hidden), 0.1),
        "wb":  dense(ks[4], hidden, (nb, hidden, hidden)),
        "bb":  dense(ks[5], 1, (nb, 1, hidden), 0.1),
        "w5":  dense(ks[6], hidden, (hidden, hidden)),
        "b5":  dense(ks[7], 1, (1, hidden), 0.1),
        "wsa": dense(ks[8], hidden, (hidden, hidden)),
        "bsa": dense(ks[9], 1, (1, hidden), 0.1),
        "wsb": dense(ks[10], hidden, (hidden, hidden)),
        "bsb": dense(ks[11], 1, (1, hidden), 0.1),
        # FullyConnectedTensorProduct weights: (C_out, H_j, H_i)
        "w_tp": dense(ks[12], 1, (c_out, hidden, hidden)),
    }


if __name__ == "__main__":
    # "4x0e" -> 32x0e hidden -> "8x0e" out; N nodes.  Auto tile -> 1024, grid=2
    # (even, so both v7x TensorCores get work; large enough to amortize per-step
    # overhead on single-TC v5e/v6e).
    N, C_IN, HIDDEN, C_OUT = 2048, 4, 32, 8

    root = jax.random.PRNGKey(0)
    kx, kp = jax.random.split(root)
    x = jax.random.normal(kx, (N, C_IN), jnp.float32)
    params = init_params(kp, C_IN, HIDDEN, C_OUT)

    out = jax.block_until_ready(turbulence_nn(x, params))
    # Precision-matched reference (bf16 MXU operands, f32 accumulation).
    ref = jax.block_until_ready(reference_forward(x, params, mm_dtype=jnp.bfloat16))

    np.testing.assert_allclose(np.asarray(out), np.asarray(ref),
                               rtol=5e-3, atol=5e-3)
    print("KERNEL_OK")
</pallas_src>

<mosaic_0001>
module attributes {stable_mosaic.version = 11 : i64} {
  func.func @turbulence_kernel(%arg0: i32, %arg1: memref<4x1024xf32, #tpu.memory_space<vmem>>, %arg2: memref<32x4xbf16, #tpu.memory_space<vmem>>, %arg3: memref<32x1xf32, #tpu.memory_space<vmem>>, %arg4: memref<3x64x32xbf16, #tpu.memory_space<vmem>>, %arg5: memref<3x64x1xf32, #tpu.memory_space<vmem>>, %arg6: memref<32x32xbf16, #tpu.memory_space<vmem>>, %arg7: memref<32x1xf32, #tpu.memory_space<vmem>>, %arg8: memref<64x32xbf16, #tpu.memory_space<vmem>>, %arg9: memref<64x1xf32, #tpu.memory_space<vmem>>, %arg10: memref<256x32xbf16, #tpu.memory_space<vmem>>, %arg11: memref<8x1024xf32, #tpu.memory_space<vmem>>) attributes {dimension_semantics = [#tpu.dimension_semantics<parallel>], iteration_bounds = array<i64: 2>, scalar_prefetch = 0 : i64, scratch_operands = 0 : i64, tpu.core_type = #tpu.core_type<tc>, window_params = [{transform_indices = @transform_0, window_bounds = array<i64: 4, 1024>}, {pipeline_mode = #tpu.pipeline_mode<synchronous>, transform_indices = @transform_1, window_bounds = array<i64: 32, 4>}, {pipeline_mode = #tpu.pipeline_mode<synchronous>, transform_indices = @transform_2, window_bounds = array<i64: 32, 1>}, {pipeline_mode = #tpu.pipeline_mode<synchronous>, transform_indices = @transform_3, window_bounds = array<i64: 3, 64, 32>}, {pipeline_mode = #tpu.pipeline_mode<synchronous>, transform_indices = @transform_4, window_bounds = array<i64: 3, 64, 1>}, {pipeline_mode = #tpu.pipeline_mode<synchronous>, transform_indices = @transform_5, window_bounds = array<i64: 32, 32>}, {pipeline_mode = #tpu.pipeline_mode<synchronous>, transform_indices = @transform_6, window_bounds = array<i64: 32, 1>}, {pipeline_mode = #tpu.pipeline_mode<synchronous>, transform_indices = @transform_7, window_bounds = array<i64: 64, 32>}, {pipeline_mode = #tpu.pipeline_mode<synchronous>, transform_indices = @transform_8, window_bounds = array<i64: 64, 1>}, {pipeline_mode = #tpu.pipeline_mode<synchronous>, transform_indices = @transform_9, window_bounds = array<i64: 256, 32>}, {transform_indices = @transform_10, window_bounds = array<i64: 8, 1024>}]} {
    %c0 = arith.constant 0 : index
    %c0_0 = arith.constant 0 : index
    %0 = vector.load %arg1[%c0, %c0_0] : memref<4x1024xf32, #tpu.memory_space<vmem>>, vector<4x1024xf32>
    %1 = arith.truncf %0 : vector<4x1024xf32> to vector<4x1024xbf16>
    %c0_1 = arith.constant 0 : index
    %c0_2 = arith.constant 0 : index
    %2 = vector.load %arg2[%c0_1, %c0_2] : memref<32x4xbf16, #tpu.memory_space<vmem>>, vector<32x4xbf16>
    %cst = arith.constant dense<0.000000e+00> : vector<32x1024xf32>
    %3 = tpu.matmul %2, %1, %cst {dimension_numbers = #tpu.dot_dimension_numbers<[1], [0], [0], [1], [0, 0, 1, 1], [], []>} : vector<32x4xbf16>, vector<4x1024xbf16>, vector<32x1024xf32> -> vector<32x1024xf32>
    %c0_3 = arith.constant 0 : index
    %c0_4 = arith.constant 0 : index
    %4 = vector.load %arg3[%c0_3, %c0_4] : memref<32x1xf32, #tpu.memory_space<vmem>>, vector<32x1xf32>
    %5 = vector.broadcast %4 : vector<32x1xf32> to vector<32x1024xf32>
    %6 = arith.addf %3, %5 : vector<32x1024xf32>
    %c0_5 = arith.constant 0 : index
    %c0_6 = arith.constant 0 : index
    %c0_7 = arith.constant 0 : index
    %7 = vector.load %arg4[%c0_5, %c0_6, %c0_7] : memref<3x64x32xbf16, #tpu.memory_space<vmem>>, vector<1x64x32xbf16>
    %8 = vector.shape_cast %7 : vector<1x64x32xbf16> to vector<64x32xbf16>
    %9 = arith.truncf %6 : vector<32x1024xf32> to vector<32x1024xbf16>
    %cst_8 = arith.constant dense<0.000000e+00> : vector<64x1024xf32>
    %10 = tpu.matmul %8, %9, %cst_8 {dimension_numbers = #tpu.dot_dimension_numbers<[1], [0], [0], [1], [0, 0, 1, 1], [], []>} : vector<64x32xbf16>, vector<32x1024xbf16>, vector<64x1024xf32> -> vector<64x1024xf32>
    %c0_9 = arith.constant 0 : index
    %c0_10 = arith.constant 0 : index
    %c0_11 = arith.constant 0 : index
    %11 = vector.load %arg5[%c0_9, %c0_10, %c0_11] : memref<3x64x1xf32, #tpu.memory_space<vmem>>, vector<1x64x1xf32>
    %12 = vector.shape_cast %11 : vector<1x64x1xf32> to vector<64x1xf32>
    %13 = vector.broadcast %12 : vector<64x1xf32> to vector<64x1024xf32>
    %14 = arith.addf %10, %13 : vector<64x1024xf32>
    %15 = vector.extract_strided_slice %14 {offsets = [0, 0], sizes = [32, 1024], strides = [1, 1]} : vector<64x1024xf32> to vector<32x1024xf32>
    %16 = vector.extract_strided_slice %14 {offsets = [32, 0], sizes = [32, 1024], strides = [1, 1]} : vector<64x1024xf32> to vector<32x1024xf32>
    %17 = arith.negf %16 : vector<32x1024xf32>
    %18 = math.exp %17 : vector<32x1024xf32>
    %cst_12 = arith.constant 1.000000e+00 : f32
    %19 = vector.broadcast %cst_12 : f32 to vector<32x1024xf32>
    %20 = arith.addf %19, %18 : vector<32x1024xf32>
    %21 = arith.divf %19, %20 : vector<32x1024xf32>
    %22 = arith.mulf %15, %21 : vector<32x1024xf32>
    %23 = math.absf %22 : vector<32x1024xf32>
    %24 = arith.negf %23 : vector<32x1024xf32>
    %25 = math.exp %24 : vector<32x1024xf32>
    %cst_13 = arith.constant 1.000000e+00 : f32
    %26 = vector.broadcast %cst_13 : f32 to vector<32x1024xf32>
    %27 = arith.addf %26, %25 : vector<32x1024xf32>
    %28 = arith.divf %26, %27 : vector<32x1024xf32>
    %29 = arith.mulf %22, %28 : vector<32x1024xf32>
    %30 = arith.addf %6, %29 : vector<32x1024xf32>
    %c1 = arith.constant 1 : index
    %c0_14 = arith.constant 0 : index
    %c0_15 = arith.constant 0 : index
    %31 = vector.load %arg4[%c1, %c0_14, %c0_15] : memref<3x64x32xbf16, #tpu.memory_space<vmem>>, vector<1x64x32xbf16>
    %32 = vector.shape_cast %31 : vector<1x64x32xbf16> to vector<64x32xbf16>
    %33 = arith.truncf %30 : vector<32x1024xf32> to vector<32x1024xbf16>
    %cst_16 = arith.constant dense<0.000000e+00> : vector<64x1024xf32>
    %34 = tpu.matmul %32, %33, %cst_16 {dimension_numbers = #tpu.dot_dimension_numbers<[1], [0], [0], [1], [0, 0, 1, 1], [], []>} : vector<64x32xbf16>, vector<32x1024xbf16>, vector<64x1024xf32> -> vector<64x1024xf32>
    %c1_17 = arith.constant 1 : index
    %c0_18 = arith.constant 0 : index
    %c0_19 = arith.constant 0 : index
    %35 = vector.load %arg5[%c1_17, %c0_18, %c0_19] : memref<3x64x1xf32, #tpu.memory_space<vmem>>, vector<1x64x1xf32>
    %36 = vector.shape_cast %35 : vector<1x64x1xf32> to vector<64x1xf32>
    %37 = vector.broadcast %36 : vector<64x1xf32> to vector<64x1024xf32>
    %38 = arith.addf %34, %37 : vector<64x1024xf32>
    %39 = vector.extract_strided_slice %38 {offsets = [0, 0], sizes = [32, 1024], strides = [1, 1]} : vector<64x1024xf32> to vector<32x1024xf32>
    %40 = vector.extract_strided_slice %38 {offsets = [32, 0], sizes = [32, 1024], strides = [1, 1]} : vector<64x1024xf32> to vector<32x1024xf32>
    %41 = arith.negf %40 : vector<32x1024xf32>
    %42 = math.exp %41 : vector<32x1024xf32>
    %cst_20 = arith.constant 1.000000e+00 : f32
    %43 = vector.broadcast %cst_20 : f32 to vector<32x1024xf32>
    %44 = arith.addf %43, %42 : vector<32x1024xf32>
    %45 = arith.divf %43, %44 : vector<32x1024xf32>
    %46 = arith.mulf %39, %45 : vector<32x1024xf32>
    %47 = math.absf %46 : vector<32x1024xf32>
    %48 = arith.negf %47 : vector<32x1024xf32>
    %49 = math.exp %48 : vector<32x1024xf32>
    %cst_21 = arith.constant 1.000000e+00 : f32
    %50 = vector.broadcast %cst_21 : f32 to vector<32x1024xf32>
    %51 = arith.addf %50, %49 : vector<32x1024xf32>
    %52 = arith.divf %50, %51 : vector<32x1024xf32>
    %53 = arith.mulf %46, %52 : vector<32x1024xf32>
    %54 = arith.addf %30, %53 : vector<32x1024xf32>
    %c2 = arith.constant 2 : index
    %c0_22 = arith.constant 0 : index
    %c0_23 = arith.constant 0 : index
    %55 = vector.load %arg4[%c2, %c0_22, %c0_23] : memref<3x64x32xbf16, #tpu.memory_space<vmem>>, vector<1x64x32xbf16>
    %56 = vector.shape_cast %55 : vector<1x64x32xbf16> to vector<64x32xbf16>
    %57 = arith.truncf %54 : vector<32x1024xf32> to vector<32x1024xbf16>
    %cst_24 = arith.constant dense<0.000000e+00> : vector<64x1024xf32>
    %58 = tpu.matmul %56, %57, %cst_24 {dimension_numbers = #tpu.dot_dimension_numbers<[1], [0], [0], [1], [0, 0, 1, 1], [], []>} : vector<64x32xbf16>, vector<32x1024xbf16>, vector<64x1024xf32> -> vector<64x1024xf32>
    %c2_25 = arith.constant 2 : index
    %c0_26 = arith.constant 0 : index
    %c0_27 = arith.constant 0 : index
    %59 = vector.load %arg5[%c2_25, %c0_26, %c0_27] : memref<3x64x1xf32, #tpu.memory_space<vmem>>, vector<1x64x1xf32>
    %60 = vector.shape_cast %59 : vector<1x64x1xf32> to vector<64x1xf32>
    %61 = vector.broadcast %60 : vector<64x1xf32> to vector<64x1024xf32>
    %62 = arith.addf %58, %61 : vector<64x1024xf32>
    %63 = vector.extract_strided_slice %62 {offsets = [0, 0], sizes = [32, 1024], strides = [1, 1]} : vector<64x1024xf32> to vector<32x1024xf32>
    %64 = vector.extract_strided_slice %62 {offsets = [32, 0], sizes = [32, 1024], strides = [1, 1]} : vector<64x1024xf32> to vector<32x1024xf32>
    %65 = arith.negf %64 : vector<32x1024xf32>
    %66 = math.exp %65 : vector<32x1024xf32>
    %cst_28 = arith.constant 1.000000e+00 : f32
    %67 = vector.broadcast %cst_28 : f32 to vector<32x1024xf32>
    %68 = arith.addf %67, %66 : vector<32x1024xf32>
    %69 = arith.divf %67, %68 : vector<32x1024xf32>
    %70 = arith.mulf %63, %69 : vector<32x1024xf32>
    %71 = math.absf %70 : vector<32x1024xf32>
    %72 = arith.negf %71 : vector<32x1024xf32>
    %73 = math.exp %72 : vector<32x1024xf32>
    %cst_29 = arith.constant 1.000000e+00 : f32
    %74 = vector.broadcast %cst_29 : f32 to vector<32x1024xf32>
    %75 = arith.addf %74, %73 : vector<32x1024xf32>
    %76 = arith.divf %74, %75 : vector<32x1024xf32>
    %77 = arith.mulf %70, %76 : vector<32x1024xf32>
    %78 = arith.addf %54, %77 : vector<32x1024xf32>
    %c0_30 = arith.constant 0 : index
    %c0_31 = arith.constant 0 : index
    %79 = vector.load %arg6[%c0_30, %c0_31] : memref<32x32xbf16, #tpu.memory_space<vmem>>, vector<32x32xbf16>
    %80 = arith.truncf %78 : vector<32x1024xf32> to vector<32x1024xbf16>
    %cst_32 = arith.constant dense<0.000000e+00> : vector<32x1024xf32>
    %81 = tpu.matmul %79, %80, %cst_32 {dimension_numbers = #tpu.dot_dimension_numbers<[1], [0], [0], [1], [0, 0, 1, 1], [], []>} : vector<32x32xbf16>, vector<32x1024xbf16>, vector<32x1024xf32> -> vector<32x1024xf32>
    %c0_33 = arith.constant 0 : index
    %c0_34 = arith.constant 0 : index
    %82 = vector.load %arg7[%c0_33, %c0_34] : memref<32x1xf32, #tpu.memory_space<vmem>>, vector<32x1xf32>
    %83 = vector.broadcast %82 : vector<32x1xf32> to vector<32x1024xf32>
    %84 = arith.addf %81, %83 : vector<32x1024xf32>
    %c0_35 = arith.constant 0 : index
    %c0_36 = arith.constant 0 : index
    %85 = vector.load %arg8[%c0_35, %c0_36] : memref<64x32xbf16, #tpu.memory_space<vmem>>, vector<64x32xbf16>
    %86 = arith.truncf %84 : vector<32x1024xf32> to vector<32x1024xbf16>
    %cst_37 = arith.constant dense<0.000000e+00> : vector<64x1024xf32>
    %87 = tpu.matmul %85, %86, %cst_37 {dimension_numbers = #tpu.dot_dimension_numbers<[1], [0], [0], [1], [0, 0, 1, 1], [], []>} : vector<64x32xbf16>, vector<32x1024xbf16>, vector<64x1024xf32> -> vector<64x1024xf32>
    %c0_38 = arith.constant 0 : index
    %c0_39 = arith.constant 0 : index
    %88 = vector.load %arg9[%c0_38, %c0_39] : memref<64x1xf32, #tpu.memory_space<vmem>>, vector<64x1xf32>
    %89 = vector.broadcast %88 : vector<64x1xf32> to vector<64x1024xf32>
    %90 = arith.addf %87, %89 : vector<64x1024xf32>
    %91 = vector.extract_strided_slice %90 {offsets = [0, 0], sizes = [32, 1024], strides = [1, 1]} : vector<64x1024xf32> to vector<32x1024xf32>
    %92 = vector.extract_strided_slice %90 {offsets = [32, 0], sizes = [32, 1024], strides = [1, 1]} : vector<64x1024xf32> to vector<32x1024xf32>
    %c0_40 = arith.constant 0 : index
    %c0_41 = arith.constant 0 : index
    %93 = vector.load %arg10[%c0_40, %c0_41] : memref<256x32xbf16, #tpu.memory_space<vmem>>, vector<256x32xbf16>
    %94 = arith.truncf %92 : vector<32x1024xf32> to vector<32x1024xbf16>
    %cst_42 = arith.constant dense<0.000000e+00> : vector<256x1024xf32>
    %95 = tpu.matmul %93, %94, %cst_42 {dimension_numbers = #tpu.dot_dimension_numbers<[1], [0], [0], [1], [0, 0, 1, 1], [], []>} : vector<256x32xbf16>, vector<32x1024xbf16>, vector<256x1024xf32> -> vector<256x1024xf32>
    %96 = vector.shape_cast %95 : vector<256x1024xf32> to vector<8x32x1024xf32>
    %97 = vector.shape_cast %91 : vector<32x1024xf32> to vector<1x32x1024xf32>
    %98 = vector.broadcast %97 : vector<1x32x1024xf32> to vector<8x32x1024xf32>
    %99 = arith.mulf %96, %98 : vector<8x32x1024xf32>
    %cst_43 = arith.constant dense<0.000000e+00> : vector<8x1024xf32>
    %100 = vector.multi_reduction <add>, %99, %cst_43 [1] : vector<8x32x1024xf32> to vector<8x1024xf32>
    %c0_44 = arith.constant 0 : index
    %c0_45 = arith.constant 0 : index
    %101 = vector.load %arg11[%c0_44, %c0_45] : memref<8x1024xf32, #tpu.memory_space<vmem>>, vector<8x1024xf32>
    tpu.vector_store %arg11[%c0_44, %c0_45], %100 {strides = array<i32>} : memref<8x1024xf32, #tpu.memory_space<vmem>>, vector<8x1024xf32>,
    return
  }
  func.func @transform_0(%arg0: i32) -> (i32, i32) {
    %c0_i32 = arith.constant 0 : i32
    %c0_i32_0 = arith.constant 0 : i32
    return %c0_i32, %arg0 : i32, i32
  }
  func.func @transform_1(%arg0: i32) -> (i32, i32) {
    %c0_i32 = arith.constant 0 : i32
    %c0_i32_0 = arith.constant 0 : i32
    %c0_i32_1 = arith.constant 0 : i32
    return %c0_i32, %c0_i32_0 : i32, i32
  }
  func.func @transform_2(%arg0: i32) -> (i32, i32) {
    %c0_i32 = arith.constant 0 : i32
    %c0_i32_0 = arith.constant 0 : i32
    %c0_i32_1 = arith.constant 0 : i32
    return %c0_i32, %c0_i32_0 : i32, i32
  }
  func.func @transform_3(%arg0: i32) -> (i32, i32, i32) {
    %c0_i32 = arith.constant 0 : i32
    %c0_i32_0 = arith.constant 0 : i32
    %c0_i32_1 = arith.constant 0 : i32
    %c0_i32_2 = arith.constant 0 : i32
    return %c0_i32, %c0_i32_0, %c0_i32_1 : i32, i32, i32
  }
  func.func @transform_4(%arg0: i32) -> (i32, i32, i32) {
    %c0_i32 = arith.constant 0 : i32
    %c0_i32_0 = arith.constant 0 : i32
    %c0_i32_1 = arith.constant 0 : i32
    %c0_i32_2 = arith.constant 0 : i32
    return %c0_i32, %c0_i32_0, %c0_i32_1 : i32, i32, i32
  }
  func.func @transform_5(%arg0: i32) -> (i32, i32) {
    %c0_i32 = arith.constant 0 : i32
    %c0_i32_0 = arith.constant 0 : i32
    %c0_i32_1 = arith.constant 0 : i32
    return %c0_i32, %c0_i32_0 : i32, i32
  }
  func.func @transform_6(%arg0: i32) -> (i32, i32) {
    %c0_i32 = arith.constant 0 : i32
    %c0_i32_0 = arith.constant 0 : i32
    %c0_i32_1 = arith.constant 0 : i32
    return %c0_i32, %c0_i32_0 : i32, i32
  }
  func.func @transform_7(%arg0: i32) -> (i32, i32) {
    %c0_i32 = arith.constant 0 : i32
    %c0_i32_0 = arith.constant 0 : i32
    %c0_i32_1 = arith.constant 0 : i32
    return %c0_i32, %c0_i32_0 : i32, i32
  }
  func.func @transform_8(%arg0: i32) -> (i32, i32) {
    %c0_i32 = arith.constant 0 : i32
    %c0_i32_0 = arith.constant 0 : i32
    %c0_i32_1 = arith.constant 0 : i32
    return %c0_i32, %c0_i32_0 : i32, i32
  }
  func.func @transform_9(%arg0: i32) -> (i32, i32) {
    %c0_i32 = arith.constant 0 : i32
    %c0_i32_0 = arith.constant 0 : i32
    %c0_i32_1 = arith.constant 0 : i32
    return %c0_i32, %c0_i32_0 : i32, i32
  }
  func.func @transform_10(%arg0: i32) -> (i32, i32) {
    %c0_i32 = arith.constant 0 : i32
    %c0_i32_0 = arith.constant 0 : i32
    return %c0_i32, %arg0 : i32, i32
  }
}

</mosaic_0001>

<bundles_post_ra>
// kernel: tpu_custom_call.1
= control target key start
LH: loop header
LB: loop body
LE: loop exit
PB: predicated region body
PF: predicated region fallthrough
CT: control target
= control target key end

     0   :  { %15 = vsyncpa [#allocation3], 0  ;;  %s17898_s0 = inlined_call_operand.vmem [shape: f32[4,2048], index: 0, kind: input, shape index: {}]   ;;  %s17899_s1 = inlined_call_operand.vmem [shape: bf16[32,4], index: 1, kind: input, shape index: {}]   ;;  %s17900_s2 = inlined_call_operand.vmem [shape: f32[32,1], index: 2, kind: input, shape index: {}]   ;;  %s17901_s3 = inlined_call_operand.vmem [shape: bf16[3,64,32], index: 3, kind: input, shape index: {}]   ;;  %s17902_s4 = inlined_call_operand.vmem [shape: f32[3,64,1], index: 4, kind: input, shape index: {}]   ;;  %s17903_s5 = inlined_call_operand.vmem [shape: bf16[32,32], index: 5, kind: input, shape index: {}]   ;;  %s17904_s6 = inlined_call_operand.vmem [shape: f32[32,1], index: 6, kind: input, shape index: {}]   ;;  %s17905_s7 = inlined_call_operand.vmem [shape: bf16[64,32], index: 7, kind: input, shape index: {}]   ;;  %s17906_s8 = inlined_call_operand.vmem [shape: f32[64,1], index: 8, kind: input, shape index: {}]   ;;  %s17907_s9 = inlined_call_operand.vmem [shape: bf16[256,32], index: 9, kind: input, shape index: {}]   ;;  %s17908_s10 = inlined_call_operand.hbm [shape: f32[8,2048], index: 10, kind: output, shape index: {}]  }
   0x1   :  { %17 = vsyncpa [#allocation3 + $0x1], 0  ;;  %s9814_s13 = smov 0   ;;  %s9816_s14 = smov 0  }
   0x2   :  { %s9818_s15 = smov 0   ;;  %s9820_s16 = smov 0  }
   0x3 LB: > { %s9835_s17 = sadd.s32 4294967295, %s9756_s16   ;;  %s8155_s18 = sadd.s32 4294967294, %s9756_s16   ;;  %s9756_s16 = sphi %s9820_s16, %s19521_s16   ;;  %s9752_s15 = sphi %s9818_s15, %s19520_s15   ;;  %s9748_s14 = sphi %s9816_s14, %s19519_s14   ;;  %s9744_s13 = sphi %s9814_s13, %s19518_s13  }
   0x4   : > { %s9839_s19 = sadd.s32 1, %s9756_s16   ;;  %s245_s20 = sadd.s32 1, %s9752_s15 }
   0x5   : > { %s242_s21 = ssub.s32 %s9756_s16, %s9839_s19  ;;  %p255_p0 = scmp.ne.s32.totalorder %s9752_s15, %s9748_s14 }
   0x6   : > { %p243_p1 = scmp.eq.s32.totalorder %s242_s21, 0  ;;  %p256_p2 = scmp.eq.s32.totalorder %s9835_s17, 1 }
   0x7   : > { %p261_p3 = scmp.ne.s32.totalorder %s9748_s14, %s9744_s13  ;;  %p262_p4 = scmp.eq.s32.totalorder %s8155_s18, 1 }
   0x8   : > { %s9850_s22 = scalar_select %p243_p1, %s9752_s15, %s245_s20  }
   0x9   : > { %p9852_p5 = por %p256_p2, %p255_p0  ;;  %p9856_p6 = por %p262_p4, %p261_p3 }
   0xa   : > { %p8158_p7 = scmp.ge.s32.totalorder %s9756_s16, 1  ;;  %p316_p8 = scmp.lt.s32.totalorder %s9756_s16, 3 }
   0xc   : > { %p317_p9 = pnand %p8158_p7, %p316_p8 }
   0xe   : > { %320 = sbr.rel (%p317_p9) target bundleno = 2429 (0x97d), region = 60 }
  0x13   : > { %v407_v0 = vld [vmem:[%s17900_s2 + $0x10] sm:$0xff]  ;;  %v405_v1 = vld [vmem:[%s17900_s2] sm:$0xff]  ;;  %s8160_s29 = sshll.u32 %s9835_s17, 3  ;;  %v9758_v2 = vmov 0   ;;  %v408_v3 = vld [vmem:[%s17900_s2 + $0x18] sm:$0xff]  ;;  %vm446_vm0 = vcmask 1041408  }
  0x14   : > { %8901 = vset.pattern.permute.xlu1 %v9758_v2  ;;  %8900 = vset.pattern.permute.xlu0 %v9758_v2  ;;  %p355_p10 = scmp.lt.s32.totalorder %s8160_s29, 15  ;;  %v406_v4 = vld [vmem:[%s17900_s2 + $0x8] sm:$0xff]  ;;  %v651_v9 = vld [vmem:[%s17902_s4 + $0x20] sm:$0xff]  ;;  %vm439_vm1 = vcmask 31744   ;;  %v650_v36 = vld [vmem:[%s17902_s4 + $0x18] sm:$0xff]  ;;  %vm18089_vm2 = vcmask 261120  }
  0x15   : > { %421 = vperm.xlu0 %8900, %v407_v0   ;;  %411 = vperm.xlu1 %8901, %v405_v1   ;;  %v652_v10 = vld [vmem:[%s17902_s4 + $0x28] sm:$0xff]  ;;  %v8823_v23 = vld [vmem:[%s17899_s1] sm:$0xff]  ;;  %v8312_v38 = vld [vmem:[%s17902_s4 + $0x70] sm:$0xff]  ;;  %s351_s25 = sand.u32 1, %s9748_s14   ;;  %s9714_s26 = scalar_lea.hbm %s17908_s10, 128 }
  0x16   : > { %s19523_s29 = smov (!%p355_p10, %s8160_s29), 15  ;;  %8902 = vset.pattern.permute.xlu2 %v9758_v2  ;;  %v647_v37 = vld [vmem:[%s17902_s4] sm:$0xff]  ;;  %v8313_v39 = vld [vmem:[%s17902_s4 + $0x78] sm:$0xff]  ;;  %v8824_v40 = vld [vmem:[%s17899_s1 + $0x8] sm:$0xff]  ;;  %s8159_s28 = sshll.u32 %s351_s25, 6 }
  0x17   : > { %s8161_s30 = sshll.u32 %s19523_s29, 2  ;;  %v8311_v41 = vld [vmem:[%s17902_s4 + $0x68] sm:$0xff]  ;;  %v8308_v42 = vld [vmem:[%s17902_s4 + $0x50] sm:$0xff]  ;;  %v8306_v43 = vld [vmem:[%s17902_s4 + $0x40] sm:$0xff]  ;;  %s17460_s29 = scalar_lea.vmem [#allocation2], %s8159_s28 }
  0x18   : > { %s358_s21 = scalar_lea.vmem %s17898_s0, %s8161_s30  ;;  %v8307_v44 = vld [vmem:[%s17902_s4 + $0x48] sm:$0xff]  ;;  %v8441_v45 = vld [vmem:[%s17902_s4 + $0xb8] sm:$0xff]  ;;  %v8438_v46 = vld [vmem:[%s17902_s4 + $0xa0] sm:$0xff]  ;;  %s8093_s30 = sshll.u32 %s17460_s29, 4  ;;  %s8094_s30 = int_to_ptr.vmem [resolvable:$true] %s8093_s30 }
  0x19   : > { %v362_v5 = vld [vmem:[%s358_s21] sm:$0xff]  ;;  %v363_v6 = vld [vmem:[%s358_s21 + $0x8] sm:$0xff]  ;;  %v364_v7 = vld [vmem:[%s358_s21 + $0x10] sm:$0xff] }
  0x1a   : > { %370 = vst [vmem:[#allocation1] ss:$2 sm:$0xff] %v362_v5  ;;  %v365_v8 = vld [vmem:[%s358_s21 + $0x18] sm:$0xff]  ;;  %v8436_v47 = vld [vmem:[%s17902_s4 + $0x90] sm:$0xff]  ;;  %v8435_v49 = vld [vmem:[%s17902_s4 + $0x88] sm:$0xff]  ;;  %s8859_s21 = sshll.u32 %s9835_s17, 6 }
  0x1b   : > { %372 = vst [vmem:[#allocation1 + $0x10] ss:$2 sm:$0xff] %v363_v6  ;;  %v8437_v48 = vld [vmem:[%s17902_s4 + $0x98] sm:$0xff]  ;;  %v5690_v50 = vld [vmem:[%s17904_s6 + $0x10] sm:$0xff]  ;;  %v5688_v51 = vld [vmem:[%s17904_s6] sm:$0xff]  ;;  %s8091_s28 = scalar_lea.hbm %s17908_s10, %s8859_s21  ;;  %s8080_s17 = scalar_lea.sflag [#allocation3], %s351_s25 }
  0x1c   : > { %374 = vst [vmem:[#allocation1 + $0x20] ss:$2 sm:$0xff] %v364_v7  ;;  %v5689_v52 = vld [vmem:[%s17904_s6 + $0x8] sm:$0xff]  ;;  %v5911_v53 = vld [vmem:[%s17906_s8 + $0x38] sm:$0xff]  ;;  %v5908_v54 = vld [vmem:[%s17906_s8 + $0x20] sm:$0xff]  ;;  %s8095_s11 = sshll.u32 %s8091_s28, 4  ;;  %s8096_s11 = int_to_ptr.hbm [resolvable:$true] %s8095_s11 }
  0x1d   : > { %426 = vperm.xlu0 %8900, %v408_v3   ;;  %416 = vperm.xlu1 %8901, %v406_v4   ;;  %376 = vst [vmem:[#allocation1 + $0x30] ss:$2 sm:$0xff] %v365_v8  ;;  %v5904_v55 = vld [vmem:[%s17906_s8] sm:$0xff]  ;;  %v5905_v56 = vld [vmem:[%s17906_s8 + $0x8] sm:$0xff]  ;;  %v5907_v57 = vld [vmem:[%s17906_s8 + $0x18] sm:$0xff]  ;;  %s9708_s12 = sshra.s32 %s8096_s11, 4  ;;  %s9709_s12 = int_to_ptr.hbm [resolvable:$true] %s9708_s12 }
  0x1e   : > { %v653_v60 = vld [vmem:[%s17902_s4 + $0x30] sm:$0xff]  ;;  %v654_v1 = vld [vmem:[%s17902_s4 + $0x38] sm:$0xff]  ;;  %s9710_s18 = scalar_lea.hbm %s9709_s12, 64  ;;  %p9715_p0 = scmp.lt.s32.totalorder %s9709_s12, %s17908_s10 }
  0x1f   : > { %687 = vperm.xlu2 %8902, %v653_v60   ;;  %v649_v8 = vld [vmem:[%s17902_s4 + $0x10] sm:$0xff]  ;;  %p9711_p11 = scmp.ne.s32.totalorder %s9709_s12, %s9710_s18  ;;  %p9716_p1 = scmp.lt.s32.totalorder %s9714_s26, %s9710_s18 }
  0x21   : > { %v377_v11 = vld.sshfl [vmem:[#allocation1] sm:$0xff pattern:$0x75316420]  ;;  %v378_v12 = vld.sshfl [vmem:[#allocation1 + $0x8] sm:$0xff pattern:$0x75316420]  ;;  %p9712_p12 = pnand %p9711_p11, %p9852_p5  ;;  %p9717_p2 = por %p9716_p1, %p9715_p0 }
  0x22   : > { %v393_v13 = vpack.c.bf16 %v377_v11, %v377_v11  ;;  %v394_v14 = vpack.c.bf16 %v378_v12, %v378_v12  ;;  %v379_v15 = vld.sshfl [vmem:[#allocation1 + $0x10] sm:$0xff pattern:$0x75316420]  ;;  %v380_v16 = vld.sshfl [vmem:[#allocation1 + $0x18] sm:$0xff pattern:$0x75316420] }
  0x23   : > { %v395_v17 = vpack.c.bf16 %v379_v15, %v379_v15  ;;  %v396_v18 = vpack.c.bf16 %v380_v16, %v380_v16  ;;  %v381_v19 = vld.sshfl [vmem:[#allocation1 + $0x20] sm:$0xff pattern:$0x75316420]  ;;  %v382_v20 = vld.sshfl [vmem:[#allocation1 + $0x28] sm:$0xff pattern:$0x75316420]  ;;  %p9713_p13 = pneg %p9712_p12 }
  0x24   : > { %v448_v21 = vsel %vm446_vm0, %v393_v13, 0  ;;  %v451_v22 = vsel %vm446_vm0, %v394_v14, 0  ;;  %v397_v24 = vpack.c.bf16 %v381_v19, %v381_v19  ;;  %v398_v25 = vpack.c.bf16 %v382_v20, %v382_v20  ;;  %v383_v26 = vld.sshfl [vmem:[#allocation1 + $0x30] sm:$0xff pattern:$0x75316420] }
  0x25   : > { %677 = vperm.xlu0 %8900, %v651_v9   ;;  %682 = vperm.xlu1 %8901, %v652_v10   ;;  %v454_v27 = vsel %vm446_vm0, %v395_v17, 0  ;;  %v457_v28 = vsel %vm446_vm0, %v396_v18, 0  ;;  %v399_v29 = vpack.c.bf16 %v383_v26, %v383_v26  ;;  %v384_v30 = vld.sshfl [vmem:[#allocation1 + $0x38] sm:$0xff pattern:$0x75316420]  ;;  %p9718_p3 = pnand %p9717_p2, %p9713_p13 }
  0x26   : > { %478 = vmatpush.bf16.msra.mxu0 %v448_v21  ;;  %497 = vmatpush.bf16.msra.mxu1 %v451_v22  ;;  %v460_v31 = vsel %vm446_vm0, %v397_v24, 0  ;;  %v463_v32 = vsel %vm446_vm0, %v398_v25, 0  ;;  %v400_v33 = vpack.c.bf16 %v384_v30, %v384_v30  ;;  %v648_v25 = vld [vmem:[%s17902_s4 + $0x8] sm:$0xff] }
  0x27   : > { %516 = vmatpush.bf16.msra.mxu2 %v454_v27  ;;  %535 = vmatpush.bf16.msra.mxu3 %v457_v28  ;;  %v466_v34 = vsel %vm446_vm0, %v399_v29, 0 }
  0x28   : > { %v469_v35 = vsel %vm446_vm0, %v400_v33, 0  ;;  %692 = vperm.xlu2 %8902, %v654_v1  }
  0x29   : > { %8170 = vmatmul.msk.bf16.vlgmr.msra.gmra.mxu0 %vm439_vm1, %v8823_v23  ;;  %8172 = vmatmul.msk.bf16.vlgmr.msra.gmra.mxu1 %vm439_vm1, %v8823_v23 }
  0x2a   : > { %554 = vmatpush.bf16.msrb.mxu0 %v460_v31  ;;  %573 = vmatpush.bf16.msrb.mxu1 %v463_v32 }
  0x2b   : > { %8174 = vmatmul.msk.bf16.vlgmr.msra.gmra.mxu2 %vm439_vm1, %v8823_v23  ;;  %8176 = vmatmul.msk.bf16.vlgmr.msra.gmra.mxu3 %vm439_vm1, %v8823_v23 }
  0x2c   : > { %592 = vmatpush.bf16.msrb.mxu2 %v466_v34  ;;  %611 = vmatpush.bf16.msrb.mxu3 %v469_v35 }
  0x2d   : > { %672 = vperm.xlu0 %8900, %v650_v36   ;;  %657 = vperm.xlu1 %8901, %v647_v37   ;;  %v10044_v36 = vld [vmem:[%s17901_s3] sm:$0xff] }
  0x30   : > { %667 = vperm.xlu2 %8902, %v649_v8  }
  0x35   : > { %2370 = vperm.xlu0 %8900, %v8312_v38   ;;  %2375 = vperm.xlu1 %8901, %v8313_v39  }
  0x38   : > { %662 = vperm.xlu2 %8902, %v648_v25  }
  0x39   : > { %8171 = vmatmul.msk.bf16.gmra.mxu0 %vm439_vm1, %v8824_v40  ;;  %8173 = vmatmul.msk.bf16.gmra.mxu1 %vm439_vm1, %v8824_v40 }
  0x3b   : > { %8175 = vmatmul.msk.bf16.gmra.mxu2 %vm439_vm1, %v8824_v40  ;;  %8177 = vmatmul.msk.bf16.gmra.mxu3 %vm439_vm1, %v8824_v40 }
  0x3d   : > { %2365 = vperm.xlu0 %8900, %v8311_v41   ;;  %2350 = vperm.xlu1 %8901, %v8308_v42   ;;  %v8310_v41 = vld [vmem:[%s17902_s4 + $0x60] sm:$0xff] }
  0x40   : > { %2360 = vperm.xlu2 %8902, %v8310_v41  }
  0x45   : > { %2340 = vperm.xlu0 %8900, %v8306_v43   ;;  %2345 = vperm.xlu1 %8901, %v8307_v44  }
  0x49   : > { %8178 = vmatmul.msk.bf16.vlgmr.msrb.gmra.mxu0 %vm439_vm1, %v8823_v23  ;;  %8180 = vmatmul.msk.bf16.vlgmr.msrb.gmra.mxu1 %vm439_vm1, %v8823_v23 }
  0x4b   : > { %8182 = vmatmul.msk.bf16.vlgmr.msrb.gmra.mxu2 %vm439_vm1, %v8823_v23  ;;  %8184 = vmatmul.msk.bf16.vlgmr.msrb.gmra.mxu3 %vm439_vm1, %v8823_v23 }
  0x4d   : > { %4057 = vperm.xlu0 %8900, %v8441_v45   ;;  %4042 = vperm.xlu1 %8901, %v8438_v46  }
  0x55   : > { %4032 = vperm.xlu0 %8900, %v8436_v47   ;;  %4037 = vperm.xlu1 %8901, %v8437_v48  }
  0x59   : > { %8179 = vmatmul.msk.bf16.gmra.mxu0 %vm439_vm1, %v8824_v40  ;;  %8181 = vmatmul.msk.bf16.gmra.mxu1 %vm439_vm1, %v8824_v40 }
  0x5b   : > { %8183 = vmatmul.msk.bf16.gmra.mxu2 %vm439_vm1, %v8824_v40  ;;  %8185 = vmatmul.msk.bf16.gmra.mxu3 %vm439_vm1, %v8824_v40 }
  0x5d   : > { %4027 = vperm.xlu0 %8900, %v8435_v49   ;;  %5704 = vperm.xlu1 %8901, %v5690_v50   ;;  %v8309_v50 = vld [vmem:[%s17902_s4 + $0x58] sm:$0xff] }
  0x5e   : > { %2355 = vperm.xlu2 %8902, %v8309_v50  }
  0x65   : > { %5694 = vperm.xlu0 %8900, %v5688_v51   ;;  %5699 = vperm.xlu1 %8901, %v5689_v52  }
  0x6d   : > { %5949 = vperm.xlu0 %8900, %v5911_v53   ;;  %5934 = vperm.xlu1 %8901, %v5908_v54  }
  0x75   : > { %5914 = vperm.xlu0 %8900, %v5904_v55   ;;  %5919 = vperm.xlu1 %8901, %v5905_v56   ;;  %v10083_v55 = vld [vmem:[%s17901_s3 + $0x8] sm:$0xff]  ;;  %v8440_v56 = vld [vmem:[%s17902_s4 + $0xb0] sm:$0xff] }
  0x76   : > { %4052 = vperm.xlu2 %8902, %v8440_v56  }
  0x7d   : > { %5929 = vperm.xlu0 %8900, %v5907_v57  }
  0x87   : > { %v9983_v2 = vpop.permute.xlu0 %421  ;;  %v9985_v3 = vpop.permute.xlu1 %411 }
  0x8f   : > { %v9990_v9 = vpop.permute.xlu0 %426  ;;  %v10004_v18 = vpop.permute.xlu1 %416 }
  0xa6   : > { %v480_v58 = vpop.f32.mrf.mxu0  ;;  %v499_v59 = vpop.f32.mrf.mxu1 }
  0xa7   : > { %v10007_v19 = vadd.f32 %v480_v58, %v9985_v3  ;;  %v10010_v20 = vadd.f32 %v499_v59, %v9985_v3 }
  0xa9   : > { %18178 = vst [vmem:[#allocation9_spill] sm:$0xff] %v10007_v19 }
  0xaa   : > { %18179 = vst [vmem:[#allocation10_spill] sm:$0xff] %v10010_v20 }
  0xae   : > { %v518_v61 = vpop.f32.mrf.mxu2  ;;  %v537_v62 = vpop.f32.mrf.mxu3 }
  0xaf   : > { %v482_v63 = vpop.f32.mrf.mxu0  ;;  %v501_v0 = vpop.f32.mrf.mxu1  ;;  %v10060_v42 = vadd.f32 %v518_v61, %v9985_v3  ;;  %v10063_v43 = vadd.f32 %v537_v62, %v9985_v3 }
  0xb0   : > { %v10013_v21 = vadd.f32 %v482_v63, %v10004_v18  ;;  %v10016_v22 = vadd.f32 %v501_v0, %v10004_v18 }
  0xb1   : > { %18188 = vst [vmem:[#allocation19_spill] sm:$0xff] %v10060_v42 }
  0xb2   : > { %18180 = vst [vmem:[#allocation11_spill] sm:$0xff] %v10013_v21  ;;  %v631_v26 = vpack.c.bf16 %v10013_v21, %v10007_v19  ;;  %v632_v27 = vpack.c.bf16 %v10016_v22, %v10010_v20 }
  0xb3   : > { %18181 = vst [vmem:[#allocation12_spill] sm:$0xff] %v10016_v22 }
  0xb4   : > { %18189 = vst [vmem:[#allocation20_spill] sm:$0xff] %v10063_v43 }
  0xb6   : > { %v520_v4 = vpop.f32.mrf.mxu2  ;;  %v539_v5 = vpop.f32.mrf.mxu3 }
  0xb7   : > { %v485_v6 = vpop.f32.mrf.mxu0  ;;  %v504_v7 = vpop.f32.mrf.mxu1  ;;  %v10047_v37 = vadd.f32 %v520_v4, %v10004_v18  ;;  %v10050_v38 = vadd.f32 %v539_v5, %v10004_v18 }
  0xb8   : > { %v9993_v14 = vadd.f32 %v485_v6, %v9983_v2  ;;  %v9996_v15 = vadd.f32 %v504_v7, %v9983_v2  ;;  %v8439_v7 = vld [vmem:[%s17902_s4 + $0xa8] sm:$0xff] }
  0xb9   : > { %18186 = vst [vmem:[#allocation17_spill] sm:$0xff] %v10047_v37  ;;  %v633_v44 = vpack.c.bf16 %v10047_v37, %v10060_v42  ;;  %v634_v45 = vpack.c.bf16 %v10050_v38, %v10063_v43  ;;  %4047 = vperm.xlu2 %8902, %v8439_v7  }
  0xba   : > { %18174 = vst [vmem:[#allocation5_spill] sm:$0xff] %v9993_v14 }
  0xbb   : > { %18175 = vst [vmem:[#allocation6_spill] sm:$0xff] %v9996_v15 }
  0xbc   : > { %18187 = vst [vmem:[#allocation18_spill] sm:$0xff] %v10050_v38 }
  0xbe   : > { %v523_v10 = vpop.f32.mrf.mxu2  ;;  %v542_v11 = vpop.f32.mrf.mxu3 }
  0xbf   : > { %v487_v12 = vpop.f32.mrf.mxu0  ;;  %v506_v13 = vpop.f32.mrf.mxu1  ;;  %v10030_v30 = vadd.f32 %v523_v10, %v9983_v2  ;;  %v10033_v31 = vadd.f32 %v542_v11, %v9983_v2 }
  0xc0   : > { %v9999_v16 = vadd.f32 %v487_v12, %v9990_v9  ;;  %v10002_v17 = vadd.f32 %v506_v13, %v9990_v9 }
  0xc1   : > { %18182 = vst [vmem:[#allocation13_spill] sm:$0xff] %v10030_v30 }
  0xc2   : > { %18176 = vst [vmem:[#allocation7_spill] sm:$0xff] %v9999_v16  ;;  %v639_v23 = vpack.c.bf16 %v9999_v16, %v9993_v14  ;;  %v640_v24 = vpack.c.bf16 %v10002_v17, %v9996_v15 }
  0xc3   : > { %18177 = vst [vmem:[#allocation8_spill] sm:$0xff] %v10002_v17 }
  0xc4   : > { %734 = vmatpush.bf16.msra.mxu0 %v639_v23  ;;  %763 = vmatpush.bf16.msra.mxu1 %v640_v24  ;;  %18183 = vst [vmem:[#allocation14_spill] sm:$0xff] %v10033_v31 }
  0xc6   : > { %v525_v28 = vpop.f32.mrf.mxu2  ;;  %v544_v29 = vpop.f32.mrf.mxu3 }
  0xc7   : > { %v10036_v32 = vadd.f32 %v525_v28, %v9990_v9  ;;  %v10039_v33 = vadd.f32 %v544_v29, %v9990_v9  ;;  %v556_v34 = vpop.f32.mrf.mxu0  ;;  %v575_v35 = vpop.f32.mrf.mxu1  ;;  %v8827_v28 = vld [vmem:[%s17901_s3 + $0x10] sm:$0xff] }
  0xc8   : > { %735 = vmatpush.bf16.msra.mxu0 %v631_v26  ;;  %764 = vmatpush.bf16.msra.mxu1 %v632_v27  ;;  %v10122_v8 = vadd.f32 %v556_v34, %v9985_v3  ;;  %v10125_v10 = vadd.f32 %v575_v35, %v9985_v3 }
  0xc9   : > { %18184 = vst [vmem:[#allocation15_spill] sm:$0xff] %v10036_v32  ;;  %v641_v39 = vpack.c.bf16 %v10036_v32, %v10030_v30  ;;  %v642_v40 = vpack.c.bf16 %v10039_v33, %v10033_v31 }
  0xca   : > { %18185 = vst [vmem:[#allocation16_spill] sm:$0xff] %v10039_v33 }
  0xcb   : > { %792 = vmatpush.bf16.msra.mxu2 %v641_v39  ;;  %821 = vmatpush.bf16.msra.mxu3 %v642_v40  ;;  %18196 = vst [vmem:[#allocation27_spill] sm:$0xff] %v10122_v8 }
  0xcc   : > { %8202 = vmatmul.msk.bf16.vlgmr.msra.gmra.mxu0 %vm18089_vm2, %v10044_v36  ;;  %8206 = vmatmul.msk.bf16.vlgmr.msra.gmra.mxu1 %vm18089_vm2, %v10044_v36  ;;  %18197 = vst [vmem:[#allocation28_spill] sm:$0xff] %v10125_v10 }
  0xce   : > { %v594_v46 = vpop.f32.mrf.mxu2  ;;  %v613_v47 = vpop.f32.mrf.mxu3 }
  0xcf   : > { %793 = vmatpush.bf16.msra.mxu2 %v633_v44  ;;  %822 = vmatpush.bf16.msra.mxu3 %v634_v45  ;;  %v558_v48 = vpop.f32.mrf.mxu0  ;;  %v577_v49 = vpop.f32.mrf.mxu1  ;;  %v10160_v39 = vadd.f32 %v594_v46, %v9985_v3  ;;  %v10163_v40 = vadd.f32 %v613_v47, %v9985_v3  ;;  %v5691_v3 = vld [vmem:[%s17904_s6 + $0x18] sm:$0xff]  ;;  %v5910_v45 = vld [vmem:[%s17906_s8 + $0x30] sm:$0xff]  ;;  %v5909_v46 = vld [vmem:[%s17906_s8 + $0x28] sm:$0xff] }
  0xd0   : > { %v10105_v1 = vadd.f32 %v558_v48, %v10004_v18  ;;  %v10108_v4 = vadd.f32 %v577_v49, %v10004_v18  ;;  %v8828_v44 = vld [vmem:[%s17901_s3 + $0x18] sm:$0xff]  ;;  %v5906_v47 = vld [vmem:[%s17906_s8 + $0x10] sm:$0xff] }
  0xd1   : > { %18204 = vst [vmem:[#allocation35_spill] sm:$0xff] %v10160_v39 }
  0xd2   : > { %8210 = vmatmul.msk.bf16.vlgmr.msra.gmra.mxu2 %vm18089_vm2, %v10044_v36  ;;  %8214 = vmatmul.msk.bf16.vlgmr.msra.gmra.mxu3 %vm18089_vm2, %v10044_v36  ;;  %18194 = vst [vmem:[#allocation25_spill] sm:$0xff] %v10105_v1  ;;  %v635_v11 = vpack.c.bf16 %v10105_v1, %v10122_v8  ;;  %v636_v12 = vpack.c.bf16 %v10108_v4, %v10125_v10 }
  0xd3   : > { %18195 = vst [vmem:[#allocation26_spill] sm:$0xff] %v10108_v4 }
  0xd4   : > { %18205 = vst [vmem:[#allocation36_spill] sm:$0xff] %v10163_v40 }
  0xd6   : > { %v596_v51 = vpop.f32.mrf.mxu2  ;;  %v615_v52 = vpop.f32.mrf.mxu3 }
  0xd7   : > { %v561_v53 = vpop.f32.mrf.mxu0  ;;  %v580_v54 = vpop.f32.mrf.mxu1  ;;  %v10147_v29 = vadd.f32 %v596_v51, %v10004_v18  ;;  %v10150_v34 = vadd.f32 %v615_v52, %v10004_v18 }
  0xd8   : > { %v10093_v61 = vadd.f32 %v561_v53, %v9983_v2  ;;  %v10096_v62 = vadd.f32 %v580_v54, %v9983_v2 }
  0xd9   : > { %18202 = vst [vmem:[#allocation33_spill] sm:$0xff] %v10147_v29  ;;  %v637_v18 = vpack.c.bf16 %v10147_v29, %v10160_v39  ;;  %v638_v41 = vpack.c.bf16 %v10150_v34, %v10163_v40 }
  0xda   : > { %18190 = vst [vmem:[#allocation21_spill] sm:$0xff] %v10093_v61 }
  0xdb   : > { %18191 = vst [vmem:[#allocation22_spill] sm:$0xff] %v10096_v62 }
  0xdc   : > { %8203 = vmatmul.msk.bf16.gmra.mxu0 %vm18089_vm2, %v10083_v55  ;;  %8207 = vmatmul.msk.bf16.gmra.mxu1 %vm18089_vm2, %v10083_v55  ;;  %18203 = vst [vmem:[#allocation34_spill] sm:$0xff] %v10150_v34 }
  0xde   : > { %v599_v57 = vpop.f32.mrf.mxu2  ;;  %v618_v58 = vpop.f32.mrf.mxu3 }
  0xdf   : > { %v563_v59 = vpop.f32.mrf.mxu0  ;;  %v582_v60 = vpop.f32.mrf.mxu1  ;;  %v10132_v24 = vadd.f32 %v599_v57, %v9983_v2  ;;  %v10135_v25 = vadd.f32 %v618_v58, %v9983_v2 }
  0xe0   : > { %v10099_v63 = vadd.f32 %v563_v59, %v9990_v9  ;;  %v10102_v0 = vadd.f32 %v582_v60, %v9990_v9 }
  0xe1   : > { %18198 = vst [vmem:[#allocation29_spill] sm:$0xff] %v10132_v24 }
  0xe2   : > { %18192 = vst [vmem:[#allocation23_spill] sm:$0xff] %v10099_v63  ;;  %v643_v5 = vpack.c.bf16 %v10099_v63, %v10093_v61  ;;  %v644_v6 = vpack.c.bf16 %v10102_v0, %v10096_v62  ;;  %8211 = vmatmul.msk.bf16.gmra.mxu2 %vm18089_vm2, %v10083_v55  ;;  %8215 = vmatmul.msk.bf16.gmra.mxu3 %vm18089_vm2, %v10083_v55 }
  0xe3   : > { %18193 = vst [vmem:[#allocation24_spill] sm:$0xff] %v10102_v0 }
  0xe4   : > { %850 = vmatpush.bf16.msrb.mxu0 %v643_v5  ;;  %879 = vmatpush.bf16.msrb.mxu1 %v644_v6  ;;  %18199 = vst [vmem:[#allocation30_spill] sm:$0xff] %v10135_v25 }
  0xe6   : > { %v601_v13 = vpop.f32.mrf.mxu2  ;;  %v620_v23 = vpop.f32.mrf.mxu3 }
  0xe7   : > { %v10138_v26 = vadd.f32 %v601_v13, %v9990_v9  ;;  %v10141_v27 = vadd.f32 %v620_v23, %v9990_v9  ;;  %v8434_v9 = vld [vmem:[%s17902_s4 + $0x80] sm:$0xff] }
  0xe8   : > { %851 = vmatpush.bf16.msrb.mxu0 %v635_v11  ;;  %880 = vmatpush.bf16.msrb.mxu1 %v636_v12 }
  0xe9   : > { %18200 = vst [vmem:[#allocation31_spill] sm:$0xff] %v10138_v26  ;;  %v645_v2 = vpack.c.bf16 %v10138_v26, %v10132_v24  ;;  %v646_v35 = vpack.c.bf16 %v10141_v27, %v10135_v25  ;;  %4022 = vperm.xlu2 %8902, %v8434_v9   ;;  %v10258_v25 = vpop.permute.xlu1 %682 }
  0xea   : > { %18201 = vst [vmem:[#allocation32_spill] sm:$0xff] %v10141_v27 }
  0xeb   : > { %908 = vmatpush.bf16.msrb.mxu2 %v645_v2  ;;  %937 = vmatpush.bf16.msrb.mxu3 %v646_v35  ;;  %v10248_v2 = vpop.permute.xlu2 %687 }
  0xec   : > { %8204 = vmatmul.msk.bf16.gmra.mxu0 %vm18089_vm2, %v8827_v28  ;;  %8208 = vmatmul.msk.bf16.gmra.mxu1 %vm18089_vm2, %v8827_v28 }
  0xef   : > { %909 = vmatpush.bf16.msrb.mxu2 %v637_v18  ;;  %938 = vmatpush.bf16.msrb.mxu3 %v638_v41 }
  0xf1   : > { %5709 = vperm.xlu2 %8902, %v5691_v3  }
  0xf2   : > { %8212 = vmatmul.msk.bf16.gmra.mxu2 %vm18089_vm2, %v8827_v28  ;;  %8216 = vmatmul.msk.bf16.gmra.mxu3 %vm18089_vm2, %v8827_v28 }
  0xf9   : > { %5944 = vperm.xlu2 %8902, %v5910_v45   ;;  %v10251_v45 = vpop.permute.xlu0 %677 }
  0xfc   : > { %8205 = vmatmul.msk.bf16.gmra.mxu0 %vm18089_vm2, %v8828_v44  ;;  %8209 = vmatmul.msk.bf16.gmra.mxu1 %vm18089_vm2, %v8828_v44 }
 0x101   : > { %5939 = vperm.xlu2 %8902, %v5909_v46  }
 0x102   : > { %8213 = vmatmul.msk.bf16.gmra.mxu2 %vm18089_vm2, %v8828_v44  ;;  %8217 = vmatmul.msk.bf16.gmra.mxu3 %vm18089_vm2, %v8828_v44 }
 0x109   : > { %5924 = vperm.xlu2 %8902, %v5906_v47   ;;  %v10254_v47 = vpop.permute.xlu2 %692 }
 0x10a   : > { %18206 = vst [vmem:[#allocation37_spill] sm:$0xff] %v10254_v47 }
 0x10c   : > { %8218 = vmatmul.msk.bf16.vlgmr.msrb.gmra.mxu0 %vm18089_vm2, %v10044_v36  ;;  %8222 = vmatmul.msk.bf16.vlgmr.msrb.gmra.mxu1 %vm18089_vm2, %v10044_v36 }
 0x112   : > { %8226 = vmatmul.msk.bf16.vlgmr.msrb.gmra.mxu2 %vm18089_vm2, %v10044_v36  ;;  %8230 = vmatmul.msk.bf16.vlgmr.msrb.gmra.mxu3 %vm18089_vm2, %v10044_v36 }
 0x11c   : > { %8219 = vmatmul.msk.bf16.gmra.mxu0 %vm18089_vm2, %v10083_v55  ;;  %8223 = vmatmul.msk.bf16.gmra.mxu1 %vm18089_vm2, %v10083_v55 }
 0x122   : > { %8227 = vmatmul.msk.bf16.gmra.mxu2 %vm18089_vm2, %v10083_v55  ;;  %8231 = vmatmul.msk.bf16.gmra.mxu3 %vm18089_vm2, %v10083_v55 }
 0x12c   : > { %8220 = vmatmul.msk.bf16.gmra.mxu0 %vm18089_vm2, %v8827_v28  ;;  %8224 = vmatmul.msk.bf16.gmra.mxu1 %vm18089_vm2, %v8827_v28 }
 0x132   : > { %8228 = vmatmul.msk.bf16.gmra.mxu2 %vm18089_vm2, %v8827_v28  ;;  %8232 = vmatmul.msk.bf16.gmra.mxu3 %vm18089_vm2, %v8827_v28 }
 0x13c   : > { %8221 = vmatmul.msk.bf16.gmra.mxu0 %vm18089_vm2, %v8828_v44  ;;  %8225 = vmatmul.msk.bf16.gmra.mxu1 %vm18089_vm2, %v8828_v44 }
 0x142   : > { %8229 = vmatmul.msk.bf16.gmra.mxu2 %vm18089_vm2, %v8828_v44  ;;  %8233 = vmatmul.msk.bf16.gmra.mxu3 %vm18089_vm2, %v8828_v44 }
 0x149   : > { %v10216_v36 = vpop.f32.mrf.mxu0  ;;  %v10218_v48 = vpop.f32.mrf.mxu1 }
 0x151   : > { %v10220_v49 = vpop.f32.mrf.mxu0  ;;  %v10222_v50 = vpop.f32.mrf.mxu1 }
 0x155   : > { %v10224_v51 = vpop.f32.mrf.mxu2  ;;  %v10226_v52 = vpop.f32.mrf.mxu3 }
 0x159   : > { %v10228_v53 = vpop.f32.mrf.mxu0  ;;  %v10230_v54 = vpop.f32.mrf.mxu1 }
 0x15d   : > { %v10232_v55 = vpop.f32.mrf.mxu2  ;;  %v10234_v56 = vpop.f32.mrf.mxu3 }
 0x161   : > { %v10236_v57 = vpop.f32.mrf.mxu0  ;;  %v10238_v58 = vpop.f32.mrf.mxu1 }
 0x165   : > { %v10240_v59 = vpop.f32.mrf.mxu2  ;;  %v10242_v60 = vpop.f32.mrf.mxu3 }
 0x169   : > { %v747_v5 = vpop.f32.mrf.mxu0  ;;  %v776_v6 = vpop.f32.mrf.mxu1 }
 0x16a   : > { %v748_v46 = vadd.f32 %v747_v5, %v10251_v45  ;;  %v777_v34 = vadd.f32 %v776_v6, %v10251_v45 }
 0x16c   : > { %v8234_v27 = vmul.f32 -1.442695, %v748_v46  ;;  %v8235_v26 = vmul.f32 -1.442695, %v777_v34 }
 0x16d   : > { %v10244_v7 = vpop.f32.mrf.mxu2  ;;  %v10246_v11 = vpop.f32.mrf.mxu3 }
 0x171   : > { %v749_v12 = vpop.f32.mrf.mxu0  ;;  %v778_v13 = vpop.f32.mrf.mxu1 }
 0x172   : > { %v750_v0 = vadd.f32 %v749_v12, %v10258_v25 }
 0x175   : > { %v805_v23 = vpop.f32.mrf.mxu2  ;;  %v834_v28 = vpop.f32.mrf.mxu3 }
 0x176   : > { %v806_v34 = vadd.f32 %v805_v23, %v10251_v45 }
 0x179   : > { %v752_v35 = vpop.f32.mrf.mxu0  ;;  %v781_v9 = vpop.f32.mrf.mxu1 }
 0x17a   : > { %v753_v18 = vadd.f32 %v752_v35, %v10248_v2  ;;  %v782_v5 = vadd.f32 %v781_v9, %v10248_v2 }
 0x17c   : > { %v8250_v41 = vmul.f32 -1.442695, %v753_v18  ;;  %v8251_v4 = vmul.f32 -1.442695, %v782_v5 }
 0x17d   : > { %v807_v3 = vpop.f32.mrf.mxu2  ;;  %v836_v44 = vpop.f32.mrf.mxu3 }
 0x17e   : > { %8903 = vpow2.f32 %v8250_v41  ;;  %v779_v41 = vadd.f32 %v778_v13, %v10258_v25 }
 0x17f   : > { %8905 = vpow2.f32 %v8234_v27 }
 0x180   : > { %v8243_v63 = vmul.f32 -1.442695, %v779_v41 }
 0x181   : > { %v754_v40 = vpop.f32.mrf.mxu0  ;;  %v783_v29 = vpop.f32.mrf.mxu1 }
 0x182   : > { %v755_v39 = vadd.f32 %v754_v40, %v10254_v47  ;;  %v784_v5 = vadd.f32 %v783_v29, %v10254_v47 }
 0x184   : > { %v8258_v35 = vmul.f32 -1.442695, %v755_v39  ;;  %v8904_v18 = vpop.eup %8903  ;;  %v8242_v39 = vmul.f32 -1.442695, %v750_v0  ;;  %v8259_v29 = vmul.f32 -1.442695, %v784_v5 }
 0x185   : > { %v810_v24 = vpop.f32.mrf.mxu2  ;;  %v839_v10 = vpop.f32.mrf.mxu3  ;;  %v10263_v6 = vadd.f32 1.0, %v8904_v18 }
 0x186   : > { %8907 = vpow2.f32 %v8258_v35  ;;  %v8906_v27 = vpop.eup %8905  ;;  %v10273_v18 = vpop.permute.xlu2 %667  ;;  %v835_v35 = vadd.f32 %v834_v28, %v10251_v45 }
 0x187   : > { %8909 = vpow2.f32 %v8235_v26  ;;  %v8236_v26 = vmul.f32 -1.442695, %v806_v34  ;;  %v10278_v0 = vadd.f32 1.0, %v8906_v27  ;;  %vm1333_vm3 = vweird.f32 %v10263_v6 }
 0x188   : > { %8911 = vrcp.f32 %v10263_v6  ;;  %v8237_v34 = vmul.f32 -1.442695, %v835_v35  ;;  %v837_v35 = vadd.f32 %v836_v44, %v10258_v25  ;;  %v1337_v20 = vand.u32 2147483647, %v10263_v6 }
 0x189   : > { %v10265_v40 = vpop.f32.mrf.mxu0  ;;  %v10267_v46 = vpop.f32.mrf.mxu1  ;;  %8913 = vpow2.f32 %v8242_v39 }
 0x18a   : > { %8915 = vpow2.f32 %v8251_v4  ;;  %vm10429_vm6 = vcmp.eq.f32.partialorder %v1337_v20, 8.507059e+37 }
 0x18b   : > { %8917 = vpow2.f32 %v8243_v63 }
 0x18c   : > { %v8908_v12 = vpop.eup %8907  ;;  %8919 = vpow2.f32 %v8236_v26 }
 0x18d   : > { %v10271_v9 = vpop.f32.mrf.mxu2  ;;  %v8910_v13 = vpop.eup %8909  ;;  %v10280_v23 = vadd.f32 1.0, %v8908_v12  ;;  %8921 = vrcp.f32 %v10278_v0  ;;  %v808_v12 = vadd.f32 %v807_v3, %v10258_v25 }
 0x18e   : > { %v10276_v62 = vpop.f32.mrf.mxu3  ;;  %v10283_v41 = vpop.eup %8911  ;;  %v10285_v39 = vadd.f32 1.0, %v8910_v13 }
 0x18f   : > { %v8914_v4 = vpop.eup %8913  ;;  %v1329_v63 = vmul.f32 %v10283_v41, %v10263_v6  ;;  %8923 = vrcp.f32 %v10280_v23  ;;  %v10297_v13 = vpop.permute.xlu1 %657  ;;  %v8244_v33 = vmul.f32 -1.442695, %v808_v12  ;;  %vm1334_vm4 = vweird.f32 %v10283_v41 }
 0x190   : > { %18207 = vst [vmem:[#allocation38_spill] sm:$0xff] %v10285_v39  ;;  %v8916_v28 = vpop.eup %8915  ;;  %8925 = vrcp.f32 %v10285_v39  ;;  %v10299_v26 = vadd.f32 1.0, %v8914_v4  ;;  %v10304_v8 = vadd.f32 %v10216_v36, %v10297_v13  ;;  %v10310_v37 = vpop.permute.xlu2 %662  ;;  %v811_v4 = vadd.f32 %v810_v24, %v10248_v2  ;;  %vm10396_vm5 = vmor %vm1333_vm3, %vm1334_vm4 }
 0x191   : > { %v10287_v61 = vpop.f32.mrf.mxu0  ;;  %v10289_v1 = vpop.f32.mrf.mxu1  ;;  %18208 = vst [vmem:[#allocation39_spill] sm:$0xff] %v10297_v13  ;;  %8927 = vpow2.f32 %v8237_v34  ;;  %v10306_v38 = vadd.f32 1.0, %v8916_v28  ;;  %v1330_v3 = vsub.f32 1.0, %v1329_v63  ;;  %v10321_v36 = vadd.f32 %v10218_v48, %v10297_v13 }
 0x192   : > { %v8918_v27 = vpop.eup %8917  ;;  %18209 = vst [vmem:[#allocation40_spill] sm:$0xff] %v10299_v26  ;;  %8929 = vpow2.f32 %v8259_v29  ;;  %v10325_v28 = vadd.f32 %v10220_v49, %v10310_v37  ;;  %v10332_v24 = vadd.f32 %v10222_v50, %v10310_v37  ;;  %v10336_v63 = vadd.f32 %v10224_v51, %v10297_v13 }
 0x193   : > { %18210 = vst [vmem:[#allocation41_spill] sm:$0xff] %v10304_v8  ;;  %v8920_v5 = vpop.eup %8919  ;;  %v10312_v42 = vadd.f32 1.0, %v8918_v27  ;;  %v840_v27 = vadd.f32 %v839_v10, %v10248_v2  ;;  %8931 = vrcp.f32 %v10299_v26  ;;  %v8245_v48 = vmul.f32 -1.442695, %v837_v35 }
 0x194   : > { %18211 = vst [vmem:[#allocation42_spill] sm:$0xff] %v10310_v37  ;;  %v10317_v44 = vpop.eup %8921  ;;  %v10343_v49 = vadd.f32 %v10226_v52, %v10297_v13  ;;  %v10347_v10 = vadd.f32 %v10228_v53, %v10273_v18  ;;  %v10349_v12 = vadd.f32 1.0, %v8920_v5  ;;  %8933 = vrcp.f32 %v10306_v38 }
 0x195   : > { %v10308_v43 = vpop.f32.mrf.mxu2  ;;  %18212 = vst [vmem:[#allocation43_spill] sm:$0xff] %v10312_v42  ;;  %v10328_v31 = vpop.eup %8923  ;;  %v10356_v35 = vadd.f32 %v10230_v54, %v10273_v18  ;;  %8935 = vrcp.f32 %v10312_v42  ;;  %v1331_v52 = vmul.f32 %v10283_v41, %v1330_v3  ;;  %v1089_v53 = vmul.f32 %v10317_v44, %v10278_v0 }
 0x196   : > { %v10315_v34 = vpop.f32.mrf.mxu3  ;;  %18214 = vst [vmem:[#allocation45_spill] sm:$0xff] %v10321_v36  ;;  %v10339_v29 = vpop.eup %8925  ;;  %8937 = vpow2.f32 %v8244_v33  ;;  %v1449_v5 = vmul.f32 %v10328_v31, %v10280_v23  ;;  %v8253_v32 = vmul.f32 -1.442695, %v840_v27  ;;  %v10372_v3 = vadd.f32 %v10232_v55, %v10310_v37 }
 0x197   : > { %18213 = vst [vmem:[#allocation44_spill] sm:$0xff] %v10315_v34  ;;  %v8928_v51 = vpop.eup %8927  ;;  %v8252_v34 = vmul.f32 -1.442695, %v811_v4  ;;  %v1104_v54 = vmul.f32 %v10339_v29, %v10285_v39  ;;  %8939 = vpow2.f32 %v8245_v48  ;;  %v1339_v4 = vand.u32 2147483648, %v10263_v6 }
 0x198   : > { %18215 = vst [vmem:[#allocation46_spill] sm:$0xff] %v10325_v28  ;;  %v8930_v30 = vpop.eup %8929  ;;  %8941 = vrcp.f32 %v10349_v12  ;;  %v10375_v33 = vadd.f32 1.0, %v8928_v51  ;;  %v10384_v22 = vadd.f32 %v10234_v56, %v10310_v37  ;;  %v1332_v48 = vadd.f32 %v10283_v41, %v1331_v52 }
 0x199   : > { %18216 = vst [vmem:[#allocation47_spill] sm:$0xff] %v10332_v24  ;;  %v10352_v50 = vpop.f32.mrf.mxu0  ;;  %v10378_v27 = vpop.eup %8931  ;;  %8943 = vpow2.f32 %v8252_v34  ;;  %v1450_v21 = vsub.f32 1.0, %v1449_v5  ;;  %v10400_v56 = vadd.f32 1.0, %v8930_v30  ;;  %v1090_v6 = vsub.f32 1.0, %v1089_v53 }
 0x19a   : > { %18217 = vst [vmem:[#allocation48_spill] sm:$0xff] %v10336_v63  ;;  %v10380_v63 = vpop.permute.xlu0 %672  ;;  %v10388_v55 = vpop.eup %8933  ;;  %8945 = vpow2.f32 %v8253_v32  ;;  %v1105_v19 = vsub.f32 1.0, %v1104_v54  ;;  %v10418_v30 = vadd.f32 %v10242_v60, %v10273_v18  ;;  %v10422_v32 = vmul.f32 %v10378_v27, %v10299_v26 }
 0x19b   : > { %18218 = vst [vmem:[#allocation49_spill] sm:$0xff] %v10339_v29  ;;  %v10392_v51 = vadd.f32 %v10236_v57, %v10380_v63  ;;  %v10408_v34 = vadd.f32 %v10238_v58, %v10380_v63  ;;  %v10412_v57 = vadd.f32 %v10240_v59, %v10273_v18  ;;  %8947 = vrcp.f32 %v10375_v33 }
 0x19c   : > { %18219 = vst [vmem:[#allocation50_spill] sm:$0xff] %v10343_v49  ;;  %v10360_v49 = vpop.f32.mrf.mxu1  ;;  %v1340_v58 = vor.u32 1.1754944e-38, %v1339_v4  ;;  %v10427_v59 = vadd.f32 %v10244_v7, %v10380_v63  ;;  %v1344_v60 = vmul.f32 %v10388_v55, %v10306_v38  ;;  %v1336_v54 = vsel %vm10396_vm5, %v10283_v41, %v1332_v48 }
 0x19d   : > { %18220 = vst [vmem:[#allocation51_spill] sm:$0xff] %v10372_v3  ;;  %v10402_v52 = vpop.f32.mrf.mxu2  ;;  %v1451_v20 = vmul.f32 %v10328_v31, %v1450_v21  ;;  %8949 = vrcp.f32 %v10400_v56  ;;  %v10453_v41 = vmul.f32 %v10339_v29, %v1105_v19  ;;  %v1210_v21 = vsub.f32 1.0, %v10422_v32 }
 0x19e   : > { %18221 = vst [vmem:[#allocation52_spill] sm:$0xff] %v10375_v33  ;;  %v10414_v17 = vpop.f32.mrf.mxu3  ;;  %v813_v24 = vadd.f32 %v10271_v9, %v10254_v47  ;;  %v1345_v3 = vsub.f32 1.0, %v1344_v60  ;;  %v842_v36 = vadd.f32 %v10276_v62, %v10254_v47  ;;  %vm1348_vm7 = vweird.f32 %v10306_v38 }
 0x19f   : > { %18222 = vst [vmem:[#allocation53_spill] sm:$0xff] %v10384_v22  ;;  %v10404_v22 = vpop.eup %8935  ;;  %vm1454_vm8 = vweird.f32 %v10328_v31  ;;  %v1452_v9 = vadd.f32 %v10328_v31, %v1451_v20  ;;  %v1459_v32 = vand.u32 2147483648, %v10280_v23  ;;  %vm1453_vm9 = vweird.f32 %v10280_v23 }
 0x1a0   : > { %18225 = vst [vmem:[#allocation54_spill] sm:$0xff] %v10412_v57  ;;  %v8938_v5 = vpop.eup %8937  ;;  %v10450_v57 = vmul.f32 %v10317_v44, %v1090_v6  ;;  %v1341_v6 = vsel %vm10429_vm6, %v1340_v58, %v1336_v54  ;;  %v1224_v19 = vmul.f32 %v10404_v22, %v10312_v42  ;;  %v8260_v60 = vmul.f32 -1.442695, %v813_v24  ;;  %vm10499_vm10 = vmor %vm1453_vm9, %vm1454_vm8 }
 0x1a1   : > { %18226 = vst [vmem:[#allocation55_spill] sm:$0xff] %v10414_v17  ;;  %v8940_v15 = vpop.eup %8939  ;;  %v10447_v7 = vpop.f32.mrf.mxu0  ;;  %v10456_v48 = vadd.f32 1.0, %v8938_v5  ;;  %v10485_v53 = vmul.f32 %v1341_v6, %v10347_v10  ;;  %v8261_v6 = vmul.f32 -1.442695, %v842_v36  ;;  %vm1349_vm11 = vweird.f32 %v10388_v55 }
 0x1a2   : > { %18227 = vst [vmem:[#allocation56_spill] sm:$0xff] %v10418_v30  ;;  %v10438_v17 = vpop.eup %8941  ;;  %v10443_v30 = vadd.f32 %v10246_v11, %v10380_v63  ;;  %v1225_v20 = vsub.f32 1.0, %v1224_v19  ;;  %v1456_v24 = vsel %vm10499_vm10, %v10328_v31, %v1452_v9  ;;  %v1354_v8 = vand.u32 2147483648, %v10306_v38  ;;  %vm10533_vm13 = vmor %vm1348_vm7, %vm1349_vm11 }
 0x1a3   : > { %18228 = vst [vmem:[#allocation57_spill] sm:$0xff] %v10427_v59  ;;  %v8944_v59 = vpop.eup %8943  ;;  %v1119_v5 = vmul.f32 %v10438_v17, %v10349_v12  ;;  %8951 = vrcp.f32 %v10456_v48  ;;  %v1616_v36 = vand.u32 2147483647, %v10485_v53  ;;  %v10522_v26 = vmul.f32 %v10378_v27, %v1210_v21 }
 0x1a4   : > { %18231 = vst [vmem:[#allocation58_spill] sm:$0xff] %v10443_v30  ;;  %v10458_v4 = vpop.f32.mrf.mxu1  ;;  %v8946_v11 = vpop.eup %8945  ;;  %v10461_v30 = vadd.f32 1.0, %v8940_v15  ;;  %v10477_v15 = vadd.f32 1.0, %v8944_v59  ;;  %v1457_v59 = vand.u32 2147483647, %v10280_v23  ;;  %vm1468_vm15 = vweird.f32 %v10400_v56 }
 0x1a5   : > { %18232 = vst [vmem:[#allocation59_spill] sm:$0xff] %v10453_v41  ;;  %v10473_v28 = vpop.eup %8947  ;;  %v10482_v58 = vadd.f32 1.0, %v8946_v11  ;;  %v10492_v54 = vpop.f32.mrf.mxu2  ;;  %v1346_v11 = vmul.f32 %v10388_v55, %v1345_v3  ;;  %v1352_v23 = vand.u32 2147483647, %v10306_v38  ;;  %v1460_v3 = vor.u32 1.1754944e-38, %v1459_v32 }
 0x1a6   : > { %18233 = vst [vmem:[#allocation60_spill] sm:$0xff] %v10456_v48  ;;  %v10487_v62 = vpop.eup %8949  ;;  %8953 = vrcp.f32 %v10461_v30  ;;  %v1134_v42 = vmul.f32 %v10473_v28, %v10375_v33  ;;  %v10503_v29 = vpop.f32.mrf.mxu3  ;;  %v1120_v41 = vsub.f32 1.0, %v1119_v5  ;;  %vm1458_vm12 = vcmp.eq.f32.partialorder %v1457_v59, 8.507059e+37 }
 0x1a7   : > { %18234 = vst [vmem:[#allocation61_spill] sm:$0xff] %v10461_v30  ;;  %8955 = vrcp.f32 %v10477_v15  ;;  %v1464_v19 = vmul.f32 %v10487_v62, %v10400_v56  ;;  %v1347_v10 = vadd.f32 %v10388_v55, %v1346_v11  ;;  %v1461_v9 = vsel %vm1458_vm12, %v1460_v3, %v1456_v24 }
 0x1a8   : > { %18235 = vst [vmem:[#allocation62_spill] sm:$0xff] %v10473_v28  ;;  %8957 = vrcp.f32 %v10482_v58  ;;  %v1135_v39 = vsub.f32 1.0, %v1134_v42  ;;  %v10525_v5 = vmul.f32 %v10404_v22, %v1225_v20  ;;  %vm10537_vm14 = vcmp.eq.f32.partialorder %v1352_v23, 8.507059e+37 }
 0x1a9   : > { %8959 = vpow2.f32 %v8260_v60  ;;  %v863_v16 = vpop.f32.mrf.mxu0  ;;  %v10516_v14 = vpop.eup %8951  ;;  %v1465_v21 = vsub.f32 1.0, %v1464_v19  ;;  %v10545_v3 = vmul.f32 %v10438_v17, %v1120_v41  ;;  %v1355_v59 = vor.u32 1.1754944e-38, %v1354_v8 }
 0x1aa   : > { %18238 = vst [vmem:[#allocation63_spill] sm:$0xff] %v10516_v14  ;;  %8961 = vpow2.f32 %v8261_v6  ;;  %v864_v20 = vadd.f32 %v863_v16, %v10251_v45  ;;  %v8282_v6 = vmul.f32 -1.442695, %v1616_v36  ;;  %v10549_v60 = vmul.f32 %v1461_v9, %v10392_v51 }
 0x1ab   : > { %v10554_v23 = vmul.f32 %v10473_v28, %v1135_v39  ;;  %v1239_v16 = vmul.f32 %v10516_v14, %v10456_v48  ;;  %v1351_v8 = vsel %vm10533_vm13, %v10388_v55, %v1347_v10  ;;  %v10565_v51 = vadd.f32 %v10265_v40, %v10297_v13 }
 0x1ac   : > { %v892_v31 = vpop.f32.mrf.mxu1  ;;  %v10519_v32 = vpop.eup %8953  ;;  %v10569_v36 = vadd.f32 %v10267_v46, %v10297_v13  ;;  %v10573_v39 = vadd.f32 %v10287_v61, %v10310_v37  ;;  %v1466_v10 = vmul.f32 %v10487_v62, %v1465_v21  ;;  %v8238_v40 = vmul.f32 -1.442695, %v864_v20 }
 0x1ad   : > { %18239 = vst [vmem:[#allocation64_spill] sm:$0xff] %v10519_v32  ;;  %v10542_v24 = vpop.eup %8955  ;;  %v893_v38 = vadd.f32 %v892_v31, %v10251_v45  ;;  %v1254_v19 = vmul.f32 %v10519_v32, %v10461_v30  ;;  %v10577_v31 = vadd.f32 %v10289_v1, %v10310_v37  ;;  %v10579_v9 = vpop.f32.mrf.mxu2  ;;  %8963 = vpow2.f32 %v8282_v6 }
 0x1ae   : > { %v10551_v33 = vpop.eup %8957  ;;  %18244 = vst [vmem:[#allocation65_spill] sm:$0xff] %v10554_v23  ;;  %v10583_v42 = vpop.f32.mrf.mxu3  ;;  %v1474_v46 = vand.u32 2147483648, %v10400_v56  ;;  %v1624_v61 = vand.u32 2147483647, %v10549_v60  ;;  %v1356_v1 = vsel %vm10537_vm14, %v1355_v59, %v1351_v8  ;;  %v1359_v21 = vmul.f32 %v10542_v24, %v10477_v15 }
 0x1af   : > { %v8960_v41 = vpop.eup %8959  ;;  %18245 = vst [vmem:[#allocation66_spill] sm:$0xff] %v10565_v51  ;;  %v1472_v51 = vand.u32 2147483647, %v10400_v56  ;;  %v1369_v20 = vand.u32 2147483648, %v10477_v15  ;;  %v1374_v6 = vmul.f32 %v10551_v33, %v10482_v58  ;;  %vm1469_vm0 = vweird.f32 %v10487_v62 }
 0x1b0   : > { %18246 = vst [vmem:[#allocation67_spill] sm:$0xff] %v10569_v36  ;;  %v8962_v55 = vpop.eup %8961  ;;  %v8239_v36 = vmul.f32 -1.442695, %v893_v38  ;;  %v10590_v30 = vadd.f32 1.0, %v8960_v41  ;;  %8965 = vpow2.f32 %v8238_v40  ;;  %v1467_v59 = vadd.f32 %v10487_v62, %v1466_v10  ;;  %vm10613_vm1 = vmor %vm1468_vm15, %vm1469_vm0 }
 0x1b1   : > { %18247 = vst [vmem:[#allocation68_spill] sm:$0xff] %v10573_v39  ;;  %v1255_v39 = vsub.f32 1.0, %v1254_v19  ;;  %v10597_v38 = vadd.f32 1.0, %v8962_v55  ;;  %v865_v28 = vpop.f32.mrf.mxu0  ;;  %v10602_v11 = vmul.f32 %v1356_v1, %v10356_v35  ;;  %v1384_v19 = vand.u32 2147483648, %v10482_v58 }
 0x1b2   : > { %18248 = vst [vmem:[#allocation69_spill] sm:$0xff] %v10577_v31  ;;  %v1240_v31 = vsub.f32 1.0, %v1239_v16  ;;  %v1475_v16 = vor.u32 1.1754944e-38, %v1474_v46  ;;  %8967 = vpow2.f32 %v8239_v36  ;;  %v8290_v8 = vmul.f32 -1.442695, %v1624_v61 }
 0x1b3   : > { %v8964_v41 = vpop.eup %8963  ;;  %8969 = vrcp.f32 %v10590_v30  ;;  %v866_v40 = vadd.f32 %v865_v28, %v10258_v25  ;;  %v1360_v10 = vsub.f32 1.0, %v1359_v21  ;;  %v1375_v46 = vsub.f32 1.0, %v1374_v6 }
 0x1b4   : > { %v10606_v23 = vmul.f32 %v10516_v14, %v1240_v31  ;;  %8971 = vrcp.f32 %v10597_v38  ;;  %v10620_v31 = vmul.f32 %v10519_v32, %v1255_v39  ;;  %v10622_v61 = vor.u32 1.1754944e-38, %v1369_v20  ;;  %v894_v1 = vpop.f32.mrf.mxu1 }
 0x1b5   : > { %v1471_v28 = vsel %vm10613_vm1, %v10487_v62, %v1467_v59  ;;  %v1617_v56 = vand.u32 2147483647, %v10602_v11  ;;  %v10628_v55 = vor.u32 1.1754944e-38, %v1384_v19  ;;  %v10632_v21 = vadd.f32 %v10308_v43, %v10297_v13  ;;  %v921_v6 = vpop.f32.mrf.mxu2 }
 0x1b6   : > { %18249 = vst [vmem:[#allocation70_spill] sm:$0xff] %v10606_v23  ;;  %8973 = vpow2.f32 %v8290_v8  ;;  %v10634_v36 = vadd.f32 1.0, %v8964_v41  ;;  %v8966_v39 = vpop.eup %8965  ;;  %v10638_v20 = vadd.f32 %v10352_v50, %v10273_v18  ;;  %v10642_v62 = vadd.f32 %v10360_v49, %v10273_v18  ;;  %v950_v19 = vpop.f32.mrf.mxu3 }
 0x1b7   : > { %18252 = vst [vmem:[#allocation71_spill] sm:$0xff] %v10620_v31  ;;  %v8246_v59 = vmul.f32 -1.442695, %v866_v40  ;;  %vm1473_vm3 = vcmp.eq.f32.partialorder %v1472_v51, 8.507059e+37  ;;  %v1361_v43 = vmul.f32 %v10542_v24, %v1360_v10  ;;  %v1376_v13 = vmul.f32 %v10551_v33, %v1375_v46 }
 0x1b8   : > { %18253 = vst [vmem:[#allocation72_spill] sm:$0xff] %v10632_v21  ;;  %v8968_v35 = vpop.eup %8967  ;;  %v895_v8 = vadd.f32 %v894_v1, %v10258_v25  ;;  %v1476_v41 = vsel %vm1473_vm3, %v1475_v16, %v1471_v28  ;;  %v10651_v50 = vadd.f32 %v10402_v52, %v10310_v37  ;;  %v10655_v49 = vadd.f32 %v10447_v7, %v10380_v63 }
 0x1b9   : > { %18254 = vst [vmem:[#allocation73_spill] sm:$0xff] %v10638_v20  ;;  %v10647_v21 = vpop.eup %8969  ;;  %v922_v51 = vadd.f32 %v921_v6, %v10251_v45  ;;  %v8283_v40 = vmul.f32 -1.442695, %v1617_v56  ;;  %vm1093_vm4 = vweird.f32 %v10278_v0  ;;  %v10663_v16 = vadd.f32 %v10458_v4, %v10380_v63  ;;  %v868_v1 = vpop.f32.mrf.mxu0 }
 0x1ba   : > { %18255 = vst [vmem:[#allocation74_spill] sm:$0xff] %v10642_v62  ;;  %v10658_v62 = vpop.eup %8971  ;;  %v10665_v10 = vadd.f32 1.0, %v8966_v39  ;;  %v951_v52 = vadd.f32 %v950_v19, %v10251_v45  ;;  %8975 = vrcp.f32 %v10634_v36  ;;  %v1489_v7 = vand.u32 2147483648, %v10590_v30 }
 0x1bb   : > { %18256 = vst [vmem:[#allocation75_spill] sm:$0xff] %v10651_v50  ;;  %v10670_v46 = vadd.f32 1.0, %v8968_v35  ;;  %8977 = vpow2.f32 %v8246_v59  ;;  %v10673_v28 = vmul.f32 %v1476_v41, %v10408_v34  ;;  %v10676_v6 = vadd.f32 %v10542_v24, %v1361_v43 }
 0x1bc   : > { %18257 = vst [vmem:[#allocation76_spill] sm:$0xff] %v10655_v49  ;;  %v8974_v56 = vpop.eup %8973  ;;  %v10679_v4 = vadd.f32 %v10551_v33, %v1376_v13  ;;  %v8247_v39 = vmul.f32 -1.442695, %v895_v8  ;;  %v1479_v19 = vmul.f32 %v10647_v21, %v10590_v30  ;;  %v1494_v59 = vmul.f32 %v10658_v62, %v10597_v38  ;;  %v897_v8 = vpop.f32.mrf.mxu1 }
 0x1bd   : > { %18258 = vst [vmem:[#allocation77_spill] sm:$0xff] %v10663_v16  ;;  %v8240_v35 = vmul.f32 -1.442695, %v922_v51  ;;  %8979 = vpow2.f32 %v8283_v40  ;;  %v8241_v43 = vmul.f32 -1.442695, %v951_v52  ;;  %v869_v41 = vadd.f32 %v868_v1, %v10248_v2 }
 0x1be   : > { %18259 = vst [vmem:[#allocation78_spill] sm:$0xff] %v10665_v10  ;;  %8981 = vrcp.f32 %v10665_v10  ;;  %v10689_v13 = vor.u32 1.1754944e-38, %v1489_v7  ;;  %v10692_v45 = vadd.f32 1.0, %v8974_v56  ;;  %v1625_v37 = vand.u32 2147483647, %v10673_v28 }
 0x1bf   : > { %18260 = vst [vmem:[#allocation79_spill] sm:$0xff] %v10670_v46  ;;  %8983 = vrcp.f32 %v10670_v46  ;;  %v1504_v51 = vand.u32 2147483648, %v10597_v38  ;;  %v1092_v40 = vadd.f32 %v10317_v44, %v10450_v57  ;;  %vm1094_vm5 = vweird.f32 %v10317_v44 }
 0x1c0   : > { %18261 = vst [vmem:[#allocation80_spill] sm:$0xff] %v10689_v13  ;;  %v10695_v50 = vpop.eup %8975  ;;  %8985 = vpow2.f32 %v8247_v39  ;;  %v1480_v7 = vsub.f32 1.0, %v1479_v19  ;;  %v1495_v1 = vsub.f32 1.0, %v1494_v59  ;;  %v10703_v34 = vadd.f32 %v10492_v54, %v10273_v18  ;;  %vm10718_vm6 = vmor %vm1093_vm4, %vm1094_vm5 }
 0x1c1   : > { %v8978_v52 = vpop.eup %8977  ;;  %8987 = vpow2.f32 %v8240_v35  ;;  %v8254_v56 = vmul.f32 -1.442695, %v869_v41  ;;  %v898_v16 = vadd.f32 %v897_v8, %v10248_v2  ;;  %v1097_v49 = vand.u32 2147483647, %v10278_v0 }
 0x1c2   : > { %18262 = vst [vmem:[#allocation81_spill] sm:$0xff] %v10703_v34  ;;  %8989 = vpow2.f32 %v8241_v43  ;;  %v10709_v57 = vadd.f32 %v10503_v29, %v10273_v18  ;;  %v2001_v19 = vmul.f32 %v10695_v50, %v10634_v36  ;;  %v8291_v59 = vmul.f32 -1.442695, %v1625_v37 }
 0x1c3   : > { %v8980_v39 = vpop.eup %8979  ;;  %8991 = vrcp.f32 %v10692_v45  ;;  %v10724_v43 = vor.u32 1.1754944e-38, %v1504_v51  ;;  %v10728_v18 = vadd.f32 %v10579_v9, %v10380_v63  ;;  %v10730_v29 = vadd.f32 1.0, %v8978_v52  ;;  %v923_v9 = vpop.f32.mrf.mxu2 }
 0x1c4   : > { %18263 = vst [vmem:[#allocation82_spill] sm:$0xff] %v10709_v57  ;;  %v10722_v35 = vpop.eup %8981  ;;  %v1096_v37 = vsel %vm10718_vm6, %v10317_v44, %v1092_v40  ;;  %v10738_v8 = vmul.f32 %v10647_v21, %v1480_v7  ;;  %v10741_v57 = vmul.f32 %v10658_v62, %v1495_v1  ;;  %v10745_v51 = vadd.f32 %v10583_v42, %v10380_v63  ;;  %v952_v44 = vpop.f32.mrf.mxu3 }
 0x1c5   : > { %18266 = vst [vmem:[#allocation83_spill] sm:$0xff] %v10722_v35  ;;  %v10735_v41 = vpop.eup %8983  ;;  %v18272_v52 = vand.u32 2147483648, %v10278_v0  ;;  %8993 = vpow2.f32 %v8254_v56  ;;  %v8255_v54 = vmul.f32 -1.442695, %v898_v16  ;;  %vm1098_vm7 = vcmp.eq.f32.partialorder %v1097_v49, 8.507059e+37  ;;  %v899_v48 = vpop.f32.mrf.mxu1 }
 0x1c6   : > { %18267 = vst [vmem:[#allocation84_spill] sm:$0xff] %v10724_v43  ;;  %v8986_v34 = vpop.eup %8985  ;;  %v10751_v40 = vadd.f32 %v10378_v27, %v10522_v26  ;;  %v2002_v1 = vsub.f32 1.0, %v2001_v19  ;;  %8995 = vpow2.f32 %v8291_v59  ;;  %v10753_v20 = vadd.f32 1.0, %v8980_v39 }
 0x1c7   : > { %18268 = vst [vmem:[#allocation85_spill] sm:$0xff] %v10728_v18  ;;  %v1100_v18 = vor.u32 1.1754944e-38, %v18272_v52  ;;  %v8988_v7 = vpop.eup %8987  ;;  %v1149_v0 = vmul.f32 %v10722_v35, %v10665_v10  ;;  %8997 = vrcp.f32 %v10730_v29  ;;  %v2009_v49 = vand.u32 2147483647, %v10634_v36  ;;  %v870_v52 = vpop.f32.mrf.mxu0 }
 0x1c8   : > { %18269 = vst [vmem:[#allocation86_spill] sm:$0xff] %v10730_v29  ;;  %v8990_v42 = vpop.eup %8989  ;;  %v1164_v26 = vmul.f32 %v10735_v41, %v10670_v46  ;;  %v10767_v19 = vadd.f32 1.0, %v8986_v34  ;;  %v924_v59 = vadd.f32 %v923_v9, %v10258_v25  ;;  %8999 = vpow2.f32 %v8255_v54 }
 0x1c9   : > { %18270 = vst [vmem:[#allocation87_spill] sm:$0xff] %v10735_v41  ;;  %v10755_v63 = vsel %vm1098_vm7, %v1100_v18, %v1096_v37  ;;  %v10762_v16 = vpop.eup %8991  ;;  %v10770_v18 = vadd.f32 1.0, %v8988_v7  ;;  %v953_v37 = vadd.f32 %v952_v44, %v10258_v25  ;;  %v2011_v56 = vand.u32 2147483648, %v10634_v36 }
 0x1ca   : > { %18271 = vst [vmem:[#allocation88_spill] sm:$0xff] %v10745_v51  ;;  %v2003_v51 = vmul.f32 %v10695_v50, %v2002_v1  ;;  %vm2005_vm8 = vweird.f32 %v10634_v36  ;;  %v2131_v10 = vand.u32 2147483648, %v10692_v45  ;;  %9001 = vrcp.f32 %v10753_v20 }
 0x1cb   : > { %18273 = vst [vmem:[#allocation89_spill] sm:$0xff] %v10767_v19  ;;  %v8994_v34 = vpop.eup %8993  ;;  %v1150_v39 = vsub.f32 1.0, %v1149_v0  ;;  %v10778_v46 = vadd.f32 1.0, %v8990_v42  ;;  %vm10780_vm9 = vcmp.eq.f32.partialorder %v2009_v49, 8.507059e+37  ;;  %v2121_v25 = vmul.f32 %v10762_v16, %v10692_v45  ;;  %v926_v14 = vpop.f32.mrf.mxu2 }
 0x1cc   : > { %18274 = vst [vmem:[#allocation90_spill] sm:$0xff] %v10770_v18  ;;  %v2129_v54 = vand.u32 2147483647, %v10692_v45  ;;  %v8996_v44 = vpop.eup %8995  ;;  %v1165_v7 = vsub.f32 1.0, %v1164_v26  ;;  %9003 = vrcp.f32 %v10767_v19  ;;  %v8248_v1 = vmul.f32 -1.442695, %v924_v59  ;;  %v955_v43 = vpop.f32.mrf.mxu3 }
 0x1cd   : > { %18275 = vst [vmem:[#allocation91_spill] sm:$0xff] %v10778_v46  ;;  %v871_v32 = vadd.f32 %v870_v52, %v10254_v47  ;;  %v10789_v31 = vpop.eup %8997  ;;  %9005 = vrcp.f32 %v10770_v18  ;;  %v8249_v42 = vmul.f32 -1.442695, %v953_v37  ;;  %v2012_v0 = vor.u32 1.1754944e-38, %v2011_v56 }
 0x1ce   : > { %vm2125_vm10 = vweird.f32 %v10692_v45  ;;  %v10793_v49 = vadd.f32 1.0, %v8994_v34  ;;  %v2004_v23 = vadd.f32 %v10695_v50, %v2003_v51  ;;  %vm2006_vm11 = vweird.f32 %v10695_v50  ;;  %v9000_v59 = vpop.eup %8999 }
 0x1cf   : > { %v2132_v26 = vor.u32 1.1754944e-38, %v2131_v10  ;;  %v10798_v52 = vmul.f32 %v10722_v35, %v1150_v39  ;;  %9007 = vrcp.f32 %v10778_v46  ;;  %v2122_v37 = vsub.f32 1.0, %v2121_v25  ;;  %vm10823_vm13 = vmor %vm2005_vm8, %vm2006_vm11  ;;  %v18287_v35 = vld [vmem:[#allocation38_spill] sm:$0xff] }
 0x1d0   : > { %vm10801_vm12 = vcmp.eq.f32.partialorder %v2129_v54, 8.507059e+37  ;;  %v10805_v34 = vadd.f32 1.0, %v8996_v44  ;;  %v10807_v13 = vpop.eup %9001  ;;  %v10810_v51 = vmul.f32 %v10735_v41, %v1165_v7  ;;  %v10814_v10 = vmul.f32 %v10789_v31, %v10730_v29  ;;  %v18285_v29 = vld [vmem:[#allocation40_spill] sm:$0xff] }
 0x1d1   : > { %18278 = vst [vmem:[#allocation92_spill] sm:$0xff] %v10798_v52  ;;  %9009 = vpow2.f32 %v8248_v1  ;;  %v8262_v39 = vmul.f32 -1.442695, %v871_v32  ;;  %v900_v25 = vadd.f32 %v899_v48, %v10254_v47  ;;  %v927_v54 = vadd.f32 %v926_v14, %v10248_v2 }
 0x1d2   : > { %18281 = vst [vmem:[#allocation93_spill] sm:$0xff] %v10810_v51  ;;  %9011 = vpow2.f32 %v8249_v42  ;;  %vm1214_vm14 = vweird.f32 %v10378_v27  ;;  %v10828_v7 = vpop.eup %9003  ;;  %v1399_v32 = vand.u32 2147483648, %v10793_v49  ;;  %v10831_v1 = vadd.f32 1.0, %v9000_v59 }
 0x1d3   : > { %v956_v48 = vadd.f32 %v955_v43, %v10248_v2  ;;  %v2008_v14 = vsel %vm10823_vm13, %v10695_v50, %v2004_v23  ;;  %v10837_v42 = vpop.eup %9005  ;;  %9013 = vrcp.f32 %v10793_v49  ;;  %v2123_v36 = vmul.f32 %v10762_v16, %v2122_v37 }
 0x1d4   : > { %18284 = vst [vmem:[#allocation94_spill] sm:$0xff] %v10837_v42  ;;  %vm2126_vm15 = vweird.f32 %v10762_v16  ;;  %v2016_v52 = vmul.f32 %v10807_v13, %v10753_v20  ;;  %vm1213_vm0 = vweird.f32 %v18285_v29  ;;  %9015 = vpow2.f32 %v8262_v39 }
 0x1d5   : > { %v2013_v23 = vsel %vm10780_vm9, %v2012_v0, %v2008_v14  ;;  %v10849_v50 = vpop.eup %9007  ;;  %v10853_v43 = vmul.f32 %v10828_v7, %v10767_v19  ;;  %v8263_v37 = vmul.f32 -1.442695, %v900_v25  ;;  %v2124_v44 = vadd.f32 %v10762_v16, %v2123_v36  ;;  %vm2127_vm3 = vmor %vm2125_vm10, %vm2126_vm15 }
 0x1d6   : > { %18286 = vst [vmem:[#allocation40_spill] sm:$0xff] %v10849_v50  ;;  %v2017_v51 = vsub.f32 1.0, %v2016_v52  ;;  %vm1108_vm1 = vweird.f32 %v18287_v35  ;;  %v10859_v2 = vmul.f32 %v10837_v42, %v10770_v18  ;;  %v10861_v39 = vor.u32 1.1754944e-38, %v1399_v32  ;;  %vm10920_vm8 = vmor %vm1213_vm0, %vm1214_vm14 }
 0x1d7   : > { %v9010_v41 = vpop.eup %9009  ;;  %9017 = vrcp.f32 %v10831_v1  ;;  %v10864_v9 = vmul.f32 -1.442695, %v927_v54  ;;  %v2128_v52 = vsel %vm2127_vm3, %v10762_v16, %v2124_v44  ;;  %v2256_v25 = vmul.f32 %v2013_v23, %v10485_v53 }
 0x1d8   : > { %18288 = vst [vmem:[#allocation38_spill] sm:$0xff] %v10861_v39  ;;  %v10870_v0 = vpop.eup %9011  ;;  %v2018_v14 = vmul.f32 %v10807_v13, %v2017_v51  ;;  %vm2021_vm4 = vweird.f32 %v10807_v13  ;;  %v2133_v32 = vsel %vm10801_vm12, %v2132_v26, %v2128_v52  ;;  %v2024_v54 = vand.u32 2147483647, %v10753_v20  ;;  %v18300_v39 = vld [vmem:[#allocation49_spill] sm:$0xff] }
 0x1d9   : > { %v2026_v36 = vand.u32 2147483648, %v10753_v20  ;;  %9019 = vrcp.f32 %v10805_v34  ;;  %v10881_v45 = vpop.eup %9013  ;;  %v2264_v16 = vmul.f32 %v2133_v32, %v10549_v60  ;;  %vm2020_vm5 = vweird.f32 %v10753_v20  ;;  %v18292_v20 = vld [vmem:[#allocation5_spill] sm:$0xff] }
 0x1da   : > { %v2019_v53 = vadd.f32 %v10807_v13, %v2018_v14  ;;  %v10887_v51 = vpop.eup %9015  ;;  %v10891_v26 = vmul.f32 %v10849_v50, %v10778_v46  ;;  %v10894_v23 = vadd.f32 1.0, %v9010_v41  ;;  %9021 = vpow2.f32 %v8263_v37  ;;  %vm10898_vm6 = vmor %vm2020_vm5, %vm2021_vm4  ;;  %v18294_v14 = vld [vmem:[#allocation7_spill] sm:$0xff] }
 0x1db   : > { %v10902_v60 = vmul.f32 -1.442695, %v956_v48  ;;  %v10905_v52 = vadd.f32 %v2256_v25, %v18292_v20  ;;  %v10908_v32 = vadd.f32 %v2264_v16, %v18294_v14  ;;  %vm2025_vm7 = vcmp.eq.f32.partialorder %v2024_v54, 8.507059e+37  ;;  %v18298_v20 = vld [vmem:[#allocation41_spill] sm:$0xff]  ;;  %v18299_v46 = vld [vmem:[#allocation59_spill] sm:$0xff] }
 0x1dc   : > { %18289 = vst [vmem:[#allocation95_spill] sm:$0xff] %v10894_v23  ;;  %v2023_v41 = vsel %vm10898_vm6, %v10807_v13, %v2019_v53  ;;  %v2027_v37 = vor.u32 1.1754944e-38, %v2026_v36  ;;  %v2144_v59 = vand.u32 2147483647, %v10805_v34  ;;  %v1217_v25 = vand.u32 2147483647, %v18285_v29 }
 0x1dd   : > { %18293 = vst [vmem:[#allocation5_spill] sm:$0xff] %v10905_v52  ;;  %v10913_v56 = vpop.eup %9017  ;;  %v2321_v16 = vpack.c.bf16 %v10908_v32, %v10905_v52  ;;  %v2146_v13 = vand.u32 2147483648, %v10805_v34  ;;  %v1216_v54 = vsel %vm10920_vm8, %v10378_v27, %v10751_v40  ;;  %v1219_v36 = vand.u32 2147483648, %v18285_v29 }
 0x1de   : > { %18295 = vst [vmem:[#allocation7_spill] sm:$0xff] %v10908_v32  ;;  %v2028_v44 = vsel %vm2025_vm7, %v2027_v37, %v2023_v41  ;;  %v10935_v14 = vmul.f32 %v10755_v63, %v18298_v20  ;;  %v1107_v18 = vadd.f32 %v18300_v39, %v18299_v46  ;;  %vm1109_vm9 = vweird.f32 %v18300_v39  ;;  %v18304_v20 = vld [vmem:[#allocation43_spill] sm:$0xff]  ;;  %v18305_v32 = vld [vmem:[#allocation46_spill] sm:$0xff] }
 0x1df   : > { %v9020_v53 = vpop.eup %9019  ;;  %vm1364_vm10 = vweird.f32 %v10542_v24  ;;  %2416 = vmatpush.bf16.msra.mxu0 %v2321_v16  ;;  %vm1218_vm12 = vcmp.eq.f32.partialorder %v1217_v25, 8.507059e+37  ;;  %v1220_v27 = vor.u32 1.1754944e-38, %v1219_v36  ;;  %vm10944_vm13 = vmor %vm1108_vm1, %vm1109_vm9  ;;  %v1112_v41 = vand.u32 2147483647, %v18287_v35 }
 0x1e0   : > { %v2136_v52 = vmul.f32 %v9020_v53, %v10805_v34  ;;  %vm2141_vm11 = vweird.f32 %v9020_v53  ;;  %v10948_v40 = vpop.eup %9021  ;;  %v1600_v46 = vand.u32 2147483647, %v10935_v14  ;;  %v1111_v63 = vsel %vm10944_vm13, %v18300_v39, %v1107_v18 }
 0x1e1   : > { %v18303_v37 = vand.u32 2147483648, %v18287_v35  ;;  %vm1363_vm14 = vweird.f32 %v10477_v15  ;;  %v1221_v16 = vsel %vm1218_vm12, %v1220_v27, %v1216_v54  ;;  %v1227_v36 = vadd.f32 %v10404_v22, %v10525_v5  ;;  %v18328_v35 = vld [vmem:[#allocation54_spill] sm:$0xff] }
 0x1e2   : > { %v2137_v25 = vsub.f32 1.0, %v2136_v52  ;;  %vm1228_vm15 = vweird.f32 %v18304_v20  ;;  %v10962_v19 = vmul.f32 %v1221_v16, %v18305_v32  ;;  %v8266_v47 = vmul.f32 -1.442695, %v1600_v46  ;;  %v18311_v46 = vld [vmem:[#allocation45_spill] sm:$0xff] }
 0x1e3   : > { %v1115_v48 = vor.u32 1.1754944e-38, %v18303_v37  ;;  %vm1113_vm0 = vcmp.eq.f32.partialorder %v1112_v41, 8.507059e+37  ;;  %vm1229_vm1 = vweird.f32 %v10404_v22  ;;  %v18306_v18 = vand.u32 2147483647, %v10477_v15  ;;  %v18322_v15 = vld [vmem:[#allocation8_spill] sm:$0xff] }
 0x1e4   : > { %vm1379_vm4 = vweird.f32 %v10551_v33  ;;  %v2138_v39 = vmul.f32 %v9020_v53, %v2137_v25  ;;  %vm10972_vm5 = vmor %vm1228_vm15, %vm1229_vm1  ;;  %v1232_v32 = vand.u32 2147483647, %v18304_v20  ;;  %v1234_v54 = vand.u32 2147483648, %v18304_v20 }
 0x1e5   : > { %vm10967_vm3 = vcmp.eq.f32.partialorder %v18306_v18, 8.507059e+37  ;;  %v1116_v52 = vsel %vm1113_vm0, %v1115_v48, %v1111_v63  ;;  %v1608_v27 = vand.u32 2147483647, %v10962_v19  ;;  %9023 = vpow2.f32 %v8266_v47  ;;  %v18312_v18 = vld [vmem:[#allocation47_spill] sm:$0xff]  ;;  %vm11010_vm15 = vmor %vm1363_vm14, %vm1364_vm10 }
 0x1e6   : > { %v1231_v29 = vsel %vm10972_vm5, %v10404_v22, %v1227_v36  ;;  %v10983_v41 = vmul.f32 %v1116_v52, %v18311_v46  ;;  %vm1378_vm6 = vweird.f32 %v10482_v58  ;;  %9025 = vrcp.f32 %v10894_v23 }
 0x1e7   : > { %v2139_v63 = vadd.f32 %v9020_v53, %v2138_v39  ;;  %vm2140_vm7 = vweird.f32 %v10805_v34  ;;  %v1235_v37 = vor.u32 1.1754944e-38, %v1234_v54  ;;  %v2147_v48 = vor.u32 1.1754944e-38, %v2146_v13  ;;  %vm11054_vm14 = vmor %vm1378_vm6, %vm1379_vm4 }
 0x1e8   : > { %vm2142_vm8 = vmor %vm2140_vm7, %vm2141_vm11  ;;  %v8274_v25 = vmul.f32 -1.442695, %v1608_v27  ;;  %vm1233_vm9 = vcmp.eq.f32.partialorder %v1232_v32, 8.507059e+37  ;;  %v1601_v47 = vand.u32 2147483647, %v10983_v41  ;;  %vm2145_vm12 = vcmp.eq.f32.partialorder %v2144_v59, 8.507059e+37 }
 0x1e9   : > { %v2143_v16 = vsel %vm2142_vm8, %v9020_v53, %v2139_v63  ;;  %v2257_v22 = vmul.f32 %v2028_v44, %v10602_v11  ;;  %v1236_v36 = vsel %vm1233_vm9, %v1235_v37, %v1231_v29  ;;  %v18313_v34 = vand.u32 2147483647, %v10482_v58 }
 0x1ea   : > { %v2148_v20 = vsel %vm2145_vm12, %v2147_v48, %v2143_v16  ;;  %9027 = vpow2.f32 %v8274_v25  ;;  %v10992_v52 = vmul.f32 %v1236_v36, %v18312_v18  ;;  %v8267_v39 = vmul.f32 -1.442695, %v1601_v47 }
 0x1eb   : > { %vm10996_vm13 = vcmp.eq.f32.partialorder %v18313_v34, 8.507059e+37  ;;  %vm1484_vm11 = vweird.f32 %v10647_v21  ;;  %v1180_v13 = vsub.f32 1.0, %v10859_v2  ;;  %v1389_v11 = vmul.f32 %v10881_v45, %v10793_v49  ;;  %v9024_v53 = vpop.eup %9023 }
 0x1ec   : > { %9029 = vpow2.f32 %v10864_v9  ;;  %v2265_v59 = vmul.f32 %v2148_v20, %v10673_v28  ;;  %v1195_v32 = vsub.f32 1.0, %v10891_v26  ;;  %v11016_v2 = vadd.f32 1.0, %v10870_v0  ;;  %v11019_v9 = vpop.eup %9025  ;;  %v18320_v28 = vld [vmem:[#allocation6_spill] sm:$0xff] }
 0x1ed   : > { %v1609_v54 = vand.u32 2147483647, %v10992_v52  ;;  %9031 = vpow2.f32 %v8267_v39  ;;  %18319 = vst [vmem:[#allocation59_spill] sm:$0xff] %v11019_v9  ;;  %vm1483_vm0 = vweird.f32 %v10590_v30  ;;  %v11023_v27 = vadd.f32 %v2257_v22, %v18320_v28  ;;  %v18345_v28 = vld [vmem:[#allocation80_spill] sm:$0xff] }
 0x1ee   : > { %18318 = vst [vmem:[#allocation41_spill] sm:$0xff] %v11016_v2  ;;  %v11026_v29 = vadd.f32 %v2265_v59, %v18322_v15  ;;  %v11028_v46 = vadd.f32 1.0, %v9024_v53  ;;  %v1366_v0 = vsel %vm11010_vm15, %v10542_v24, %v10676_v6  ;;  %vm1123_vm10 = vweird.f32 %v10349_v12  ;;  %vm11122_vm5 = vmor %vm1483_vm0, %vm1484_vm11 }
 0x1ef   : > { %18321 = vst [vmem:[#allocation49_spill] sm:$0xff] %v11023_v27  ;;  %v11036_v26 = vadd.f32 1.0, %v10887_v51  ;;  %9033 = vpow2.f32 %v10902_v60  ;;  %v8275_v63 = vmul.f32 -1.442695, %v1609_v54  ;;  %v1371_v37 = vsel %vm10967_vm3, %v10622_v61, %v1366_v0  ;;  %v18340_v51 = vld [vmem:[#allocation56_spill] sm:$0xff] }
 0x1f0   : > { %18323 = vst [vmem:[#allocation43_spill] sm:$0xff] %v11026_v29  ;;  %v18324_v48 = vsub.f32 1.0, %v10814_v10  ;;  %v1390_v47 = vsub.f32 1.0, %v1389_v11  ;;  %v2322_v24 = vpack.c.bf16 %v11026_v29, %v11023_v27  ;;  %9035 = vrcp.f32 %v11028_v46  ;;  %v9028_v6 = vpop.eup %9027 }
 0x1f1   : > { %v18327_v61 = vsub.f32 1.0, %v10853_v43  ;;  %9037 = vpow2.f32 %v8275_v63  ;;  %v11065_v16 = vmul.f32 %v1371_v37, %v18328_v35  ;;  %vm1499_vm1 = vweird.f32 %v10658_v62 }
 0x1f2   : > { %v11045_v25 = vmul.f32 %v10789_v31, %v18324_v48  ;;  %v11067_v22 = vpop.eup %9029  ;;  %v18329_v58 = vand.u32 2147483648, %v10831_v1  ;;  %9039 = vrcp.f32 %v11016_v2  ;;  %2445 = vmatpush.bf16.msra.mxu1 %v2322_v24  ;;  %v11075_v43 = vadd.f32 1.0, %v9028_v6 }
 0x1f3   : > { %v11061_v10 = vmul.f32 %v10828_v7, %v18327_v61  ;;  %v1381_v20 = vsel %vm11054_vm14, %v10551_v33, %v10679_v4  ;;  %v9032_v18 = vpop.eup %9031  ;;  %v11082_v39 = vmul.f32 %v10837_v42, %v1180_v13  ;;  %v11085_v34 = vmul.f32 %v10849_v50, %v1195_v32 }
 0x1f4   : > { %v11072_v36 = vor.u32 1.1754944e-38, %v18329_v58  ;;  %v11089_v11 = vmul.f32 %v10913_v56, %v10831_v1  ;;  %9041 = vrcp.f32 %v11036_v26  ;;  %vm1498_vm3 = vweird.f32 %v10597_v38 }
 0x1f5   : > { %18330 = vst [vmem:[#allocation46_spill] sm:$0xff] %v11085_v34  ;;  %v11094_v59 = vmul.f32 %v10881_v45, %v1390_v47  ;;  %9043 = vrcp.f32 %v11075_v43  ;;  %v11099_v33 = vadd.f32 %v10438_v17, %v10545_v3  ;;  %vm1124_vm4 = vweird.f32 %v10438_v17  ;;  %v11102_v4 = vpop.eup %9033  ;;  %vm11185_vm11 = vmor %vm1498_vm3, %vm1499_vm1 }
 0x1f6   : > { %v11104_v13 = vadd.f32 1.0, %v9032_v18  ;;  %v1482_v53 = vadd.f32 %v10647_v21, %v10738_v8  ;;  %v1618_v44 = vand.u32 2147483647, %v11065_v16  ;;  %v1386_v32 = vsel %vm10996_vm13, %v10628_v55, %v1381_v20  ;;  %v9036_v54 = vpop.eup %9035  ;;  %vm11152_vm8 = vmor %vm1123_vm10, %vm1124_vm4 }
 0x1f7   : > { %v11115_v15 = vadd.f32 1.0, %v10948_v40  ;;  %v1769_v0 = vand.u32 2147483647, %v11028_v46  ;;  %v9038_v63 = vpop.eup %9037  ;;  %v1761_v55 = vmul.f32 %v9036_v54, %v11028_v46  ;;  %v1771_v5 = vand.u32 2147483648, %v11028_v46 }
 0x1f8   : > { %9045 = vrcp.f32 %v11104_v13  ;;  %v18333_v40 = vand.u32 2147483647, %v10590_v30  ;;  %v11135_v48 = vpop.eup %9039  ;;  %v11137_v47 = vadd.f32 1.0, %v9038_v63  ;;  %v18337_v24 = vand.u32 2147483647, %v10597_v38 }
 0x1f9   : > { %18336 = vst [vmem:[#allocation45_spill] sm:$0xff] %v11135_v48  ;;  %v11146_v61 = vmul.f32 %v1386_v32, %v18340_v51  ;;  %v1762_v20 = vsub.f32 1.0, %v1761_v55  ;;  %v1486_v18 = vsel %vm11122_vm5, %v10647_v21, %v1482_v53  ;;  %v8284_v63 = vmul.f32 -1.442695, %v1618_v44 }
 0x1fa   : > { %vm11131_vm6 = vcmp.eq.f32.partialorder %v18333_v40, 8.507059e+37  ;;  %vm11141_vm7 = vcmp.eq.f32.partialorder %v18337_v24, 8.507059e+37  ;;  %v11157_v58 = vpop.eup %9041  ;;  %vm1765_vm9 = vweird.f32 %v11028_v46  ;;  %vm11167_vm12 = vcmp.eq.f32.partialorder %v1769_v0, 8.507059e+37 }
 0x1fb   : > { %v9044_v40 = vpop.eup %9043  ;;  %9047 = vrcp.f32 %v11137_v47  ;;  %v1497_v55 = vadd.f32 %v10658_v62, %v10741_v57  ;;  %v1763_v8 = vmul.f32 %v9036_v54, %v1762_v20  ;;  %vm1766_vm13 = vweird.f32 %v9036_v54 }
 0x1fc   : > { %v1772_v21 = vor.u32 1.1754944e-38, %v1771_v5  ;;  %v1881_v53 = vmul.f32 %v9044_v40, %v11075_v43  ;;  %v1889_v44 = vand.u32 2147483647, %v11075_v43  ;;  %v1891_v51 = vand.u32 2147483648, %v11075_v43  ;;  %vm1767_vm0 = vmor %vm1765_vm9, %vm1766_vm13 }
 0x1fd   : > { %v1491_v0 = vsel %vm11131_vm6, %v18345_v28, %v1486_v18  ;;  %v1619_v60 = vand.u32 2147483647, %v11146_v61  ;;  %v1764_v5 = vadd.f32 %v9036_v54, %v1763_v8  ;;  %vm1885_vm15 = vweird.f32 %v11075_v43  ;;  %v18348_v18 = vld [vmem:[#allocation57_spill] sm:$0xff] }
 0x1fe   : > { %v9046_v3 = vpop.eup %9045  ;;  %v1882_v20 = vsub.f32 1.0, %v1881_v53  ;;  %9049 = vpow2.f32 %v8284_v63  ;;  %v1784_v37 = vand.u32 2147483647, %v11104_v13  ;;  %v11195_v32 = vmul.f32 %v1491_v0, %v18348_v18 }
 0x1ff   : > { %v1776_v28 = vmul.f32 %v9046_v3, %v11104_v13  ;;  %v1501_v38 = vsel %vm11185_vm11, %v10658_v62, %v1497_v55  ;;  %v1768_v35 = vsel %vm1767_vm0, %v9036_v54, %v1764_v5  ;;  %vm1886_vm10 = vweird.f32 %v9044_v40  ;;  %v18351_v54 = vld [vmem:[#allocation84_spill] sm:$0xff] }
 0x200   : > { %v1883_v8 = vmul.f32 %v9044_v40, %v1882_v20  ;;  %v1786_v53 = vand.u32 2147483648, %v11104_v13  ;;  %v1773_v46 = vsel %vm11167_vm12, %v1772_v21, %v1768_v35  ;;  %vm11203_vm14 = vcmp.eq.f32.partialorder %v1889_v44, 8.507059e+37  ;;  %vm1887_vm3 = vmor %vm1885_vm15, %vm1886_vm10  ;;  %v11249_v35 = vld [vmem:[%s17901_s3 + $0x20] sm:$0xff] }
 0x201   : > { %v9048_v63 = vpop.eup %9047  ;;  %v1892_v27 = vor.u32 1.1754944e-38, %v1891_v51  ;;  %v1777_v0 = vsub.f32 1.0, %v1776_v28  ;;  %vm1780_vm1 = vweird.f32 %v11104_v13  ;;  %v1506_v55 = vsel %vm11141_vm7, %v18351_v54, %v1501_v38  ;;  %v18354_v38 = vld [vmem:[#allocation58_spill] sm:$0xff] }
 0x202   : > { %v1884_v18 = vadd.f32 %v9044_v40, %v1883_v8  ;;  %v1896_v62 = vmul.f32 %v9048_v63, %v11137_v47  ;;  %vm1781_vm4 = vweird.f32 %v9046_v3  ;;  %vm11214_vm5 = vcmp.eq.f32.partialorder %v1784_v37, 8.507059e+37 }
 0x203   : > { %v1778_v24 = vmul.f32 %v9046_v3, %v1777_v0  ;;  %v1626_v21 = vand.u32 2147483647, %v11195_v32  ;;  %v2240_v57 = vmul.f32 %v1773_v46, %v10935_v14  ;;  %v1787_v5 = vor.u32 1.1754944e-38, %v1786_v53  ;;  %vm1782_vm6 = vmor %vm1780_vm1, %vm1781_vm4  ;;  %v18355_v53 = vld [vmem:[#allocation9_spill] sm:$0xff] }
 0x204   : > { %v9050_v44 = vpop.eup %9049  ;;  %v1888_v51 = vsel %vm1887_vm3, %v9044_v40, %v1884_v18  ;;  %v1897_v20 = vsub.f32 1.0, %v1896_v62  ;;  %v1906_v43 = vand.u32 2147483648, %v11137_v47  ;;  %v11224_v8 = vmul.f32 %v1506_v55, %v18354_v38  ;;  %v18357_v18 = vld [vmem:[#allocation11_spill] sm:$0xff] }
 0x205   : > { %v1893_v6 = vsel %vm11203_vm14, %v1892_v27, %v1888_v51  ;;  %v1779_v28 = vadd.f32 %v9046_v3, %v1778_v24  ;;  %vm1901_vm7 = vweird.f32 %v9048_v63  ;;  %v1904_v14 = vand.u32 2147483647, %v11137_v47 }
 0x206   : > { %v2248_v37 = vmul.f32 %v1893_v6, %v10962_v19  ;;  %v1898_v0 = vmul.f32 %v9048_v63, %v1897_v20  ;;  %vm1900_vm9 = vweird.f32 %v11137_v47  ;;  %v8292_v29 = vmul.f32 -1.442695, %v1626_v21  ;;  %v18362_v20 = vld [vmem:[#allocation63_spill] sm:$0xff] }
 0x207   : > { %v1783_v40 = vsel %vm1782_vm6, %v9046_v3, %v1779_v28  ;;  %v11231_v27 = vadd.f32 1.0, %v9050_v44  ;;  %v11234_v46 = vadd.f32 %v2240_v57, %v18355_v53  ;;  %vm1902_vm12 = vmor %vm1900_vm9, %vm1901_vm7  ;;  %v1907_v54 = vor.u32 1.1754944e-38, %v1906_v43  ;;  %v928_v53 = vpop.f32.mrf.mxu2 }
 0x208   : > { %v11237_v62 = vadd.f32 %v2248_v37, %v18357_v18  ;;  %v1788_v19 = vsel %vm11214_vm5, %v1787_v5, %v1783_v40  ;;  %v1899_v13 = vadd.f32 %v9048_v63, %v1898_v0  ;;  %9051 = vpow2.f32 %v8292_v29  ;;  %v18367_v37 = vld [vmem:[#allocation12_spill] sm:$0xff] }
 0x209   : > { %18356 = vst [vmem:[#allocation47_spill] sm:$0xff] %v11234_v46  ;;  %v1627_v3 = vand.u32 2147483647, %v11224_v8  ;;  %v8285_v55 = vmul.f32 -1.442695, %v1619_v60  ;;  %vm1905_vm13 = vcmp.eq.f32.partialorder %v1904_v14, 8.507059e+37  ;;  %v2241_v21 = vmul.f32 %v1788_v19, %v10983_v41 }
 0x20a   : > { %18358 = vst [vmem:[#allocation6_spill] sm:$0xff] %v11237_v62  ;;  %v2313_v47 = vpack.c.bf16 %v11237_v62, %v11234_v46  ;;  %v1903_v24 = vsel %vm1902_vm12, %v9048_v63, %v1899_v13  ;;  %v1405_v44 = vsub.f32 1.0, %v11089_v11  ;;  %9053 = vrcp.f32 %v11231_v27  ;;  %v18361_v41 = vld [vmem:[#allocation70_spill] sm:$0xff]  ;;  %v18369_v14 = vld [vmem:[#allocation60_spill] sm:$0xff] }
 0x20b   : > { %v1908_v51 = vsel %vm1905_vm13, %v1907_v54, %v1903_v24  ;;  %v18359_v57 = vand.u32 2147483648, %v10349_v12  ;;  %v18360_v63 = vand.u32 2147483647, %v10349_v12  ;;  %v1242_v11 = vadd.f32 %v18362_v20, %v18361_v41  ;;  %v18365_v12 = vld [vmem:[#allocation10_spill] sm:$0xff]  ;;  %v18372_v19 = vld [vmem:[#allocation48_spill] sm:$0xff]  ;;  %v957_v24 = vpop.f32.mrf.mxu3 }
 0x20c   : > { %2417 = vmatpush.bf16.msra.mxu0 %v2313_v47  ;;  %v2249_v5 = vmul.f32 %v1908_v51, %v10992_v52  ;;  %vm1244_vm15 = vweird.f32 %v18362_v20  ;;  %v11261_v6 = vadd.f32 1.0, %v11067_v22  ;;  %9055 = vpow2.f32 %v8285_v55 }
 0x20d   : > { %v1130_v60 = vor.u32 1.1754944e-38, %v18359_v57  ;;  %vm1128_vm11 = vcmp.eq.f32.partialorder %v18360_v63, 8.507059e+37  ;;  %v8293_v28 = vmul.f32 -1.442695, %v1627_v3  ;;  %v18364_v43 = vsel %vm11152_vm8, %v10438_v17, %v11099_v33  ;;  %v18373_v3 = vld [vmem:[#allocation52_spill] sm:$0xff]  ;;  %v18376_v17 = vld [vmem:[#allocation65_spill] sm:$0xff] }
 0x20e   : > { %18363 = vst [vmem:[#allocation8_spill] sm:$0xff] %v11261_v6  ;;  %9057 = vrcp.f32 %v11115_v15  ;;  %v11270_v52 = vadd.f32 %v2241_v21, %v18365_v12  ;;  %v11273_v0 = vadd.f32 %v2249_v5, %v18367_v37  ;;  %vm1243_vm0 = vweird.f32 %v18369_v14  ;;  %v9052_v22 = vpop.eup %9051 }
 0x20f   : > { %v1131_v38 = vsel %vm1128_vm11, %v1130_v60, %v18364_v43  ;;  %v11277_v40 = vadd.f32 1.0, %v11102_v4  ;;  %8330 = vmatmul.msk.bf16.vlgmr.msra.gmra.mxu0 %vm18089_vm2, %v11249_v35  ;;  %9059 = vpow2.f32 %v8293_v28  ;;  %vm11281_vm8 = vmor %vm1243_vm0, %vm1244_vm15  ;;  %v1247_v33 = vand.u32 2147483647, %v18369_v14  ;;  %v18375_v43 = vld [vmem:[#allocation51_spill] sm:$0xff] }
 0x210   : > { %18366 = vst [vmem:[#allocation54_spill] sm:$0xff] %v11270_v52  ;;  %v1249_v30 = vand.u32 2147483648, %v18369_v14  ;;  %v2314_v29 = vpack.c.bf16 %v11273_v0, %v11270_v52  ;;  %v11289_v18 = vadd.f32 1.0, %v9052_v22  ;;  %v1246_v4 = vsel %vm11281_vm8, %v18362_v20, %v1242_v11  ;;  %v11297_v54 = vpop.eup %9053 }
 0x211   : > { %18368 = vst [vmem:[#allocation56_spill] sm:$0xff] %v11273_v0  ;;  %v11295_v13 = vmul.f32 %v1131_v38, %v18372_v19  ;;  %vm1138_vm10 = vweird.f32 %v18373_v3  ;;  %v11302_v55 = vadd.f32 %v10881_v45, %v11094_v59  ;;  %v11305_v47 = vmul.f32 %v10913_v56, %v1405_v44  ;;  %v18374_v44 = vld [vmem:[#allocation37_spill] sm:$0xff] }
 0x212   : > { %9061 = vrcp.f32 %v11261_v6  ;;  %v1250_v21 = vor.u32 1.1754944e-38, %v1249_v30  ;;  %v11310_v51 = vmul.f32 %v11019_v9, %v10894_v23  ;;  %2446 = vmatpush.bf16.msra.mxu1 %v2314_v29  ;;  %v2031_v57 = vmul.f32 %v11297_v54, %v11231_v27  ;;  %v9056_v59 = vpop.eup %9055 }
 0x213   : > { %9063 = vrcp.f32 %v11289_v18  ;;  %vm1248_vm14 = vcmp.eq.f32.partialorder %v1247_v33, 8.507059e+37  ;;  %v11317_v60 = vadd.f32 %v928_v53, %v18374_v44  ;;  %v1602_v63 = vand.u32 2147483647, %v11295_v13  ;;  %v18377_v33 = vld [vmem:[#allocation62_spill] sm:$0xff] }
 0x214   : > { %9065 = vrcp.f32 %v11277_v40  ;;  %v1251_v5 = vsel %vm1248_vm14, %v1250_v21, %v1246_v4  ;;  %v11320_v41 = vpop.eup %9057  ;;  %v11323_v20 = vadd.f32 %v957_v24, %v18374_v44  ;;  %v2032_v11 = vsub.f32 1.0, %v2031_v57 }
 0x215   : > { %v11325_v28 = vadd.f32 1.0, %v9056_v59  ;;  %v11328_v38 = vmul.f32 %v1251_v5, %v18375_v43  ;;  %v9060_v12 = vpop.eup %9059  ;;  %8334 = vmatmul.msk.bf16.vlgmr.msra.gmra.mxu1 %vm18089_vm2, %v11249_v35  ;;  %v2039_v37 = vand.u32 2147483647, %v11231_v27  ;;  %v2041_v14 = vand.u32 2147483648, %v11231_v27 }
 0x216   : > { %v8268_v22 = vmul.f32 -1.442695, %v1602_v63  ;;  %v11336_v30 = vadd.f32 %v18377_v33, %v18376_v17  ;;  %v2033_v29 = vmul.f32 %v11297_v54, %v2032_v11  ;;  %vm2036_vm1 = vweird.f32 %v11297_v54 }
 0x217   : > { %v11340_v53 = vadd.f32 1.0, %v9060_v12  ;;  %9067 = vrcp.f32 %v11325_v28  ;;  %v2159_v19 = vand.u32 2147483647, %v11289_v18  ;;  %v1610_v24 = vand.u32 2147483647, %v11328_v38 }
 0x218   : > { %v11343_v4 = vpop.eup %9061  ;;  %9069 = vpow2.f32 %v8268_v22  ;;  %vm1139_vm3 = vweird.f32 %v18377_v33  ;;  %v2034_v57 = vadd.f32 %v11297_v54, %v2033_v29  ;;  %vm2035_vm4 = vweird.f32 %v11231_v27  ;;  %v18395_v29 = vld [vmem:[#allocation61_spill] sm:$0xff] }
 0x219   : > { %v9064_v21 = vpop.eup %9063  ;;  %v2161_v59 = vand.u32 2147483648, %v11289_v18  ;;  %9071 = vrcp.f32 %v11340_v53  ;;  %vm11354_vm5 = vmor %vm2035_vm4, %vm2036_vm1  ;;  %vm11358_vm6 = vcmp.eq.f32.partialorder %v2039_v37, 8.507059e+37  ;;  %v2042_v11 = vor.u32 1.1754944e-38, %v2041_v14 }
 0x21a   : > { %v11352_v44 = vpop.eup %9065  ;;  %v2151_v43 = vmul.f32 %v9064_v21, %v11289_v18  ;;  %vm2155_vm7 = vweird.f32 %v11289_v18  ;;  %v2038_v27 = vsel %vm11354_vm5, %v11297_v54, %v2034_v57  ;;  %v2054_v12 = vand.u32 2147483647, %v11325_v28  ;;  %vm11373_vm9 = vmor %vm1138_vm10, %vm1139_vm3 }
 0x21b   : > { %v2056_v22 = vand.u32 2147483648, %v11325_v28  ;;  %v8276_v17 = vmul.f32 -1.442695, %v1610_v24  ;;  %vm11377_vm12 = vcmp.eq.f32.partialorder %v2159_v19, 8.507059e+37  ;;  %v2174_v54 = vand.u32 2147483647, %v11340_v53 }
 0x21c   : > { %v2152_v14 = vsub.f32 1.0, %v2151_v43  ;;  %v1141_v24 = vsel %vm11373_vm9, %v18377_v33, %v11336_v30  ;;  %v2162_v5 = vor.u32 1.1754944e-38, %v2161_v59  ;;  %vm2050_vm13 = vweird.f32 %v11325_v28 }
 0x21d   : > { %v9068_v57 = vpop.eup %9067  ;;  %9073 = vpow2.f32 %v8276_v17  ;;  %v1142_v0 = vand.u32 2147483647, %v18373_v3  ;;  %v2043_v19 = vsel %vm11358_vm6, %v2042_v11, %v2038_v27  ;;  %vm2156_vm11 = vweird.f32 %v9064_v21  ;;  %v18401_v11 = vld [vmem:[#allocation14_spill] sm:$0xff] }
 0x21e   : > { %v9070_v52 = vpop.eup %9069  ;;  %v2153_v43 = vmul.f32 %v9064_v21, %v2152_v14  ;;  %v2046_v62 = vmul.f32 %v9068_v57, %v11325_v28  ;;  %vm2170_vm15 = vweird.f32 %v11340_v53  ;;  %vm11392_vm0 = vcmp.eq.f32.partialorder %v2054_v12, 8.507059e+37  ;;  %vm2157_vm10 = vmor %vm2155_vm7, %vm2156_vm11 }
 0x21f   : > { %v9072_v46 = vpop.eup %9071  ;;  %v2057_v30 = vor.u32 1.1754944e-38, %v2056_v22  ;;  %v2176_v59 = vand.u32 2147483648, %v11340_v53  ;;  %v11397_v17 = vadd.f32 1.0, %v9070_v52  ;;  %vm11400_vm8 = vcmp.eq.f32.partialorder %v2174_v54, 8.507059e+37 }
 0x220   : > { %v2154_v37 = vadd.f32 %v9064_v21, %v2153_v43  ;;  %v2047_v50 = vsub.f32 1.0, %v2046_v62  ;;  %v2166_v63 = vmul.f32 %v9072_v46, %v11340_v53  ;;  %v2258_v27 = vmul.f32 %v2043_v19, %v11065_v16 }
 0x221   : > { %9075 = vrcp.f32 %v11397_v17  ;;  %vm1143_vm14 = vcmp.eq.f32.partialorder %v1142_v0, 8.507059e+37  ;;  %v18390_v12 = vand.u32 2147483648, %v18373_v3  ;;  %vm2051_vm1 = vweird.f32 %v9068_v57  ;;  %v18391_v0 = vld [vmem:[#allocation13_spill] sm:$0xff] }
 0x222   : > { %v2158_v22 = vsel %vm2157_vm10, %v9064_v21, %v2154_v37  ;;  %v2048_v14 = vmul.f32 %v9068_v57, %v2047_v50  ;;  %v2167_v62 = vsub.f32 1.0, %v2166_v63  ;;  %vm2171_vm3 = vweird.f32 %v9072_v46  ;;  %vm2052_vm4 = vmor %vm2050_vm13, %vm2051_vm1  ;;  %v18393_v50 = vld [vmem:[#allocation71_spill] sm:$0xff]  ;;  %v18394_v21 = vld [vmem:[#allocation64_spill] sm:$0xff] }
 0x223   : > { %v1145_v52 = vor.u32 1.1754944e-38, %v18390_v12  ;;  %v9074_v43 = vpop.eup %9073  ;;  %v2163_v54 = vsel %vm11377_vm12, %v2162_v5, %v2158_v22  ;;  %v2177_v34 = vor.u32 1.1754944e-38, %v2176_v59  ;;  %v11416_v3 = vadd.f32 %v2258_v27, %v18391_v0  ;;  %vm2172_vm6 = vmor %vm2170_vm15, %vm2171_vm3  ;;  %v18403_v0 = vld [vmem:[#allocation16_spill] sm:$0xff] }
 0x224   : > { %v2266_v23 = vmul.f32 %v2163_v54, %v11195_v32  ;;  %v2049_v16 = vadd.f32 %v9068_v57, %v2048_v14  ;;  %v2168_v19 = vmul.f32 %v9072_v46, %v2167_v62  ;;  %v11413_v42 = vadd.f32 1.0, %v9074_v43 }
 0x225   : > { %v1146_v18 = vsel %vm1143_vm14, %v1145_v52, %v1141_v24  ;;  %18392 = vst [vmem:[#allocation80_spill] sm:$0xff] %v11416_v3  ;;  %v1257_v37 = vadd.f32 %v18394_v21, %v18393_v50  ;;  %vm1259_vm5 = vweird.f32 %v18394_v21  ;;  %v1264_v5 = vand.u32 2147483648, %v18395_v29  ;;  %v18396_v24 = vld [vmem:[#allocation15_spill] sm:$0xff]  ;;  %v18398_v52 = vld [vmem:[#allocation50_spill] sm:$0xff] }
 0x226   : > { %v11425_v59 = vadd.f32 %v2266_v23, %v18396_v24  ;;  %v2053_v32 = vsel %vm2052_vm4, %v9068_v57, %v2049_v16  ;;  %v2169_v63 = vadd.f32 %v9072_v46, %v2168_v19  ;;  %9077 = vrcp.f32 %v11413_v42 }
 0x227   : > { %v9076_v12 = vpop.eup %9075  ;;  %v2058_v27 = vsel %vm11392_vm0, %v2057_v30, %v2053_v32  ;;  %vm1258_vm7 = vweird.f32 %v18395_v29  ;;  %v1262_v28 = vand.u32 2147483647, %v18395_v29  ;;  %v11436_v22 = vmul.f32 %v1146_v18, %v18398_v52  ;;  %v18405_v29 = vld [vmem:[#allocation53_spill] sm:$0xff] }
 0x228   : > { %18397 = vst [vmem:[#allocation57_spill] sm:$0xff] %v11425_v59  ;;  %v2323_v23 = vpack.c.bf16 %v11425_v59, %v11416_v3  ;;  %v2173_v57 = vsel %vm2172_vm6, %v9072_v46, %v2169_v63  ;;  %v2259_v14 = vmul.f32 %v2058_v27, %v11146_v61  ;;  %v1791_v33 = vmul.f32 %v9076_v12, %v11397_v17  ;;  %vm11444_vm9 = vmor %vm1258_vm7, %vm1259_vm5 }
 0x229   : > { %v8264_v30 = vmul.f32 -1.442695, %v11317_v60  ;;  %v8265_v62 = vmul.f32 -1.442695, %v11323_v20  ;;  %v2178_v43 = vsel %vm11400_vm8, %v2177_v34, %v2173_v57  ;;  %v1261_v46 = vsel %vm11444_vm9, %v18394_v21, %v1257_v37 }
 0x22a   : > { %2474 = vmatpush.bf16.msra.mxu2 %v2323_v23  ;;  %v2267_v61 = vmul.f32 %v2178_v43, %v11224_v8  ;;  %v1792_v54 = vsub.f32 1.0, %v1791_v33  ;;  %v1799_v18 = vand.u32 2147483647, %v11397_v17  ;;  %v1265_v16 = vor.u32 1.1754944e-38, %v1264_v5 }
 0x22b   : > { %vm1796_vm12 = vweird.f32 %v9076_v12  ;;  %v1801_v19 = vand.u32 2147483648, %v11397_v17  ;;  %vm1263_vm13 = vcmp.eq.f32.partialorder %v1262_v28, 8.507059e+37  ;;  %v1603_v60 = vand.u32 2147483647, %v11436_v22 }
 0x22c   : > { %v9078_v20 = vpop.eup %9077  ;;  %v11460_v34 = vadd.f32 %v2259_v14, %v18401_v11  ;;  %v11463_v50 = vadd.f32 %v2267_v61, %v18403_v0  ;;  %v1793_v21 = vmul.f32 %v9076_v12, %v1792_v54  ;;  %v1266_v37 = vsel %vm1263_vm13, %v1265_v16, %v1261_v46 }
 0x22d   : > { %9079 = vpow2.f32 %v8264_v30  ;;  %v1911_v8 = vmul.f32 %v9078_v20, %v11413_v42  ;;  %v11467_v5 = vmul.f32 %v1266_v37, %v18405_v29  ;;  %v8269_v24 = vmul.f32 -1.442695, %v1603_v60 }
 0x22e   : > { %18402 = vst [vmem:[#allocation84_spill] sm:$0xff] %v11460_v34  ;;  %9081 = vpow2.f32 %v8265_v62  ;;  %v2324_v32 = vpack.c.bf16 %v11463_v50, %v11460_v34  ;;  %v1794_v63 = vadd.f32 %v9076_v12, %v1793_v21  ;;  %vm1795_vm11 = vweird.f32 %v11397_v17  ;;  %v18431_v34 = vld [vmem:[#allocation86_spill] sm:$0xff] }
 0x22f   : > { %18404 = vst [vmem:[#allocation58_spill] sm:$0xff] %v11463_v50  ;;  %v1534_v27 = vand.u32 2147483648, %v11115_v15  ;;  %vm11474_vm15 = vmor %vm1795_vm11, %vm1796_vm12  ;;  %v1912_v52 = vsub.f32 1.0, %v1911_v8  ;;  %v1611_v23 = vand.u32 2147483647, %v11467_v5  ;;  %9083 = vpow2.f32 %v8269_v24 }
 0x230   : > { %2503 = vmatpush.bf16.msra.mxu3 %v2324_v32  ;;  %v1798_v57 = vsel %vm11474_vm15, %v9076_v12, %v1794_v63  ;;  %vm1800_vm0 = vcmp.eq.f32.partialorder %v1799_v18, 8.507059e+37  ;;  %v1802_v14 = vor.u32 1.1754944e-38, %v1801_v19  ;;  %v1921_v33 = vand.u32 2147483648, %v11413_v42  ;;  %v11518_v63 = vld [vmem:[%s17901_s3 + $0x28] sm:$0xff] }
 0x231   : > { %v1913_v17 = vmul.f32 %v9078_v20, %v1912_v52  ;;  %vm1916_vm8 = vweird.f32 %v9078_v20  ;;  %v1919_v53 = vand.u32 2147483647, %v11413_v42  ;;  %v8277_v30 = vmul.f32 -1.442695, %v1611_v23  ;;  %8331 = vmatmul.msk.bf16.gmra.mxu0 %vm18089_vm2, %v11518_v63  ;;  %8335 = vmatmul.msk.bf16.gmra.mxu1 %vm18089_vm2, %v11518_v63 }
 0x232   : > { %v1300_v62 = vsub.f32 1.0, %v11310_v51  ;;  %v18408_v43 = vand.u32 2147483648, %v11036_v26  ;;  %v1803_v54 = vsel %vm1800_vm0, %v1802_v14, %v1798_v57  ;;  %v11491_v12 = vmul.f32 %v11135_v48, %v11016_v2  ;;  %v18432_v2 = vld [vmem:[#allocation89_spill] sm:$0xff] }
 0x233   : > { %v9080_v16 = vpop.eup %9079  ;;  %v1914_v18 = vadd.f32 %v9078_v20, %v1913_v17  ;;  %vm1915_vm10 = vweird.f32 %v11413_v42  ;;  %9085 = vpow2.f32 %v8277_v30  ;;  %v11496_v51 = vadd.f32 %v10913_v56, %v11305_v47 }
 0x234   : > { %v11486_v46 = vor.u32 1.1754944e-38, %v18408_v43  ;;  %18409 = vst [vmem:[#allocation9_spill] sm:$0xff] %v11491_v12  ;;  %v9082_v19 = vpop.eup %9081  ;;  %v11498_v60 = vor.u32 1.1754944e-38, %v1534_v27  ;;  %v1419_v11 = vmul.f32 %v11343_v4, %v11261_v6  ;;  %vm1917_vm14 = vmor %vm1915_vm10, %vm1916_vm8  ;;  %v1922_v0 = vor.u32 1.1754944e-38, %v1921_v33  ;;  %v18412_v33 = vld [vmem:[#allocation78_spill] sm:$0xff] }
 0x235   : > { %v9084_v21 = vpop.eup %9083  ;;  %v1434_v37 = vmul.f32 %v11352_v44, %v11277_v40  ;;  %v1918_v8 = vsel %vm1917_vm14, %v9078_v20, %v1914_v18  ;;  %vm1920_vm1 = vcmp.eq.f32.partialorder %v1919_v53, 8.507059e+37  ;;  %v2242_v42 = vmul.f32 %v1803_v54, %v11295_v13  ;;  %v18413_v53 = vld [vmem:[#allocation19_spill] sm:$0xff] }
 0x236   : > { %18410 = vst [vmem:[#allocation11_spill] sm:$0xff] %v11498_v60  ;;  %v11507_v29 = vmul.f32 %v11019_v9, %v1300_v62  ;;  %v11511_v47 = vmul.f32 %v11157_v58, %v11036_v26  ;;  %v1923_v24 = vsel %vm1920_vm1, %v1922_v0, %v1918_v8  ;;  %v11513_v32 = vadd.f32 1.0, %v9084_v21  ;;  %v18415_v62 = vld [vmem:[#allocation17_spill] sm:$0xff]  ;;  %v18417_v54 = vld [vmem:[#allocation79_spill] sm:$0xff] }
 0x237   : > { %v11522_v13 = vadd.f32 1.0, %v9080_v16  ;;  %v2250_v28 = vmul.f32 %v1923_v24, %v11328_v38  ;;  %v11527_v52 = vmul.f32 %v11320_v41, %v11115_v15  ;;  %v1420_v23 = vsub.f32 1.0, %v1419_v11 }
 0x238   : > { %18411 = vst [vmem:[#allocation70_spill] sm:$0xff] %v11507_v29  ;;  %v1429_v57 = vand.u32 2147483648, %v11261_v6  ;;  %9087 = vrcp.f32 %v11513_v32  ;;  %vm1153_vm3 = vweird.f32 %v18412_v33  ;;  %v1435_v17 = vsub.f32 1.0, %v1434_v37  ;;  %v18435_v6 = vld [vmem:[#allocation66_spill] sm:$0xff] }
 0x239   : > { %v9086_v14 = vpop.eup %9085  ;;  %v11536_v38 = vadd.f32 1.0, %v9082_v19  ;;  %v11539_v30 = vadd.f32 %v2242_v42, %v18413_v53  ;;  %v11542_v43 = vadd.f32 %v2250_v28, %v18415_v62  ;;  %vm1168_vm4 = vweird.f32 %v18417_v54  ;;  %v18428_v42 = vld [vmem:[#allocation87_spill] sm:$0xff] }
 0x23a   : > { %v11546_v18 = vadd.f32 1.0, %v9086_v14  ;;  %v1157_v11 = vand.u32 2147483647, %v18412_v33  ;;  %v1172_v0 = vand.u32 2147483647, %v18417_v54  ;;  %9089 = vrcp.f32 %v11522_v13 }
 0x23b   : > { %18414 = vst [vmem:[#allocation63_spill] sm:$0xff] %v11539_v30  ;;  %v2315_v19 = vpack.c.bf16 %v11542_v43, %v11539_v30  ;;  %v1814_v37 = vand.u32 2147483647, %v11513_v32  ;;  %v11555_v8 = vor.u32 1.1754944e-38, %v1429_v57  ;;  %v1816_v24 = vand.u32 2147483648, %v11513_v32  ;;  %v18430_v30 = vld [vmem:[#allocation93_spill] sm:$0xff] }
 0x23c   : > { %18416 = vst [vmem:[#allocation10_spill] sm:$0xff] %v11542_v43  ;;  %9091 = vrcp.f32 %v11546_v18  ;;  %v11562_v14 = vmul.f32 %v11343_v4, %v1420_v23  ;;  %v11565_v53 = vmul.f32 %v11352_v44, %v1435_v17  ;;  %vm11568_vm5 = vcmp.eq.f32.partialorder %v1157_v11, 8.507059e+37  ;;  %v18427_v11 = vld [vmem:[#allocation83_spill] sm:$0xff]  ;;  %v18455_v57 = vld [vmem:[#allocation18_spill] sm:$0xff] }
 0x23d   : > { %18418 = vst [vmem:[#allocation12_spill] sm:$0xff] %v11555_v8  ;;  %9093 = vrcp.f32 %v11536_v38  ;;  %2475 = vmatpush.bf16.msra.mxu2 %v2315_v19  ;;  %v18421_v20 = vand.u32 2147483648, %v18412_v33  ;;  %vm11574_vm6 = vcmp.eq.f32.partialorder %v1172_v0, 8.507059e+37  ;;  %v18424_v23 = vand.u32 2147483648, %v18417_v54  ;;  %v11631_v54 = vld [vmem:[%s17901_s3 + $0x30] sm:$0xff] }
 0x23e   : > { %v9088_v62 = vpop.eup %9087  ;;  %vm1810_vm7 = vweird.f32 %v11513_v32  ;;  %vm11582_vm9 = vcmp.eq.f32.partialorder %v1814_v37, 8.507059e+37  ;;  %vm1154_vm12 = vweird.f32 %v18427_v11  ;;  %v1817_v28 = vor.u32 1.1754944e-38, %v1816_v24  ;;  %v18429_v37 = vld [vmem:[#allocation92_spill] sm:$0xff] }
 0x23f   : > { %v1160_v21 = vor.u32 1.1754944e-38, %v18421_v20  ;;  %v1175_v61 = vor.u32 1.1754944e-38, %v18424_v23  ;;  %v1806_v17 = vmul.f32 %v9088_v62, %v11513_v32  ;;  %v1934_v20 = vand.u32 2147483647, %v11546_v18  ;;  %vm1155_vm15 = vmor %vm1153_vm3, %vm1154_vm12 }
 0x240   : > { %v1936_v0 = vand.u32 2147483648, %v11546_v18  ;;  %8338 = vmatmul.msk.bf16.vlgmr.msra.gmra.mxu2 %vm18089_vm2, %v11249_v35  ;;  %vm1169_vm13 = vweird.f32 %v18428_v42  ;;  %v11592_v23 = vpop.eup %9089  ;;  %vm1930_vm11 = vweird.f32 %v11546_v18  ;;  %v1152_v43 = vadd.f32 %v18427_v11, %v18429_v37 }
 0x241   : > { %v1807_v16 = vsub.f32 1.0, %v1806_v17  ;;  %v1167_v24 = vadd.f32 %v18428_v42, %v18430_v30  ;;  %vm1273_vm0 = vweird.f32 %v18431_v34  ;;  %v1277_v59 = vand.u32 2147483647, %v18431_v34  ;;  %vm1170_vm14 = vmor %vm1168_vm4, %vm1169_vm13  ;;  %8332 = vmatmul.msk.bf16.gmra.mxu0 %vm18089_vm2, %v11631_v54  ;;  %8336 = vmatmul.msk.bf16.gmra.mxu1 %vm18089_vm2, %v11631_v54 }
 0x242   : > { %v9092_v50 = vpop.eup %9091  ;;  %v1279_v3 = vand.u32 2147483648, %v18431_v34  ;;  %vm1288_vm8 = vweird.f32 %v18432_v2  ;;  %vm1811_vm10 = vweird.f32 %v9088_v62  ;;  %v1156_v30 = vsel %vm1155_vm15, %v18427_v11, %v1152_v43  ;;  %v18464_v34 = vld [vmem:[#allocation94_spill] sm:$0xff] }
 0x243   : > { %v11605_v17 = vpop.eup %9093  ;;  %v1808_v48 = vmul.f32 %v9088_v62, %v1807_v16  ;;  %v1926_v37 = vmul.f32 %v9092_v50, %v11546_v18  ;;  %vm11613_vm1 = vcmp.eq.f32.partialorder %v1934_v20, 8.507059e+37  ;;  %v1937_v12 = vor.u32 1.1754944e-38, %v1936_v0  ;;  %vm1812_vm4 = vmor %vm1810_vm7, %vm1811_vm10 }
 0x244   : > { %v1161_v9 = vsel %vm11568_vm5, %v1160_v21, %v1156_v30  ;;  %v1171_v16 = vsel %vm1170_vm14, %v18428_v42, %v1167_v24  ;;  %vm1394_vm3 = vweird.f32 %v10881_v45  ;;  %vm1931_vm12 = vweird.f32 %v9092_v50 }
 0x245   : > { %v1809_v29 = vadd.f32 %v9088_v62, %v1808_v48  ;;  %v1927_v8 = vsub.f32 1.0, %v1926_v37  ;;  %v11621_v60 = vmul.f32 %v1161_v9, %v18435_v6  ;;  %v1176_v43 = vsel %vm11574_vm6, %v1175_v61, %v1171_v16  ;;  %v18436_v9 = vld [vmem:[#allocation67_spill] sm:$0xff] }
 0x246   : > { %v1292_v48 = vand.u32 2147483647, %v18432_v2  ;;  %v1294_v21 = vand.u32 2147483648, %v18432_v2  ;;  %v11636_v6 = vmul.f32 %v1176_v43, %v18436_v9  ;;  %vm1409_vm5 = vweird.f32 %v10913_v56 }
 0x247   : > { %v1813_v61 = vsel %vm1812_vm4, %v9088_v62, %v1809_v29  ;;  %v1928_v27 = vmul.f32 %v9092_v50, %v1927_v8  ;;  %vm1274_vm6 = vweird.f32 %v10789_v31  ;;  %v1604_v32 = vand.u32 2147483647, %v11621_v60 }
 0x248   : > { %vm1393_vm7 = vweird.f32 %v10793_v49  ;;  %v1818_v42 = vsel %vm11582_vm9, %v1817_v28, %v1813_v61  ;;  %vm11648_vm13 = vcmp.eq.f32.partialorder %v1277_v59, 8.507059e+37  ;;  %vm1289_vm15 = vweird.f32 %v10828_v7  ;;  %vm11658_vm9 = vmor %vm1930_vm11, %vm1931_vm12  ;;  %v18452_v61 = vld [vmem:[#allocation69_spill] sm:$0xff]  ;;  %v18457_v28 = vld [vmem:[#allocation90_spill] sm:$0xff] }
 0x249   : > { %v1605_v29 = vand.u32 2147483647, %v11636_v6  ;;  %vm1408_vm10 = vweird.f32 %v10831_v1  ;;  %v1929_v8 = vadd.f32 %v9092_v50, %v1928_v27  ;;  %v1272_v59 = vadd.f32 %v10789_v31, %v11045_v25  ;;  %vm1275_vm14 = vmor %vm1273_vm0, %vm1274_vm6 }
 0x24a   : > { %v1280_v62 = vor.u32 1.1754944e-38, %v1279_v3  ;;  %v8270_v19 = vmul.f32 -1.442695, %v1604_v32  ;;  %v1287_v11 = vadd.f32 %v10828_v7, %v11061_v10  ;;  %vm11670_vm4 = vcmp.eq.f32.partialorder %v1292_v48, 8.507059e+37  ;;  %vm1290_vm0 = vmor %vm1288_vm8, %vm1289_vm15  ;;  %v18453_v32 = vld [vmem:[#allocation20_spill] sm:$0xff] }
 0x24b   : > { %v1295_v18 = vor.u32 1.1754944e-38, %v1294_v21  ;;  %v8271_v0 = vmul.f32 -1.442695, %v1605_v29  ;;  %v18443_v24 = vand.u32 2147483647, %v10793_v49  ;;  %v1933_v10 = vsel %vm11658_vm9, %v9092_v50, %v1929_v8  ;;  %v18450_v21 = vld [vmem:[#allocation68_spill] sm:$0xff]  ;;  %vm11749_vm15 = vmor %vm1393_vm7, %vm1394_vm3 }
 0x24c   : > { %v18446_v3 = vand.u32 2147483647, %v10831_v1  ;;  %v2243_v37 = vmul.f32 %v1818_v42, %v11436_v22  ;;  %v1276_v30 = vsel %vm1275_vm14, %v10789_v31, %v1272_v59  ;;  %9095 = vpow2.f32 %v8270_v19  ;;  %vm1410_vm14 = vmor %vm1408_vm10, %vm1409_vm5 }
 0x24d   : > { %vm11676_vm11 = vcmp.eq.f32.partialorder %v18443_v24, 8.507059e+37  ;;  %vm1514_vm6 = vweird.f32 %v11157_v58  ;;  %v1938_v16 = vsel %vm11613_vm1, %v1937_v12, %v1933_v10  ;;  %v1281_v43 = vsel %vm11648_vm13, %v1280_v62, %v1276_v30 }
 0x24e   : > { %vm11682_vm12 = vcmp.eq.f32.partialorder %v18446_v3, 8.507059e+37  ;;  %v1291_v50 = vsel %vm1290_vm0, %v10828_v7, %v1287_v11  ;;  %9097 = vpow2.f32 %v8271_v0  ;;  %v18449_v22 = vsub.f32 1.0, %v11511_v47 }
 0x24f   : > { %v2251_v48 = vmul.f32 %v1938_v16, %v11467_v5  ;;  %v11705_v2 = vmul.f32 %v1281_v43, %v18450_v21  ;;  %v1296_v9 = vsel %vm11670_vm4, %v1295_v18, %v1291_v50  ;;  %vm1513_vm8 = vweird.f32 %v11036_v26 }
 0x250   : > { %v1511_v31 = vmul.f32 %v11157_v58, %v18449_v22  ;;  %v18451_v12 = vand.u32 2147483648, %v11277_v40  ;;  %v1539_v7 = vmul.f32 %v11592_v23, %v11522_v13  ;;  %v1549_v47 = vand.u32 2147483648, %v11522_v13  ;;  %8339 = vmatmul.msk.bf16.gmra.mxu2 %vm18089_vm2, %v11518_v63  ;;  %v18461_v22 = vld [vmem:[#allocation38_spill] sm:$0xff]  ;;  %vm1515_vm5 = vmor %vm1513_vm8, %vm1514_vm6 }
 0x251   : > { %v11718_v27 = vmul.f32 %v1296_v9, %v18452_v61  ;;  %vm1529_vm1 = vweird.f32 %v11320_v41  ;;  %v1554_v5 = vmul.f32 %v11605_v17, %v11536_v38  ;;  %v11724_v42 = vadd.f32 %v2243_v37, %v18453_v32 }
 0x252   : > { %v11712_v33 = vor.u32 1.1754944e-38, %v18451_v12  ;;  %v11727_v29 = vadd.f32 %v2251_v48, %v18455_v57  ;;  %v1612_v8 = vand.u32 2147483647, %v11705_v2  ;;  %vm1183_vm13 = vweird.f32 %v18457_v28  ;;  %v9096_v18 = vpop.eup %9095 }
 0x253   : > { %18454 = vst [vmem:[#allocation60_spill] sm:$0xff] %v11724_v42  ;;  %v18458_v59 = vsub.f32 1.0, %v11527_v52  ;;  %v11736_v19 = vadd.f32 %v11343_v4, %v11562_v14  ;;  %v11740_v11 = vadd.f32 %v11352_v44, %v11565_v53  ;;  %v1613_v20 = vand.u32 2147483647, %v11718_v27 }
 0x254   : > { %18456 = vst [vmem:[#allocation48_spill] sm:$0xff] %v11727_v29  ;;  %vm1528_vm9 = vweird.f32 %v11115_v15  ;;  %v1564_v53 = vand.u32 2147483648, %v11536_v38  ;;  %v2316_v0 = vpack.c.bf16 %v11727_v29, %v11724_v42  ;;  %v8278_v24 = vmul.f32 -1.442695, %v1612_v8  ;;  %v9098_v3 = vpop.eup %9097 }
 0x255   : > { %v1526_v62 = vmul.f32 %v11320_v41, %v18458_v59  ;;  %v1540_v49 = vsub.f32 1.0, %v1539_v7  ;;  %v11762_v10 = vor.u32 1.1754944e-38, %v1549_v47  ;;  %v11764_v37 = vadd.f32 1.0, %v9096_v18  ;;  %vm1530_vm4 = vmor %vm1528_vm9, %vm1529_vm1 }
 0x256   : > { %v8279_v30 = vmul.f32 -1.442695, %v1613_v20  ;;  %v1555_v16 = vsub.f32 1.0, %v1554_v5  ;;  %2504 = vmatpush.bf16.msra.mxu3 %v2316_v0  ;;  %v1396_v43 = vsel %vm11749_vm15, %v10881_v45, %v11302_v55  ;;  %v1411_v50 = vsel %vm1410_vm14, %v10913_v56, %v11496_v51  ;;  %v18462_v45 = vld [vmem:[#allocation73_spill] sm:$0xff]  ;;  %v18463_v56 = vld [vmem:[#allocation74_spill] sm:$0xff] }
 0x257   : > { %9099 = vpow2.f32 %v8278_v24  ;;  %v1401_v1 = vsel %vm11676_vm11, %v18461_v22, %v1396_v43  ;;  %v1416_v48 = vsel %vm11682_vm12, %v11072_v36, %v1411_v50  ;;  %v11779_v21 = vadd.f32 1.0, %v9098_v3  ;;  %v11795_v36 = vld [vmem:[%s17901_s3 + $0x38] sm:$0xff] }
 0x258   : > { %9101 = vrcp.f32 %v11764_v37  ;;  %v11782_v12 = vor.u32 1.1754944e-38, %v1564_v53  ;;  %v11785_v55 = vmul.f32 %v1401_v1, %v18462_v45  ;;  %v11788_v51 = vmul.f32 %v1416_v48, %v18463_v56  ;;  %8333 = vmatmul.msk.bf16.gmra.mxu0 %vm18089_vm2, %v11795_v36  ;;  %8337 = vmatmul.msk.bf16.gmra.mxu1 %vm18089_vm2, %v11795_v36  ;;  %v18471_v50 = vld [vmem:[#allocation11_spill] sm:$0xff] }
 0x259   : > { %8342 = vmatmul.msk.bf16.vlgmr.msra.gmra.mxu3 %vm18089_vm2, %v11249_v35  ;;  %v1512_v25 = vadd.f32 %v11157_v58, %v1511_v31  ;;  %9103 = vpow2.f32 %v8279_v30  ;;  %v1182_v7 = vadd.f32 %v18464_v34, %v11082_v39  ;;  %vm1184_vm3 = vweird.f32 %v18464_v34 }
 0x25a   : > { %v11806_v35 = vmul.f32 %v11592_v23, %v1540_v49  ;;  %v11809_v47 = vmul.f32 %v11605_v17, %v1555_v16  ;;  %v1620_v61 = vand.u32 2147483647, %v11785_v55  ;;  %v1621_v31 = vand.u32 2147483647, %v11788_v51  ;;  %vm11828_vm10 = vmor %vm1183_vm13, %vm1184_vm3 }
 0x25b   : > { %v1516_v39 = vsel %vm1515_vm5, %v11157_v58, %v1512_v25  ;;  %v18465_v5 = vand.u32 2147483647, %v11036_v26  ;;  %9105 = vrcp.f32 %v11779_v21  ;;  %v1187_v32 = vand.u32 2147483647, %v18457_v28 }
 0x25c   : > { %v8286_v59 = vmul.f32 -1.442695, %v1620_v61  ;;  %v1527_v20 = vadd.f32 %v11320_v41, %v1526_v62  ;;  %v8287_v18 = vmul.f32 -1.442695, %v1621_v31  ;;  %v1186_v53 = vsel %vm11828_vm10, %v18464_v34, %v1182_v7  ;;  %v18473_v34 = vld [vmem:[#allocation8_spill] sm:$0xff] }
 0x25d   : > { %vm1518_vm7 = vcmp.eq.f32.partialorder %v18465_v5, 8.507059e+37  ;;  %v9100_v57 = vpop.eup %9099  ;;  %v18469_v0 = vand.u32 2147483648, %v18457_v28  ;;  %v18470_v49 = vand.u32 2147483647, %v11115_v15  ;;  %vm1188_vm12 = vcmp.eq.f32.partialorder %v1187_v32, 8.507059e+37  ;;  %v18472_v28 = vld [vmem:[#allocation77_spill] sm:$0xff] }
 0x25e   : > { %v1521_v8 = vsel %vm1518_vm7, %v11486_v46, %v1516_v39  ;;  %v11832_v26 = vpop.eup %9101  ;;  %v18468_v46 = vld [vmem:[#allocation76_spill] sm:$0xff]  ;;  %v11841_v62 = vadd.f32 1.0, %v9100_v57  ;;  %9107 = vpow2.f32 %v8286_v59  ;;  %v1531_v3 = vsel %vm1530_vm4, %v11320_v41, %v1527_v20 }
 0x25f   : > { %v11839_v52 = vmul.f32 %v1521_v8, %v18468_v46  ;;  %v1190_v24 = vor.u32 1.1754944e-38, %v18469_v0  ;;  %vm1533_vm11 = vcmp.eq.f32.partialorder %v18470_v49, 8.507059e+37  ;;  %v1821_v30 = vmul.f32 %v11832_v26, %v11764_v37  ;;  %v9104_v16 = vpop.eup %9103 }
 0x260   : > { %v1536_v22 = vsel %vm1533_vm11, %v18471_v50, %v1531_v3  ;;  %9109 = vpow2.f32 %v8287_v18  ;;  %vm1424_vm0 = vweird.f32 %v11343_v4  ;;  %vm1825_vm6 = vweird.f32 %v11764_v37  ;;  %8340 = vmatmul.msk.bf16.gmra.mxu2 %vm18089_vm2, %v11631_v54 }
 0x261   : > { %v1628_v43 = vand.u32 2147483647, %v11839_v52  ;;  %v11857_v1 = vmul.f32 %v1536_v22, %v18472_v28  ;;  %v1822_v48 = vsub.f32 1.0, %v1821_v30  ;;  %9111 = vrcp.f32 %v11841_v62  ;;  %v11862_v41 = vpop.eup %9105 }
 0x262   : > { %v11860_v15 = vsel %vm1188_vm12, %v1190_v24, %v1186_v53  ;;  %v1829_v56 = vand.u32 2147483647, %v11764_v37  ;;  %v11866_v25 = vadd.f32 1.0, %v9104_v16  ;;  %vm1423_vm8 = vweird.f32 %v18473_v34 }
 0x263   : > { %v8294_v45 = vmul.f32 -1.442695, %v1628_v43  ;;  %v1629_v7 = vand.u32 2147483647, %v11857_v1  ;;  %v1823_v61 = vmul.f32 %v11832_v26, %v1822_v48  ;;  %vm1826_vm1 = vweird.f32 %v11832_v26  ;;  %vm11939_vm10 = vmor %vm1423_vm8, %vm1424_vm0 }
 0x264   : > { %v1836_v31 = vmul.f32 %v11862_v41, %v11779_v21  ;;  %v1831_v39 = vand.u32 2147483648, %v11764_v37  ;;  %v1951_v5 = vand.u32 2147483648, %v11841_v62  ;;  %v1846_v32 = vand.u32 2147483648, %v11779_v21  ;;  %v9108_v57 = vpop.eup %9107  ;;  %vm11885_vm13 = vmor %vm1825_vm6, %vm1826_vm1 }
 0x265   : > { %9113 = vpow2.f32 %v8294_v45  ;;  %v8295_v8 = vmul.f32 -1.442695, %v1629_v7  ;;  %v1824_v59 = vadd.f32 %v11832_v26, %v1823_v61  ;;  %v11881_v58 = vadd.f32 1.0, %v9108_v57 }
 0x266   : > { %v1837_v20 = vsub.f32 1.0, %v1836_v31  ;;  %9115 = vrcp.f32 %v11866_v25  ;;  %v9110_v18 = vpop.eup %9109  ;;  %vm11889_vm15 = vcmp.eq.f32.partialorder %v1829_v56, 8.507059e+37  ;;  %vm1840_vm9 = vweird.f32 %v11779_v21 }
 0x267   : > { %v1844_v0 = vand.u32 2147483647, %v11779_v21  ;;  %v11895_v24 = vpop.eup %9111  ;;  %9117 = vpow2.f32 %v8295_v8  ;;  %v11897_v3 = vadd.f32 1.0, %v9110_v18  ;;  %v1828_v37 = vsel %vm11885_vm13, %v11832_v26, %v1824_v59 }
 0x268   : > { %v1949_v49 = vand.u32 2147483647, %v11841_v62  ;;  %9119 = vrcp.f32 %v11881_v58  ;;  %v1832_v30 = vor.u32 1.1754944e-38, %v1831_v39  ;;  %v1838_v16 = vmul.f32 %v11862_v41, %v1837_v20 }
 0x269   : > { %v11905_v43 = vor.u32 1.1754944e-38, %v1846_v32  ;;  %v2071_v50 = vand.u32 2147483648, %v11881_v58  ;;  %9121 = vrcp.f32 %v11897_v3  ;;  %vm1945_vm14 = vweird.f32 %v11841_v62  ;;  %8343 = vmatmul.msk.bf16.gmra.mxu3 %vm18089_vm2, %v11518_v63 }
 0x26a   : > { %v11910_v22 = vor.u32 1.1754944e-38, %v1951_v5  ;;  %v1833_v26 = vsel %vm11889_vm15, %v1832_v30, %v1828_v37  ;;  %v1941_v48 = vmul.f32 %v11895_v24, %v11841_v62  ;;  %vm1841_vm3 = vweird.f32 %v11862_v41 }
 0x26b   : > { %v9114_v28 = vpop.eup %9113  ;;  %vm11919_vm5 = vcmp.eq.f32.partialorder %v1844_v0, 8.507059e+37  ;;  %v2069_v31 = vand.u32 2147483647, %v11881_v58  ;;  %v2086_v39 = vand.u32 2147483648, %v11897_v3  ;;  %vm11930_vm7 = vcmp.eq.f32.partialorder %v1949_v49, 8.507059e+37  ;;  %vm11977_vm6 = vmor %vm1840_vm9, %vm1841_vm3 }
 0x26c   : > { %v11924_v7 = vpop.eup %9115  ;;  %v11926_v61 = vadd.f32 1.0, %v9114_v28  ;;  %v2084_v8 = vand.u32 2147483647, %v11897_v3  ;;  %v1942_v59 = vsub.f32 1.0, %v1941_v48  ;;  %v2244_v20 = vmul.f32 %v1833_v26, %v11621_v60 }
 0x26d   : > { %v1839_v18 = vadd.f32 %v11862_v41, %v1838_v16  ;;  %v9118_v46 = vpop.eup %9117  ;;  %vm2065_vm4 = vweird.f32 %v11881_v58  ;;  %v11947_v53 = vor.u32 1.1754944e-38, %v2071_v50  ;;  %v1956_v16 = vmul.f32 %v11924_v7, %v11866_v25 }
 0x26e   : > { %9123 = vrcp.f32 %v11926_v61  ;;  %v11954_v37 = vpop.eup %9119  ;;  %v2191_v49 = vand.u32 2147483648, %v11926_v61  ;;  %v11957_v30 = vadd.f32 1.0, %v9118_v46  ;;  %v1943_v60 = vmul.f32 %v11895_v24, %v1942_v59 }
 0x26f   : > { %v11963_v50 = vpop.eup %9121  ;;  %v2061_v28 = vmul.f32 %v11954_v37, %v11881_v58  ;;  %vm11967_vm12 = vcmp.eq.f32.partialorder %v2069_v31, 8.507059e+37  ;;  %v2189_v48 = vand.u32 2147483647, %v11926_v61  ;;  %v2087_v46 = vor.u32 1.1754944e-38, %v2086_v39  ;;  %v18490_v39 = vld [vmem:[#allocation27_spill] sm:$0xff] }
 0x270   : > { %vm1946_vm0 = vweird.f32 %v11895_v24  ;;  %v2076_v0 = vmul.f32 %v11963_v50, %v11897_v3  ;;  %vm11983_vm8 = vcmp.eq.f32.partialorder %v2084_v8, 8.507059e+37  ;;  %9125 = vrcp.f32 %v11957_v30  ;;  %8341 = vmatmul.msk.bf16.gmra.mxu2 %vm18089_vm2, %v11795_v36 }
 0x271   : > { %v11989_v9 = vadd.f32 %v2244_v20, %v18490_v39  ;;  %v1843_v21 = vsel %vm11977_vm6, %v11862_v41, %v1839_v18  ;;  %v2062_v32 = vsub.f32 1.0, %v2061_v28  ;;  %vm2066_vm15 = vweird.f32 %v11954_v37  ;;  %vm1947_vm1 = vmor %vm1945_vm14, %vm1946_vm0 }
 0x272   : > { %v2206_v8 = vand.u32 2147483648, %v11957_v30  ;;  %v1944_v14 = vadd.f32 %v11895_v24, %v1943_v60  ;;  %v18492_v56 = vand.u32 2147483647, %v18473_v34  ;;  %v12007_v41 = vor.u32 1.1754944e-38, %v2191_v49 }
 0x273   : > { %18491 = vst [vmem:[#allocation52_spill] sm:$0xff] %v11989_v9  ;;  %v2077_v18 = vsub.f32 1.0, %v2076_v0  ;;  %vm2081_vm13 = vweird.f32 %v11963_v50  ;;  %v1957_v60 = vsub.f32 1.0, %v1956_v16  ;;  %v2204_v28 = vand.u32 2147483647, %v11957_v30 }
 0x274   : > { %vm12001_vm9 = vcmp.eq.f32.partialorder %v18492_v56, 8.507059e+37  ;;  %v12014_v34 = vpop.eup %9123  ;;  %v2063_v56 = vmul.f32 %v11954_v37, %v2062_v32  ;;  %v1948_v49 = vsel %vm1947_vm1, %v11895_v24, %v1944_v14  ;;  %v1848_v0 = vsel %vm11919_vm5, %v11905_v43, %v1843_v21  ;;  %v18536_v43 = vld [vmem:[#allocation26_spill] sm:$0xff] }
 0x275   : > { %v2181_v62 = vmul.f32 %v12014_v34, %v11926_v61  ;;  %vm12026_vm14 = vcmp.eq.f32.partialorder %v2189_v48, 8.507059e+37  ;;  %v2078_v59 = vmul.f32 %v11963_v50, %v2077_v18  ;;  %v1953_v14 = vsel %vm11930_vm7, %v11910_v22, %v1948_v49  ;;  %vm2067_vm7 = vmor %vm2065_vm4, %vm2066_vm15 }
 0x276   : > { %vm1961_vm5 = vweird.f32 %v11924_v7  ;;  %v18497_v24 = vand.u32 2147483647, %v11277_v40  ;;  %v2064_v45 = vadd.f32 %v11954_v37, %v2063_v56  ;;  %v2207_v32 = vor.u32 1.1754944e-38, %v2206_v8  ;;  %v9126_v22 = vpop.eup %9125 }
 0x277   : > { %v2252_v48 = vmul.f32 %v1953_v14, %v11705_v2  ;;  %v1958_v5 = vmul.f32 %v11924_v7, %v1957_v60  ;;  %v2182_v39 = vsub.f32 1.0, %v2181_v62  ;;  %v2079_v21 = vadd.f32 %v11963_v50, %v2078_v59  ;;  %v18509_v62 = vld [vmem:[#allocation25_spill] sm:$0xff] }
 0x278   : > { %vm12039_vm0 = vcmp.eq.f32.partialorder %v18497_v24, 8.507059e+37  ;;  %v18500_v18 = vand.u32 2147483647, %v11866_v25  ;;  %v18503_v2 = vand.u32 2147483647, %v11522_v13  ;;  %vm1558_vm6 = vweird.f32 %v11536_v38 }
 0x279   : > { %v2068_v58 = vsel %vm2067_vm7, %v11954_v37, %v2064_v45  ;;  %vm18506_vm4 = vweird.f32 %v11897_v3  ;;  %v2196_v60 = vmul.f32 %v9126_v22, %v11957_v30  ;;  %vm12073_vm11 = vcmp.eq.f32.partialorder %v2204_v28, 8.507059e+37  ;;  %8344 = vmatmul.msk.bf16.gmra.mxu3 %vm18089_vm2, %v11631_v54 }
 0x27a   : > { %vm12056_vm1 = vcmp.eq.f32.partialorder %v18500_v18, 8.507059e+37  ;;  %vm12062_vm3 = vcmp.eq.f32.partialorder %v18503_v2, 8.507059e+37  ;;  %vm2082_vm15 = vmor %vm18506_vm4, %vm2081_vm13  ;;  %v12078_v59 = vadd.f32 %v2252_v48, %v18509_v62  ;;  %v18511_v14 = vand.u32 2147483648, %v11866_v25 }
 0x27b   : > { %v2073_v37 = vsel %vm11967_vm12, %v11947_v53, %v2068_v58  ;;  %v2183_v45 = vmul.f32 %v12014_v34, %v2182_v39  ;;  %v2083_v3 = vsel %vm2082_vm15, %v11963_v50, %v2079_v21  ;;  %v1959_v18 = vadd.f32 %v11924_v7, %v1958_v5  ;;  %v18524_v21 = vld [vmem:[#allocation21_spill] sm:$0xff] }
 0x27c   : > { %18510 = vst [vmem:[#allocation37_spill] sm:$0xff] %v12078_v59  ;;  %v1967_v24 = vor.u32 1.1754944e-38, %v18511_v14  ;;  %v2260_v28 = vmul.f32 %v2073_v37, %v11785_v55  ;;  %v2088_v2 = vsel %vm11983_vm8, %v2087_v46, %v2083_v3  ;;  %v2197_v48 = vsub.f32 1.0, %v2196_v60  ;;  %v18539_v37 = vld [vmem:[#allocation82_spill] sm:$0xff] }
 0x27d   : > { %vm18512_vm13 = vweird.f32 %v11866_v25  ;;  %v2245_v26 = vmul.f32 %v1848_v0, %v11636_v6  ;;  %v18513_v53 = vand.u32 2147483647, %v11536_v38  ;;  %v2184_v55 = vadd.f32 %v12014_v34, %v2183_v45  ;;  %v18540_v3 = vld [vmem:[#allocation70_spill] sm:$0xff] }
 0x27e   : > { %vm1962_vm7 = vmor %vm18512_vm13, %vm1961_vm5  ;;  %vm2201_vm8 = vweird.f32 %v9126_v22  ;;  %v2261_v50 = vmul.f32 %v2088_v2, %v11788_v51  ;;  %vm18516_vm5 = vweird.f32 %v12014_v34  ;;  %vm18517_vm4 = vweird.f32 %v11926_v61  ;;  %v18519_v51 = vld [vmem:[#allocation12_spill] sm:$0xff] }
 0x27f   : > { %vm12098_vm12 = vcmp.eq.f32.partialorder %v18513_v53, 8.507059e+37  ;;  %v1963_v46 = vsel %vm1962_vm7, %v11924_v7, %v1959_v18  ;;  %vm2187_vm15 = vmor %vm18517_vm4, %vm18516_vm5  ;;  %v2198_v6 = vmul.f32 %v9126_v22, %v2197_v48  ;;  %v2317_v25 = vpack.c.bf16 %v12078_v59, %v11989_v9  ;;  %v18541_v18 = vld [vmem:[#allocation59_spill] sm:$0xff]  ;;  %v18542_v2 = vld [vmem:[#allocation24_spill] sm:$0xff] }
 0x280   : > { %v1968_v31 = vsel %vm12056_vm1, %v1967_v24, %v1963_v46  ;;  %v18518_v0 = vsel %vm11939_vm10, %v11343_v4, %v11736_v19  ;;  %vm18520_vm13 = vweird.f32 %v11352_v44  ;;  %vm18521_vm7 = vweird.f32 %v11277_v40  ;;  %v18526_v19 = vld [vmem:[#allocation95_spill] sm:$0xff] }
 0x281   : > { %v1431_v7 = vsel %vm12001_vm9, %v18519_v51, %v18518_v0  ;;  %vm12127_vm5 = vmor %vm18521_vm7, %vm18520_vm13  ;;  %v2188_v5 = vsel %vm2187_vm15, %v12014_v34, %v2184_v55  ;;  %v12133_v56 = vadd.f32 %v2260_v28, %v18524_v21  ;;  %v2253_v57 = vmul.f32 %v1968_v31, %v11718_v27  ;;  %v18529_v34 = vld [vmem:[#allocation81_spill] sm:$0xff]  ;;  %v18545_v31 = vld [vmem:[#allocation72_spill] sm:$0xff] }
 0x282   : > { %v1542_v4 = vadd.f32 %v11592_v23, %v11806_v35  ;;  %vm1303_vm10 = vweird.f32 %v18526_v19  ;;  %vm18527_vm9 = vweird.f32 %v11592_v23  ;;  %vm18528_vm1 = vweird.f32 %v11522_v13  ;;  %v18531_v13 = vld [vmem:[#allocation22_spill] sm:$0xff]  ;;  %v18546_v51 = vld [vmem:[#allocation28_spill] sm:$0xff] }
 0x283   : > { %18525 = vst [vmem:[#allocation51_spill] sm:$0xff] %v12133_v56  ;;  %vm1545_vm4 = vmor %vm18528_vm1, %vm18527_vm9  ;;  %v2193_v40 = vsel %vm12026_vm14, %v12007_v41, %v2188_v5  ;;  %v2199_v20 = vadd.f32 %v9126_v22, %v2198_v6  ;;  %v12147_v58 = vmul.f32 %v1431_v7, %v18529_v34  ;;  %v1441_v27 = vsel %vm12127_vm5, %v11352_v44, %v11740_v11 }
 0x284   : > { %v2268_v35 = vmul.f32 %v2193_v40, %v11839_v52  ;;  %vm18530_vm15 = vweird.f32 %v11957_v30  ;;  %v12158_v60 = vadd.f32 %v2261_v50, %v18531_v13  ;;  %v1546_v41 = vsel %vm1545_vm4, %v11592_v23, %v1542_v4  ;;  %v18534_v23 = vld [vmem:[#allocation23_spill] sm:$0xff]  ;;  %v18548_v4 = vld [vmem:[#allocation9_spill] sm:$0xff] }
 0x285   : > { %vm2202_vm13 = vmor %vm18530_vm15, %vm2201_vm8  ;;  %v1446_v16 = vsel %vm12039_vm0, %v11712_v33, %v1441_v27  ;;  %v1551_v44 = vsel %vm12062_vm3, %v11762_v10, %v1546_v41  ;;  %v1622_v11 = vand.u32 2147483647, %v12147_v58  ;;  %v1557_v52 = vadd.f32 %v11605_v17, %v11809_v47  ;;  %v18538_v10 = vld [vmem:[#allocation85_spill] sm:$0xff]  ;;  %v18551_v27 = vld [vmem:[#allocation75_spill] sm:$0xff] }
 0x286   : > { %18532 = vst [vmem:[#allocation65_spill] sm:$0xff] %v12158_v60  ;;  %v2203_v62 = vsel %vm2202_vm13, %v9126_v22, %v2199_v20  ;;  %vm18533_vm14 = vweird.f32 %v11605_v17  ;;  %v12175_v30 = vadd.f32 %v2268_v35, %v18534_v23  ;;  %v12180_v22 = vadd.f32 %v2253_v57, %v18536_v43  ;;  %v18550_v40 = vld [vmem:[#allocation45_spill] sm:$0xff] }
 0x287   : > { %vm1560_vm8 = vmor %vm1558_vm6, %vm18533_vm14  ;;  %v2208_v33 = vsel %vm12073_vm11, %v2207_v32, %v2203_v62  ;;  %v12183_v8 = vmul.f32 %v1551_v44, %v18538_v10  ;;  %v8288_v47 = vmul.f32 -1.442695, %v1622_v11  ;;  %v12188_v38 = vmul.f32 %v1446_v16, %v18539_v37  ;;  %v18552_v16 = vld [vmem:[#allocation46_spill] sm:$0xff]  ;;  %v18553_v62 = vld [vmem:[#allocation40_spill] sm:$0xff] }
 0x288   : > { %18535 = vst [vmem:[#allocation62_spill] sm:$0xff] %v12175_v30  ;;  %v2269_v14 = vmul.f32 %v2208_v33, %v11857_v1  ;;  %v1561_v24 = vsel %vm1560_vm8, %v11605_v17, %v1557_v52  ;;  %v2325_v45 = vpack.c.bf16 %v12175_v30, %v12133_v56  ;;  %v1302_v28 = vadd.f32 %v18541_v18, %v18540_v3  ;;  %v18544_v17 = vld [vmem:[#allocation88_spill] sm:$0xff]  ;;  %v18559_v3 = vld [vmem:[#allocation42_spill] sm:$0xff] }
 0x289   : > { %18537 = vst [vmem:[#allocation13_spill] sm:$0xff] %v12180_v22  ;;  %v1630_v49 = vand.u32 2147483647, %v12183_v8  ;;  %v1566_v32 = vsel %vm12098_vm12, %v11782_v12, %v1561_v24  ;;  %9127 = vpow2.f32 %v8288_v47  ;;  %v1623_v53 = vand.u32 2147483647, %v12188_v38  ;;  %8345 = vmatmul.msk.bf16.gmra.mxu3 %vm18089_vm2, %v11795_v36  ;;  %v12241_v52 = vld [vmem:[%s17901_s3 + $0x20] sm:$0xff] }
 0x28a   : > { %v12199_v1 = vadd.f32 %v2269_v14, %v18542_v2  ;;  %v12202_v48 = vmul.f32 %v1566_v32, %v18544_v17  ;;  %2532 = vmatpush.bf16.msrb.mxu0 %v2325_v45  ;;  %vm1304_vm11 = vweird.f32 %v18541_v18  ;;  %v1307_v50 = vand.u32 2147483647, %v18526_v19  ;;  %v18557_v45 = vld [vmem:[#allocation39_spill] sm:$0xff] }
 0x28b   : > { %v8296_v55 = vmul.f32 -1.442695, %v1630_v49  ;;  %v1309_v12 = vand.u32 2147483648, %v18526_v19  ;;  %v8289_v6 = vmul.f32 -1.442695, %v1623_v53  ;;  %vm1305_vm3 = vmor %vm1303_vm10, %vm1304_vm11  ;;  %v12215_v0 = vmul.f32 %v11860_v15, %v18545_v31  ;;  %v18558_v49 = vld [vmem:[#allocation44_spill] sm:$0xff] }
 0x28c   : > { %18543 = vst [vmem:[#allocation71_spill] sm:$0xff] %v12199_v1  ;;  %v2326_v39 = vpack.c.bf16 %v12199_v1, %v12158_v60  ;;  %v1631_v46 = vand.u32 2147483647, %v12202_v48  ;;  %v12218_v7 = vadd.f32 %v2245_v26, %v18546_v51  ;;  %v1306_v61 = vsel %vm1305_vm3, %v18541_v18, %v1302_v28  ;;  %v18560_v18 = vld [vmem:[#allocation55_spill] sm:$0xff] }
 0x28d   : > { %9129 = vpow2.f32 %v8296_v55  ;;  %v1310_v5 = vor.u32 1.1754944e-38, %v1309_v12  ;;  %vm1308_vm6 = vcmp.eq.f32.partialorder %v1307_v50, 8.507059e+37  ;;  %v1606_v57 = vand.u32 2147483647, %v12215_v0  ;;  %v18561_v12 = vld [vmem:[#allocation41_spill] sm:$0xff] }
 0x28e   : > { %18547 = vst [vmem:[#allocation64_spill] sm:$0xff] %v12218_v7  ;;  %2561 = vmatpush.bf16.msrb.mxu1 %v2326_v39  ;;  %9131 = vpow2.f32 %v8289_v6  ;;  %v8297_v21 = vmul.f32 -1.442695, %v1631_v46  ;;  %v18549_v19 = vsub.f32 1.0, %v18548_v4  ;;  %2533 = vmatpush.bf16.msrb.mxu0 %v2317_v25  ;;  %v2318_v26 = vpack.c.bf16 %v12180_v22, %v12218_v7  ;;  %v18554_v25 = vld [vmem:[#allocation91_spill] sm:$0xff] }
 0x28f   : > { %v1311_v15 = vsel %vm1308_vm6, %v1310_v5, %v1306_v61  ;;  %v9128_v34 = vpop.eup %9127  ;;  %v8272_v13 = vmul.f32 -1.442695, %v1606_v57  ;;  %v1197_v44 = vadd.f32 %v18553_v62, %v18552_v16  ;;  %vm1199_vm0 = vweird.f32 %v18553_v62 }
 0x290   : > { %v1316_v20 = vmul.f32 %v18550_v40, %v18549_v19  ;;  %9133 = vpow2.f32 %v8297_v21  ;;  %v12228_v35 = vmul.f32 %v1311_v15, %v18551_v27  ;;  %v12232_v41 = vadd.f32 1.0, %v9128_v34 }
 0x291   : > { %v1204_v11 = vand.u32 2147483648, %v18554_v25  ;;  %8346 = vmatmul.msk.bf16.vlgmr.msrb.gmra.mxu0 %vm18089_vm2, %v12241_v52  ;;  %9135 = vpow2.f32 %v8272_v13  ;;  %vm1198_vm12 = vweird.f32 %v18554_v25  ;;  %v1202_v43 = vand.u32 2147483647, %v18554_v25 }
 0x292   : > { %2562 = vmatpush.bf16.msrb.mxu1 %v2318_v26  ;;  %v1614_v23 = vand.u32 2147483647, %v12228_v35  ;;  %9137 = vrcp.f32 %v12232_v41  ;;  %vm12251_vm7 = vmor %vm1198_vm12, %vm1199_vm0  ;;  %v12256_v37 = vadd.f32 %v18550_v40, %v1316_v20  ;;  %vm1319_vm5 = vweird.f32 %v18550_v40 }
 0x293   : > { %v9130_v33 = vpop.eup %9129  ;;  %v941_v32 = vadd.f32 %v18558_v49, %v18557_v45  ;;  %v12263_v28 = vadd.f32 %v18560_v18, %v18559_v3  ;;  %v1201_v17 = vsel %vm12251_vm7, %v18553_v62, %v1197_v44  ;;  %v2099_v55 = vand.u32 2147483647, %v12232_v41 }
 0x294   : > { %v9132_v10 = vpop.eup %9131  ;;  %v12249_v14 = vadd.f32 1.0, %v9130_v33  ;;  %v8280_v47 = vmul.f32 -1.442695, %v1614_v23  ;;  %v1205_v50 = vor.u32 1.1754944e-38, %v1204_v11  ;;  %vm1318_vm10 = vweird.f32 %v18561_v12 }
 0x295   : > { %8350 = vmatmul.msk.bf16.vlgmr.msrb.gmra.mxu1 %vm18089_vm2, %v12241_v52  ;;  %v12267_v2 = vadd.f32 1.0, %v9132_v10  ;;  %v2101_v39 = vand.u32 2147483648, %v12232_v41  ;;  %vm1203_vm9 = vcmp.eq.f32.partialorder %v1202_v43, 8.507059e+37  ;;  %vm12281_vm1 = vmor %vm1318_vm10, %vm1319_vm5  ;;  %vm2095_vm4 = vweird.f32 %v12232_v41 }
 0x296   : > { %v9134_v53 = vpop.eup %9133  ;;  %9139 = vrcp.f32 %v12249_v14  ;;  %v1206_v51 = vsel %vm1203_vm9, %v1205_v50, %v1201_v17  ;;  %v1321_v61 = vsel %vm12281_vm1, %v18550_v40, %v12256_v37  ;;  %v2219_v21 = vand.u32 2147483647, %v12249_v14 }
 0x297   : > { %v12276_v46 = vadd.f32 1.0, %v9134_v53  ;;  %9141 = vrcp.f32 %v12267_v2  ;;  %v9136_v31 = vpop.eup %9135  ;;  %v2221_v57 = vand.u32 2147483648, %v12249_v14  ;;  %v1322_v4 = vand.u32 2147483647, %v18561_v12 }
 0x298   : > { %9143 = vpow2.f32 %v8280_v47  ;;  %v9138_v5 = vpop.eup %9137  ;;  %vm12295_vm15 = vcmp.eq.f32.partialorder %v2099_v55, 8.507059e+37  ;;  %v2114_v15 = vand.u32 2147483647, %v12267_v2  ;;  %v2116_v34 = vand.u32 2147483648, %v12267_v2 }
 0x299   : > { %9145 = vrcp.f32 %v12276_v46  ;;  %v2091_v19 = vmul.f32 %v9138_v5, %v12232_v41  ;;  %v2102_v40 = vor.u32 1.1754944e-38, %v2101_v39  ;;  %v2236_v26 = vand.u32 2147483648, %v12276_v46 }
 0x29a   : > { %v12302_v27 = vadd.f32 1.0, %v9136_v31  ;;  %v1324_v13 = vand.u32 2147483648, %v18561_v12  ;;  %vm2215_vm13 = vweird.f32 %v12249_v14  ;;  %vm2110_vm14 = vweird.f32 %v12267_v2 }
 0x29b   : > { %v2092_v62 = vsub.f32 1.0, %v2091_v19  ;;  %v2234_v44 = vand.u32 2147483647, %v12276_v46  ;;  %vm2096_vm8 = vweird.f32 %v9138_v5  ;;  %vm12309_vm11 = vcmp.eq.f32.partialorder %v2219_v21, 8.507059e+37 }
 0x29c   : > { %v9140_v16 = vpop.eup %9139  ;;  %v2222_v33 = vor.u32 1.1754944e-38, %v2221_v57  ;;  %9147 = vrcp.f32 %v12302_v27  ;;  %vm12315_vm3 = vcmp.eq.f32.partialorder %v2114_v15, 8.507059e+37  ;;  %v2117_v37 = vor.u32 1.1754944e-38, %v2116_v34  ;;  %vm2097_vm7 = vmor %vm2095_vm4, %vm2096_vm8 }
 0x29d   : > { %v9142_v25 = vpop.eup %9141  ;;  %v2211_v11 = vmul.f32 %v9140_v16, %v12249_v14  ;;  %v2093_v10 = vmul.f32 %v9138_v5, %v2092_v62  ;;  %vm2230_vm6 = vweird.f32 %v12276_v46  ;;  %vm12320_vm0 = vcmp.eq.f32.partialorder %v1322_v4, 8.507059e+37  ;;  %v12357_v14 = vld [vmem:[%s17901_s3 + $0x28] sm:$0xff] }
 0x29e   : > { %v9144_v43 = vpop.eup %9143  ;;  %v2106_v47 = vmul.f32 %v9142_v25, %v12267_v2  ;;  %v2237_v18 = vor.u32 1.1754944e-38, %v2236_v26  ;;  %v1325_v53 = vor.u32 1.1754944e-38, %v1324_v13  ;;  %vm12327_vm12 = vcmp.eq.f32.partialorder %v2234_v44, 8.507059e+37 }
 0x29f   : > { %v9146_v49 = vpop.eup %9145  ;;  %v2212_v3 = vsub.f32 1.0, %v2211_v11  ;;  %v12324_v17 = vadd.f32 1.0, %v9144_v43  ;;  %v2094_v55 = vadd.f32 %v9138_v5, %v2093_v10  ;;  %v12331_v6 = vmul.f32 %v1206_v51, %v941_v32 }
 0x2a0   : > { %v2107_v50 = vsub.f32 1.0, %v2106_v47  ;;  %v2226_v12 = vmul.f32 %v9146_v49, %v12276_v46  ;;  %vm2216_vm5 = vweird.f32 %v9140_v16  ;;  %v1861_v21 = vand.u32 2147483648, %v12302_v27  ;;  %v18574_v47 = vld [vmem:[#allocation29_spill] sm:$0xff] }
 0x2a1   : > { %v2213_v31 = vmul.f32 %v9140_v16, %v2212_v3  ;;  %9149 = vrcp.f32 %v12324_v17  ;;  %v2098_v57 = vsel %vm2097_vm7, %v9138_v5, %v2094_v55  ;;  %vm2111_vm10 = vweird.f32 %v9142_v25  ;;  %8347 = vmatmul.msk.bf16.gmra.mxu0 %vm18089_vm2, %v11518_v63  ;;  %vm2217_vm4 = vmor %vm2215_vm13, %vm2216_vm5 }
 0x2a2   : > { %v2108_v4 = vmul.f32 %v9142_v25, %v2107_v50  ;;  %v2227_v19 = vsub.f32 1.0, %v2226_v12  ;;  %v9148_v15 = vpop.eup %9147  ;;  %v2103_v32 = vsel %vm12295_vm15, %v2102_v40, %v2098_v57  ;;  %vm2231_vm9 = vweird.f32 %v9146_v49  ;;  %vm2112_vm15 = vmor %vm2110_vm14, %vm2111_vm10 }
 0x2a3   : > { %v2214_v51 = vadd.f32 %v9140_v16, %v2213_v31  ;;  %vm1855_vm1 = vweird.f32 %v12302_v27  ;;  %v1326_v41 = vsel %vm12320_vm0, %v1325_v53, %v1321_v61  ;;  %v2262_v5 = vmul.f32 %v2103_v32, %v12147_v58  ;;  %vm2232_vm14 = vmor %vm2230_vm6, %vm2231_vm9  ;;  %v18578_v31 = vld [vmem:[#allocation30_spill] sm:$0xff] }
 0x2a4   : > { %v2109_v34 = vadd.f32 %v9142_v25, %v2108_v4  ;;  %v2228_v26 = vmul.f32 %v9146_v49, %v2227_v19  ;;  %v1851_v63 = vmul.f32 %v9148_v15, %v12302_v27  ;;  %v1859_v20 = vand.u32 2147483647, %v12302_v27 }
 0x2a5   : > { %v2218_v13 = vsel %vm2217_vm4, %v9140_v16, %v2214_v51  ;;  %v1862_v40 = vor.u32 1.1754944e-38, %v1861_v21  ;;  %v1979_v62 = vand.u32 2147483647, %v12324_v17  ;;  %8351 = vmatmul.msk.bf16.gmra.mxu1 %vm18089_vm2, %v12357_v14  ;;  %vm1856_vm13 = vweird.f32 %v9148_v15 }
 0x2a6   : > { %v2223_v58 = vsel %vm12309_vm11, %v2222_v33, %v2218_v13  ;;  %v2113_v61 = vsel %vm2112_vm15, %v9142_v25, %v2109_v34  ;;  %v2229_v16 = vadd.f32 %v9146_v49, %v2228_v26  ;;  %v1852_v43 = vsub.f32 1.0, %v1851_v63  ;;  %vm1857_vm11 = vmor %vm1855_vm1, %vm1856_vm13  ;;  %v18582_v63 = vld [vmem:[#allocation35_spill] sm:$0xff] }
 0x2a7   : > { %v9150_v2 = vpop.eup %9149  ;;  %v2270_v44 = vmul.f32 %v2223_v58, %v12183_v8  ;;  %v2118_v11 = vsel %vm12315_vm3, %v2117_v37, %v2113_v61  ;;  %v12370_v10 = vmul.f32 %v1326_v41, %v12263_v28  ;;  %v12373_v23 = vadd.f32 %v2262_v5, %v18574_v47  ;;  %v18576_v8 = vld [vmem:[#allocation31_spill] sm:$0xff] }
 0x2a8   : > { %v2233_v25 = vsel %vm2232_vm14, %v9146_v49, %v2229_v16  ;;  %v2263_v33 = vmul.f32 %v2118_v11, %v12188_v38  ;;  %v1971_v45 = vmul.f32 %v9150_v2, %v12324_v17  ;;  %v1853_v46 = vmul.f32 %v9148_v15, %v1852_v43 }
 0x2a9   : > { %18575 = vst [vmem:[#allocation61_spill] sm:$0xff] %v12373_v23  ;;  %v12378_v3 = vadd.f32 %v2270_v44, %v18576_v8  ;;  %v2238_v24 = vsel %vm12327_vm12, %v2237_v18, %v2233_v25  ;;  %v1607_v37 = vand.u32 2147483647, %v12331_v6  ;;  %v1981_v55 = vand.u32 2147483648, %v12324_v17  ;;  %v18580_v18 = vld [vmem:[#allocation32_spill] sm:$0xff] }
 0x2aa   : > { %v2271_v28 = vmul.f32 %v2238_v24, %v12202_v48  ;;  %v1972_v53 = vsub.f32 1.0, %v1971_v45  ;;  %v1615_v49 = vand.u32 2147483647, %v12370_v10  ;;  %v1854_v50 = vadd.f32 %v9148_v15, %v1853_v46 }
 0x2ab   : > { %18577 = vst [vmem:[#allocation15_spill] sm:$0xff] %v12378_v3  ;;  %v2327_v38 = vpack.c.bf16 %v12378_v3, %v12373_v23  ;;  %vm1976_vm8 = vweird.f32 %v9150_v2  ;;  %v8273_v12 = vmul.f32 -1.442695, %v1607_v37  ;;  %v12389_v21 = vadd.f32 %v2263_v33, %v18578_v31 }
 0x2ac   : > { %v12392_v39 = vadd.f32 %v2271_v28, %v18580_v18  ;;  %v1973_v48 = vmul.f32 %v9150_v2, %v1972_v53  ;;  %v8281_v57 = vmul.f32 -1.442695, %v1615_v49  ;;  %v1858_v4 = vsel %vm1857_vm11, %v9148_v15, %v1854_v50  ;;  %v18588_v18 = vld [vmem:[#allocation34_spill] sm:$0xff] }
 0x2ad   : > { %18579 = vst [vmem:[#allocation50_spill] sm:$0xff] %v12389_v21  ;;  %2590 = vmatpush.bf16.msrb.mxu2 %v2327_v38  ;;  %vm1860_vm3 = vcmp.eq.f32.partialorder %v1859_v20, 8.507059e+37  ;;  %vm1975_vm6 = vweird.f32 %v12324_v17  ;;  %9151 = vpow2.f32 %v8273_v12  ;;  %v1982_v41 = vor.u32 1.1754944e-38, %v1981_v55  ;;  %v18584_v20 = vld [vmem:[#allocation33_spill] sm:$0xff]  ;;  %v18586_v12 = vld [vmem:[#allocation36_spill] sm:$0xff] }
 0x2ae   : > { %18581 = vst [vmem:[#allocation14_spill] sm:$0xff] %v12392_v39  ;;  %v2328_v19 = vpack.c.bf16 %v12392_v39, %v12389_v21  ;;  %v1863_v32 = vsel %vm1860_vm3, %v1862_v40, %v1858_v4  ;;  %v1974_v51 = vadd.f32 %v9150_v2, %v1973_v48  ;;  %9153 = vpow2.f32 %v8281_v57  ;;  %vm1977_vm0 = vmor %vm1975_vm6, %vm1976_vm8  ;;  %v12443_v4 = vpop.f32.mrf.mxu1 }
 0x2af   : > { %vm1980_vm12 = vcmp.eq.f32.partialorder %v1979_v62, 8.507059e+37  ;;  %v2246_v5 = vmul.f32 %v1863_v32, %v12215_v0 }
 0x2b0   : > { %2619 = vmatpush.bf16.msrb.mxu3 %v2328_v19  ;;  %v1978_v27 = vsel %vm1977_vm0, %v9150_v2, %v1974_v51 }
 0x2b1   : > { %v1983_v34 = vsel %vm1980_vm12, %v1982_v41, %v1978_v27  ;;  %8348 = vmatmul.msk.bf16.gmra.mxu0 %vm18089_vm2, %v11631_v54  ;;  %v12406_v13 = vadd.f32 %v2246_v5, %v18582_v63 }
 0x2b2   : > { %v2254_v15 = vmul.f32 %v1983_v34, %v12228_v35 }
 0x2b3   : > { %v9152_v17 = vpop.eup %9151  ;;  %18583 = vst [vmem:[#allocation16_spill] sm:$0xff] %v12406_v13 }
 0x2b4   : > { %v9154_v26 = vpop.eup %9153  ;;  %v12409_v40 = vadd.f32 %v2254_v15, %v18584_v20  ;;  %v1735_v58 = vadd.f32 1.0, %v9152_v17 }
 0x2b5   : > { %v1743_v61 = vadd.f32 1.0, %v9154_v26  ;;  %8352 = vmatmul.msk.bf16.gmra.mxu1 %vm18089_vm2, %v11631_v54 }
 0x2b6   : > { %18585 = vst [vmem:[#allocation53_spill] sm:$0xff] %v12409_v40  ;;  %v2319_v0 = vpack.c.bf16 %v12409_v40, %v12406_v13  ;;  %9155 = vrcp.f32 %v1735_v58  ;;  %v1876_v11 = vand.u32 2147483648, %v1735_v58  ;;  %v1874_v25 = vand.u32 2147483647, %v1735_v58  ;;  %v12447_v32 = vpop.f32.mrf.mxu1 }
 0x2b7   : > { %9157 = vrcp.f32 %v1743_v61  ;;  %v1996_v54 = vand.u32 2147483648, %v1743_v61  ;;  %v1994_v45 = vand.u32 2147483647, %v1743_v61  ;;  %vm1870_vm10 = vweird.f32 %v1735_v58 }
 0x2b8   : > { %2591 = vmatpush.bf16.msrb.mxu2 %v2319_v0  ;;  %v1877_v24 = vor.u32 1.1754944e-38, %v1876_v11  ;;  %vm1990_vm1 = vweird.f32 %v1743_v61  ;;  %vm1875_vm4 = vcmp.eq.f32.partialorder %v1874_v25, 8.507059e+37 }
 0x2b9   : > { %v1997_v28 = vor.u32 1.1754944e-38, %v1996_v54  ;;  %vm1995_vm13 = vcmp.eq.f32.partialorder %v1994_v45, 8.507059e+37 }
 0x2bb   : > { %8354 = vmatmul.msk.bf16.vlgmr.msrb.gmra.mxu2 %vm18089_vm2, %v12241_v52 }
 0x2bc   : > { %v9156_v35 = vpop.eup %9155 }
 0x2bd   : > { %v9158_v62 = vpop.eup %9157  ;;  %v1866_v16 = vmul.f32 %v9156_v35, %v1735_v58  ;;  %vm1871_vm7 = vweird.f32 %v9156_v35  ;;  %v12474_v58 = vpop.permute.xlu0 %2370 }
 0x2be   : > { %v1986_v2 = vmul.f32 %v9158_v62, %v1743_v61  ;;  %vm1991_vm5 = vweird.f32 %v9158_v62  ;;  %vm1872_vm9 = vmor %vm1870_vm10, %vm1871_vm7 }
 0x2bf   : > { %v1867_v44 = vsub.f32 1.0, %v1866_v16  ;;  %vm1992_vm15 = vmor %vm1990_vm1, %vm1991_vm5  ;;  %v12480_v16 = vpop.permute.xlu2 %2360 }
 0x2c0   : > { %v1987_v43 = vsub.f32 1.0, %v1986_v2 }
 0x2c1   : > { %v1868_v47 = vmul.f32 %v9156_v35, %v1867_v44  ;;  %8349 = vmatmul.msk.bf16.gmra.mxu0 %vm18089_vm2, %v11795_v36 }
 0x2c2   : > { %v1988_v33 = vmul.f32 %v9158_v62, %v1987_v43 }
 0x2c3   : > { %v1869_v8 = vadd.f32 %v9156_v35, %v1868_v47 }
 0x2c4   : > { %v1989_v46 = vadd.f32 %v9158_v62, %v1988_v33 }
 0x2c5   : > { %v1873_v37 = vsel %vm1872_vm9, %v9156_v35, %v1869_v8  ;;  %8353 = vmatmul.msk.bf16.gmra.mxu1 %vm18089_vm2, %v11795_v36  ;;  %v12484_v43 = vpop.permute.xlu0 %2365 }
 0x2c6   : > { %v1878_v53 = vsel %vm1875_vm4, %v1877_v24, %v1873_v37  ;;  %v1993_v55 = vsel %vm1992_vm15, %v9158_v62, %v1989_v46 }
 0x2c7   : > { %v1998_v49 = vsel %vm1995_vm13, %v1997_v28, %v1993_v55  ;;  %v2247_v38 = vmul.f32 %v1878_v53, %v12331_v6  ;;  %v9673_v6 = vld [vmem:[%s17901_s3 + $0x30] sm:$0xff]  ;;  %v12578_v39 = vpop.permute.xlu2 %2355 }
 0x2c8   : > { %v2255_v50 = vmul.f32 %v1998_v49, %v12370_v10  ;;  %v12441_v10 = vpop.f32.mrf.mxu0 }
 0x2c9   : > { %v12424_v31 = vadd.f32 %v2247_v38, %v18586_v12 }
 0x2ca   : > { %v12427_v48 = vadd.f32 %v2255_v50, %v18588_v18  ;;  %v12491_v50 = vpop.permute.xlu1 %2375 }
 0x2cb   : > { %18587 = vst [vmem:[#allocation78_spill] sm:$0xff] %v12424_v31  ;;  %8355 = vmatmul.msk.bf16.gmra.mxu2 %vm18089_vm2, %v12357_v14 }
 0x2cc   : > { %18589 = vst [vmem:[#allocation19_spill] sm:$0xff] %v12427_v48  ;;  %v2320_v57 = vpack.c.bf16 %v12427_v48, %v12424_v31 }
 0x2cd   : > { %18590 = vst [vmem:[#allocation17_spill] sm:$0xff] %v12491_v50 }
 0x2ce   : > { %2620 = vmatpush.bf16.msrb.mxu3 %v2320_v57 }
 0x2d0   : > { %v12445_v19 = vpop.f32.mrf.mxu0 }
 0x2d1   : > { %8358 = vmatmul.msk.bf16.vlgmr.msrb.gmra.mxu3 %vm18089_vm2, %v12241_v52  ;;  %v12451_v52 = vpop.f32.mrf.mxu2 }
 0x2d8   : > { %v12456_v41 = vpop.f32.mrf.mxu0 }
 0x2d9   : > { %v12460_v27 = vpop.f32.mrf.mxu2 }
 0x2db   : > { %8356 = vmatmul.msk.bf16.gmra.mxu2 %vm18089_vm2, %v9673_v6 }
 0x2dc   : > { %v12453_v51 = vpop.f32.mrf.mxu3 }
 0x2e0   : > { %v12462_v5 = vpop.f32.mrf.mxu0 }
 0x2e1   : > { %8359 = vmatmul.msk.bf16.gmra.mxu3 %vm18089_vm2, %v12357_v14  ;;  %v12458_v14 = vpop.f32.mrf.mxu1  ;;  %v12468_v17 = vpop.f32.mrf.mxu2 }
 0x2e4   : > { %v12466_v15 = vpop.f32.mrf.mxu3 }
 0x2e8   : > { %v2429_v26 = vpop.f32.mrf.mxu0 }
 0x2e9   : > { %v12464_v34 = vpop.f32.mrf.mxu1  ;;  %v12476_v35 = vpop.f32.mrf.mxu2  ;;  %v2430_v2 = vadd.f32 %v2429_v26, %v12480_v16 }
 0x2eb   : > { %8357 = vmatmul.msk.bf16.gmra.mxu2 %vm18089_vm2, %v11795_v36  ;;  %v8362_v54 = vmul.f32 -1.442695, %v2430_v2 }
 0x2ec   : > { %v12472_v20 = vpop.f32.mrf.mxu3 }
 0x2ed   : > { %9159 = vpow2.f32 %v8362_v54 }
 0x2f0   : > { %v2431_v61 = vpop.f32.mrf.mxu0 }
 0x2f1   : > { %8360 = vmatmul.msk.bf16.gmra.mxu3 %vm18089_vm2, %v9673_v6  ;;  %v2458_v63 = vpop.f32.mrf.mxu1  ;;  %v2432_v47 = vadd.f32 %v2431_v61, %v12484_v43  ;;  %v2487_v25 = vpop.f32.mrf.mxu2 }
 0x2f2   : > { %v2488_v8 = vadd.f32 %v2487_v25, %v12480_v16 }
 0x2f3   : > { %v8370_v24 = vmul.f32 -1.442695, %v2432_v47  ;;  %v9160_v6 = vpop.eup %9159 }
 0x2f4   : > { %v12478_v62 = vpop.f32.mrf.mxu3  ;;  %v8364_v38 = vmul.f32 -1.442695, %v2488_v8  ;;  %v12505_v8 = vpop.permute.xlu1 %2350 }
 0x2f5   : > { %v12598_v7 = vadd.f32 %v12458_v14, %v12505_v8  ;;  %v12615_v14 = vadd.f32 %v12468_v17, %v12505_v8 }
 0x2f7   : > { %18604 = vst [vmem:[#allocation90_spill] sm:$0xff] %v12615_v14 }
 0x2f8   : > { %v2434_v44 = vpop.f32.mrf.mxu0 }
 0x2f9   : > { %v2460_v0 = vpop.f32.mrf.mxu1  ;;  %v2435_v46 = vadd.f32 %v2434_v44, %v12474_v58  ;;  %v2489_v61 = vpop.f32.mrf.mxu2 }
 0x2fa   : > { %v2461_v45 = vadd.f32 %v2460_v0, %v12484_v43 }
 0x2fb   : > { %v8378_v12 = vmul.f32 -1.442695, %v2435_v46 }
 0x2fc   : > { %v2516_v37 = vpop.f32.mrf.mxu3  ;;  %v8371_v55 = vmul.f32 -1.442695, %v2461_v45  ;;  %v12547_v48 = vpop.permute.xlu1 %2345 }
 0x2fd   : > { %v2517_v18 = vadd.f32 %v2516_v37, %v12480_v16  ;;  %18596 = vst [vmem:[#allocation86_spill] sm:$0xff] %v12547_v48 }
 0x300   : > { %v2436_v28 = vpop.f32.mrf.mxu0 }
 0x301   : > { %8361 = vmatmul.msk.bf16.gmra.mxu3 %vm18089_vm2, %v11795_v36  ;;  %v2463_v11 = vpop.f32.mrf.mxu1  ;;  %v2459_v36 = vadd.f32 %v2458_v63, %v12480_v16  ;;  %v8365_v63 = vmul.f32 -1.442695, %v2517_v18 }
 0x302   : > { %v2464_v49 = vadd.f32 %v2463_v11, %v12474_v58  ;;  %v12498_v11 = vadd.f32 1.0, %v9160_v6 }
 0x303   : > { %v8363_v33 = vmul.f32 -1.442695, %v2459_v36  ;;  %v2437_v36 = vadd.f32 %v2436_v28, %v12491_v50 }
 0x304   : > { %v8379_v57 = vmul.f32 -1.442695, %v2464_v49  ;;  %v2490_v49 = vadd.f32 %v2489_v61, %v12484_v43  ;;  %vm2775_vm12 = vweird.f32 %v12498_v11 }
 0x305   : > { %9161 = vpow2.f32 %v8363_v33 }
 0x306   : > { %9163 = vpow2.f32 %v8370_v24  ;;  %v8386_v24 = vmul.f32 -1.442695, %v2437_v36  ;;  %v8372_v36 = vmul.f32 -1.442695, %v2490_v49 }
 0x307   : > { %9165 = vpow2.f32 %v8371_v55 }
 0x308   : > { %9167 = vpow2.f32 %v8364_v38  ;;  %v2518_v38 = vpop.f32.mrf.mxu3 }
 0x309   : > { %v2465_v53 = vpop.f32.mrf.mxu1  ;;  %9169 = vpow2.f32 %v8378_v12 }
 0x30a   : > { %9171 = vpow2.f32 %v8379_v57  ;;  %v2466_v46 = vadd.f32 %v2465_v53, %v12491_v50 }
 0x30b   : > { %v9162_v26 = vpop.eup %9161  ;;  %9173 = vpow2.f32 %v8365_v63  ;;  %v2519_v63 = vadd.f32 %v2518_v38, %v12484_v43 }
 0x30c   : > { %v9164_v44 = vpop.eup %9163  ;;  %v12501_v47 = vadd.f32 1.0, %v9162_v26  ;;  %9175 = vrcp.f32 %v12498_v11  ;;  %v8387_v53 = vmul.f32 -1.442695, %v2466_v46 }
 0x30d   : > { %v9166_v25 = vpop.eup %9165  ;;  %v12503_v33 = vadd.f32 1.0, %v9164_v44  ;;  %v2492_v44 = vpop.f32.mrf.mxu2  ;;  %v8373_v49 = vmul.f32 -1.442695, %v2519_v63  ;;  %v12565_v63 = vadd.f32 %v12447_v32, %v12547_v48  ;;  %v12586_v32 = vadd.f32 %v12460_v27, %v12547_v48 }
 0x30e   : > { %v12494_v0 = vpop.f32.mrf.mxu0  ;;  %v9168_v54 = vpop.eup %9167  ;;  %9177 = vrcp.f32 %v12501_v47  ;;  %v12510_v37 = vadd.f32 1.0, %v9166_v25  ;;  %v2493_v60 = vadd.f32 %v2492_v44, %v12474_v58 }
 0x30f   : > { %v9170_v45 = vpop.eup %9169  ;;  %v12512_v55 = vadd.f32 1.0, %v9168_v54  ;;  %9179 = vrcp.f32 %v12503_v33  ;;  %18599 = vst [vmem:[#allocation67_spill] sm:$0xff] %v12565_v63 }
 0x310   : > { %18591 = vst [vmem:[#allocation79_spill] sm:$0xff] %v12510_v37  ;;  %v9172_v28 = vpop.eup %9171  ;;  %v12516_v12 = vadd.f32 1.0, %v9170_v45  ;;  %9181 = vpow2.f32 %v8386_v24  ;;  %v12534_v45 = vpop.permute.xlu0 %2340 }
 0x311   : > { %18592 = vst [vmem:[#allocation83_spill] sm:$0xff] %v12512_v55  ;;  %v9174_v6 = vpop.eup %9173  ;;  %9183 = vrcp.f32 %v12510_v37  ;;  %v12523_v26 = vadd.f32 1.0, %v9172_v28  ;;  %v12540_v46 = vadd.f32 %v12441_v10, %v12534_v45  ;;  %v12544_v28 = vadd.f32 %v12443_v4, %v12534_v45  ;;  %v2521_v3 = vpop.f32.mrf.mxu3 }
 0x312   : > { %v12496_v2 = vpop.f32.mrf.mxu1  ;;  %v12526_v61 = vpop.eup %9175  ;;  %9185 = vrcp.f32 %v12512_v55  ;;  %v12532_v54 = vadd.f32 1.0, %v9174_v6  ;;  %18594 = vst [vmem:[#allocation92_spill] sm:$0xff] %v12534_v45  ;;  %v12551_v6 = vadd.f32 %v12451_v52, %v12534_v45  ;;  %v12561_v4 = vadd.f32 %v12445_v19, %v12547_v48 }
 0x313   : > { %9187 = vrcp.f32 %v12516_v12  ;;  %18595 = vst [vmem:[#allocation93_spill] sm:$0xff] %v12544_v28  ;;  %v12569_v52 = vadd.f32 %v12453_v51, %v12534_v45  ;;  %v12582_v19 = vadd.f32 %v12456_v41, %v12505_v8  ;;  %v12590_v51 = vadd.f32 %v12466_v15, %v12547_v48 }
 0x314   : > { %v12529_v25 = vpop.eup %9177  ;;  %18593 = vst [vmem:[#allocation87_spill] sm:$0xff] %v12532_v54  ;;  %9189 = vpow2.f32 %v8387_v53  ;;  %v2771_v53 = vmul.f32 %v12526_v61, %v12498_v11  ;;  %v12602_v41 = vadd.f32 %v12462_v5, %v12578_v39  ;;  %v12608_v15 = vadd.f32 %v12464_v34, %v12578_v39 }
 0x315   : > { %v12536_v24 = vpop.eup %9179  ;;  %9191 = vrcp.f32 %v12523_v26  ;;  %18597 = vst [vmem:[#allocation89_spill] sm:$0xff] %v12551_v6  ;;  %v2786_v10 = vmul.f32 %v12529_v25, %v12501_v47  ;;  %v12619_v5 = vadd.f32 %v12472_v20, %v12505_v8  ;;  %v12627_v34 = vadd.f32 %v12478_v62, %v12578_v39 }
 0x316   : > { %v12518_v18 = vpop.f32.mrf.mxu0  ;;  %v9182_v38 = vpop.eup %9181  ;;  %9193 = vpow2.f32 %v8372_v36  ;;  %18600 = vst [vmem:[#allocation68_spill] sm:$0xff] %v12569_v52  ;;  %v2891_v21 = vmul.f32 %v12536_v24, %v12503_v33  ;;  %v2772_v1 = vsub.f32 1.0, %v2771_v53  ;;  %v3021_v59 = vand.u32 2147483648, %v12516_v12 }
 0x317   : > { %v12557_v31 = vpop.eup %9183  ;;  %9195 = vrcp.f32 %v12532_v54  ;;  %18602 = vst [vmem:[#allocation20_spill] sm:$0xff] %v12586_v32  ;;  %v12604_v27 = vadd.f32 1.0, %v9182_v38  ;;  %v2787_v30 = vsub.f32 1.0, %v2786_v10  ;;  %v2494_v38 = vpop.f32.mrf.mxu2  ;;  %v8380_v53 = vmul.f32 -1.442695, %v2493_v60 }
 0x318   : > { %18598 = vst [vmem:[#allocation66_spill] sm:$0xff] %v12557_v31  ;;  %v12576_v36 = vpop.eup %9185  ;;  %9197 = vpow2.f32 %v8373_v49  ;;  %v12623_v49 = vadd.f32 %v12476_v35, %v12578_v39  ;;  %v2892_v17 = vsub.f32 1.0, %v2891_v21  ;;  %v2906_v20 = vmul.f32 %v12557_v31, %v12510_v37 }
 0x319   : > { %18601 = vst [vmem:[#allocation69_spill] sm:$0xff] %v12576_v36  ;;  %v12594_v23 = vpop.eup %9187  ;;  %9199 = vrcp.f32 %v12604_v27  ;;  %v12642_v29 = vmul.f32 %v12526_v61, %v2772_v1  ;;  %v12645_v10 = vmul.f32 %v12529_v25, %v2787_v30  ;;  %v2801_v52 = vmul.f32 %v12576_v36, %v12512_v55  ;;  %v2523_v14 = vpop.f32.mrf.mxu3 }
 0x31a   : > { %v12520_v57 = vpop.f32.mrf.mxu1  ;;  %18603 = vst [vmem:[#allocation18_spill] sm:$0xff] %v12590_v51  ;;  %v9190_v22 = vpop.eup %9189  ;;  %v3011_v35 = vmul.f32 %v12594_v23, %v12516_v12  ;;  %v3019_v1 = vand.u32 2147483647, %v12516_v12  ;;  %v12658_v30 = vor.u32 1.1754944e-38, %v3021_v59  ;;  %vm3015_vm14 = vweird.f32 %v12516_v12 }
 0x31b   : > { %v12611_v56 = vpop.eup %9191  ;;  %18605 = vst [vmem:[#allocation38_spill] sm:$0xff] %v12619_v5  ;;  %v12639_v62 = vadd.f32 1.0, %v9190_v22  ;;  %v2522_v22 = vadd.f32 %v2521_v3, %v12474_v58  ;;  %v3034_v3 = vand.u32 2147483647, %v12523_v26  ;;  %v3036_v5 = vand.u32 2147483648, %v12523_v26 }
 0x31c   : > { %18606 = vst [vmem:[#allocation73_spill] sm:$0xff] %v12623_v49  ;;  %v9194_v44 = vpop.eup %9193  ;;  %v3026_v51 = vmul.f32 %v12611_v56, %v12523_v26  ;;  %v12666_v49 = vmul.f32 %v12536_v24, %v2892_v17  ;;  %v3012_v55 = vsub.f32 1.0, %v3011_v35  ;;  %v12682_v35 = vadd.f32 %v12496_v2, %v12534_v45 }
 0x31d   : > { %18607 = vst [vmem:[#allocation74_spill] sm:$0xff] %v12627_v34  ;;  %v12632_v9 = vpop.eup %9195  ;;  %v12652_v32 = vadd.f32 1.0, %v9194_v44  ;;  %v2907_v44 = vsub.f32 1.0, %v2906_v20  ;;  %9201 = vrcp.f32 %v12639_v62  ;;  %v8381_v17 = vmul.f32 -1.442695, %v2522_v22 }
 0x31e   : > { %v12572_v40 = vpop.f32.mrf.mxu0  ;;  %18608 = vst [vmem:[#allocation94_spill] sm:$0xff] %v12632_v9  ;;  %v9198_v42 = vpop.eup %9197  ;;  %v2816_v60 = vmul.f32 %v12632_v9, %v12532_v54  ;;  %9203 = vpow2.f32 %v8380_v53  ;;  %v3027_v21 = vsub.f32 1.0, %v3026_v51  ;;  %v2802_v54 = vsub.f32 1.0, %v2801_v52 }
 0x31f   : > { %18609 = vst [vmem:[#allocation76_spill] sm:$0xff] %v12652_v32  ;;  %v12671_v59 = vadd.f32 1.0, %v9198_v42  ;;  %v12673_v63 = vpop.eup %9199  ;;  %9205 = vrcp.f32 %v12652_v32  ;;  %v12678_v20 = vadd.f32 %v12494_v0, %v12534_v45  ;;  %v2495_v42 = vadd.f32 %v2494_v38, %v12491_v50 }
 0x320   : > { %v2817_v28 = vsub.f32 1.0, %v2816_v60  ;;  %18612 = vst [vmem:[#allocation8_spill] sm:$0xff] %v12682_v35  ;;  %v12686_v53 = vmul.f32 %v12557_v31, %v2907_v44  ;;  %v3013_v51 = vmul.f32 %v12594_v23, %v3012_v55  ;;  %v3141_v52 = vand.u32 2147483648, %v12604_v27 }
 0x321   : > { %18610 = vst [vmem:[#allocation11_spill] sm:$0xff] %v12671_v59  ;;  %v2524_v22 = vadd.f32 %v2523_v14, %v12491_v50  ;;  %vm3016_vm8 = vweird.f32 %v12594_v23  ;;  %v12695_v0 = vor.u32 1.1754944e-38, %v3036_v5  ;;  %v3131_v2 = vmul.f32 %v12673_v63, %v12604_v27 }
 0x322   : > { %v12574_v13 = vpop.f32.mrf.mxu1  ;;  %18611 = vst [vmem:[#allocation77_spill] sm:$0xff] %v12678_v20  ;;  %9207 = vrcp.f32 %v12671_v59  ;;  %v3028_v55 = vmul.f32 %v12611_v56, %v3027_v21  ;;  %vm3030_vm11 = vweird.f32 %v12523_v26  ;;  %v12705_v14 = vmul.f32 %v12576_v36, %v2802_v54  ;;  %vm12773_vm4 = vmor %vm3015_vm14, %vm3016_vm8 }
 0x323   : > { %18613 = vst [vmem:[#allocation27_spill] sm:$0xff] %v12686_v53  ;;  %v12700_v38 = vpop.eup %9201  ;;  %v3156_v44 = vand.u32 2147483648, %v12639_v62  ;;  %9209 = vpow2.f32 %v8381_v17  ;;  %vm3031_vm3 = vweird.f32 %v12611_v56  ;;  %v12710_v20 = vmul.f32 %v12632_v9, %v2817_v28 }
 0x324   : > { %18614 = vst [vmem:[#allocation25_spill] sm:$0xff] %v12705_v14  ;;  %v9204_v5 = vpop.eup %9203  ;;  %v8388_v53 = vmul.f32 -1.442695, %v2495_v42  ;;  %v3014_v21 = vadd.f32 %v12594_v23, %v3013_v51  ;;  %vm12716_vm6 = vcmp.eq.f32.partialorder %v3019_v1, 8.507059e+37  ;;  %vm12720_vm0 = vcmp.eq.f32.partialorder %v3034_v3, 8.507059e+37  ;;  %vm3032_vm13 = vmor %vm3030_vm11, %vm3031_vm3 }
 0x325   : > { %18615 = vst [vmem:[#allocation12_spill] sm:$0xff] %v12710_v20  ;;  %v12713_v37 = vpop.eup %9205  ;;  %v12724_v36 = vor.u32 1.1754944e-38, %v3141_v52  ;;  %v8389_v9 = vmul.f32 -1.442695, %v2524_v22  ;;  %v3132_v42 = vsub.f32 1.0, %v3131_v2  ;;  %v12730_v31 = vadd.f32 %v12518_v18, %v12547_v48 }
 0x326   : > { %v12655_v6 = vpop.f32.mrf.mxu0  ;;  %18616 = vst [vmem:[#allocation21_spill] sm:$0xff] %v12713_v37  ;;  %v2779_v3 = vand.u32 2147483647, %v12498_v11  ;;  %v3029_v20 = vadd.f32 %v12611_v56, %v3028_v55  ;;  %v3146_v52 = vmul.f32 %v12700_v38, %v12639_v62  ;;  %v12737_v14 = vor.u32 1.1754944e-38, %v3156_v44 }
 0x327   : > { %18621 = vst [vmem:[#allocation95_spill] sm:$0xff] %v12730_v31  ;;  %v12741_v22 = vadd.f32 %v12520_v57, %v12547_v48  ;;  %vm3136_vm7 = vweird.f32 %v12673_v63  ;;  %v2921_v18 = vmul.f32 %v12713_v37, %v12652_v32  ;;  %9211 = vpow2.f32 %v8388_v53 }
 0x328   : > { %v12743_v2 = vpop.eup %9207  ;;  %v18624_v55 = vand.u32 2147483648, %v12498_v11  ;;  %vm3151_vm5 = vweird.f32 %v12700_v38  ;;  %9213 = vpow2.f32 %v8389_v9  ;;  %v12755_v57 = vadd.f32 %v12572_v40, %v12505_v8 }
 0x329   : > { %18622 = vst [vmem:[#allocation81_spill] sm:$0xff] %v12741_v22  ;;  %v9210_v31 = vpop.eup %9209  ;;  %v3133_v22 = vmul.f32 %v12673_v63, %v3132_v42  ;;  %vm3135_vm10 = vweird.f32 %v12604_v27  ;;  %v12762_v53 = vadd.f32 %v12574_v13, %v12505_v8  ;;  %vm2776_vm9 = vweird.f32 %v12526_v61 }
 0x32a   : > { %v12663_v34 = vpop.f32.mrf.mxu1  ;;  %18623 = vst [vmem:[#allocation22_spill] sm:$0xff] %v12743_v2  ;;  %v2782_v28 = vor.u32 1.1754944e-38, %v18624_v55  ;;  %vm12765_vm1 = vcmp.eq.f32.partialorder %v2779_v3, 8.507059e+37  ;;  %v3147_v40 = vsub.f32 1.0, %v3146_v52  ;;  %vm3150_vm15 = vweird.f32 %v12639_v62  ;;  %vm12815_vm8 = vmor %vm2775_vm12, %vm2776_vm9 }
 0x32b   : > { %18625 = vst [vmem:[#allocation23_spill] sm:$0xff] %v12755_v57  ;;  %v2936_v13 = vmul.f32 %v12743_v2, %v12671_v59  ;;  %v2922_v12 = vsub.f32 1.0, %v2921_v18  ;;  %v12789_v52 = vadd.f32 1.0, %v9210_v31  ;;  %v3018_v59 = vsel %vm12773_vm4, %v12594_v23, %v3014_v21  ;;  %vm12865_vm12 = vmor %vm3150_vm15, %vm3151_vm5 }
 0x32c   : > { %18626 = vst [vmem:[#allocation26_spill] sm:$0xff] %v12762_v53  ;;  %v2774_v53 = vadd.f32 %v12526_v61, %v12642_v29  ;;  %v3033_v32 = vsel %vm3032_vm13, %v12611_v56, %v3029_v20  ;;  %vm2896_vm14 = vweird.f32 %v12536_v24  ;;  %v3023_v26 = vsel %vm12716_vm6, %v12658_v30, %v3018_v59 }
 0x32d   : > { %v9212_v50 = vpop.eup %9211  ;;  %v3038_v31 = vsel %vm12720_vm0, %v12695_v0, %v3033_v32  ;;  %v2894_v29 = vadd.f32 %v12536_v24, %v12666_v49  ;;  %v3148_v23 = vmul.f32 %v12700_v38, %v3147_v40  ;;  %v12809_v56 = vmul.f32 %v3023_v26, %v12582_v19  ;;  %vm12851_vm0 = vmor %vm3135_vm10, %vm3136_vm7 }
 0x32e   : > { %v2545_v35 = vpop.f32.mrf.mxu0  ;;  %v9214_v18 = vpop.eup %9213  ;;  %vm2895_vm11 = vweird.f32 %v12503_v33  ;;  %v2937_v32 = vsub.f32 1.0, %v2936_v13  ;;  %v12822_v20 = vmul.f32 %v3038_v31, %v12598_v7  ;;  %v2778_v19 = vsel %vm12815_vm8, %v12526_v61, %v2774_v53 }
 0x32f   : > { %v2546_v1 = vadd.f32 %v2545_v35, %v12480_v16  ;;  %v12748_v35 = vadd.f32 1.0, %v9204_v5  ;;  %v12828_v0 = vmul.f32 %v12713_v37, %v2922_v12  ;;  %vm12832_vm3 = vmor %vm2895_vm11, %vm2896_vm14  ;;  %v3298_v61 = vand.u32 2147483647, %v12809_v56 }
 0x330   : > { %v2898_v54 = vsel %vm12832_vm3, %v12536_v24, %v2894_v29  ;;  %v3149_v53 = vadd.f32 %v12700_v38, %v3148_v23  ;;  %v12870_v40 = vmul.f32 %v12743_v2, %v2937_v32  ;;  %v18643_v12 = vand.u32 2147483647, %v12604_v27 }
 0x331   : > { %v8366_v5 = vmul.f32 -1.442695, %v2546_v1  ;;  %v2899_v1 = vand.u32 2147483647, %v12503_v33  ;;  %v3051_v3 = vand.u32 2147483648, %v12748_v35  ;;  %18633 = vst [vmem:[#allocation85_spill] sm:$0xff] %v12828_v0  ;;  %vm2790_vm10 = vweird.f32 %v12501_v47 }
 0x332   : > { %v2574_v51 = vpop.f32.mrf.mxu1  ;;  %18642 = vst [vmem:[#allocation82_spill] sm:$0xff] %v12870_v40  ;;  %v8410_v13 = vmul.f32 -1.442695, %v3298_v61  ;;  %vm3140_vm7 = vcmp.eq.f32.partialorder %v18643_v12, 8.507059e+37  ;;  %v18644_v29 = vand.u32 2147483647, %v12639_v62  ;;  %v12942_v12 = vadd.f32 %v12663_v34, %v12578_v39 }
 0x333   : > { %v2575_v44 = vadd.f32 %v2574_v51, %v12480_v16  ;;  %v2901_v51 = vand.u32 2147483648, %v12503_v33  ;;  %9215 = vpow2.f32 %v8366_v5  ;;  %vm12836_vm6 = vcmp.eq.f32.partialorder %v2899_v1, 8.507059e+37 }
 0x334   : > { %9217 = vrcp.f32 %v12748_v35  ;;  %v12840_v21 = vor.u32 1.1754944e-38, %v3051_v3  ;;  %v2783_v5 = vsel %vm12765_vm1, %v2782_v28, %v2778_v19  ;;  %v3299_v1 = vand.u32 2147483647, %v12822_v20  ;;  %18649 = vst [vmem:[#allocation72_spill] sm:$0xff] %v12942_v12 }
 0x335   : > { %v8367_v57 = vmul.f32 -1.442695, %v2575_v44  ;;  %v2902_v7 = vor.u32 1.1754944e-38, %v2901_v51  ;;  %v3134_v44 = vadd.f32 %v12673_v63, %v3133_v22  ;;  %v3153_v3 = vsel %vm12865_vm12, %v12700_v38, %v3149_v53 }
 0x336   : > { %v2547_v59 = vpop.f32.mrf.mxu0  ;;  %vm3155_vm5 = vcmp.eq.f32.partialorder %v18644_v29, 8.507059e+37  ;;  %v3066_v11 = vand.u32 2147483648, %v12789_v52  ;;  %vm2791_vm9 = vweird.f32 %v12529_v25 }
 0x337   : > { %9219 = vpow2.f32 %v8367_v57  ;;  %v12855_v57 = vadd.f32 1.0, %v9212_v50  ;;  %v12872_v50 = vadd.f32 1.0, %v9214_v18  ;;  %v3138_v51 = vsel %vm12851_vm0, %v12673_v63, %v3134_v44  ;;  %vm13013_vm1 = vmor %vm2790_vm10, %vm2791_vm9 }
 0x338   : > { %9221 = vrcp.f32 %v12789_v52  ;;  %v2903_v26 = vsel %vm12836_vm6, %v2902_v7, %v2898_v54  ;;  %v3143_v31 = vsel %vm3140_vm7, %v12724_v36, %v3138_v51  ;;  %v12893_v18 = vmul.f32 %v2783_v5, %v12540_v46 }
 0x339   : > { %v9216_v9 = vpop.eup %9215  ;;  %9223 = vpow2.f32 %v8410_v13  ;;  %v12901_v38 = vmul.f32 %v3143_v31, %v12602_v41  ;;  %v3158_v30 = vsel %vm3155_vm5, %v12737_v14, %v3153_v3  ;;  %v8411_v46 = vmul.f32 -1.442695, %v3299_v1 }
 0x33a   : > { %v2576_v22 = vpop.f32.mrf.mxu1  ;;  %v12875_v55 = vpop.eup %9217  ;;  %9225 = vrcp.f32 %v12855_v57  ;;  %v12898_v23 = vadd.f32 1.0, %v9216_v9  ;;  %v12908_v62 = vmul.f32 %v3158_v30, %v12608_v15  ;;  %v12911_v32 = vmul.f32 %v2903_v26, %v12561_v4 }
 0x33b   : > { %9227 = vrcp.f32 %v12872_v50  ;;  %v2548_v41 = vadd.f32 %v2547_v59, %v12484_v43  ;;  %v3306_v33 = vand.u32 2147483647, %v12901_v38  ;;  %v12919_v14 = vadd.f32 %v12655_v6, %v12578_v39 }
 0x33c   : > { %18646 = vst [vmem:[#allocation59_spill] sm:$0xff] %v12898_v23  ;;  %v3307_v61 = vand.u32 2147483647, %v12908_v62  ;;  %v3282_v4 = vand.u32 2147483647, %v12893_v18  ;;  %v3041_v54 = vmul.f32 %v12875_v55, %v12748_v35  ;;  %9229 = vrcp.f32 %v12898_v23 }
 0x33d   : > { %v9220_v63 = vpop.eup %9219  ;;  %18647 = vst [vmem:[#allocation24_spill] sm:$0xff] %v12919_v14  ;;  %v2577_v59 = vadd.f32 %v2576_v22, %v12484_v43  ;;  %v8418_v17 = vmul.f32 -1.442695, %v3306_v33  ;;  %9231 = vpow2.f32 %v8411_v46  ;;  %v3290_v5 = vand.u32 2147483647, %v12911_v32 }
 0x33e   : > { %v12691_v60 = vpop.f32.mrf.mxu2  ;;  %v12904_v36 = vpop.eup %9221  ;;  %v12921_v7 = vadd.f32 1.0, %v9220_v63  ;;  %v8419_v53 = vmul.f32 -1.442695, %v3307_v61  ;;  %v8374_v24 = vmul.f32 -1.442695, %v2548_v41  ;;  %v3171_v22 = vand.u32 2147483648, %v12855_v57 }
 0x33f   : > { %v2550_v15 = vpop.f32.mrf.mxu0  ;;  %v9224_v44 = vpop.eup %9223  ;;  %v3056_v6 = vmul.f32 %v12904_v36, %v12789_v52  ;;  %9233 = vpow2.f32 %v8418_v17  ;;  %v8394_v26 = vmul.f32 -1.442695, %v3282_v4  ;;  %v3042_v31 = vsub.f32 1.0, %v3041_v54 }
 0x340   : > { %18648 = vst [vmem:[#allocation88_spill] sm:$0xff] %v12921_v7  ;;  %v12932_v9 = vpop.eup %9225  ;;  %v2551_v13 = vadd.f32 %v2550_v15, %v12474_v58  ;;  %v12935_v1 = vadd.f32 1.0, %v9224_v44  ;;  %9235 = vrcp.f32 %v12921_v7  ;;  %v3186_v29 = vand.u32 2147483648, %v12872_v50 }
 0x341   : > { %v12937_v51 = vpop.eup %9227  ;;  %v8375_v63 = vmul.f32 -1.442695, %v2577_v59  ;;  %v3057_v46 = vsub.f32 1.0, %v3056_v6  ;;  %v3161_v41 = vmul.f32 %v12932_v9, %v12855_v57  ;;  %v8402_v34 = vmul.f32 -1.442695, %v3290_v5 }
 0x342   : > { %v2579_v3 = vpop.f32.mrf.mxu1  ;;  %9237 = vrcp.f32 %v12935_v1  ;;  %v12952_v33 = vpop.eup %9229  ;;  %v3176_v15 = vmul.f32 %v12937_v51, %v12872_v50  ;;  %v8382_v4 = vmul.f32 -1.442695, %v2551_v13  ;;  %v12959_v17 = vor.u32 1.1754944e-38, %v3066_v11 }
 0x343   : > { %9239 = vpow2.f32 %v8419_v53  ;;  %18650 = vst [vmem:[#allocation28_spill] sm:$0xff] %v12952_v33  ;;  %v2580_v54 = vadd.f32 %v2579_v3, %v12474_v58  ;;  %v9232_v59 = vpop.eup %9231  ;;  %v3043_v5 = vmul.f32 %v12875_v55, %v3042_v31  ;;  %v12964_v19 = vor.u32 1.1754944e-38, %v3171_v22 }
 0x344   : > { %9241 = vpow2.f32 %v8374_v24  ;;  %v12968_v49 = vadd.f32 %v12691_v60, %v12534_v45  ;;  %v3058_v11 = vmul.f32 %v12904_v36, %v3057_v46  ;;  %v3162_v13 = vsub.f32 1.0, %v3161_v41 }
 0x345   : > { %9243 = vpow2.f32 %v8394_v26  ;;  %v9234_v53 = vpop.eup %9233  ;;  %v12973_v3 = vor.u32 1.1754944e-38, %v3186_v29  ;;  %v3177_v26 = vsub.f32 1.0, %v3176_v15  ;;  %v8383_v31 = vmul.f32 -1.442695, %v2580_v54 }
 0x346   : > { %v12780_v42 = vpop.f32.mrf.mxu2  ;;  %18652 = vst [vmem:[#allocation45_spill] sm:$0xff] %v12968_v49  ;;  %9245 = vpow2.f32 %v8375_v63  ;;  %v12970_v24 = vpop.eup %9235  ;;  %v12977_v22 = vadd.f32 1.0, %v9234_v53  ;;  %v12981_v63 = vadd.f32 1.0, %v9232_v59  ;;  %v2789_v46 = vadd.f32 %v12529_v25, %v12645_v10 }
 0x347   : > { %18653 = vst [vmem:[#allocation75_spill] sm:$0xff] %v12970_v24  ;;  %9247 = vpow2.f32 %v8402_v34  ;;  %v12987_v41 = vadd.f32 %v12875_v55, %v3043_v5  ;;  %v2831_v34 = vmul.f32 %v12952_v33, %v12898_v23  ;;  %v2794_v15 = vand.u32 2147483647, %v12501_v47 }
 0x348   : > { %18654 = vst [vmem:[#allocation46_spill] sm:$0xff] %v12973_v3  ;;  %v12975_v6 = vpop.eup %9237  ;;  %9249 = vpow2.f32 %v8382_v4  ;;  %v18655_v4 = vand.u32 2147483648, %v12501_v47  ;;  %v12995_v59 = vadd.f32 %v12904_v36, %v3058_v11  ;;  %v12999_v10 = vadd.f32 %v12780_v42, %v12547_v48 }
 0x349   : > { %v9240_v44 = vpop.eup %9239  ;;  %v3683_v60 = vmul.f32 %v12975_v6, %v12935_v1  ;;  %9251 = vrcp.f32 %v12977_v22  ;;  %v2846_v45 = vmul.f32 %v12970_v24, %v12921_v7  ;;  %v2832_v48 = vsub.f32 1.0, %v2831_v34 }
 0x34a   : > { %v9242_v29 = vpop.eup %9241  ;;  %v2797_v54 = vor.u32 1.1754944e-38, %v18655_v4  ;;  %18656 = vst [vmem:[#allocation40_spill] sm:$0xff] %v12999_v10  ;;  %9253 = vpow2.f32 %v8383_v31  ;;  %v13007_v49 = vadd.f32 1.0, %v9240_v44  ;;  %v2793_v44 = vsel %vm13013_vm1, %v12529_v25, %v2789_v46  ;;  %v2581_v23 = vpop.f32.mrf.mxu1 }
 0x34b   : > { %v9244_v53 = vpop.eup %9243  ;;  %9255 = vrcp.f32 %v12981_v63  ;;  %vm2795_vm4 = vcmp.eq.f32.partialorder %v2794_v15, 8.507059e+37  ;;  %v2847_v25 = vsub.f32 1.0, %v2846_v45  ;;  %v13053_v45 = vmul.f32 %v12952_v33, %v2832_v48 }
 0x34c   : > { %v9246_v5 = vpop.eup %9245  ;;  %9257 = vrcp.f32 %v13007_v49  ;;  %v13039_v46 = vadd.f32 1.0, %v9244_v53  ;;  %v13041_v34 = vsel %vm2795_vm4, %v2797_v54, %v2793_v44  ;;  %vm3688_vm15 = vweird.f32 %v12975_v6 }
 0x34d   : > { %v9248_v11 = vpop.eup %9247  ;;  %v13035_v14 = vadd.f32 1.0, %v9246_v5  ;;  %18662 = vst [vmem:[#allocation42_spill] sm:$0xff] %v13053_v45  ;;  %v3691_v44 = vand.u32 2147483647, %v12935_v1  ;;  %vm3687_vm13 = vweird.f32 %v12935_v1  ;;  %v2552_v45 = vpop.f32.mrf.mxu0  ;;  %vm3807_vm3 = vweird.f32 %v12977_v22 }
 0x34e   : > { %v12877_v28 = vpop.f32.mrf.mxu2  ;;  %v9250_v31 = vpop.eup %9249  ;;  %v13050_v15 = vadd.f32 1.0, %v9248_v11  ;;  %v3693_v11 = vand.u32 2147483648, %v12935_v1  ;;  %vm13069_vm14 = vmor %vm3687_vm13, %vm3688_vm15  ;;  %vm3702_vm6 = vweird.f32 %v12981_v63  ;;  %vm3822_vm1 = vweird.f32 %v13007_v49 }
 0x34f   : > { %v9252_v47 = vpop.eup %9251  ;;  %vm3692_vm11 = vcmp.eq.f32.partialorder %v3691_v44, 8.507059e+37 }
 0x350   : > { %v9254_v5 = vpop.eup %9253  ;;  %v3803_v54 = vmul.f32 %v9252_v47, %v12977_v22  ;;  %vm3808_vm8 = vweird.f32 %v9252_v47 }
 0x351   : > { %vm3809_vm0 = vmor %vm3807_vm3, %vm3808_vm8  ;;  %vm3447_vm8 = vweird.f32 %v13039_v46  ;;  %vm3045_vm3 = vweird.f32 %v12748_v35 }
 0x352   : > { %v3804_v48 = vsub.f32 1.0, %v3803_v54 }
 0x354   : > { %v12896_v27 = vpop.f32.mrf.mxu3  ;;  %v3805_v54 = vmul.f32 %v9252_v47, %v3804_v48 }
 0x355   : > { %18645 = vst [vmem:[#allocation70_spill] sm:$0xff] %v12896_v27  ;;  %v13003_v27 = vmul.f32 %v12932_v9, %v3162_v13  ;;  %v13020_v13 = vadd.f32 1.0, %v9242_v29  ;;  %v13033_v29 = vadd.f32 %v12877_v28, %v12505_v8  ;;  %v13048_v28 = vadd.f32 1.0, %v9250_v31 }
 0x356   : > { %v12946_v30 = vpop.f32.mrf.mxu2  ;;  %v13064_v31 = vmul.f32 %v12970_v24, %v2847_v25  ;;  %v3694_v24 = vor.u32 1.1754944e-38, %v3693_v11  ;;  %v3806_v2 = vadd.f32 %v9252_v47, %v3805_v54  ;;  %v18666_v11 = vld [vmem:[#allocation17_spill] sm:$0xff] }
 0x357   : > { %18659 = vst [vmem:[#allocation91_spill] sm:$0xff] %v13020_v13  ;;  %9259 = vrcp.f32 %v13020_v13  ;;  %v2553_v48 = vadd.f32 %v2552_v45, %v18666_v11  ;;  %v2582_v40 = vadd.f32 %v2581_v23, %v18666_v11  ;;  %v3081_v0 = vand.u32 2147483648, %v13048_v28 }
 0x358   : > { %18660 = vst [vmem:[#allocation39_spill] sm:$0xff] %v13033_v29  ;;  %9261 = vrcp.f32 %v13035_v14  ;;  %v13079_v29 = vadd.f32 1.0, %v9254_v5 }
 0x359   : > { %18663 = vst [vmem:[#allocation55_spill] sm:$0xff] %v13064_v31  ;;  %9263 = vrcp.f32 %v13039_v46 }
 0x35a   : > { %9265 = vrcp.f32 %v13048_v28 }
 0x35c   : > { %v12956_v61 = vpop.f32.mrf.mxu3 }
 0x35d   : > { %18651 = vst [vmem:[#allocation9_spill] sm:$0xff] %v12956_v61  ;;  %v3684_v61 = vsub.f32 1.0, %v3683_v60  ;;  %v13018_v60 = vmul.f32 %v12937_v51, %v3177_v26  ;;  %v3813_v26 = vand.u32 2147483648, %v12977_v22 }
 0x35e   : > { %v2603_v4 = vpop.f32.mrf.mxu2 }
 0x35f   : > { %v3685_v12 = vmul.f32 %v12975_v6, %v3684_v61  ;;  %v2604_v42 = vadd.f32 %v2603_v4, %v12480_v16  ;;  %v13046_v61 = vadd.f32 %v12946_v30, %v12578_v39  ;;  %v13058_v4 = vpop.eup %9255 }
 0x360   : > { %v13077_v25 = vpop.eup %9257  ;;  %vm3703_vm7 = vweird.f32 %v13058_v4 }
 0x361   : > { %18661 = vst [vmem:[#allocation44_spill] sm:$0xff] %v13046_v61  ;;  %v3686_v53 = vadd.f32 %v12975_v6, %v3685_v12  ;;  %v8368_v30 = vmul.f32 -1.442695, %v2604_v42  ;;  %v3811_v42 = vand.u32 2147483647, %v12977_v22  ;;  %v3698_v61 = vmul.f32 %v13058_v4, %v12981_v63  ;;  %v13084_v31 = vpop.eup %9259  ;;  %vm13116_vm5 = vmor %vm3702_vm6, %vm3703_vm7 }
 0x362   : > { %v13092_v5 = vpop.eup %9261  ;;  %v3810_v12 = vsel %vm3809_vm0, %v9252_v47, %v3806_v2  ;;  %v2951_v45 = vmul.f32 %v13084_v31, %v13020_v13  ;;  %vm3823_vm10 = vweird.f32 %v13077_v25 }
 0x363   : > { %v3690_v1 = vsel %vm13069_vm14, %v12975_v6, %v3686_v53  ;;  %9267 = vpow2.f32 %v8368_v30  ;;  %v3699_v33 = vsub.f32 1.0, %v3698_v61  ;;  %v3818_v6 = vmul.f32 %v13077_v25, %v13007_v49  ;;  %v13096_v44 = vpop.eup %9263  ;;  %vm3824_vm4 = vmor %vm3822_vm1, %vm3823_vm10 }
 0x364   : > { %v13027_v10 = vpop.f32.mrf.mxu3  ;;  %v3695_v53 = vsel %vm3692_vm11, %v3694_v24, %v3690_v1  ;;  %vm3812_vm12 = vcmp.eq.f32.partialorder %v3811_v42, 8.507059e+37  ;;  %v3814_v30 = vor.u32 1.1754944e-38, %v3813_v26  ;;  %v13100_v54 = vpop.eup %9265  ;;  %v3708_v42 = vand.u32 2147483648, %v12981_v63 }
 0x365   : > { %v3700_v61 = vmul.f32 %v13058_v4, %v3699_v33  ;;  %v3819_v22 = vsub.f32 1.0, %v3818_v6  ;;  %v3938_v26 = vmul.f32 %v3695_v53, %v12809_v56  ;;  %v3706_v1 = vand.u32 2147483647, %v12981_v63  ;;  %v18669_v53 = vld [vmem:[#allocation7_spill] sm:$0xff] }
 0x366   : > { %v3815_v37 = vsel %vm3812_vm12, %v3814_v30, %v3810_v12  ;;  %9269 = vrcp.f32 %v13079_v29  ;;  %v2605_v23 = vpop.f32.mrf.mxu2  ;;  %v3828_v12 = vand.u32 2147483648, %v13007_v49  ;;  %v3709_v63 = vor.u32 1.1754944e-38, %v3708_v42  ;;  %v18673_v6 = vld [vmem:[#allocation79_spill] sm:$0xff] }
 0x367   : > { %v3701_v24 = vadd.f32 %v13058_v4, %v3700_v61  ;;  %v3946_v33 = vmul.f32 %v3815_v37, %v12901_v38  ;;  %v3820_v2 = vmul.f32 %v13077_v25, %v3819_v22  ;;  %v3826_v37 = vand.u32 2147483647, %v13007_v49 }
 0x368   : > { %v8390_v38 = vmul.f32 -1.442695, %v2553_v48  ;;  %v8391_v22 = vmul.f32 -1.442695, %v2582_v40  ;;  %v2606_v56 = vadd.f32 %v2605_v23, %v12484_v43  ;;  %v18671_v48 = vld [vmem:[#allocation5_spill] sm:$0xff]  ;;  %vm3707_vm9 = vcmp.eq.f32.partialorder %v3706_v1, 8.507059e+37 }
 0x369   : > { %v9268_v47 = vpop.eup %9267  ;;  %v13123_v30 = vadd.f32 %v3946_v33, %v18669_v53  ;;  %v3705_v61 = vsel %vm13116_vm5, %v13058_v4, %v3701_v24  ;;  %v3821_v13 = vadd.f32 %v13077_v25, %v3820_v2  ;;  %v13134_v3 = vadd.f32 %v3938_v26, %v18671_v48 }
 0x36a   : > { %v3071_v33 = vmul.f32 %v13100_v54, %v13048_v28  ;;  %v3710_v4 = vsel %vm3707_vm9, %v3709_v63, %v3705_v61  ;;  %v3443_v40 = vmul.f32 %v13096_v44, %v13039_v46  ;;  %v2966_v24 = vmul.f32 %v13092_v5, %v13035_v14 }
 0x36b   : > { %18670 = vst [vmem:[#allocation41_spill] sm:$0xff] %v13123_v30  ;;  %9271 = vpow2.f32 %v8390_v38  ;;  %v4003_v2 = vpack.c.bf16 %v13123_v30, %v13134_v3  ;;  %v3829_v26 = vor.u32 1.1754944e-38, %v3828_v12  ;;  %v13147_v23 = vadd.f32 1.0, %v9268_v47 }
 0x36c   : > { %v13086_v7 = vpop.f32.mrf.mxu3  ;;  %18672 = vst [vmem:[#allocation29_spill] sm:$0xff] %v13134_v3  ;;  %v13145_v1 = vpop.eup %9269  ;;  %9273 = vpow2.f32 %v8391_v22  ;;  %v3825_v49 = vsel %vm3824_vm4, %v13077_v25, %v3821_v13  ;;  %vm3827_vm15 = vcmp.eq.f32.partialorder %v3826_v37, 8.507059e+37  ;;  %vm2910_vm13 = vweird.f32 %v18673_v6  ;;  %v18674_v13 = vld [vmem:[#allocation27_spill] sm:$0xff]  ;;  %v18675_v25 = vld [vmem:[#allocation66_spill] sm:$0xff] }
 0x36d   : > { %v8376_v53 = vmul.f32 -1.442695, %v2606_v56  ;;  %4098 = vmatpush.bf16.msra.mxu0 %v4003_v2  ;;  %v3830_v61 = vsel %vm3827_vm15, %v3829_v26, %v3825_v49  ;;  %v3939_v38 = vmul.f32 %v3710_v4, %v12822_v20  ;;  %v3453_v63 = vand.u32 2147483648, %v13039_v46  ;;  %v18678_v4 = vld [vmem:[#allocation43_spill] sm:$0xff] }
 0x36e   : > { %v2952_v48 = vsub.f32 1.0, %v2951_v45  ;;  %v3072_v30 = vsub.f32 1.0, %v3071_v33  ;;  %v3947_v12 = vmul.f32 %v3830_v61, %v12908_v62  ;;  %v3444_v3 = vsub.f32 1.0, %v3443_v40 }
 0x36f   : > { %v2909_v37 = vadd.f32 %v18675_v25, %v18674_v13  ;;  %vm2911_vm14 = vweird.f32 %v18675_v25  ;;  %v2967_v56 = vsub.f32 1.0, %v2966_v24  ;;  %v13159_v2 = vor.u32 1.1754944e-38, %v3081_v0 }
 0x370   : > { %v3086_v20 = vmul.f32 %v13145_v1, %v13079_v29  ;;  %9275 = vrcp.f32 %v13147_v23  ;;  %v3096_v45 = vand.u32 2147483648, %v13079_v29  ;;  %v13170_v40 = vadd.f32 %v3947_v12, %v18678_v4  ;;  %vm13201_vm6 = vmor %vm2910_vm13, %vm2911_vm14 }
 0x371   : > { %v9272_v62 = vpop.eup %9271  ;;  %9277 = vpow2.f32 %v8376_v53  ;;  %vm3046_vm11 = vweird.f32 %v12875_v55  ;;  %v13174_v0 = vmul.f32 %v13084_v31, %v2952_v48  ;;  %v3445_v26 = vmul.f32 %v13096_v44, %v3444_v3 }
 0x372   : > { %18679 = vst [vmem:[#allocation30_spill] sm:$0xff] %v13170_v40  ;;  %v9274_v24 = vpop.eup %9273  ;;  %9279 = vrcp.f32 %v13050_v15  ;;  %v13181_v49 = vadd.f32 %v13027_v10, %v12505_v8  ;;  %v13188_v48 = vmul.f32 %v13092_v5, %v2967_v56  ;;  %v13190_v12 = vadd.f32 1.0, %v9272_v62  ;;  %vm3047_vm14 = vmor %vm3045_vm3, %vm3046_vm11 }
 0x373   : > { %v2914_v3 = vand.u32 2147483647, %v18673_v6  ;;  %v13193_v13 = vor.u32 1.1754944e-38, %v3096_v45  ;;  %v13195_v8 = vadd.f32 1.0, %v9274_v24  ;;  %v2916_v56 = vand.u32 2147483648, %v18673_v6 }
 0x374   : > { %v2632_v42 = vpop.f32.mrf.mxu3  ;;  %18680 = vst [vmem:[#allocation32_spill] sm:$0xff] %v13181_v49  ;;  %vm3061_vm12 = vweird.f32 %v12904_v36  ;;  %vm3448_vm7 = vweird.f32 %v13096_v44  ;;  %vm3060_vm5 = vweird.f32 %v12789_v52  ;;  %vm3166_vm1 = vweird.f32 %v12932_v9 }
 0x375   : > { %v2633_v22 = vadd.f32 %v2632_v42, %v12480_v16  ;;  %v18676_v16 = vld [vmem:[#allocation49_spill] sm:$0xff]  ;;  %v3073_v42 = vmul.f32 %v13100_v54, %v3072_v30  ;;  %v3087_v30 = vsub.f32 1.0, %v3086_v20  ;;  %vm2915_vm10 = vcmp.eq.f32.partialorder %v2914_v3, 8.507059e+37  ;;  %vm13242_vm9 = vmor %vm3447_vm8, %vm3448_vm7 }
 0x376   : > { %v13167_v33 = vadd.f32 %v3939_v38, %v18676_v16  ;;  %v18683_v20 = vld [vmem:[#allocation93_spill] sm:$0xff]  ;;  %v13210_v45 = vpop.eup %9275  ;;  %v18684_v16 = vand.u32 2147483647, %v12748_v35  ;;  %vm3165_vm13 = vweird.f32 %v12855_v57  ;;  %vm3567_vm11 = vweird.f32 %v13050_v15  ;;  %vm13298_vm7 = vmor %vm3060_vm5, %vm3061_vm12 }
 0x377   : > { %v8369_v61 = vmul.f32 -1.442695, %v2633_v22  ;;  %v13208_v62 = vmul.f32 %v13041_v34, %v18683_v20  ;;  %v13220_v24 = vadd.f32 %v13100_v54, %v3073_v42  ;;  %v2913_v34 = vsel %vm13201_vm6, %v18675_v25, %v2909_v37  ;;  %v9278_v6 = vpop.eup %9277  ;;  %vm13334_vm12 = vmor %vm3165_vm13, %vm3166_vm1 }
 0x378   : > { %18677 = vst [vmem:[#allocation31_spill] sm:$0xff] %v13167_v33  ;;  %v4004_v38 = vpack.c.bf16 %v13170_v40, %v13167_v33  ;;  %vm13214_vm0 = vcmp.eq.f32.partialorder %v18684_v16, 8.507059e+37  ;;  %v13229_v20 = vadd.f32 %v13086_v7, %v12578_v39  ;;  %v2917_v16 = vor.u32 1.1754944e-38, %v2916_v56  ;;  %v9280_v47 = vpop.eup %9279 }
 0x379   : > { %9281 = vpow2.f32 %v8369_v61  ;;  %v3283_v53 = vand.u32 2147483647, %v13208_v62  ;;  %v3088_v42 = vmul.f32 %v13145_v1, %v3087_v30  ;;  %v3563_v7 = vmul.f32 %v9280_v47, %v13050_v15  ;;  %v18691_v30 = vld [vmem:[#allocation67_spill] sm:$0xff] }
 0x37a   : > { %4127 = vmatpush.bf16.msra.mxu1 %v4004_v38  ;;  %v3446_v38 = vadd.f32 %v13096_v44, %v3445_v26  ;;  %18687 = vst [vmem:[#allocation35_spill] sm:$0xff] %v13229_v20  ;;  %9283 = vrcp.f32 %v13190_v12  ;;  %v2918_v37 = vsel %vm2915_vm10, %v2917_v16, %v2913_v34  ;;  %v13248_v61 = vadd.f32 1.0, %v9278_v6 }
 0x37b   : > { %9285 = vrcp.f32 %v13195_v8  ;;  %v13254_v3 = vmul.f32 %v2918_v37, %v18691_v30  ;;  %v2861_v22 = vmul.f32 %v13210_v45, %v13147_v23  ;;  %v18692_v56 = vand.u32 2147483647, %v13039_v46 }
 0x37c   : > { %v2634_v10 = vpop.f32.mrf.mxu3  ;;  %18690 = vst [vmem:[#allocation33_spill] sm:$0xff] %v13248_v61  ;;  %v3454_v34 = vor.u32 1.1754944e-38, %v3453_v63  ;;  %v3564_v16 = vsub.f32 1.0, %v3563_v7  ;;  %v18693_v6 = vand.u32 2147483647, %v12789_v52  ;;  %vm3568_vm8 = vweird.f32 %v9280_v47 }
 0x37d   : > { %v2635_v26 = vadd.f32 %v2634_v10, %v12484_v43  ;;  %v3450_v43 = vsel %vm13242_vm9, %v13096_v44, %v3446_v38  ;;  %v8395_v10 = vmul.f32 -1.442695, %v3283_v53  ;;  %vm3452_vm4 = vcmp.eq.f32.partialorder %v18692_v56, 8.507059e+37  ;;  %vm3569_vm6 = vmor %vm3567_vm11, %vm3568_vm8 }
 0x37e   : > { %vm13264_vm15 = vcmp.eq.f32.partialorder %v18693_v6, 8.507059e+37  ;;  %v3573_v53 = vand.u32 2147483648, %v13050_v15  ;;  %v3291_v38 = vand.u32 2147483647, %v13254_v3  ;;  %v3455_v46 = vsel %vm3452_vm4, %v3454_v34, %v3450_v43 }
 0x37f   : > { %v8377_v44 = vmul.f32 -1.442695, %v2635_v26  ;;  %9287 = vpow2.f32 %v8395_v10  ;;  %v9282_v39 = vpop.eup %9281  ;;  %v3565_v63 = vmul.f32 %v9280_v47, %v3564_v16  ;;  %v3571_v7 = vand.u32 2147483647, %v13050_v15  ;;  %v18699_v15 = vld [vmem:[#allocation90_spill] sm:$0xff] }
 0x380   : > { %v13276_v37 = vpop.eup %9283  ;;  %v13279_v26 = vadd.f32 %v13145_v1, %v3088_v42  ;;  %9289 = vrcp.f32 %v13248_v61  ;;  %v8403_v30 = vmul.f32 -1.442695, %v3291_v38  ;;  %v3048_v10 = vsel %vm3047_vm14, %v12875_v55, %v12987_v41 }
 0x381   : > { %v13284_v56 = vpop.eup %9285  ;;  %v2862_v35 = vsub.f32 1.0, %v2861_v22  ;;  %v3566_v6 = vadd.f32 %v9280_v47, %v3565_v63  ;;  %v3053_v43 = vsel %vm13214_vm0, %v12840_v21, %v3048_v10  ;;  %vm3181_vm3 = vweird.f32 %v12937_v51  ;;  %v2608_v21 = vpop.f32.mrf.mxu2 }
 0x382   : > { %v13291_v42 = vadd.f32 1.0, %v9282_v39  ;;  %v3574_v34 = vor.u32 1.1754944e-38, %v3573_v53  ;;  %v3922_v16 = vmul.f32 %v3455_v46, %v12893_v18  ;;  %9291 = vpow2.f32 %v8403_v30 }
 0x383   : > { %9293 = vpow2.f32 %v8377_v44  ;;  %v3570_v41 = vsel %vm3569_vm6, %v9280_v47, %v3566_v6  ;;  %vm3572_vm0 = vcmp.eq.f32.partialorder %v3571_v7, 8.507059e+37  ;;  %v13303_v4 = vmul.f32 %v3053_v43, %v18699_v15  ;;  %v18702_v7 = vld [vmem:[#allocation47_spill] sm:$0xff] }
 0x384   : > { %18696 = vst [vmem:[#allocation36_spill] sm:$0xff] %v13291_v42  ;;  %vm3180_vm10 = vweird.f32 %v12872_v50  ;;  %v3191_v18 = vmul.f32 %v13276_v37, %v13190_v12  ;;  %v3206_v52 = vmul.f32 %v13284_v56, %v13195_v8  ;;  %v3575_v53 = vsel %vm3572_vm0, %v3574_v34, %v3570_v41  ;;  %v2637_v41 = vpop.f32.mrf.mxu3 }
 0x385   : > { %v9288_v22 = vpop.eup %9287  ;;  %v3063_v47 = vsel %vm13298_vm7, %v12904_v36, %v12995_v59  ;;  %v13315_v44 = vmul.f32 %v13210_v45, %v2862_v35  ;;  %v3201_v38 = vand.u32 2147483648, %v13190_v12  ;;  %v3930_v39 = vmul.f32 %v3575_v53, %v12911_v32  ;;  %v18706_v59 = vld [vmem:[#allocation6_spill] sm:$0xff]  ;;  %vm13386_vm9 = vmor %vm3180_vm10, %vm3181_vm3 }
 0x386   : > { %v13319_v46 = vadd.f32 1.0, %v9288_v22  ;;  %v13321_v63 = vpop.eup %9289  ;;  %9295 = vrcp.f32 %v13291_v42  ;;  %v13325_v30 = vadd.f32 %v3922_v16, %v18702_v7  ;;  %v2609_v10 = vadd.f32 %v2608_v21, %v12474_v58 }
 0x387   : > { %18700 = vst [vmem:[#allocation34_spill] sm:$0xff] %v13315_v44  ;;  %v3164_v36 = vadd.f32 %v12932_v9, %v13003_v27  ;;  %v13339_v35 = vadd.f32 %v3930_v39, %v18706_v59  ;;  %v3300_v6 = vand.u32 2147483647, %v13303_v4  ;;  %v3068_v43 = vsel %vm13264_vm15, %v12959_v17, %v3063_v47  ;;  %v18709_v47 = vld [vmem:[#allocation38_spill] sm:$0xff] }
 0x388   : > { %18701 = vst [vmem:[#allocation17_spill] sm:$0xff] %v13321_v63  ;;  %9297 = vrcp.f32 %v13319_v46  ;;  %v9292_v27 = vpop.eup %9291  ;;  %v3192_v34 = vsub.f32 1.0, %v3191_v18  ;;  %v3207_v16 = vsub.f32 1.0, %v3206_v52  ;;  %v3216_v55 = vand.u32 2147483648, %v13195_v8  ;;  %v13361_v18 = vld [vmem:[%s17901_s3 + $0x40] sm:$0xff] }
 0x389   : > { %18703 = vst [vmem:[#allocation7_spill] sm:$0xff] %v13325_v30  ;;  %v3168_v21 = vsel %vm13334_vm12, %v12932_v9, %v3164_v36  ;;  %v9294_v15 = vpop.eup %9293  ;;  %v2981_v22 = vmul.f32 %v13321_v63, %v13248_v61  ;;  %v3995_v53 = vpack.c.bf16 %v13339_v35, %v13325_v30  ;;  %v13354_v39 = vadd.f32 1.0, %v9292_v27 }
 0x38a   : > { %18707 = vst [vmem:[#allocation5_spill] sm:$0xff] %v13339_v35  ;;  %v18708_v17 = vand.u32 2147483647, %v12855_v57  ;;  %v8384_v25 = vmul.f32 -1.442695, %v2609_v10  ;;  %v3179_v52 = vadd.f32 %v12937_v51, %v13018_v60  ;;  %v13367_v7 = vmul.f32 %v3068_v43, %v18709_v47  ;;  %v18717_v47 = vld [vmem:[#allocation25_spill] sm:$0xff] }
 0x38b   : > { %4099 = vmatpush.bf16.msra.mxu0 %v3995_v53  ;;  %9299 = vrcp.f32 %v13354_v39  ;;  %v2638_v57 = vadd.f32 %v2637_v41, %v12474_v58  ;;  %v8412_v10 = vmul.f32 -1.442695, %v3300_v6  ;;  %v13375_v59 = vmul.f32 %v13276_v37, %v3192_v34  ;;  %v2610_v53 = vpop.f32.mrf.mxu2 }
 0x38c   : > { %vm3170_vm5 = vcmp.eq.f32.partialorder %v18708_v17, 8.507059e+37  ;;  %v13372_v32 = vpop.eup %9295  ;;  %v13380_v27 = vor.u32 1.1754944e-38, %v3216_v55  ;;  %v13391_v58 = vmul.f32 %v13284_v56, %v3207_v16  ;;  %v2982_v6 = vsub.f32 1.0, %v2981_v22 }
 0x38d   : > { %v3173_v9 = vsel %vm3170_vm5, %v12964_v19, %v3168_v21  ;;  %18710 = vst [vmem:[#allocation79_spill] sm:$0xff] %v13372_v32  ;;  %v13377_v19 = vor.u32 1.1754944e-38, %v3201_v38  ;;  %v13393_v34 = vadd.f32 1.0, %v9294_v15  ;;  %v18716_v38 = vld [vmem:[#allocation73_spill] sm:$0xff]  ;;  %9301 = vpow2.f32 %v8384_v25 }
 0x38e   : > { %18712 = vst [vmem:[#allocation66_spill] sm:$0xff] %v13380_v27  ;;  %v9298_v43 = vpop.eup %9297  ;;  %v13396_v41 = vmul.f32 %v3173_v9, %v18716_v38  ;;  %8458 = vmatmul.msk.bf16.vlgmr.msra.gmra.mxu0 %vm18089_vm2, %v13361_v18  ;;  %v3183_v17 = vsel %vm13386_vm9, %v12937_v51, %v3179_v52  ;;  %v3301_v16 = vand.u32 2147483647, %v13367_v7  ;;  %v3466_v22 = vand.u32 2147483647, %v13319_v46  ;;  %v18718_v9 = vld [vmem:[#allocation69_spill] sm:$0xff] }
 0x38f   : > { %18711 = vst [vmem:[#allocation27_spill] sm:$0xff] %v13377_v19  ;;  %v3458_v55 = vmul.f32 %v9298_v43, %v13319_v46  ;;  %v8385_v15 = vmul.f32 -1.442695, %v2638_v57  ;;  %9303 = vpow2.f32 %v8412_v10  ;;  %v13408_v38 = vadd.f32 %v18718_v9, %v18717_v47  ;;  %v18720_v10 = vld [vmem:[#allocation46_spill] sm:$0xff] }
 0x390   : > { %18715 = vst [vmem:[#allocation49_spill] sm:$0xff] %v13393_v34  ;;  %v13412_v25 = vmul.f32 %v13372_v32, %v13291_v42  ;;  %v3468_v36 = vand.u32 2147483648, %v13319_v46  ;;  %v18719_v21 = vand.u32 2147483647, %v12872_v50  ;;  %9305 = vrcp.f32 %v13393_v34 }
 0x391   : > { %v3459_v60 = vsub.f32 1.0, %v3458_v55  ;;  %v9300_v51 = vpop.eup %9299  ;;  %v2611_v52 = vadd.f32 %v2610_v53, %v18666_v11  ;;  %v3308_v57 = vand.u32 2147483647, %v13396_v41  ;;  %vm3463_vm4 = vweird.f32 %v9298_v43 }
 0x392   : > { %vm3185_vm1 = vcmp.eq.f32.partialorder %v18719_v21, 8.507059e+37  ;;  %v3578_v30 = vmul.f32 %v9300_v51, %v13354_v39  ;;  %v8413_v40 = vmul.f32 -1.442695, %v3301_v16  ;;  %vm2806_vm15 = vweird.f32 %v18718_v9  ;;  %v18724_v21 = vld [vmem:[#allocation83_spill] sm:$0xff] }
 0x393   : > { %v3188_v47 = vsel %vm3185_vm1, %v18720_v10, %v3183_v17  ;;  %v3460_v35 = vmul.f32 %v9298_v43, %v3459_v60  ;;  %v13424_v55 = vmul.f32 %v13321_v63, %v2982_v6  ;;  %vm3462_vm13 = vweird.f32 %v13319_v46  ;;  %v9302_v53 = vpop.eup %9301 }
 0x394   : > { %vm13427_vm14 = vcmp.eq.f32.partialorder %v3466_v22, 8.507059e+37  ;;  %9307 = vpow2.f32 %v8385_v15  ;;  %vm2805_vm8 = vweird.f32 %v18724_v21  ;;  %v3469_v17 = vor.u32 1.1754944e-38, %v3468_v36  ;;  %vm3464_vm11 = vmor %vm3462_vm13, %vm3463_vm4  ;;  %v18725_v22 = vld [vmem:[#allocation74_spill] sm:$0xff] }
 0x395   : > { %18721 = vst [vmem:[#allocation43_spill] sm:$0xff] %v13424_v55  ;;  %v3461_v60 = vadd.f32 %v9298_v43, %v3460_v35  ;;  %v3579_v10 = vsub.f32 1.0, %v3578_v30  ;;  %v3586_v16 = vand.u32 2147483647, %v13354_v39  ;;  %v9304_v33 = vpop.eup %9303  ;;  %v3588_v6 = vand.u32 2147483648, %v13354_v39  ;;  %vm13474_vm12 = vmor %vm2805_vm8, %vm2806_vm15 }
 0x396   : > { %v8392_v42 = vmul.f32 -1.442695, %v2611_v52  ;;  %v8420_v46 = vmul.f32 -1.442695, %v3308_v57  ;;  %v13436_v63 = vmul.f32 %v3188_v47, %v18725_v22  ;;  %vm3583_vm3 = vweird.f32 %v9300_v51  ;;  %v13438_v20 = vpop.eup %9305  ;;  %v18730_v22 = vld [vmem:[#allocation76_spill] sm:$0xff] }
 0x397   : > { %v3465_v55 = vsel %vm3464_vm11, %v9298_v43, %v3461_v60  ;;  %v3580_v15 = vmul.f32 %v9300_v51, %v3579_v10  ;;  %9309 = vpow2.f32 %v8413_v40  ;;  %18726 = vst [vmem:[#allocation93_spill] sm:$0xff] %v13438_v20  ;;  %v13442_v35 = vadd.f32 1.0, %v9302_v53  ;;  %v18728_v53 = vld [vmem:[#allocation85_spill] sm:$0xff] }
 0x398   : > { %v3470_v30 = vsel %vm13427_vm14, %v3469_v17, %v3465_v55  ;;  %9311 = vpow2.f32 %v8420_v46  ;;  %v2809_v36 = vand.u32 2147483647, %v18724_v21  ;;  %vm3582_vm6 = vweird.f32 %v13354_v39  ;;  %v2639_v55 = vpop.f32.mrf.mxu3  ;;  %v18729_v60 = vld [vmem:[#allocation21_spill] sm:$0xff] }
 0x399   : > { %v3581_v49 = vadd.f32 %v9300_v51, %v3580_v15  ;;  %v13446_v52 = vadd.f32 1.0, %v9304_v33  ;;  %v18727_v43 = vand.u32 2147483648, %v18724_v21  ;;  %v2877_v40 = vsub.f32 1.0, %v13412_v25  ;;  %vm3584_vm7 = vmor %vm3582_vm6, %vm3583_vm3 }
 0x39a   : > { %v9308_v47 = vpop.eup %9307  ;;  %vm3587_vm0 = vcmp.eq.f32.partialorder %v3586_v16, 8.507059e+37  ;;  %v3589_v50 = vor.u32 1.1754944e-38, %v3588_v6  ;;  %v2924_v17 = vadd.f32 %v18729_v60, %v18728_v53  ;;  %v3923_v46 = vmul.f32 %v3470_v30, %v13208_v62 }
 0x39b   : > { %v2812_v57 = vor.u32 1.1754944e-38, %v18727_v43  ;;  %v3585_v10 = vsel %vm3584_vm7, %v9300_v51, %v3581_v49  ;;  %9313 = vpow2.f32 %v8392_v42  ;;  %v3309_v33 = vand.u32 2147483647, %v13436_v63  ;;  %v18735_v51 = vld [vmem:[#allocation54_spill] sm:$0xff] }
 0x39c   : > { %v3590_v39 = vsel %vm3587_vm0, %v3589_v50, %v3585_v10  ;;  %9315 = vrcp.f32 %v13442_v35  ;;  %vm2926_vm10 = vweird.f32 %v18729_v60  ;;  %v2931_v25 = vand.u32 2147483648, %v18730_v22 }
 0x39d   : > { %v9310_v15 = vpop.eup %9309  ;;  %v3931_v16 = vmul.f32 %v3590_v39, %v13254_v3  ;;  %v13459_v6 = vadd.f32 1.0, %v9308_v47  ;;  %v2640_v43 = vadd.f32 %v2639_v55, %v18666_v11  ;;  %9317 = vrcp.f32 %v13446_v52  ;;  %v18737_v47 = vld [vmem:[#allocation56_spill] sm:$0xff]  ;;  %v18742_v55 = vld [vmem:[#allocation89_spill] sm:$0xff] }
 0x39e   : > { %v9312_v49 = vpop.eup %9311  ;;  %v13464_v62 = vmul.f32 %v13372_v32, %v2877_v40  ;;  %v13468_v42 = vmul.f32 %v13438_v20, %v13393_v34  ;;  %vm2925_vm5 = vweird.f32 %v18730_v22  ;;  %v2929_v11 = vand.u32 2147483647, %v18730_v22 }
 0x39f   : > { %v13481_v30 = vadd.f32 %v3923_v46, %v18735_v51  ;;  %v13484_v40 = vadd.f32 %v3931_v16, %v18737_v47  ;;  %v8421_v50 = vmul.f32 -1.442695, %v3309_v33  ;;  %v2808_v21 = vsel %vm13474_vm12, %v18718_v9, %v13408_v38  ;;  %vm13492_vm9 = vmor %vm2925_vm5, %vm2926_vm10  ;;  %v18741_v47 = vld [vmem:[#allocation87_spill] sm:$0xff] }
 0x3a0   : > { %18731 = vst [vmem:[#allocation67_spill] sm:$0xff] %v13464_v62  ;;  %v13496_v53 = vadd.f32 1.0, %v9312_v49  ;;  %v13498_v10 = vadd.f32 1.0, %v9310_v15  ;;  %vm2810_vm1 = vcmp.eq.f32.partialorder %v2809_v36, 8.507059e+37  ;;  %v2928_v46 = vsel %vm13492_vm9, %v18729_v60, %v2924_v17 }
 0x3a1   : > { %18732 = vst [vmem:[#allocation90_spill] sm:$0xff] %v13468_v42  ;;  %v9314_v33 = vpop.eup %9313  ;;  %v3996_v39 = vpack.c.bf16 %v13484_v40, %v13481_v30  ;;  %9319 = vrcp.f32 %v13459_v6  ;;  %v8393_v9 = vmul.f32 -1.442695, %v2640_v43  ;;  %v2932_v38 = vor.u32 1.1754944e-38, %v2931_v25 }
 0x3a2   : > { %18736 = vst [vmem:[#allocation47_spill] sm:$0xff] %v13481_v30  ;;  %v13506_v22 = vpop.eup %9315  ;;  %9321 = vrcp.f32 %v13496_v53  ;;  %v2813_v15 = vsel %vm2810_vm1, %v2812_v57, %v2808_v21  ;;  %vm2930_vm4 = vcmp.eq.f32.partialorder %v2929_v11, 8.507059e+37  ;;  %v3721_v60 = vand.u32 2147483647, %v13446_v52 }
 0x3a3   : > { %18738 = vst [vmem:[#allocation6_spill] sm:$0xff] %v13484_v40  ;;  %v9318_v36 = vpop.eup %9317  ;;  %4128 = vmatpush.bf16.msra.mxu1 %v3996_v39  ;;  %v3723_v17 = vand.u32 2147483648, %v13446_v52  ;;  %9323 = vpow2.f32 %v8421_v50  ;;  %v2933_v49 = vsel %vm2930_vm4, %v2932_v38, %v2928_v46  ;;  %v13517_v57 = vadd.f32 1.0, %v9314_v33  ;;  %v18745_v38 = vld [vmem:[#allocation20_spill] sm:$0xff] }
 0x3a4   : > { %v3713_v43 = vmul.f32 %v9318_v36, %v13446_v52  ;;  %9325 = vrcp.f32 %v13498_v10  ;;  %v3841_v11 = vand.u32 2147483647, %v13496_v53  ;;  %vm2820_vm15 = vweird.f32 %v18741_v47 }
 0x3a5   : > { %9327 = vpow2.f32 %v8393_v9  ;;  %v13523_v50 = vmul.f32 %v13506_v22, %v13442_v35  ;;  %vm3717_vm13 = vweird.f32 %v13446_v52  ;;  %v13529_v46 = vmul.f32 %v2813_v15, %v18742_v55 }
 0x3a6   : > { %8462 = vmatmul.msk.bf16.vlgmr.msra.gmra.mxu1 %vm18089_vm2, %v13361_v18  ;;  %v3714_v21 = vsub.f32 1.0, %v3713_v43  ;;  %vm13533_vm14 = vcmp.eq.f32.partialorder %v3721_v60, 8.507059e+37  ;;  %v3724_v9 = vor.u32 1.1754944e-38, %v3723_v17  ;;  %vm3837_vm8 = vweird.f32 %v13496_v53 }
 0x3a7   : > { %v13531_v33 = vpop.eup %9319  ;;  %v13539_v16 = vmul.f32 %v2933_v49, %v18745_v38  ;;  %vm3718_vm11 = vweird.f32 %v9318_v36  ;;  %v3843_v43 = vand.u32 2147483648, %v13496_v53  ;;  %v3284_v15 = vand.u32 2147483647, %v13529_v46 }
 0x3a8   : > { %v9322_v3 = vpop.eup %9321  ;;  %v3715_v51 = vmul.f32 %v9318_v36, %v3714_v21  ;;  %vm13544_vm3 = vcmp.eq.f32.partialorder %v3841_v11, 8.507059e+37  ;;  %vm3732_vm6 = vweird.f32 %v13498_v10  ;;  %v3738_v40 = vand.u32 2147483648, %v13498_v10  ;;  %vm3719_vm7 = vmor %vm3717_vm13, %vm3718_vm11 }
 0x3a9   : > { %v9324_v55 = vpop.eup %9323  ;;  %v3833_v25 = vmul.f32 %v9322_v3, %v13496_v53  ;;  %v3292_v17 = vand.u32 2147483647, %v13539_v16  ;;  %v8396_v30 = vmul.f32 -1.442695, %v3284_v15  ;;  %v3736_v62 = vand.u32 2147483647, %v13498_v10 }
 0x3aa   : > { %v13550_v49 = vpop.eup %9325  ;;  %v3716_v38 = vadd.f32 %v9318_v36, %v3715_v51  ;;  %v13552_v21 = vadd.f32 1.0, %v9324_v55  ;;  %v18748_v51 = vld [vmem:[#allocation12_spill] sm:$0xff]  ;;  %v18749_v55 = vld [vmem:[#allocation94_spill] sm:$0xff]  ;;  %vm3838_vm10 = vweird.f32 %v9322_v3  ;;  %v3844_v27 = vor.u32 1.1754944e-38, %v3843_v43 }
 0x3ab   : > { %v13555_v34 = vpop.eup %9327  ;;  %v3834_v11 = vsub.f32 1.0, %v3833_v25  ;;  %v3728_v32 = vmul.f32 %v13550_v49, %v13498_v10  ;;  %v8404_v20 = vmul.f32 -1.442695, %v3292_v17  ;;  %v2819_v61 = vadd.f32 %v18749_v55, %v18748_v51  ;;  %vm3839_vm1 = vmor %vm3837_vm8, %vm3838_vm10 }
 0x3ac   : > { %v3720_v42 = vsel %vm3719_vm7, %v9318_v36, %v3716_v38  ;;  %9329 = vrcp.f32 %v13552_v21  ;;  %vm2821_vm0 = vweird.f32 %v18749_v55  ;;  %v3739_v19 = vor.u32 1.1754944e-38, %v3738_v40  ;;  %v18755_v40 = vld [vmem:[#allocation22_spill] sm:$0xff] }
 0x3ad   : > { %v3725_v15 = vsel %vm13533_vm14, %v3724_v9, %v3720_v42  ;;  %v3835_v52 = vmul.f32 %v9322_v3, %v3834_v11  ;;  %v3729_v25 = vsub.f32 1.0, %v3728_v32  ;;  %9331 = vpow2.f32 %v8396_v30  ;;  %vm13577_vm9 = vmor %vm2820_vm15, %vm2821_vm0 }
 0x3ae   : > { %v2824_v44 = vand.u32 2147483647, %v18741_v47  ;;  %vm3733_vm12 = vweird.f32 %v13550_v49  ;;  %vm13571_vm5 = vcmp.eq.f32.partialorder %v3736_v62, 8.507059e+37  ;;  %9333 = vpow2.f32 %v8404_v20  ;;  %v18754_v62 = vld [vmem:[#allocation82_spill] sm:$0xff] }
 0x3af   : > { %v3836_v17 = vadd.f32 %v9322_v3, %v3835_v52  ;;  %v3730_v36 = vmul.f32 %v13550_v49, %v3729_v25  ;;  %v3940_v32 = vmul.f32 %v3725_v15, %v13303_v4  ;;  %v2823_v30 = vsel %vm13577_vm9, %v18749_v55, %v2819_v61  ;;  %vm13599_vm13 = vmor %vm3732_vm6, %vm3733_vm12  ;;  %v18762_v52 = vld [vmem:[#allocation80_spill] sm:$0xff] }
 0x3b0   : > { %vm2825_vm4 = vcmp.eq.f32.partialorder %v2824_v44, 8.507059e+37  ;;  %v2939_v39 = vadd.f32 %v18755_v40, %v18754_v62  ;;  %v18756_v43 = vand.u32 2147483648, %v18741_v47  ;;  %vm2941_vm15 = vweird.f32 %v18755_v40  ;;  %v18759_v44 = vld [vmem:[#allocation11_spill] sm:$0xff] }
 0x3b1   : > { %v3840_v20 = vsel %vm3839_vm1, %v9322_v3, %v3836_v17  ;;  %v3731_v9 = vadd.f32 %v13550_v49, %v3730_v36  ;;  %vm2940_vm14 = vweird.f32 %v18759_v44  ;;  %v2944_v3 = vand.u32 2147483647, %v18759_v44 }
 0x3b2   : > { %v2827_v11 = vor.u32 1.1754944e-38, %v18756_v43  ;;  %v9330_v53 = vpop.eup %9329  ;;  %v3845_v4 = vsel %vm13544_vm3, %v3844_v27, %v3840_v20  ;;  %v2946_v47 = vand.u32 2147483648, %v18759_v44  ;;  %v3856_v27 = vand.u32 2147483647, %v13552_v21  ;;  %vm13609_vm8 = vmor %vm2940_vm14, %vm2941_vm15 }
 0x3b3   : > { %v3948_v51 = vmul.f32 %v3845_v4, %v13396_v41  ;;  %v3848_v55 = vmul.f32 %v9330_v53, %v13552_v21  ;;  %v9332_v10 = vpop.eup %9331  ;;  %v13614_v25 = vadd.f32 %v3940_v32, %v18762_v52  ;;  %v3735_v17 = vsel %vm13599_vm13, %v13550_v49, %v3731_v9  ;;  %v18766_v4 = vld [vmem:[#allocation68_spill] sm:$0xff] }
 0x3b4   : > { %v2828_v60 = vsel %vm2825_vm4, %v2827_v11, %v2823_v30  ;;  %v3858_v36 = vand.u32 2147483648, %v13552_v21  ;;  %v2943_v41 = vsel %vm13609_vm8, %v18755_v40, %v2939_v39  ;;  %v9334_v42 = vpop.eup %9333  ;;  %v18764_v30 = vld [vmem:[#allocation57_spill] sm:$0xff]  ;;  %v13626_v43 = vadd.f32 1.0, %v9332_v10 }
 0x3b5   : > { %18763 = vst [vmem:[#allocation38_spill] sm:$0xff] %v13614_v25  ;;  %v13624_v62 = vadd.f32 %v3948_v51, %v18764_v30  ;;  %v3849_v20 = vsub.f32 1.0, %v3848_v55  ;;  %v2947_v11 = vor.u32 1.1754944e-38, %v2946_v47  ;;  %vm3853_vm11 = vweird.f32 %v9330_v53 }
 0x3b6   : > { %v13628_v32 = vadd.f32 1.0, %v9334_v42  ;;  %vm2945_vm3 = vcmp.eq.f32.partialorder %v2944_v3, 8.507059e+37  ;;  %v13631_v49 = vmul.f32 %v2828_v60, %v18766_v4  ;;  %9335 = vrcp.f32 %v13626_v43 }
 0x3b7   : > { %18765 = vst [vmem:[#allocation73_spill] sm:$0xff] %v13624_v62  ;;  %v4005_v9 = vpack.c.bf16 %v13624_v62, %v13614_v25  ;;  %v3850_v61 = vmul.f32 %v9330_v53, %v3849_v20  ;;  %v2948_v40 = vsel %vm2945_vm3, %v2947_v11, %v2943_v41  ;;  %v18767_v39 = vand.u32 2147483648, %v13442_v35 }
 0x3b8   : > { %v3740_v51 = vsel %vm13571_vm5, %v3739_v19, %v3735_v17  ;;  %9337 = vrcp.f32 %v13628_v32  ;;  %v13646_v3 = vmul.f32 %v13531_v33, %v13459_v6  ;;  %v18769_v55 = vand.u32 2147483648, %v13459_v6  ;;  %v18771_v19 = vld [vmem:[#allocation18_spill] sm:$0xff] }
 0x3b9   : > { %v13638_v44 = vor.u32 1.1754944e-38, %v18767_v39  ;;  %4156 = vmatpush.bf16.msra.mxu2 %v4005_v9  ;;  %v3851_v15 = vadd.f32 %v9330_v53, %v3850_v61  ;;  %vm3852_vm6 = vweird.f32 %v13552_v21  ;;  %v3102_v10 = vsub.f32 1.0, %v13523_v50  ;;  %v18772_v39 = vld [vmem:[#allocation84_spill] sm:$0xff] }
 0x3ba   : > { %v13650_v60 = vor.u32 1.1754944e-38, %v18769_v55  ;;  %vm3854_vm7 = vmor %vm3852_vm6, %vm3853_vm11  ;;  %v3859_v38 = vor.u32 1.1754944e-38, %v3858_v36  ;;  %v13656_v52 = vmul.f32 %v2948_v40, %v18771_v19  ;;  %v3285_v17 = vand.u32 2147483647, %v13631_v49  ;;  %v18774_v55 = vld [vmem:[#allocation58_spill] sm:$0xff] }
 0x3bb   : > { %18768 = vst [vmem:[#allocation25_spill] sm:$0xff] %v13638_v44  ;;  %9339 = vrcp.f32 %v13517_v57  ;;  %v3855_v41 = vsel %vm3854_vm7, %v9330_v53, %v3851_v15  ;;  %vm3857_vm0 = vcmp.eq.f32.partialorder %v3856_v27, 8.507059e+37  ;;  %v3941_v42 = vmul.f32 %v3740_v51, %v13367_v7 }
 0x3bc   : > { %18770 = vst [vmem:[#allocation69_spill] sm:$0xff] %v13650_v60  ;;  %v3860_v20 = vsel %vm3857_vm0, %v3859_v38, %v3855_v41  ;;  %v3293_v21 = vand.u32 2147483647, %v13656_v52  ;;  %v8397_v50 = vmul.f32 -1.442695, %v3285_v17  ;;  %v9336_v11 = vpop.eup %9335  ;;  %v13666_v9 = vadd.f32 1.0, %v13555_v34 }
 0x3bd   : > { %v3949_v61 = vmul.f32 %v3860_v20, %v13436_v63  ;;  %v13670_v27 = vmul.f32 %v13506_v22, %v3102_v10  ;;  %v3473_v7 = vmul.f32 %v9336_v11, %v13626_v43  ;;  %v13674_v51 = vadd.f32 %v3941_v42, %v18772_v39  ;;  %v13686_v17 = vld [vmem:[%s17901_s3 + $0x48] sm:$0xff] }
 0x3be   : > { %v9338_v53 = vpop.eup %9337  ;;  %9341 = vpow2.f32 %v8397_v50  ;;  %v8405_v40 = vmul.f32 -1.442695, %v3293_v21  ;;  %v3481_v38 = vand.u32 2147483647, %v13626_v43  ;;  %v3483_v63 = vand.u32 2147483648, %v13626_v43  ;;  %v18776_v50 = vld [vmem:[#allocation59_spill] sm:$0xff]  ;;  %8459 = vmatmul.msk.bf16.gmra.mxu0 %vm18089_vm2, %v13686_v17  ;;  %8463 = vmatmul.msk.bf16.gmra.mxu1 %vm18089_vm2, %v13686_v17 }
 0x3bf   : > { %18773 = vst [vmem:[#allocation46_spill] sm:$0xff] %v13674_v51  ;;  %v13677_v15 = vadd.f32 %v3949_v61, %v18774_v55  ;;  %v3593_v34 = vmul.f32 %v9338_v53, %v13628_v32  ;;  %v3474_v19 = vsub.f32 1.0, %v3473_v7  ;;  %v3601_v10 = vand.u32 2147483647, %v13628_v32 }
 0x3c0   : > { %9343 = vpow2.f32 %v8405_v40  ;;  %v3603_v21 = vand.u32 2147483648, %v13628_v32  ;;  %v2839_v61 = vand.u32 2147483647, %v18776_v50  ;;  %vm3477_vm10 = vweird.f32 %v13626_v43 }
 0x3c1   : > { %18775 = vst [vmem:[#allocation83_spill] sm:$0xff] %v13677_v15  ;;  %v13688_v41 = vpop.eup %9339  ;;  %v4006_v42 = vpack.c.bf16 %v13677_v15, %v13674_v51  ;;  %v3594_v20 = vsub.f32 1.0, %v3593_v34  ;;  %9345 = vrcp.f32 %v13666_v9  ;;  %v3475_v7 = vmul.f32 %v9336_v11, %v3474_v19  ;;  %v18779_v34 = vld [vmem:[#allocation88_spill] sm:$0xff]  ;;  %v18785_v51 = vld [vmem:[#allocation91_spill] sm:$0xff] }
 0x3c2   : > { %vm3478_vm12 = vweird.f32 %v9336_v11  ;;  %vm2835_vm5 = vweird.f32 %v18776_v50  ;;  %vm13701_vm9 = vcmp.eq.f32.partialorder %v3481_v38, 8.507059e+37  ;;  %vm3597_vm1 = vweird.f32 %v13628_v32 }
 0x3c3   : > { %4185 = vmatpush.bf16.msra.mxu3 %v4006_v42  ;;  %v3595_v39 = vmul.f32 %v9338_v53, %v3594_v20  ;;  %vm3598_vm4 = vweird.f32 %v9338_v53  ;;  %vm2850_vm15 = vweird.f32 %v18779_v34  ;;  %v3476_v19 = vadd.f32 %v9336_v11, %v3475_v7  ;;  %vm3479_vm14 = vmor %vm3477_vm10, %vm3478_vm12 }
 0x3c4   : > { %v9342_v55 = vpop.eup %9341  ;;  %v3484_v30 = vor.u32 1.1754944e-38, %v3483_v63  ;;  %vm13707_vm13 = vcmp.eq.f32.partialorder %v3601_v10, 8.507059e+37  ;;  %v2854_v4 = vand.u32 2147483647, %v18779_v34  ;;  %v3604_v42 = vor.u32 1.1754944e-38, %v3603_v21  ;;  %vm3599_vm11 = vmor %vm3597_vm1, %vm3598_vm4 }
 0x3c5   : > { %v3596_v38 = vadd.f32 %v9338_v53, %v3595_v39  ;;  %v13715_v20 = vadd.f32 1.0, %v9342_v55  ;;  %vm13717_vm8 = vcmp.eq.f32.partialorder %v2839_v61, 8.507059e+37  ;;  %v3480_v63 = vsel %vm3479_vm14, %v9336_v11, %v3476_v19 }
 0x3c6   : > { %v9344_v7 = vpop.eup %9343  ;;  %v18784_v10 = vand.u32 2147483648, %v18776_v50  ;;  %v2959_v62 = vand.u32 2147483647, %v18785_v51  ;;  %v2961_v43 = vand.u32 2147483648, %v18785_v51  ;;  %v3485_v21 = vsel %vm13701_vm9, %v3484_v30, %v3480_v63 }
 0x3c7   : > { %v3600_v39 = vsel %vm3599_vm11, %v9338_v53, %v3596_v38  ;;  %v13729_v61 = vadd.f32 1.0, %v9344_v7  ;;  %9347 = vrcp.f32 %v13715_v20  ;;  %v13732_v55 = vpop.eup %9345  ;;  %v3924_v11 = vmul.f32 %v3485_v21, %v13529_v46  ;;  %v18789_v53 = vld [vmem:[#allocation28_spill] sm:$0xff]  ;;  %v18790_v38 = vld [vmem:[#allocation75_spill] sm:$0xff]  ;;  %v18793_v7 = vld [vmem:[#allocation10_spill] sm:$0xff] }
 0x3c8   : > { %v2842_v15 = vor.u32 1.1754944e-38, %v18784_v10  ;;  %v3605_v32 = vsel %vm13707_vm13, %v3604_v42, %v3600_v39  ;;  %vm13737_vm3 = vcmp.eq.f32.partialorder %v2854_v4, 8.507059e+37  ;;  %v18788_v10 = vand.u32 2147483648, %v18779_v34  ;;  %v18791_v4 = vld [vmem:[#allocation63_spill] sm:$0xff]  ;;  %v18795_v21 = vld [vmem:[#allocation42_spill] sm:$0xff] }
 0x3c9   : > { %v3932_v30 = vmul.f32 %v3605_v32, %v13539_v16  ;;  %9349 = vrcp.f32 %v13729_v61  ;;  %vm2836_vm6 = vweird.f32 %v18789_v53  ;;  %vm2851_vm7 = vweird.f32 %v18790_v38 }
 0x3ca   : > { %v2857_v40 = vor.u32 1.1754944e-38, %v18788_v10  ;;  %vm2955_vm0 = vweird.f32 %v18785_v51  ;;  %v2962_v47 = vor.u32 1.1754944e-38, %v2961_v43  ;;  %vm2970_vm10 = vweird.f32 %v13035_v14  ;;  %vm2837_vm1 = vmor %vm2835_vm5, %vm2836_vm6 }
 0x3cb   : > { %v2974_v46 = vand.u32 2147483647, %v13035_v14  ;;  %v13751_v42 = vadd.f32 %v3924_v11, %v18791_v4  ;;  %v13754_v63 = vadd.f32 %v3932_v30, %v18793_v7  ;;  %v3498_v16 = vand.u32 2147483648, %v13715_v20  ;;  %v18798_v11 = vld [vmem:[#allocation55_spill] sm:$0xff]  ;;  %vm2852_vm5 = vmor %vm2850_vm15, %vm2851_vm7 }
 0x3cc   : > { %v2834_v39 = vadd.f32 %v18789_v53, %v18795_v21  ;;  %vm13759_vm12 = vcmp.eq.f32.partialorder %v2959_v62, 8.507059e+37  ;;  %vm3492_vm9 = vweird.f32 %v13715_v20  ;;  %v3496_v43 = vand.u32 2147483647, %v13715_v20 }
 0x3cd   : > { %18792 = vst [vmem:[#allocation74_spill] sm:$0xff] %v13751_v42  ;;  %v2849_v10 = vadd.f32 %v18790_v38, %v18798_v11  ;;  %v2976_v30 = vand.u32 2147483648, %v13035_v14  ;;  %v9348_v4 = vpop.eup %9347  ;;  %v3997_v7 = vpack.c.bf16 %v13754_v63, %v13751_v42  ;;  %v3618_v21 = vand.u32 2147483648, %v13729_v61  ;;  %v13785_v11 = vld [vmem:[%s17901_s3 + $0x50] sm:$0xff] }
 0x3ce   : > { %18794 = vst [vmem:[#allocation85_spill] sm:$0xff] %v13754_v63  ;;  %v2838_v25 = vsel %vm2837_vm1, %v18789_v53, %v2834_v39  ;;  %vm3076_vm4 = vweird.f32 %v13100_v54  ;;  %v3488_v50 = vmul.f32 %v9348_v4, %v13715_v20  ;;  %vm3612_vm13 = vweird.f32 %v13729_v61  ;;  %v18799_v63 = vld [vmem:[#allocation77_spill] sm:$0xff]  ;;  %8460 = vmatmul.msk.bf16.gmra.mxu0 %vm18089_vm2, %v13785_v11  ;;  %8464 = vmatmul.msk.bf16.gmra.mxu1 %vm18089_vm2, %v13785_v11 }
 0x3cf   : > { %v2843_v62 = vsel %vm13717_vm8, %v2842_v15, %v2838_v25  ;;  %vm2956_vm14 = vweird.f32 %v13084_v31  ;;  %v2853_v53 = vsel %vm2852_vm5, %v18790_v38, %v2849_v10  ;;  %v9350_v34 = vpop.eup %9349  ;;  %vm3091_vm15 = vweird.f32 %v13145_v1  ;;  %4157 = vmatpush.bf16.msra.mxu2 %v3997_v7  ;;  %v18802_v38 = vld [vmem:[#allocation8_spill] sm:$0xff] }
 0x3d0   : > { %v3499_v39 = vor.u32 1.1754944e-38, %v3498_v16  ;;  %v13793_v42 = vmul.f32 %v2843_v62, %v18799_v63  ;;  %v2858_v60 = vsel %vm13737_vm3, %v2857_v40, %v2853_v53  ;;  %vm2971_vm11 = vweird.f32 %v13092_v5  ;;  %vm13814_vm3 = vmor %vm2955_vm0, %vm2956_vm14 }
 0x3d1   : > { %vm3075_vm6 = vweird.f32 %v13048_v28  ;;  %v3489_v25 = vsub.f32 1.0, %v3488_v50  ;;  %v3608_v36 = vmul.f32 %v9350_v34, %v13729_v61  ;;  %vm13800_vm8 = vcmp.eq.f32.partialorder %v2974_v46, 8.507059e+37  ;;  %vm2972_vm0 = vmor %vm2970_vm10, %vm2971_vm11 }
 0x3d2   : > { %v13805_v10 = vmul.f32 %v2858_v60, %v18802_v38  ;;  %v2954_v19 = vadd.f32 %v13084_v31, %v13174_v0  ;;  %v3286_v46 = vand.u32 2147483647, %v13793_v42  ;;  %v2969_v63 = vadd.f32 %v13092_v5, %v13188_v48  ;;  %8466 = vmatmul.msk.bf16.vlgmr.msra.gmra.mxu2 %vm18089_vm2, %v13361_v18 }
 0x3d3   : > { %v2977_v60 = vor.u32 1.1754944e-38, %v2976_v30  ;;  %v3490_v16 = vmul.f32 %v9348_v4, %v3489_v25  ;;  %vm3493_vm1 = vweird.f32 %v9348_v4  ;;  %v3609_v7 = vsub.f32 1.0, %v3608_v36 }
 0x3d4   : > { %v3287_v0 = vand.u32 2147483647, %v13805_v10  ;;  %v18805_v51 = vand.u32 2147483647, %v13048_v28  ;;  %v18808_v30 = vand.u32 2147483647, %v13079_v29  ;;  %vm3613_vm7 = vweird.f32 %v9350_v34  ;;  %vm3494_vm10 = vmor %vm3492_vm9, %vm3493_vm1 }
 0x3d5   : > { %v2958_v14 = vsel %vm13814_vm3, %v13084_v31, %v2954_v19  ;;  %v8398_v50 = vmul.f32 -1.442695, %v3286_v46  ;;  %v2973_v53 = vsel %vm2972_vm0, %v13092_v5, %v2969_v63  ;;  %v3491_v25 = vadd.f32 %v9348_v4, %v3490_v16  ;;  %v18812_v31 = vld [vmem:[#allocation81_spill] sm:$0xff]  ;;  %vm3614_vm9 = vmor %vm3612_vm13, %vm3613_vm7 }
 0x3d6   : > { %vm13832_vm5 = vcmp.eq.f32.partialorder %v18805_v51, 8.507059e+37  ;;  %vm13838_vm14 = vcmp.eq.f32.partialorder %v18808_v30, 8.507059e+37  ;;  %v3610_v36 = vmul.f32 %v9350_v34, %v3609_v7  ;;  %v2963_v38 = vsel %vm13759_vm12, %v2962_v47, %v2958_v14  ;;  %v18811_v30 = vld [vmem:[#allocation95_spill] sm:$0xff]  ;;  %vm13879_vm13 = vmor %vm3075_vm6, %vm3076_vm4 }
 0x3d7   : > { %v2978_v51 = vsel %vm13800_vm8, %v2977_v60, %v2973_v53  ;;  %v13856_v44 = vmul.f32 %v2963_v38, %v18811_v30  ;;  %9351 = vpow2.f32 %v8398_v50  ;;  %v8399_v5 = vmul.f32 -1.442695, %v3287_v0  ;;  %v18819_v53 = vld [vmem:[#allocation60_spill] sm:$0xff] }
 0x3d8   : > { %v13859_v19 = vmul.f32 %v2978_v51, %v18812_v31  ;;  %vm3196_vm11 = vweird.f32 %v13276_v37  ;;  %v3495_v40 = vsel %vm3494_vm10, %v9348_v4, %v3491_v25  ;;  %vm3497_vm3 = vcmp.eq.f32.partialorder %v3496_v43, 8.507059e+37  ;;  %v18821_v38 = vld [vmem:[#allocation48_spill] sm:$0xff] }
 0x3d9   : > { %v3611_v47 = vadd.f32 %v9350_v34, %v3610_v36  ;;  %v3619_v32 = vor.u32 1.1754944e-38, %v3618_v21  ;;  %vm3211_vm12 = vweird.f32 %v13284_v56  ;;  %v3500_v15 = vsel %vm3497_vm3, %v3499_v39, %v3495_v40 }
 0x3da   : > { %v3294_v20 = vand.u32 2147483647, %v13856_v44  ;;  %v3295_v46 = vand.u32 2147483647, %v13859_v19  ;;  %9353 = vpow2.f32 %v8399_v5  ;;  %vm3195_vm8 = vweird.f32 %v13190_v12 }
 0x3db   : > { %v18813_v63 = vsub.f32 1.0, %v13646_v3  ;;  %v3615_v4 = vsel %vm3614_vm9, %v9350_v34, %v3611_v47  ;;  %v18814_v21 = vand.u32 2147483647, %v13729_v61  ;;  %v3925_v39 = vmul.f32 %v3500_v15, %v13631_v49  ;;  %vm13958_vm6 = vmor %vm3195_vm8, %vm3196_vm11 }
 0x3dc   : > { %vm3210_vm7 = vweird.f32 %v13195_v8  ;;  %v18817_v3 = vand.u32 2147483648, %v13517_v57  ;;  %v8406_v7 = vmul.f32 -1.442695, %v3294_v20  ;;  %v8407_v61 = vmul.f32 -1.442695, %v3295_v46 }
 0x3dd   : > { %v3118_v43 = vmul.f32 %v13531_v33, %v18813_v63  ;;  %vm3617_vm1 = vcmp.eq.f32.partialorder %v18814_v21, 8.507059e+37  ;;  %vm18818_vm0 = vweird.f32 %v13079_v29  ;;  %v3221_v28 = vmul.f32 %v13688_v41, %v13517_v57  ;;  %v9352_v50 = vpop.eup %9351 }
 0x3de   : > { %v13886_v16 = vor.u32 1.1754944e-38, %v18817_v3  ;;  %v3620_v34 = vsel %vm3617_vm1, %v3619_v32, %v3615_v4  ;;  %vm3092_vm10 = vmor %vm18818_vm0, %vm3091_vm15  ;;  %v3236_v49 = vmul.f32 %v13732_v55, %v13666_v9  ;;  %v3246_v0 = vand.u32 2147483648, %v13666_v9 }
 0x3df   : > { %v3933_v14 = vmul.f32 %v3620_v34, %v13656_v52  ;;  %v13899_v25 = vadd.f32 %v3925_v39, %v18819_v53  ;;  %v3078_v29 = vsel %vm13879_vm13, %v13100_v54, %v13220_v24  ;;  %v3093_v36 = vsel %vm3092_vm10, %v13145_v1, %v13279_v26  ;;  %v18823_v1 = vld [vmem:[#allocation23_spill] sm:$0xff]  ;;  %v18824_v26 = vld [vmem:[#allocation26_spill] sm:$0xff] }
 0x3e0   : > { %9355 = vpow2.f32 %v8406_v7  ;;  %v3083_v52 = vsel %vm13832_vm5, %v13159_v2, %v3078_v29  ;;  %v3098_v30 = vsel %vm13838_vm14, %v13193_v13, %v3093_v36  ;;  %v13916_v31 = vadd.f32 1.0, %v9352_v50  ;;  %v9354_v5 = vpop.eup %9353  ;;  %vm13970_vm5 = vmor %vm3210_vm7, %vm3211_vm12  ;;  %v18835_v29 = vld [vmem:[#allocation66_spill] sm:$0xff] }
 0x3e1   : > { %18820 = vst [vmem:[#allocation21_spill] sm:$0xff] %v13899_v25  ;;  %v13908_v51 = vadd.f32 %v3933_v14, %v18821_v38  ;;  %vm2865_vm4 = vweird.f32 %v13147_v23  ;;  %v13921_v54 = vadd.f32 %v13506_v22, %v13670_v27  ;;  %v13924_v24 = vmul.f32 %v3083_v52, %v18823_v1  ;;  %v13938_v27 = vld [vmem:[%s17901_s3 + $0x58] sm:$0xff]  ;;  %v18836_v38 = vld [vmem:[#allocation24_spill] sm:$0xff] }
 0x3e2   : > { %v13927_v40 = vmul.f32 %v3098_v30, %v18824_v26  ;;  %9357 = vpow2.f32 %v8407_v61  ;;  %v13930_v2 = vadd.f32 %v13531_v33, %v3118_v43  ;;  %v13941_v62 = vor.u32 1.1754944e-38, %v3246_v0  ;;  %8467 = vmatmul.msk.bf16.gmra.mxu2 %vm18089_vm2, %v13686_v17  ;;  %8461 = vmatmul.msk.bf16.gmra.mxu0 %vm18089_vm2, %v13938_v27 }
 0x3e3   : > { %18822 = vst [vmem:[#allocation76_spill] sm:$0xff] %v13908_v51  ;;  %v3998_v48 = vpack.c.bf16 %v13908_v51, %v13899_v25  ;;  %9359 = vrcp.f32 %v13916_v31  ;;  %v3302_v47 = vand.u32 2147483647, %v13924_v24  ;;  %v13945_v15 = vadd.f32 1.0, %v9354_v5  ;;  %8465 = vmatmul.msk.bf16.gmra.mxu1 %vm18089_vm2, %v13938_v27 }
 0x3e4   : > { %v3303_v32 = vand.u32 2147483647, %v13927_v40  ;;  %v3222_v20 = vsub.f32 1.0, %v3221_v28  ;;  %v3237_v46 = vsub.f32 1.0, %v3236_v49  ;;  %v18825_v63 = vand.u32 2147483647, %v13190_v12 }
 0x3e5   : > { %4186 = vmatpush.bf16.msra.mxu3 %v3998_v48  ;;  %v2869_v4 = vand.u32 2147483647, %v13147_v23  ;;  %v3194_v60 = vadd.f32 %v13276_v37, %v13375_v59  ;;  %v8414_v3 = vmul.f32 -1.442695, %v3302_v47  ;;  %v3209_v34 = vadd.f32 %v13284_v56, %v13391_v58  ;;  %v18833_v49 = vld [vmem:[#allocation34_spill] sm:$0xff] }
 0x3e6   : > { %vm13949_vm15 = vcmp.eq.f32.partialorder %v18825_v63, 8.507059e+37  ;;  %v9356_v21 = vpop.eup %9355  ;;  %v8415_v7 = vmul.f32 -1.442695, %v3303_v32  ;;  %v18832_v12 = vand.u32 2147483647, %v13195_v8  ;;  %9361 = vrcp.f32 %v13945_v15 }
 0x3e7   : > { %v13980_v59 = vadd.f32 1.0, %v9356_v21  ;;  %vm2866_vm11 = vweird.f32 %v13210_v45  ;;  %v3198_v28 = vsel %vm13958_vm6, %v13276_v37, %v3194_v60  ;;  %9363 = vpow2.f32 %v8414_v3 }
 0x3e8   : > { %vm3215_vm14 = vcmp.eq.f32.partialorder %v18832_v12, 8.507059e+37  ;;  %v9358_v58 = vpop.eup %9357  ;;  %8470 = vmatmul.msk.bf16.vlgmr.msra.gmra.mxu3 %vm18089_vm2, %v13361_v18  ;;  %v3213_v8 = vsel %vm13970_vm5, %v13284_v56, %v3209_v34  ;;  %v2864_v0 = vadd.f32 %v13210_v45, %v18833_v49  ;;  %v13997_v50 = vmul.f32 %v13688_v41, %v3222_v20  ;;  %v18834_v18 = vld [vmem:[#allocation27_spill] sm:$0xff]  ;;  %v18837_v56 = vld [vmem:[#allocation72_spill] sm:$0xff]  ;;  %vm14021_vm3 = vmor %vm2865_vm4, %vm2866_vm11 }
 0x3e9   : > { %v9360_v14 = vpop.eup %9359  ;;  %v3203_v53 = vsel %vm13949_vm15, %v18834_v18, %v3198_v28  ;;  %v3218_v36 = vsel %vm3215_vm14, %v18835_v29, %v3213_v8  ;;  %9365 = vpow2.f32 %v8415_v7  ;;  %v14004_v37 = vmul.f32 %v13732_v55, %v3237_v46 }
 0x3ea   : > { %v14007_v52 = vmul.f32 %v3203_v53, %v18836_v38  ;;  %v14010_v30 = vmul.f32 %v3218_v36, %v18837_v56  ;;  %v3503_v5 = vmul.f32 %v9360_v14, %v13916_v31  ;;  %v3511_v1 = vand.u32 2147483647, %v13916_v31 }
 0x3eb   : > { %9367 = vrcp.f32 %v13980_v59  ;;  %v14015_v26 = vadd.f32 1.0, %v9358_v58  ;;  %vm14025_vm12 = vcmp.eq.f32.partialorder %v2869_v4, 8.507059e+37  ;;  %v2868_v63 = vsel %vm14021_vm3, %v13210_v45, %v2864_v0 }
 0x3ec   : > { %v3310_v32 = vand.u32 2147483647, %v14007_v52  ;;  %v3311_v20 = vand.u32 2147483647, %v14010_v30  ;;  %v3504_v46 = vsub.f32 1.0, %v3503_v5  ;;  %v14034_v43 = vpop.eup %9361  ;;  %vm3507_vm9 = vweird.f32 %v13916_v31 }
 0x3ed   : > { %v3513_v21 = vand.u32 2147483648, %v13916_v31  ;;  %9369 = vrcp.f32 %v14015_v26  ;;  %v18842_v4 = vand.u32 2147483648, %v13147_v23  ;;  %v9364_v60 = vpop.eup %9363  ;;  %v3518_v61 = vmul.f32 %v14034_v43, %v13945_v15 }
 0x3ee   : > { %v8422_v3 = vmul.f32 -1.442695, %v3310_v32  ;;  %v8423_v34 = vmul.f32 -1.442695, %v3311_v20  ;;  %v3505_v7 = vmul.f32 %v9360_v14, %v3504_v46  ;;  %v14043_v45 = vadd.f32 1.0, %v9364_v60 }
 0x3ef   : > { %v2872_v39 = vor.u32 1.1754944e-38, %v18842_v4  ;;  %v9366_v12 = vpop.eup %9365  ;;  %vm3508_vm8 = vweird.f32 %v9360_v14  ;;  %vm14045_vm1 = vcmp.eq.f32.partialorder %v3511_v1, 8.507059e+37  ;;  %v3631_v49 = vand.u32 2147483647, %v13980_v59 }
 0x3f0   : > { %9371 = vpow2.f32 %v8422_v3  ;;  %v14053_v23 = vadd.f32 1.0, %v9366_v12  ;;  %v3506_v8 = vadd.f32 %v9360_v14, %v3505_v7  ;;  %v3633_v18 = vand.u32 2147483648, %v13980_v59  ;;  %vm3509_vm13 = vmor %vm3507_vm9, %vm3508_vm8 }
 0x3f1   : > { %v14051_v28 = vsel %vm14025_vm12, %v2872_v39, %v2868_v63  ;;  %v14056_v0 = vpop.eup %9367  ;;  %9373 = vrcp.f32 %v14043_v45  ;;  %v3519_v53 = vsub.f32 1.0, %v3518_v61  ;;  %v3528_v29 = vand.u32 2147483648, %v13945_v15 }
 0x3f2   : > { %9375 = vpow2.f32 %v8423_v34  ;;  %v3514_v36 = vor.u32 1.1754944e-38, %v3513_v21  ;;  %vm3522_vm7 = vweird.f32 %v13945_v15  ;;  %v3526_v38 = vand.u32 2147483647, %v13945_v15  ;;  %8468 = vmatmul.msk.bf16.gmra.mxu2 %vm18089_vm2, %v13785_v11 }
 0x3f3   : > { %v14065_v56 = vpop.eup %9369  ;;  %v3753_v5 = vand.u32 2147483648, %v14043_v45  ;;  %9377 = vrcp.f32 %v14053_v23  ;;  %v3768_v1 = vand.u32 2147483648, %v14053_v23  ;;  %v3510_v48 = vsel %vm3509_vm13, %v9360_v14, %v3506_v8 }
 0x3f4   : > { %v3751_v47 = vand.u32 2147483647, %v14043_v45  ;;  %v3515_v31 = vsel %vm14045_vm1, %v3514_v36, %v3510_v48  ;;  %v3623_v32 = vmul.f32 %v14056_v0, %v13980_v59  ;;  %vm3627_vm0 = vweird.f32 %v13980_v59  ;;  %v18907_v48 = vld [vmem:[#allocation45_spill] sm:$0xff] }
 0x3f5   : > { %vm3106_vm10 = vweird.f32 %v13506_v22  ;;  %vm14077_vm4 = vcmp.eq.f32.partialorder %v3631_v49, 8.507059e+37  ;;  %v3634_v46 = vor.u32 1.1754944e-38, %v3633_v18  ;;  %v3520_v63 = vmul.f32 %v14034_v43, %v3519_v53 }
 0x3f6   : > { %vm3523_vm15 = vweird.f32 %v14034_v43  ;;  %v14083_v14 = vor.u32 1.1754944e-38, %v3528_v29  ;;  %v9372_v21 = vpop.eup %9371  ;;  %vm3747_vm6 = vweird.f32 %v14043_v45  ;;  %v3766_v4 = vand.u32 2147483647, %v14053_v23 }
 0x3f7   : > { %v3624_v39 = vsub.f32 1.0, %v3623_v32  ;;  %v3638_v60 = vmul.f32 %v14065_v56, %v14015_v26  ;;  %v14089_v3 = vpop.eup %9373  ;;  %vm3105_vm5 = vweird.f32 %v13442_v35  ;;  %v14094_v34 = vadd.f32 1.0, %v9372_v21  ;;  %vm14142_vm8 = vmor %vm3522_vm7, %vm3523_vm15 }
 0x3f8   : > { %v3754_v7 = vor.u32 1.1754944e-38, %v3753_v5  ;;  %v14096_v61 = vor.u32 1.1754944e-38, %v3768_v1  ;;  %v3926_v12 = vmul.f32 %v3515_v31, %v13793_v42  ;;  %v9376_v58 = vpop.eup %9375  ;;  %8471 = vmatmul.msk.bf16.gmra.mxu3 %vm18089_vm2, %v13686_v17  ;;  %v3743_v8 = vmul.f32 %v14089_v3, %v14043_v45 }
 0x3f9   : > { %vm14103_vm14 = vcmp.eq.f32.partialorder %v3751_v47, 8.507059e+37  ;;  %v3625_v18 = vmul.f32 %v14056_v0, %v3624_v39  ;;  %vm3628_vm3 = vweird.f32 %v14056_v0  ;;  %vm14110_vm12 = vcmp.eq.f32.partialorder %v3526_v38, 8.507059e+37  ;;  %v14115_v17 = vpop.eup %9377 }
 0x3fa   : > { %9379 = vrcp.f32 %v14094_v34  ;;  %v3521_v42 = vadd.f32 %v14034_v43, %v3520_v63  ;;  %v3646_v29 = vand.u32 2147483647, %v14015_v26  ;;  %v3648_v36 = vand.u32 2147483648, %v14015_v26  ;;  %v18853_v63 = vld [vmem:[#allocation52_spill] sm:$0xff]  ;;  %vm3629_vm7 = vmor %vm3627_vm0, %vm3628_vm3 }
 0x3fb   : > { %v3744_v5 = vsub.f32 1.0, %v3743_v8  ;;  %v14122_v1 = vadd.f32 1.0, %v9376_v58  ;;  %v3758_v38 = vmul.f32 %v14115_v17, %v14053_v23  ;;  %vm14126_vm1 = vcmp.eq.f32.partialorder %v3766_v4, 8.507059e+37 }
 0x3fc   : > { %v3639_v47 = vsub.f32 1.0, %v3638_v60  ;;  %vm3748_vm9 = vweird.f32 %v14089_v3  ;;  %v3873_v31 = vand.u32 2147483648, %v14094_v34  ;;  %v3626_v32 = vadd.f32 %v14056_v0, %v3625_v18 }
 0x3fd   : > { %v14136_v21 = vadd.f32 %v3926_v12, %v18853_v63  ;;  %v18857_v39 = vand.u32 2147483647, %v13442_v35  ;;  %vm3120_vm13 = vweird.f32 %v13459_v6  ;;  %v3745_v58 = vmul.f32 %v14089_v3, %v3744_v5  ;;  %vm3749_vm3 = vmor %vm3747_vm6, %vm3748_vm9 }
 0x3fe   : > { %v3871_v12 = vand.u32 2147483647, %v14094_v34  ;;  %v3759_v8 = vsub.f32 1.0, %v3758_v38  ;;  %9381 = vrcp.f32 %v14122_v1  ;;  %vm3763_vm11 = vweird.f32 %v14115_v17 }
 0x3ff   : > { %18854 = vst [vmem:[#allocation54_spill] sm:$0xff] %v14136_v21  ;;  %vm14148_vm2 = vcmp.eq.f32.partialorder %v18857_v39, 8.507059e+37  ;;  %v3888_v15 = vand.u32 2147483648, %v14122_v1  ;;  %v3630_v18 = vsel %vm3629_vm7, %v14056_v0, %v3626_v32  ;;  %v3525_v5 = vsel %vm14142_vm8, %v14034_v43, %v3521_v42  ;;  %vm14192_vm7 = vmor %vm3105_vm5, %vm3106_vm10 }
 0x400   : > { %v3746_v38 = vadd.f32 %v14089_v3, %v3745_v58  ;;  %v3760_v63 = vmul.f32 %v14115_v17, %v3759_v8  ;;  %v3635_v59 = vsel %vm14077_vm4, %v3634_v46, %v3630_v18  ;;  %v3640_v39 = vmul.f32 %v14065_v56, %v3639_v47  ;;  %v9380_v13 = vpop.eup %9379  ;;  %v18901_v58 = vld [vmem:[#allocation43_spill] sm:$0xff] }
 0x401   : > { %v18860_v51 = vand.u32 2147483647, %v13459_v6  ;;  %vm3867_vm8 = vweird.f32 %v14094_v34  ;;  %v3874_v43 = vor.u32 1.1754944e-38, %v3873_v31  ;;  %v3886_v0 = vand.u32 2147483647, %v14122_v1 }
 0x402   : > { %vm14184_vm4 = vcmp.eq.f32.partialorder %v3646_v29, 8.507059e+37  ;;  %vm3241_vm15 = vweird.f32 %v13732_v55  ;;  %v3750_v45 = vsel %vm3749_vm3, %v14089_v3, %v3746_v38  ;;  %v3863_v46 = vmul.f32 %v9380_v13, %v14094_v34  ;;  %v18886_v38 = vld [vmem:[#allocation65_spill] sm:$0xff] }
 0x403   : > { %vm14174_vm0 = vcmp.eq.f32.partialorder %v18860_v51, 8.507059e+37  ;;  %vm14199_vm6 = vcmp.eq.f32.partialorder %v3871_v12, 8.507059e+37  ;;  %v3761_v29 = vadd.f32 %v14115_v17, %v3760_v63  ;;  %v3934_v47 = vmul.f32 %v3635_v59, %v13856_v44  ;;  %v18889_v59 = vld [vmem:[#allocation39_spill] sm:$0xff] }
 0x404   : > { %v3755_v35 = vsel %vm14103_vm14, %v3754_v7, %v3750_v45  ;;  %vm18869_vm10 = vweird.f32 %v14053_v23  ;;  %vm3882_vm9 = vweird.f32 %v14122_v1  ;;  %v3889_v3 = vor.u32 1.1754944e-38, %v3888_v15  ;;  %v9382_v4 = vpop.eup %9381  ;;  %v18884_v15 = vld [vmem:[#allocation51_spill] sm:$0xff]  ;;  %v18893_v45 = vld [vmem:[#allocation69_spill] sm:$0xff] }
 0x405   : > { %vm3764_vm5 = vmor %vm18869_vm10, %vm3763_vm11  ;;  %v3530_v31 = vsel %vm14110_vm12, %v14083_v14, %v3525_v5  ;;  %v3641_v32 = vadd.f32 %v14065_v56, %v3640_v39  ;;  %v3864_v44 = vsub.f32 1.0, %v3863_v46  ;;  %v3942_v7 = vmul.f32 %v3755_v35, %v13924_v24 }
 0x406   : > { %v3765_v49 = vsel %vm3764_vm5, %v14115_v17, %v3761_v29  ;;  %v3108_v23 = vsel %vm14192_vm7, %v13506_v22, %v13921_v54  ;;  %vm3868_vm14 = vweird.f32 %v9380_v13  ;;  %v3878_v53 = vmul.f32 %v9382_v4, %v14122_v1  ;;  %v18874_v54 = vld [vmem:[#allocation37_spill] sm:$0xff]  ;;  %v18897_v1 = vld [vmem:[#allocation32_spill] sm:$0xff] }
 0x407   : > { %v3770_v14 = vsel %vm14126_vm1, %v14096_v61, %v3765_v49  ;;  %vm14227_vm11 = vcmp.eq.f32.partialorder %v3886_v0, 8.507059e+37  ;;  %vm18872_vm12 = vweird.f32 %v14065_v56  ;;  %vm18873_vm10 = vweird.f32 %v14015_v26 }
 0x408   : > { %vm3644_vm5 = vmor %vm18873_vm10, %vm18872_vm12  ;;  %v3649_v24 = vor.u32 1.1754944e-38, %v3648_v36  ;;  %v3865_v17 = vmul.f32 %v9380_v13, %v3864_v44  ;;  %v3943_v22 = vmul.f32 %v3770_v14, %v13927_v40  ;;  %v14237_v12 = vadd.f32 %v3934_v47, %v18874_v54  ;;  %v18879_v36 = vld [vmem:[#allocation25_spill] sm:$0xff]  ;;  %v18900_v14 = vld [vmem:[#allocation35_spill] sm:$0xff] }
 0x409   : > { %v3645_v61 = vsel %vm3644_vm5, %v14065_v56, %v3641_v32  ;;  %vm18876_vm1 = vweird.f32 %v13531_v33  ;;  %v3879_v8 = vsub.f32 1.0, %v3878_v53  ;;  %vm3883_vm3 = vweird.f32 %v9382_v4 }
 0x40a   : > { %18875 = vst [vmem:[#allocation56_spill] sm:$0xff] %v14237_v12  ;;  %vm14244_vm7 = vmor %vm3120_vm13, %vm18876_vm1  ;;  %v14249_v26 = vmul.f32 %v3530_v31, %v13805_v10  ;;  %v3113_v40 = vsel %vm14148_vm2, %v18879_v36, %v3108_v23  ;;  %vm18880_vm12 = vweird.f32 %v13688_v41  ;;  %vm18881_vm10 = vweird.f32 %v13517_v57 }
 0x40b   : > { %vm14258_vm5 = vmor %vm18881_vm10, %vm18880_vm12  ;;  %v3866_v6 = vadd.f32 %v9380_v13, %v3865_v17  ;;  %v14263_v18 = vadd.f32 %v3942_v7, %v18884_v15  ;;  %v3650_v10 = vsel %vm14184_vm4, %v3649_v24, %v3645_v61  ;;  %v3224_v5 = vadd.f32 %v13688_v41, %v13997_v50  ;;  %v18890_v50 = vld [vmem:[#allocation33_spill] sm:$0xff]  ;;  %v18903_v17 = vld [vmem:[#allocation71_spill] sm:$0xff] }
 0x40c   : > { %vm3869_vm2 = vmor %vm3867_vm8, %vm3868_vm14  ;;  %v3880_v60 = vmul.f32 %v9382_v4, %v3879_v8  ;;  %v14273_v63 = vadd.f32 %v3943_v22, %v18886_v38  ;;  %vm18888_vm13 = vcmask 261120   ;;  %v14278_v39 = vmul.f32 %v3113_v40, %v18889_v59  ;;  %v18908_v40 = vld [vmem:[#allocation13_spill] sm:$0xff]  ;;  %v18910_v38 = vld [vmem:[#allocation36_spill] sm:$0xff] }
 0x40d   : > { %18885 = vst [vmem:[#allocation87_spill] sm:$0xff] %v14263_v18  ;;  %8469 = vmatmul.msk.bf16.gmra.mxu2 %vm18888_vm13, %v13938_v27  ;;  %v3123_v0 = vsel %vm14244_vm7, %v13531_v33, %v13930_v2  ;;  %vm2985_vm4 = vweird.f32 %v18890_v50  ;;  %vm18891_vm1 = vmmov %vm18888_vm13  ;;  %v3870_v34 = vsel %vm3869_vm2, %v9380_v13, %v3866_v6  ;;  %v3228_v20 = vsel %vm14258_vm5, %v13688_v41, %v3224_v5  ;;  %v18894_v41 = vld [vmem:[#allocation44_spill] sm:$0xff] }
 0x40e   : > { %18887 = vst [vmem:[#allocation89_spill] sm:$0xff] %v14273_v63  ;;  %8472 = vmatmul.msk.bf16.gmra.mxu3 %vm18891_vm1, %v13785_v11  ;;  %v18892_v51 = vand.u32 2147483647, %v13517_v57  ;;  %v3128_v46 = vsel %vm14174_vm0, %v18893_v45, %v3123_v0  ;;  %v3875_v33 = vsel %vm14199_vm6, %v3874_v43, %v3870_v34  ;;  %v3881_v2 = vadd.f32 %v9382_v4, %v3880_v60  ;;  %vm3884_vm14 = vmor %vm3882_vm9, %vm3883_vm3  ;;  %v18911_v0 = vld [vmem:[#allocation90_spill] sm:$0xff]  ;;  %v18913_v34 = vld [vmem:[#allocation93_spill] sm:$0xff] }
 0x40f   : > { %v3304_v47 = vand.u32 2147483647, %v14278_v39  ;;  %v3950_v13 = vmul.f32 %v3875_v33, %v14007_v52  ;;  %v3935_v57 = vmul.f32 %v3650_v10, %v13859_v19  ;;  %v3239_v25 = vadd.f32 %v13732_v55, %v14004_v37  ;;  %v18898_v19 = vld [vmem:[#allocation62_spill] sm:$0xff]  ;;  %vm18919_vm10 = vmmov %vm18891_vm1 }
 0x410   : > { %vm3230_vm8 = vcmp.eq.f32.partialorder %v18892_v51, 8.507059e+37  ;;  %vm18895_vm0 = vweird.f32 %v13666_v9  ;;  %v18896_v52 = vand.u32 2147483647, %v13666_v9  ;;  %v14316_v42 = vmul.f32 %v3128_v46, %v18897_v1  ;;  %v18914_v51 = vld [vmem:[#allocation64_spill] sm:$0xff]  ;;  %vm18924_vm5 = vmmov %vm18891_vm1 }
 0x411   : > { %v3233_v29 = vsel %vm3230_vm8, %v13886_v16, %v3228_v20  ;;  %vm3242_vm6 = vmor %vm18895_vm0, %vm3241_vm15  ;;  %v3885_v16 = vsel %vm3884_vm14, %v9382_v4, %v3881_v2  ;;  %v8416_v43 = vmul.f32 -1.442695, %v3304_v47  ;;  %v14319_v31 = vadd.f32 %v3950_v13, %v18898_v19  ;;  %v18916_v47 = vld [vmem:[#allocation40_spill] sm:$0xff] }
 0x412   : > { %v14305_v35 = vmul.f32 %v3233_v29, %v18894_v41  ;;  %vm3245_vm7 = vcmp.eq.f32.partialorder %v18896_v52, 8.507059e+37  ;;  %v3890_v32 = vsel %vm14227_vm11, %v3889_v3, %v3885_v16  ;;  %v3243_v44 = vsel %vm3242_vm6, %v13732_v55, %v3239_v25  ;;  %v18902_v3 = vld [vmem:[#allocation17_spill] sm:$0xff]  ;;  %v18918_v41 = vld [vmem:[#allocation79_spill] sm:$0xff]  ;;  %v14387_v52 = vld [vmem:[%s17901_s3 + $0x40] sm:$0xff] }
 0x413   : > { %18899 = vst [vmem:[#allocation20_spill] sm:$0xff] %v14319_v31  ;;  %v3951_v7 = vmul.f32 %v3890_v32, %v14010_v30  ;;  %9383 = vpow2.f32 %v8416_v43  ;;  %v3248_v4 = vsel %vm3245_vm7, %v13941_v62, %v3243_v44  ;;  %v3305_v9 = vand.u32 2147483647, %v14316_v42  ;;  %v18920_v32 = vld [vmem:[#allocation92_spill] sm:$0xff]  ;;  %vm18927_vm13 = vmmov %vm18891_vm1 }
 0x414   : > { %v3312_v37 = vand.u32 2147483647, %v14305_v35  ;;  %v4007_v49 = vpack.c.bf16 %v14319_v31, %v14263_v18  ;;  %v14331_v53 = vmul.f32 %v3248_v4, %v18900_v14  ;;  %v2984_v24 = vadd.f32 %v18902_v3, %v18901_v58  ;;  %v18923_v4 = vld [vmem:[#allocation9_spill] sm:$0xff] }
 0x415   : > { %v14336_v22 = vadd.f32 %v3951_v7, %v18903_v17  ;;  %v8417_v55 = vmul.f32 -1.442695, %v3305_v9  ;;  %vm2986_vm15 = vweird.f32 %v18902_v3  ;;  %v2989_v62 = vand.u32 2147483647, %v18890_v50  ;;  %v18922_v7 = vld [vmem:[#allocation86_spill] sm:$0xff] }
 0x416   : > { %v8424_v23 = vmul.f32 -1.442695, %v3312_v37  ;;  %4214 = vmatpush.bf16.msrb.mxu0 %v4007_v49  ;;  %v3313_v30 = vand.u32 2147483647, %v14331_v53  ;;  %vm14343_vm9 = vmor %vm2985_vm4, %vm2986_vm15  ;;  %v2991_v61 = vand.u32 2147483648, %v18890_v50  ;;  %v14350_v8 = vmul.f32 %v14051_v28, %v18907_v48  ;;  %v18921_v37 = vld [vmem:[#allocation70_spill] sm:$0xff] }
 0x417   : > { %18904 = vst [vmem:[#allocation12_spill] sm:$0xff] %v14336_v22  ;;  %v4008_v36 = vpack.c.bf16 %v14336_v22, %v14273_v63  ;;  %v14355_v56 = vadd.f32 %v3935_v57, %v18908_v40  ;;  %v2988_v6 = vsel %vm14343_vm9, %v18902_v3, %v2984_v24  ;;  %v3999_v15 = vpack.c.bf16 %v14237_v12, %v14136_v21  ;;  %v18917_v57 = vld [vmem:[#allocation67_spill] sm:$0xff] }
 0x418   : > { %9385 = vpow2.f32 %v8424_v23  ;;  %v8425_v10 = vmul.f32 -1.442695, %v3313_v30  ;;  %v2992_v5 = vor.u32 1.1754944e-38, %v2991_v61  ;;  %v3288_v60 = vand.u32 2147483647, %v14350_v8  ;;  %v18949_v23 = vld [vmem:[#allocation50_spill] sm:$0xff] }
 0x419   : > { %18909 = vst [vmem:[#allocation94_spill] sm:$0xff] %v14355_v56  ;;  %9387 = vpow2.f32 %v8417_v55  ;;  %v9384_v28 = vpop.eup %9383  ;;  %v2886_v59 = vand.u32 2147483648, %v18910_v38  ;;  %v18912_v50 = vsub.f32 1.0, %v18911_v0  ;;  %4243 = vmatpush.bf16.msrb.mxu1 %v4008_v36  ;;  %v14369_v45 = vadd.f32 %v14249_v26, %v18914_v51 }
 0x41a   : > { %vm2990_vm3 = vcmp.eq.f32.partialorder %v2989_v62, 8.507059e+37  ;;  %4215 = vmatpush.bf16.msrb.mxu0 %v3999_v15  ;;  %v14371_v46 = vadd.f32 1.0, %v9384_v28  ;;  %9389 = vpow2.f32 %v8425_v10  ;;  %v8400_v2 = vmul.f32 -1.442695, %v3288_v60  ;;  %v18928_v62 = vld [vmem:[#allocation49_spill] sm:$0xff] }
 0x41b   : > { %v2998_v20 = vmul.f32 %v18913_v34, %v18912_v50  ;;  %18915 = vst [vmem:[#allocation82_spill] sm:$0xff] %v14369_v45  ;;  %v2993_v33 = vsel %vm2990_vm3, %v2992_v5, %v2988_v6  ;;  %v4000_v29 = vpack.c.bf16 %v14355_v56, %v14369_v45  ;;  %v2879_v25 = vadd.f32 %v18918_v41, %v18917_v57 }
 0x41c   : > { %v14376_v13 = vmul.f32 %v2993_v33, %v18916_v47  ;;  %vm2881_vm11 = vweird.f32 %v18918_v41  ;;  %9391 = vrcp.f32 %v14371_v46  ;;  %v2884_v16 = vand.u32 2147483647, %v18910_v38 }
 0x41d   : > { %vm2880_vm12 = vweird.f32 %v18910_v38  ;;  %4244 = vmatpush.bf16.msrb.mxu1 %v4000_v29  ;;  %8474 = vmatmul.msk.bf16.vlgmr.msrb.gmra.mxu0 %vm18919_vm10, %v14387_v52  ;;  %9393 = vpow2.f32 %v8400_v2  ;;  %v2623_v44 = vadd.f32 %v18921_v37, %v18920_v32  ;;  %v14398_v9 = vadd.f32 %v18923_v4, %v18922_v7 }
 0x41e   : > { %v9386_v26 = vpop.eup %9385  ;;  %v3296_v19 = vand.u32 2147483647, %v14376_v13  ;;  %8473 = vmatmul.msk.bf16.gmra.mxu3 %vm18924_vm5, %v13938_v27  ;;  %vm14406_vm2 = vmor %vm2880_vm12, %vm2881_vm11  ;;  %v2887_v14 = vor.u32 1.1754944e-38, %v2886_v59  ;;  %v3781_v58 = vand.u32 2147483647, %v14371_v46  ;;  %v14416_v24 = vadd.f32 %v18913_v34, %v2998_v20 }
 0x41f   : > { %v9388_v43 = vpop.eup %9387  ;;  %v14391_v1 = vadd.f32 1.0, %v9386_v26  ;;  %v2883_v3 = vsel %vm14406_vm2, %v18918_v41, %v2879_v25  ;;  %v3783_v55 = vand.u32 2147483648, %v14371_v46  ;;  %vm2885_vm4 = vcmp.eq.f32.partialorder %v2884_v16, 8.507059e+37 }
 0x420   : > { %v14402_v49 = vadd.f32 1.0, %v9388_v43  ;;  %v9390_v17 = vpop.eup %9389  ;;  %8478 = vmatmul.msk.bf16.vlgmr.msrb.gmra.mxu1 %vm18927_vm13, %v14387_v52  ;;  %vm3000_vm1 = vweird.f32 %v18928_v62  ;;  %v8408_v48 = vmul.f32 -1.442695, %v3296_v19  ;;  %vm3777_vm8 = vweird.f32 %v14371_v46 }
 0x421   : > { %9395 = vrcp.f32 %v14391_v1  ;;  %v3903_v30 = vand.u32 2147483648, %v14391_v1  ;;  %v14424_v54 = vadd.f32 1.0, %v9390_v17  ;;  %v3901_v40 = vand.u32 2147483647, %v14391_v1 }
 0x422   : > { %9397 = vrcp.f32 %v14402_v49  ;;  %v3798_v61 = vand.u32 2147483648, %v14402_v49  ;;  %v9392_v36 = vpop.eup %9391  ;;  %v2888_v6 = vsel %vm2885_vm4, %v2887_v14, %v2883_v3  ;;  %vm3001_vm14 = vweird.f32 %v18913_v34 }
 0x423   : > { %v9394_v15 = vpop.eup %9393  ;;  %v3773_v10 = vmul.f32 %v9392_v36, %v14371_v46  ;;  %vm14431_vm0 = vcmp.eq.f32.partialorder %v3781_v58, 8.507059e+37  ;;  %v3796_v60 = vand.u32 2147483647, %v14402_v49  ;;  %9399 = vrcp.f32 %v14424_v54  ;;  %vm14445_vm15 = vmor %vm3000_vm1, %vm3001_vm14 }
 0x424   : > { %v3784_v28 = vor.u32 1.1754944e-38, %v3783_v55  ;;  %vm3897_vm6 = vweird.f32 %v14391_v1  ;;  %9401 = vpow2.f32 %v8408_v48  ;;  %v14438_v38 = vadd.f32 1.0, %v9394_v15 }
 0x425   : > { %v3774_v0 = vsub.f32 1.0, %v3773_v10  ;;  %v3904_v50 = vor.u32 1.1754944e-38, %v3903_v30  ;;  %vm3792_vm7 = vweird.f32 %v14402_v49  ;;  %v3799_v20 = vor.u32 1.1754944e-38, %v3798_v61 }
 0x426   : > { %v3004_v33 = vand.u32 2147483647, %v18928_v62  ;;  %vm3778_vm9 = vweird.f32 %v9392_v36  ;;  %vm14451_vm3 = vcmp.eq.f32.partialorder %v3901_v40, 8.507059e+37  ;;  %v3916_v57 = vand.u32 2147483647, %v14424_v54 }
 0x427   : > { %v9396_v59 = vpop.eup %9395  ;;  %v3003_v41 = vsel %vm14445_vm15, %v18913_v34, %v14416_v24  ;;  %v3775_v25 = vmul.f32 %v9392_v36, %v3774_v0  ;;  %vm14461_vm11 = vcmp.eq.f32.partialorder %v3796_v60, 8.507059e+37  ;;  %9403 = vrcp.f32 %v14438_v38  ;;  %vm3779_vm2 = vmor %vm3777_vm8, %vm3778_vm9 }
 0x428   : > { %v9398_v2 = vpop.eup %9397  ;;  %v3893_v29 = vmul.f32 %v9396_v59, %v14391_v1  ;;  %v3006_v43 = vand.u32 2147483648, %v18928_v62  ;;  %vm3912_vm12 = vweird.f32 %v14424_v54  ;;  %v3918_v32 = vand.u32 2147483648, %v14424_v54 }
 0x429   : > { %v3788_v26 = vmul.f32 %v9398_v2, %v14402_v49  ;;  %v14469_v37 = vmul.f32 %v2888_v6, %v2623_v44  ;;  %v9400_v7 = vpop.eup %9399  ;;  %v3776_v34 = vadd.f32 %v9392_v36, %v3775_v25  ;;  %vm3898_vm10 = vweird.f32 %v9396_v59 }
 0x42a   : > { %v3894_v19 = vsub.f32 1.0, %v3893_v29  ;;  %vm14471_vm5 = vcmp.eq.f32.partialorder %v3004_v33, 8.507059e+37  ;;  %v9402_v14 = vpop.eup %9401  ;;  %vm3793_vm13 = vweird.f32 %v9398_v2  ;;  %v3908_v3 = vmul.f32 %v9400_v7, %v14424_v54  ;;  %vm3899_vm1 = vmor %vm3897_vm6, %vm3898_vm10  ;;  %v18943_v29 = vld [vmem:[#allocation61_spill] sm:$0xff] }
 0x42b   : > { %v3789_v4 = vsub.f32 1.0, %v3788_v26  ;;  %vm14479_vm4 = vcmp.eq.f32.partialorder %v3916_v57, 8.507059e+37  ;;  %v3780_v24 = vsel %vm3779_vm2, %v9392_v36, %v3776_v34  ;;  %v14483_v55 = vadd.f32 1.0, %v9402_v14  ;;  %v14496_v36 = vld [vmem:[%s17901_s3 + $0x48] sm:$0xff] }
 0x42c   : > { %v3895_v58 = vmul.f32 %v9396_v59, %v3894_v19  ;;  %v3007_v62 = vor.u32 1.1754944e-38, %v3006_v43  ;;  %v3785_v30 = vsel %vm14431_vm0, %v3784_v28, %v3780_v24  ;;  %v3909_v48 = vsub.f32 1.0, %v3908_v3  ;;  %vm3794_vm0 = vmor %vm3792_vm7, %vm3793_vm13 }
 0x42d   : > { %v3790_v17 = vmul.f32 %v9398_v2, %v3789_v4  ;;  %v3289_v46 = vand.u32 2147483647, %v14469_v37  ;;  %v9404_v40 = vpop.eup %9403  ;;  %v3944_v6 = vmul.f32 %v3785_v30, %v14278_v39  ;;  %vm3913_vm8 = vweird.f32 %v9400_v7 }
 0x42e   : > { %v3896_v61 = vadd.f32 %v9396_v59, %v3895_v58  ;;  %9405 = vrcp.f32 %v14483_v55  ;;  %vm18941_vm14 = vcmask 261120   ;;  %v3910_v1 = vmul.f32 %v9400_v7, %v3909_v48  ;;  %vm3914_vm15 = vmor %vm3912_vm12, %vm3913_vm8  ;;  %v18951_v58 = vld [vmem:[#allocation14_spill] sm:$0xff] }
 0x42f   : > { %v3791_v15 = vadd.f32 %v9398_v2, %v3790_v17  ;;  %8475 = vmatmul.msk.bf16.gmra.mxu0 %vm18941_vm14, %v14496_v36  ;;  %v3533_v39 = vmul.f32 %v9404_v40, %v14438_v38  ;;  %v3008_v5 = vsel %vm14471_vm5, %v3007_v62, %v3003_v41  ;;  %v3919_v0 = vor.u32 1.1754944e-38, %v3918_v32  ;;  %vm18942_vm7 = vmmov %vm18941_vm14 }
 0x430   : > { %v3900_v10 = vsel %vm3899_vm1, %v9396_v59, %v3896_v61  ;;  %vm3537_vm6 = vweird.f32 %v14438_v38  ;;  %v3911_v49 = vadd.f32 %v9400_v7, %v3910_v1  ;;  %8479 = vmatmul.msk.bf16.gmra.mxu1 %vm18942_vm7, %v14496_v36  ;;  %v14515_v57 = vadd.f32 %v3944_v6, %v18943_v29  ;;  %vm18953_vm13 = vmmov %vm18942_vm7 }
 0x431   : > { %v3905_v60 = vsel %vm14451_vm3, %v3904_v50, %v3900_v10  ;;  %v3795_v28 = vsel %vm3794_vm0, %v9398_v2, %v3791_v15  ;;  %v3534_v33 = vsub.f32 1.0, %v3533_v39  ;;  %vm3538_vm9 = vweird.f32 %v9404_v40  ;;  %v18945_v2 = vld [vmem:[#allocation15_spill] sm:$0xff] }
 0x432   : > { %v3952_v51 = vmul.f32 %v3905_v60, %v14305_v35  ;;  %v3800_v59 = vsel %vm14461_vm11, %v3799_v20, %v3795_v28  ;;  %18944 = vst [vmem:[#allocation22_spill] sm:$0xff] %v14515_v57  ;;  %v14522_v35 = vmul.f32 %v3008_v5, %v14398_v9  ;;  %v3915_v47 = vsel %vm3914_vm15, %v9400_v7, %v3911_v49  ;;  %vm14539_vm3 = vmor %vm3537_vm6, %vm3538_vm9  ;;  %v18954_v28 = vld [vmem:[#allocation16_spill] sm:$0xff] }
 0x433   : > { %v3945_v50 = vmul.f32 %v3800_v59, %v14316_v42  ;;  %v3535_v41 = vmul.f32 %v9404_v40, %v3534_v33  ;;  %v8401_v25 = vmul.f32 -1.442695, %v3289_v46  ;;  %v3920_v16 = vsel %vm14479_vm4, %v3919_v0, %v3915_v47  ;;  %vm18958_vm4 = vmmov %vm18942_vm7 }
 0x434   : > { %v14525_v20 = vadd.f32 %v3952_v51, %v18945_v2  ;;  %v9406_v26 = vpop.eup %9405  ;;  %v3541_v43 = vand.u32 2147483647, %v14438_v38  ;;  %v3543_v54 = vand.u32 2147483648, %v14438_v38  ;;  %v3297_v42 = vand.u32 2147483647, %v14522_v35  ;;  %vm18959_vm1 = vmmov %vm18958_vm4 }
 0x435   : > { %v3953_v19 = vmul.f32 %v3920_v16, %v14331_v53  ;;  %v3536_v32 = vadd.f32 %v9404_v40, %v3535_v41  ;;  %v3653_v7 = vmul.f32 %v9406_v26, %v14483_v55  ;;  %9407 = vpow2.f32 %v8401_v25  ;;  %vm18960_vm9 = vmmov %vm18959_vm1 }
 0x436   : > { %18946 = vst [vmem:[#allocation11_spill] sm:$0xff] %v14525_v20  ;;  %v4009_v9 = vpack.c.bf16 %v14525_v20, %v14515_v57  ;;  %v8409_v4 = vmul.f32 -1.442695, %v3297_v42  ;;  %v14544_v14 = vadd.f32 %v3945_v50, %v18949_v23  ;;  %vm3542_vm11 = vcmp.eq.f32.partialorder %v3541_v43, 8.507059e+37 }
 0x437   : > { %v14547_v3 = vadd.f32 %v3953_v19, %v18951_v58  ;;  %v3540_v53 = vsel %vm14539_vm3, %v9404_v40, %v3536_v32  ;;  %v3654_v44 = vsub.f32 1.0, %v3653_v7  ;;  %v3544_v24 = vor.u32 1.1754944e-38, %v3543_v54  ;;  %v18962_v58 = vld [vmem:[#allocation78_spill] sm:$0xff] }
 0x438   : > { %4272 = vmatpush.bf16.msrb.mxu2 %v4009_v9  ;;  %18950 = vst [vmem:[#allocation80_spill] sm:$0xff] %v14544_v14  ;;  %v3663_v38 = vand.u32 2147483648, %v14483_v55  ;;  %9409 = vpow2.f32 %v8409_v4  ;;  %vm3658_vm12 = vweird.f32 %v9406_v26  ;;  %v3661_v30 = vand.u32 2147483647, %v14483_v55 }
 0x439   : > { %18952 = vst [vmem:[#allocation57_spill] sm:$0xff] %v14547_v3  ;;  %v4010_v17 = vpack.c.bf16 %v14547_v3, %v14544_v14  ;;  %v3655_v62 = vmul.f32 %v9406_v26, %v3654_v44  ;;  %v3545_v61 = vsel %vm3542_vm11, %v3544_v24, %v3540_v53  ;;  %vm3657_vm10 = vweird.f32 %v14483_v55  ;;  %v18956_v55 = vld [vmem:[#allocation53_spill] sm:$0xff]  ;;  %v18964_v44 = vld [vmem:[#allocation19_spill] sm:$0xff] }
 0x43a   : > { %vm3659_vm5 = vmor %vm3657_vm10, %vm3658_vm12  ;;  %v3664_v40 = vor.u32 1.1754944e-38, %v3663_v38  ;;  %vm3662_vm2 = vcmp.eq.f32.partialorder %v3661_v30, 8.507059e+37  ;;  %v3928_v15 = vmul.f32 %v3545_v61, %v14350_v8  ;;  %v9676_v8 = vld [vmem:[%s17901_s3 + $0x50] sm:$0xff] }
 0x43b   : > { %4301 = vmatpush.bf16.msrb.mxu3 %v4010_v17  ;;  %v3656_v48 = vadd.f32 %v9406_v26, %v3655_v62  ;;  %v9408_v46 = vpop.eup %9407  ;;  %vm18961_vm12 = vmmov %vm18959_vm1  ;;  %v14594_v17 = vpop.f32.mrf.mxu1 }
 0x43c   : > { %v3417_v10 = vadd.f32 1.0, %v9408_v46  ;;  %v14561_v0 = vadd.f32 %v3928_v15, %v18954_v28  ;;  %vm18966_vm10 = vmmov %vm18959_vm1 }
 0x43d   : > { %v3660_v6 = vsel %vm3659_vm5, %v9406_v26, %v3656_v48  ;;  %vm18967_vm5 = vmmov %vm18959_vm1 }
 0x43e   : > { %v9410_v1 = vpop.eup %9409  ;;  %v3665_v39 = vsel %vm3662_vm2, %v3664_v40, %v3660_v6  ;;  %9411 = vrcp.f32 %v3417_v10  ;;  %18955 = vst [vmem:[#allocation68_spill] sm:$0xff] %v14561_v0  ;;  %v3558_v50 = vand.u32 2147483648, %v3417_v10  ;;  %v3556_v47 = vand.u32 2147483647, %v3417_v10  ;;  %vm18968_vm2 = vmmov %vm18959_vm1 }
 0x43f   : > { %8476 = vmatmul.msk.bf16.gmra.mxu0 %vm18953_vm13, %v13785_v11  ;;  %v3936_v5 = vmul.f32 %v3665_v39, %v14376_v13  ;;  %v3425_v60 = vadd.f32 1.0, %v9410_v1  ;;  %vm3552_vm14 = vweird.f32 %v3417_v10  ;;  %vm18969_vm13 = vmmov %vm18959_vm1  ;;  %v14622_v1 = vpop.permute.xlu2 %4052 }
 0x440   : > { %8480 = vmatmul.msk.bf16.gmra.mxu1 %vm18958_vm4, %v9676_v8  ;;  %v3559_v54 = vor.u32 1.1754944e-38, %v3558_v50  ;;  %vm3557_vm7 = vcmp.eq.f32.partialorder %v3556_v47, 8.507059e+37  ;;  %vm18970_vm4 = vmmov %vm18959_vm1 }
 0x441   : > { %v14564_v51 = vadd.f32 %v3936_v5, %v18956_v55  ;;  %9413 = vrcp.f32 %v3425_v60  ;;  %v3678_v25 = vand.u32 2147483648, %v3425_v60  ;;  %v3676_v43 = vand.u32 2147483647, %v3425_v60  ;;  %v14630_v55 = vpop.permute.xlu1 %4042 }
 0x442   : > { %vm3672_vm15 = vweird.f32 %v3425_v60 }
 0x443   : > { %18957 = vst [vmem:[#allocation18_spill] sm:$0xff] %v14564_v51  ;;  %v4001_v11 = vpack.c.bf16 %v14564_v51, %v14561_v0  ;;  %v3679_v32 = vor.u32 1.1754944e-38, %v3678_v25  ;;  %vm3677_vm11 = vcmp.eq.f32.partialorder %v3676_v43, 8.507059e+37  ;;  %v14601_v62 = vpop.f32.mrf.mxu1 }
 0x444   : > { %v9412_v59 = vpop.eup %9411 }
 0x445   : > { %4273 = vmatpush.bf16.msrb.mxu2 %v4001_v11  ;;  %v3548_v13 = vmul.f32 %v9412_v59, %v3417_v10  ;;  %vm3553_vm8 = vweird.f32 %v9412_v59 }
 0x446   : > { %vm3554_vm6 = vmor %vm3552_vm14, %vm3553_vm8 }
 0x447   : > { %v9414_v49 = vpop.eup %9413  ;;  %v3549_v33 = vsub.f32 1.0, %v3548_v13  ;;  %vm18971_vm8 = vmmov %vm18959_vm1  ;;  %v14633_v11 = vpop.permute.xlu2 %4047 }
 0x448   : > { %v3668_v29 = vmul.f32 %v9414_v49, %v3425_v60  ;;  %8482 = vmatmul.msk.bf16.vlgmr.msrb.gmra.mxu2 %vm18959_vm1, %v14387_v52  ;;  %vm3673_vm0 = vweird.f32 %v9414_v49 }
 0x449   : > { %v3550_v2 = vmul.f32 %v9412_v59, %v3549_v33  ;;  %vm3674_vm3 = vmor %vm3672_vm15, %vm3673_vm0 }
 0x44a   : > { %v3669_v41 = vsub.f32 1.0, %v3668_v29 }
 0x44b   : > { %v3551_v26 = vadd.f32 %v9412_v59, %v3550_v2  ;;  %v14607_v48 = vpop.f32.mrf.mxu1 }
 0x44c   : > { %v3670_v16 = vmul.f32 %v9414_v49, %v3669_v41 }
 0x44d   : > { %v3555_v42 = vsel %vm3554_vm6, %v9412_v59, %v3551_v26 }
 0x44e   : > { %v3671_v9 = vadd.f32 %v9414_v49, %v3670_v16  ;;  %v3560_v19 = vsel %vm3557_vm7, %v3559_v54, %v3555_v42  ;;  %v14644_v54 = vpop.permute.xlu0 %4057 }
 0x44f   : > { %8477 = vmatmul.msk.bf16.gmra.mxu0 %vm18960_vm9, %v13938_v27  ;;  %v3929_v34 = vmul.f32 %v3560_v19, %v14469_v37  ;;  %v14592_v37 = vpop.f32.mrf.mxu0  ;;  %18972 = vst [vmem:[#allocation59_spill] sm:$0xff] %v14644_v54 }
 0x450   : > { %v3675_v7 = vsel %vm3674_vm3, %v9414_v49, %v3671_v9  ;;  %8481 = vmatmul.msk.bf16.gmra.mxu1 %vm18961_vm12, %v13938_v27 }
 0x451   : > { %v3680_v4 = vsel %vm3677_vm11, %v3679_v32, %v3675_v7  ;;  %v14581_v53 = vadd.f32 %v3929_v34, %v18962_v58 }
 0x452   : > { %v3937_v23 = vmul.f32 %v3680_v4, %v14522_v35 }
 0x453   : > { %18963 = vst [vmem:[#allocation84_spill] sm:$0xff] %v14581_v53 }
 0x454   : > { %v14584_v24 = vadd.f32 %v3937_v23, %v18964_v44 }
 0x455   : > { %v14603_v30 = vpop.f32.mrf.mxu2 }
 0x456   : > { %18965 = vst [vmem:[#allocation58_spill] sm:$0xff] %v14584_v24  ;;  %v4002_v38 = vpack.c.bf16 %v14584_v24, %v14581_v53  ;;  %v14720_v53 = vpop.permute.xlu1 %4037 }
 0x457   : > { %v14599_v35 = vpop.f32.mrf.mxu0 }
 0x458   : > { %4302 = vmatpush.bf16.msrb.mxu3 %v4002_v38  ;;  %8483 = vmatmul.msk.bf16.gmra.mxu2 %vm18966_vm10, %v14496_v36 }
 0x45b   : > { %8486 = vmatmul.msk.bf16.vlgmr.msrb.gmra.mxu3 %vm18967_vm5, %v14387_v52 }
 0x45d   : > { %v14618_v40 = vpop.f32.mrf.mxu2 }
 0x45f   : > { %v14605_v61 = vpop.f32.mrf.mxu0 }
 0x465   : > { %v14624_v39 = vpop.f32.mrf.mxu2 }
 0x467   : > { %v14614_v46 = vpop.f32.mrf.mxu0 }
 0x468   : > { %8484 = vmatmul.msk.bf16.gmra.mxu2 %vm18968_vm2, %v9676_v8 }
 0x46b   : > { %8487 = vmatmul.msk.bf16.gmra.mxu3 %vm18969_vm13, %v14496_v36  ;;  %v14609_v52 = vpop.f32.mrf.mxu3  ;;  %v14616_v36 = vpop.f32.mrf.mxu1 }
 0x46c   : > { %v14740_v3 = vadd.f32 %v14616_v36, %v14720_v53 }
 0x46d   : > { %v14637_v49 = vpop.f32.mrf.mxu2 }
 0x46e   : > { %18981 = vst [vmem:[#allocation77_spill] sm:$0xff] %v14740_v3  ;;  %v14790_v18 = vadd.f32 %v14637_v49, %v14720_v53 }
 0x46f   : > { %v4111_v15 = vpop.f32.mrf.mxu0 }
 0x470   : > { %18988 = vst [vmem:[#allocation26_spill] sm:$0xff] %v14790_v18 }
 0x473   : > { %v14620_v6 = vpop.f32.mrf.mxu3  ;;  %v4140_v10 = vpop.f32.mrf.mxu1 }
 0x474   : > { %v4141_v59 = vadd.f32 %v4140_v10, %v14630_v55 }
 0x475   : > { %v4169_v43 = vpop.f32.mrf.mxu2 }
 0x476   : > { %v4170_v58 = vadd.f32 %v4169_v43, %v14630_v55 }
 0x477   : > { %v4113_v60 = vpop.f32.mrf.mxu0 }
 0x478   : > { %8485 = vmatmul.msk.bf16.gmra.mxu2 %vm18970_vm4, %v13938_v27  ;;  %v4114_v13 = vadd.f32 %v4113_v60, %v14633_v11 }
 0x47a   : > { %v8498_v41 = vmul.f32 -1.442695, %v4114_v13 }
 0x47b   : > { %8488 = vmatmul.msk.bf16.gmra.mxu3 %vm18959_vm1, %v9676_v8  ;;  %v14626_v5 = vpop.f32.mrf.mxu3  ;;  %v4142_v28 = vpop.f32.mrf.mxu1  ;;  %v4112_v8 = vadd.f32 %v4111_v15, %v14630_v55 }
 0x47c   : > { %v4143_v47 = vadd.f32 %v4142_v28, %v14633_v11 }
 0x47d   : > { %v8490_v29 = vmul.f32 -1.442695, %v4112_v8  ;;  %v4171_v10 = vpop.f32.mrf.mxu2 }
 0x47e   : > { %v8499_v25 = vmul.f32 -1.442695, %v4143_v47  ;;  %v4172_v47 = vadd.f32 %v4171_v10, %v14633_v11 }
 0x47f   : > { %v4116_v50 = vpop.f32.mrf.mxu0  ;;  %9415 = vpow2.f32 %v8490_v29 }
 0x480   : > { %v4117_v26 = vadd.f32 %v4116_v50, %v14622_v1 }
 0x482   : > { %v8506_v19 = vmul.f32 -1.442695, %v4117_v26 }
 0x483   : > { %v14639_v33 = vpop.f32.mrf.mxu3  ;;  %v4145_v2 = vpop.f32.mrf.mxu1 }
 0x484   : > { %v4146_v16 = vadd.f32 %v4145_v2, %v14622_v1  ;;  %v14660_v2 = vpop.permute.xlu0 %4032 }
 0x485   : > { %v9416_v7 = vpop.eup %9415  ;;  %v14754_v20 = vadd.f32 %v14624_v39, %v14660_v2 }
 0x486   : > { %v8507_v34 = vmul.f32 -1.442695, %v4146_v16  ;;  %v14647_v44 = vadd.f32 1.0, %v9416_v7 }
 0x487   : > { %v4118_v42 = vpop.f32.mrf.mxu0  ;;  %18984 = vst [vmem:[#allocation81_spill] sm:$0xff] %v14754_v20 }
 0x488   : > { %v4119_v38 = vadd.f32 %v4118_v42, %v14644_v54  ;;  %vm4457_vm6 = vweird.f32 %v14647_v44 }
 0x48b   : > { %8489 = vmatmul.msk.bf16.gmra.mxu3 %vm18971_vm8, %v13938_v27  ;;  %v8491_v27 = vmul.f32 -1.442695, %v4141_v59  ;;  %v4147_v9 = vpop.f32.mrf.mxu1  ;;  %v8492_v59 = vmul.f32 -1.442695, %v4170_v58 }
 0x48c   : > { %v4148_v8 = vadd.f32 %v4147_v9, %v14644_v54  ;;  %v8500_v9 = vmul.f32 -1.442695, %v4172_v47 }
 0x48d   : > { %9417 = vpow2.f32 %v8491_v27  ;;  %v8514_v27 = vmul.f32 -1.442695, %v4119_v38 }
 0x48e   : > { %9419 = vpow2.f32 %v8498_v41  ;;  %v8515_v26 = vmul.f32 -1.442695, %v4148_v8  ;;  %v14686_v8 = vpop.permute.xlu2 %4022 }
 0x48f   : > { %9421 = vpow2.f32 %v8499_v25  ;;  %18974 = vst [vmem:[#allocation91_spill] sm:$0xff] %v14686_v8  ;;  %v14698_v47 = vadd.f32 %v14594_v17, %v14686_v8 }
 0x490   : > { %9423 = vpow2.f32 %v8506_v19 }
 0x491   : > { %v4198_v32 = vpop.f32.mrf.mxu3  ;;  %9425 = vpow2.f32 %v8507_v34  ;;  %18976 = vst [vmem:[#allocation75_spill] sm:$0xff] %v14698_v47 }
 0x492   : > { %v4199_v13 = vadd.f32 %v4198_v32, %v14630_v55  ;;  %9427 = vrcp.f32 %v14647_v44 }
 0x493   : > { %v9418_v4 = vpop.eup %9417 }
 0x494   : > { %v9420_v23 = vpop.eup %9419  ;;  %v14650_v15 = vadd.f32 1.0, %v9418_v4  ;;  %v8493_v42 = vmul.f32 -1.442695, %v4199_v13 }
 0x495   : > { %v9422_v60 = vpop.eup %9421  ;;  %v14652_v28 = vadd.f32 1.0, %v9420_v23 }
 0x496   : > { %9429 = vrcp.f32 %v14650_v15  ;;  %v14665_v41 = vadd.f32 1.0, %v9422_v60  ;;  %v9424_v25 = vpop.eup %9423  ;;  %v14684_v60 = vpop.permute.xlu0 %4027 }
 0x497   : > { %9431 = vrcp.f32 %v14652_v28  ;;  %v9426_v43 = vpop.eup %9425  ;;  %v14669_v19 = vadd.f32 1.0, %v9424_v25  ;;  %v14702_v25 = vadd.f32 %v14599_v35, %v14684_v60  ;;  %vm4577_vm3 = vweird.f32 %v14652_v28 }
 0x498   : > { %18973 = vst [vmem:[#allocation88_spill] sm:$0xff] %v14665_v41  ;;  %9433 = vpow2.f32 %v8492_v59  ;;  %v14671_v32 = vpop.eup %9427  ;;  %v14673_v7 = vadd.f32 1.0, %v9426_v43  ;;  %v4174_v43 = vpop.f32.mrf.mxu2 }
 0x499   : > { %v4200_v16 = vpop.f32.mrf.mxu3  ;;  %9435 = vpow2.f32 %v8514_v27  ;;  %v14694_v27 = vadd.f32 %v14592_v37, %v14686_v8  ;;  %v14714_v37 = vadd.f32 %v14609_v52, %v14686_v8  ;;  %v4453_v17 = vmul.f32 %v14671_v32, %v14647_v44 }
 0x49a   : > { %v14656_v29 = vpop.f32.mrf.mxu0  ;;  %9437 = vrcp.f32 %v14665_v41  ;;  %v4201_v59 = vadd.f32 %v4200_v16, %v14633_v11  ;;  %vm4697_vm0 = vweird.f32 %v14669_v19  ;;  %vm4458_vm15 = vweird.f32 %v14671_v32 }
 0x49b   : > { %9439 = vpow2.f32 %v8515_v26  ;;  %v14706_v26 = vadd.f32 %v14601_v62, %v14684_v60  ;;  %18979 = vst [vmem:[#allocation42_spill] sm:$0xff] %v14714_v37  ;;  %v14724_v62 = vadd.f32 %v14605_v61, %v14660_v2  ;;  %v14744_v61 = vadd.f32 %v14618_v40, %v14684_v60  ;;  %vm14975_vm8 = vmor %vm4457_vm6, %vm4458_vm15 }
 0x49c   : > { %v14675_v34 = vpop.eup %9429  ;;  %9441 = vpow2.f32 %v8493_v42  ;;  %v14710_v42 = vadd.f32 %v14603_v30, %v14686_v8  ;;  %v14728_v30 = vadd.f32 %v14607_v48, %v14660_v2  ;;  %v8501_v48 = vmul.f32 -1.442695, %v4201_v59 }
 0x49d   : > { %v14658_v50 = vpop.f32.mrf.mxu1  ;;  %v14681_v58 = vpop.eup %9431  ;;  %9443 = vpow2.f32 %v8500_v9  ;;  %18977 = vst [vmem:[#allocation63_spill] sm:$0xff] %v14706_v26  ;;  %v4468_v52 = vmul.f32 %v14675_v34, %v14650_v15  ;;  %v4454_v56 = vsub.f32 1.0, %v4453_v17  ;;  %vm4712_vm12 = vweird.f32 %v14673_v7 }
 0x49e   : > { %v9434_v38 = vpop.eup %9433  ;;  %9445 = vrcp.f32 %v14669_v19  ;;  %18978 = vst [vmem:[#allocation10_spill] sm:$0xff] %v14710_v42  ;;  %v14832_v26 = vadd.f32 %v14658_v50, %v14686_v8  ;;  %vm4578_vm4 = vweird.f32 %v14681_v58 }
 0x49f   : > { %v9436_v10 = vpop.eup %9435  ;;  %9447 = vrcp.f32 %v14673_v7  ;;  %v14718_v9 = vadd.f32 1.0, %v9434_v38  ;;  %v14736_v38 = vadd.f32 %v14614_v46, %v14720_v53  ;;  %18982 = vst [vmem:[#allocation8_spill] sm:$0xff] %v14744_v61  ;;  %v14758_v46 = vadd.f32 %v14626_v5, %v14660_v2 }
 0x4a0   : > { %v14690_v13 = vpop.eup %9437  ;;  %v14732_v51 = vadd.f32 1.0, %v9436_v10  ;;  %v14750_v10 = vadd.f32 %v14620_v6, %v14684_v60  ;;  %v4573_v6 = vmul.f32 %v14681_v58, %v14652_v28  ;;  %v4469_v45 = vsub.f32 1.0, %v4468_v52  ;;  %v4176_v12 = vpop.f32.mrf.mxu2  ;;  %18992 = vst [vmem:[#allocation24_spill] sm:$0xff] %v14832_v26 }
 0x4a1   : > { %18975 = vst [vmem:[#allocation28_spill] sm:$0xff] %v14690_v13  ;;  %v9440_v16 = vpop.eup %9439  ;;  %v4203_v35 = vpop.f32.mrf.mxu3  ;;  %9449 = vrcp.f32 %v14718_v9  ;;  %v4588_v22 = vmul.f32 %v14690_v13, %v14665_v41 }
 0x4a2   : > { %v14677_v4 = vpop.f32.mrf.mxu0  ;;  %18980 = vst [vmem:[#allocation55_spill] sm:$0xff] %v14718_v9  ;;  %v9442_v24 = vpop.eup %9441  ;;  %v14760_v36 = vadd.f32 1.0, %v9440_v16  ;;  %9451 = vrcp.f32 %v14732_v51  ;;  %v4175_v16 = vadd.f32 %v4174_v43, %v14622_v1  ;;  %v4204_v63 = vadd.f32 %v4203_v35, %v14622_v1 }
 0x4a3   : > { %v9444_v0 = vpop.eup %9443  ;;  %18983 = vst [vmem:[#allocation95_spill] sm:$0xff] %v14750_v10  ;;  %v14771_v39 = vadd.f32 1.0, %v9442_v24  ;;  %9453 = vpow2.f32 %v8501_v48  ;;  %v4703_v24 = vand.u32 2147483648, %v14669_v19  ;;  %v4574_v43 = vsub.f32 1.0, %v4573_v6 }
 0x4a4   : > { %v14746_v14 = vpop.eup %9445  ;;  %18985 = vst [vmem:[#allocation60_spill] sm:$0xff] %v14758_v46  ;;  %v14774_v5 = vadd.f32 1.0, %v9444_v0  ;;  %9455 = vrcp.f32 %v14760_v36  ;;  %v14794_v35 = vmul.f32 %v14671_v32, %v4454_v56  ;;  %v14798_v48 = vadd.f32 %v14639_v33, %v14720_v53 }
 0x4a5   : > { %v14679_v23 = vpop.f32.mrf.mxu1  ;;  %v14766_v59 = vpop.eup %9447  ;;  %18986 = vst [vmem:[#allocation48_spill] sm:$0xff] %v14771_v39  ;;  %v4693_v17 = vmul.f32 %v14746_v14, %v14669_v19  ;;  %9457 = vrcp.f32 %v14771_v39  ;;  %v8508_v31 = vmul.f32 -1.442695, %v4175_v16  ;;  %v14804_v6 = vmul.f32 %v14675_v34, %v4469_v45 }
 0x4a6   : > { %18987 = vst [vmem:[#allocation23_spill] sm:$0xff] %v14774_v5  ;;  %v4708_v52 = vmul.f32 %v14766_v59, %v14673_v7  ;;  %9459 = vrcp.f32 %v14774_v5  ;;  %v4589_v49 = vsub.f32 1.0, %v4588_v22  ;;  %v8509_v10 = vmul.f32 -1.442695, %v4204_v63 }
 0x4a7   : > { %18989 = vst [vmem:[#allocation34_spill] sm:$0xff] %v14798_v48  ;;  %v14801_v21 = vpop.eup %9449  ;;  %v4694_v0 = vsub.f32 1.0, %v4693_v17  ;;  %v4701_v56 = vand.u32 2147483647, %v14669_v19  ;;  %v14809_v46 = vor.u32 1.1754944e-38, %v4703_v24  ;;  %v4718_v48 = vand.u32 2147483648, %v14673_v7 }
 0x4a8   : > { %18990 = vst [vmem:[#allocation27_spill] sm:$0xff] %v14801_v21  ;;  %v14806_v61 = vpop.eup %9451  ;;  %v4709_v33 = vsub.f32 1.0, %v4708_v52  ;;  %v14817_v45 = vmul.f32 %v14681_v58, %v4574_v43  ;;  %v14822_v22 = vadd.f32 %v14656_v29, %v14686_v8  ;;  %v4177_v17 = vadd.f32 %v4176_v12, %v14644_v54 }
 0x4a9   : > { %v4205_v37 = vpop.f32.mrf.mxu3  ;;  %v9454_v18 = vpop.eup %9453  ;;  %v4823_v52 = vand.u32 2147483648, %v14732_v51  ;;  %v4483_v20 = vmul.f32 %v14801_v21, %v14718_v9  ;;  %9461 = vpow2.f32 %v8508_v31  ;;  %v14837_v63 = vmul.f32 %v14690_v13, %v4589_v49 }
 0x4aa   : > { %18991 = vst [vmem:[#allocation66_spill] sm:$0xff] %v14822_v22  ;;  %v14825_v24 = vpop.eup %9455  ;;  %v4695_v29 = vmul.f32 %v14746_v14, %v4694_v0  ;;  %9463 = vpow2.f32 %v8509_v10  ;;  %v4206_v12 = vadd.f32 %v4205_v37, %v14644_v54  ;;  %v4710_v47 = vmul.f32 %v14766_v59, %v4709_v33 }
 0x4ab   : > { %v14834_v43 = vpop.eup %9457  ;;  %18994 = vst [vmem:[#allocation52_spill] sm:$0xff] %v14837_v63  ;;  %v14844_v41 = vor.u32 1.1754944e-38, %v4718_v48  ;;  %v4838_v50 = vand.u32 2147483648, %v14760_v36  ;;  %v14847_v26 = vadd.f32 1.0, %v9454_v18  ;;  %v4813_v31 = vmul.f32 %v14806_v61, %v14732_v51 }
 0x4ac   : > { %v14762_v57 = vpop.f32.mrf.mxu0  ;;  %18993 = vst [vmem:[#allocation72_spill] sm:$0xff] %v14834_v43  ;;  %v14841_v22 = vpop.eup %9459  ;;  %v8516_v10 = vmul.f32 -1.442695, %v4177_v17  ;;  %v14853_v13 = vor.u32 1.1754944e-38, %v4823_v52  ;;  %v4828_v37 = vmul.f32 %v14825_v24, %v14760_v36  ;;  %v4484_v33 = vsub.f32 1.0, %v4483_v20 }
 0x4ad   : > { %v14764_v40 = vpop.f32.mrf.mxu1  ;;  %18995 = vst [vmem:[#allocation37_spill] sm:$0xff] %v14841_v22  ;;  %v4498_v48 = vmul.f32 %v14834_v43, %v14771_v39  ;;  %v14860_v18 = vadd.f32 %v14746_v14, %v4695_v29  ;;  %vm4698_vm14 = vweird.f32 %v14746_v14  ;;  %v4603_v0 = vmul.f32 %v14841_v22, %v14774_v5 }
 0x4ae   : > { %18996 = vst [vmem:[#allocation25_spill] sm:$0xff] %v14847_v26  ;;  %v8517_v17 = vmul.f32 -1.442695, %v4206_v12  ;;  %v14867_v49 = vadd.f32 %v14766_v59, %v4710_v47  ;;  %v14869_v9 = vor.u32 1.1754944e-38, %v4838_v50  ;;  %9465 = vrcp.f32 %v14847_v26  ;;  %vm4699_vm2 = vmor %vm4697_vm0, %vm4698_vm14 }
 0x4af   : > { %v9462_v52 = vpop.eup %9461  ;;  %v4814_v63 = vsub.f32 1.0, %v4813_v31  ;;  %v14876_v5 = vadd.f32 %v14677_v4, %v14684_v60  ;;  %v14880_v47 = vadd.f32 %v14679_v23, %v14684_v60  ;;  %9467 = vpow2.f32 %v8516_v10  ;;  %vm14993_vm14 = vmor %vm4577_vm3, %vm4578_vm4 }
 0x4b0   : > { %v9464_v8 = vpop.eup %9463  ;;  %v4829_v12 = vsub.f32 1.0, %v4828_v37  ;;  %v14883_v50 = vmul.f32 %v14801_v21, %v4484_v33  ;;  %v4499_v20 = vsub.f32 1.0, %v4498_v48  ;;  %v4461_v39 = vand.u32 2147483647, %v14647_v44 }
 0x4b1   : > { %18997 = vst [vmem:[#allocation51_spill] sm:$0xff] %v14876_v5  ;;  %vm14887_vm7 = vcmp.eq.f32.partialorder %v4701_v56, 8.507059e+37  ;;  %v4604_v4 = vsub.f32 1.0, %v4603_v0  ;;  %v14891_v5 = vadd.f32 1.0, %v9462_v52  ;;  %9469 = vpow2.f32 %v8517_v17 }
 0x4b2   : > { %18998 = vst [vmem:[#allocation65_spill] sm:$0xff] %v14880_v47  ;;  %v14894_v10 = vadd.f32 1.0, %v9464_v8  ;;  %v4581_v33 = vand.u32 2147483647, %v14652_v28  ;;  %v4583_v48 = vand.u32 2147483648, %v14652_v28  ;;  %v14900_v47 = vmul.f32 %v14806_v61, %v4814_v63 }
 0x4b3   : > { %18999 = vst [vmem:[#allocation39_spill] sm:$0xff] %v14883_v50  ;;  %v14904_v56 = vadd.f32 %v14762_v57, %v14660_v2  ;;  %v14908_v0 = vadd.f32 %v14764_v40, %v14660_v2  ;;  %vm4713_vm9 = vweird.f32 %v14766_v59  ;;  %v14918_v63 = vmul.f32 %v14834_v43, %v4499_v20 }
 0x4b4   : > { %v14812_v16 = vpop.f32.mrf.mxu0  ;;  %v14911_v8 = vpop.eup %9465  ;;  %v19006_v17 = vand.u32 2147483648, %v14647_v44  ;;  %v14924_v40 = vmul.f32 %v14841_v22, %v4604_v4  ;;  %9471 = vrcp.f32 %v14891_v5  ;;  %vm14927_vm11 = vcmp.eq.f32.partialorder %v4461_v39, 8.507059e+37  ;;  %vm15026_vm0 = vmor %vm4712_vm12, %vm4713_vm9 }
 0x4b5   : > { %v14814_v42 = vpop.f32.mrf.mxu1  ;;  %19002 = vst [vmem:[#allocation33_spill] sm:$0xff] %v14904_v56  ;;  %v9468_v52 = vpop.eup %9467  ;;  %vm4818_vm10 = vweird.f32 %v14806_v61  ;;  %v4733_v20 = vand.u32 2147483648, %v14891_v5  ;;  %9473 = vrcp.f32 %v14894_v10  ;;  %vm14937_vm5 = vcmp.eq.f32.partialorder %v4581_v33, 8.507059e+37 }
 0x4b6   : > { %19003 = vst [vmem:[#allocation69_spill] sm:$0xff] %v14908_v0  ;;  %v4464_v57 = vor.u32 1.1754944e-38, %v19006_v17  ;;  %v4584_v39 = vor.u32 1.1754944e-38, %v4583_v48  ;;  %v4618_v43 = vmul.f32 %v14911_v8, %v14847_v26  ;;  %v4456_v21 = vadd.f32 %v14671_v32, %v14794_v35 }
 0x4b7   : > { %19004 = vst [vmem:[#allocation44_spill] sm:$0xff] %v14911_v8  ;;  %vm4817_vm13 = vweird.f32 %v14732_v51  ;;  %v4576_v48 = vadd.f32 %v14681_v58, %v14817_v45  ;;  %v4700_v26 = vsel %vm4699_vm2, %v14746_v14, %v14860_v18  ;;  %v19012_v19 = vand.u32 2147483647, %v14673_v7 }
 0x4b8   : > { %19005 = vst [vmem:[#allocation32_spill] sm:$0xff] %v14918_v63  ;;  %v4748_v63 = vand.u32 2147483648, %v14894_v10  ;;  %v4705_v45 = vsel %vm14887_vm7, %v14809_v46, %v4700_v26  ;;  %v4619_v18 = vsub.f32 1.0, %v4618_v43  ;;  %v4460_v26 = vsel %vm14975_vm8, %v14671_v32, %v4456_v21  ;;  %vm4819_vm7 = vmor %vm4817_vm13, %vm4818_vm10 }
 0x4b9   : > { %19007 = vst [vmem:[#allocation62_spill] sm:$0xff] %v14924_v40  ;;  %vm14963_vm1 = vcmp.eq.f32.partialorder %v19012_v19, 8.507059e+37  ;;  %v14999_v43 = vor.u32 1.1754944e-38, %v4733_v20  ;;  %v4580_v21 = vsel %vm14993_vm14, %v14681_v58, %v4576_v48  ;;  %v15009_v32 = vadd.f32 %v14812_v16, %v14720_v53 }
 0x4ba   : > { %v15001_v31 = vor.u32 1.1754944e-38, %v4748_v63  ;;  %v15013_v28 = vadd.f32 %v14814_v42, %v14720_v53  ;;  %v4465_v58 = vsel %vm14927_vm11, %v4464_v57, %v4460_v26  ;;  %v15031_v48 = vmul.f32 %v14911_v8, %v4619_v18 }
 0x4bb   : > { %19021 = vst [vmem:[#allocation17_spill] sm:$0xff] %v15009_v32  ;;  %v4585_v19 = vsel %vm14937_vm5, %v4584_v39, %v4580_v21  ;;  %vm4833_vm6 = vweird.f32 %v14825_v24  ;;  %v4715_v14 = vsel %vm15026_vm0, %v14766_v59, %v14867_v49  ;;  %vm4832_vm15 = vweird.f32 %v14760_v36 }
 0x4bc   : > { %v4227_v29 = vpop.f32.mrf.mxu0  ;;  %19020 = vst [vmem:[#allocation43_spill] sm:$0xff] %v15001_v31  ;;  %v19027_v44 = vand.u32 2147483647, %v14732_v51  ;;  %v15066_v21 = vmul.f32 %v4585_v19, %v14702_v25  ;;  %v19030_v25 = vand.u32 2147483648, %v14650_v15  ;;  %vm4472_vm3 = vweird.f32 %v14650_v15  ;;  %vm15118_vm11 = vmor %vm4832_vm15, %vm4833_vm6 }
 0x4bd   : > { %v4256_v3 = vpop.f32.mrf.mxu1  ;;  %v4228_v23 = vadd.f32 %v4227_v29, %v14630_v55  ;;  %19022 = vst [vmem:[#allocation71_spill] sm:$0xff] %v15013_v28  ;;  %vm4473_vm12 = vweird.f32 %v14675_v34 }
 0x4be   : > { %v4257_v37 = vadd.f32 %v4256_v3, %v14630_v55  ;;  %v14915_v3 = vmul.f32 %v14825_v24, %v4829_v12  ;;  %19025 = vst [vmem:[#allocation45_spill] sm:$0xff] %v15031_v48  ;;  %vm4822_vm9 = vcmp.eq.f32.partialorder %v19027_v44, 8.507059e+37  ;;  %vm15162_vm5 = vmor %vm4472_vm3, %vm4473_vm12 }
 0x4bf   : > { %v8494_v29 = vmul.f32 -1.442695, %v4228_v23  ;;  %v9470_v23 = vpop.eup %9469 }
 0x4c0   : > { %v8495_v17 = vmul.f32 -1.442695, %v4257_v37  ;;  %v14952_v37 = vadd.f32 1.0, %v9468_v52 }
 0x4c1   : > { %9475 = vpow2.f32 %v8494_v29  ;;  %v14981_v29 = vadd.f32 1.0, %v9470_v23 }
 0x4c2   : > { %9477 = vpow2.f32 %v8495_v17  ;;  %v14984_v17 = vmul.f32 %v4705_v45, %v14724_v62  ;;  %v4853_v20 = vand.u32 2147483648, %v14952_v37 }
 0x4c3   : > { %19017 = vst [vmem:[#allocation35_spill] sm:$0xff] %v14981_v29  ;;  %9479 = vrcp.f32 %v14952_v37 }
 0x4c4   : > { %v4229_v4 = vpop.f32.mrf.mxu0  ;;  %v4980_v62 = vand.u32 2147483647, %v14984_v17  ;;  %v15074_v42 = vor.u32 1.1754944e-38, %v4853_v20 }
 0x4c5   : > { %v4230_v22 = vadd.f32 %v4229_v4, %v14633_v11  ;;  %v4258_v40 = vpop.f32.mrf.mxu1 }
 0x4c6   : > { %v4259_v33 = vadd.f32 %v4258_v40, %v14633_v11  ;;  %v8538_v45 = vmul.f32 -1.442695, %v4980_v62  ;;  %19029 = vst [vmem:[#allocation90_spill] sm:$0xff] %v15074_v42 }
 0x4c7   : > { %v8502_v35 = vmul.f32 -1.442695, %v4230_v22  ;;  %v14979_v22 = vpop.eup %9471 }
 0x4c8   : > { %v8503_v40 = vmul.f32 -1.442695, %v4259_v33  ;;  %v14997_v46 = vpop.eup %9473  ;;  %v4723_v56 = vmul.f32 %v14979_v22, %v14891_v5 }
 0x4c9   : > { %9481 = vpow2.f32 %v8502_v35  ;;  %v9476_v16 = vpop.eup %9475  ;;  %v4738_v39 = vmul.f32 %v14997_v46, %v14894_v10 }
 0x4ca   : > { %9483 = vpow2.f32 %v8503_v40  ;;  %v9478_v57 = vpop.eup %9477  ;;  %v4816_v40 = vadd.f32 %v14806_v61, %v14900_v47  ;;  %v15055_v47 = vmul.f32 %v4465_v58, %v14694_v27  ;;  %v15060_v59 = vadd.f32 1.0, %v9476_v16 }
 0x4cb   : > { %v14935_v12 = vpop.f32.mrf.mxu2  ;;  %9485 = vrcp.f32 %v14981_v29  ;;  %v15057_v26 = vpop.eup %9479  ;;  %v4720_v58 = vsel %vm14963_vm1, %v14844_v41, %v4715_v14 }
 0x4cc   : > { %v4232_v33 = vpop.f32.mrf.mxu0  ;;  %19026 = vst [vmem:[#allocation13_spill] sm:$0xff] %v15060_v59  ;;  %v4820_v49 = vsel %vm4819_vm7, %v14806_v61, %v4816_v40  ;;  %9487 = vpow2.f32 %v8538_v45  ;;  %v4964_v45 = vand.u32 2147483647, %v15055_v47  ;;  %v15093_v20 = vmul.f32 %v4720_v58, %v14728_v30 }
 0x4cd   : > { %v4261_v35 = vpop.f32.mrf.mxu1  ;;  %v4233_v7 = vadd.f32 %v4232_v33, %v14622_v1  ;;  %v15068_v33 = vadd.f32 1.0, %v9478_v57  ;;  %v4825_v27 = vsel %vm4822_vm9, %v14853_v13, %v4820_v49  ;;  %v4724_v57 = vsub.f32 1.0, %v4723_v56 }
 0x4ce   : > { %v4262_v18 = vadd.f32 %v4261_v35, %v14622_v1  ;;  %v15077_v51 = vmul.f32 %v4825_v27, %v14736_v38  ;;  %v15081_v35 = vor.u32 1.1754944e-38, %v19030_v25  ;;  %v4739_v13 = vsub.f32 1.0, %v4738_v39 }
 0x4cf   : > { %v9482_v62 = vpop.eup %9481  ;;  %19028 = vst [vmem:[#allocation36_spill] sm:$0xff] %v15068_v33  ;;  %v8510_v61 = vmul.f32 -1.442695, %v4233_v7  ;;  %9489 = vrcp.f32 %v15060_v59  ;;  %v4972_v56 = vand.u32 2147483647, %v15066_v21  ;;  %v4843_v39 = vmul.f32 %v15057_v26, %v14952_v37 }
 0x4d0   : > { %v9484_v16 = vpop.eup %9483  ;;  %v8511_v40 = vmul.f32 -1.442695, %v4262_v18  ;;  %v15087_v41 = vadd.f32 1.0, %v9482_v62  ;;  %v4988_v38 = vand.u32 2147483647, %v15077_v51  ;;  %9491 = vrcp.f32 %v15068_v33 }
 0x4d1   : > { %v15083_v19 = vpop.eup %9485  ;;  %v15098_v14 = vadd.f32 1.0, %v9484_v16  ;;  %9493 = vpow2.f32 %v8510_v61  ;;  %v4831_v30 = vadd.f32 %v14825_v24, %v14915_v3  ;;  %v4725_v62 = vmul.f32 %v14979_v22, %v4724_v57 }
 0x4d2   : > { %19031 = vst [vmem:[#allocation93_spill] sm:$0xff] %v15083_v19  ;;  %v8546_v49 = vmul.f32 -1.442695, %v4988_v38  ;;  %v9488_v44 = vpop.eup %9487  ;;  %v4858_v27 = vmul.f32 %v15083_v19, %v14981_v29  ;;  %v4868_v58 = vand.u32 2147483648, %v14981_v29  ;;  %9495 = vpow2.f32 %v8511_v40 }
 0x4d3   : > { %v15018_v23 = vpop.f32.mrf.mxu2  ;;  %19032 = vst [vmem:[#allocation64_spill] sm:$0xff] %v15087_v41  ;;  %v4740_v7 = vmul.f32 %v14997_v46, %v4739_v13  ;;  %9497 = vrcp.f32 %v15087_v41  ;;  %v4981_v61 = vand.u32 2147483647, %v15093_v20  ;;  %v8522_v38 = vmul.f32 -1.442695, %v4964_v45 }
 0x4d4   : > { %19033 = vst [vmem:[#allocation40_spill] sm:$0xff] %v15098_v14  ;;  %v4234_v18 = vpop.f32.mrf.mxu0  ;;  %9499 = vrcp.f32 %v15098_v14  ;;  %v15124_v40 = vadd.f32 1.0, %v9488_v44  ;;  %v8530_v13 = vmul.f32 -1.442695, %v4972_v56  ;;  %v4844_v63 = vsub.f32 1.0, %v4843_v39 }
 0x4d5   : > { %v4263_v25 = vpop.f32.mrf.mxu1  ;;  %v4235_v57 = vadd.f32 %v4234_v18, %v14644_v54  ;;  %v15126_v52 = vpop.eup %9489  ;;  %9501 = vpow2.f32 %v8546_v49  ;;  %v4835_v4 = vsel %vm15118_vm11, %v14825_v24, %v4831_v30  ;;  %v4859_v28 = vsub.f32 1.0, %v4858_v27 }
 0x4d6   : > { %19036 = vst [vmem:[#allocation67_spill] sm:$0xff] %v15126_v52  ;;  %v4264_v45 = vadd.f32 %v4263_v25, %v14644_v54  ;;  %v15132_v0 = vpop.eup %9491  ;;  %9503 = vrcp.f32 %v15124_v40  ;;  %v4471_v18 = vadd.f32 %v14675_v34, %v14804_v6  ;;  %v15138_v44 = vor.u32 1.1754944e-38, %v4868_v58 }
 0x4d7   : > { %19037 = vst [vmem:[#allocation79_spill] sm:$0xff] %v15132_v0  ;;  %v9494_v56 = vpop.eup %9493  ;;  %v19039_v49 = vand.u32 2147483647, %v14760_v36  ;;  %v8539_v25 = vmul.f32 -1.442695, %v4981_v61  ;;  %9505 = vpow2.f32 %v8522_v38  ;;  %v15145_v30 = vadd.f32 %v14979_v22, %v4725_v62 }
 0x4d8   : > { %19038 = vst [vmem:[#allocation92_spill] sm:$0xff] %v15138_v44  ;;  %v9496_v24 = vpop.eup %9495  ;;  %v8518_v27 = vmul.f32 -1.442695, %v4235_v57  ;;  %9507 = vpow2.f32 %v8530_v13  ;;  %v15151_v58 = vadd.f32 %v14997_v46, %v4740_v7  ;;  %v15154_v32 = vmul.f32 %v15057_v26, %v4844_v63  ;;  %v19046_v7 = vld [vmem:[#allocation91_spill] sm:$0xff] }
 0x4d9   : > { %vm4837_vm10 = vcmp.eq.f32.partialorder %v19039_v49, 8.507059e+37  ;;  %v15148_v6 = vpop.eup %9497  ;;  %v4513_v36 = vmul.f32 %v15126_v52, %v15060_v59  ;;  %v8519_v61 = vmul.f32 -1.442695, %v4264_v45  ;;  %v15173_v63 = vadd.f32 %v14935_v12, %v19046_v7 }
 0x4da   : > { %v4840_v3 = vsel %vm4837_vm10, %v14869_v9, %v4835_v4  ;;  %19040 = vst [vmem:[#allocation70_spill] sm:$0xff] %v15148_v6  ;;  %v15166_v9 = vpop.eup %9499  ;;  %v15169_v4 = vmul.f32 %v15083_v19, %v4859_v28  ;;  %v15177_v57 = vadd.f32 1.0, %v9494_v56  ;;  %v4475_v13 = vsel %vm15162_vm5, %v14675_v34, %v4471_v18  ;;  %v19048_v28 = vld [vmem:[#allocation77_spill] sm:$0xff] }
 0x4db   : > { %v15089_v50 = vpop.f32.mrf.mxu2  ;;  %19041 = vst [vmem:[#allocation86_spill] sm:$0xff] %v15151_v58  ;;  %v9502_v45 = vpop.eup %9501  ;;  %v4528_v49 = vmul.f32 %v15132_v0, %v15068_v33  ;;  %v15184_v8 = vadd.f32 1.0, %v9496_v24  ;;  %v15187_v48 = vmul.f32 %v4840_v3, %v19048_v28  ;;  %9509 = vpow2.f32 %v8539_v25 }
 0x4dc   : > { %19044 = vst [vmem:[#allocation9_spill] sm:$0xff] %v15166_v9  ;;  %v15189_v12 = vpop.eup %9503  ;;  %9511 = vpow2.f32 %v8518_v27  ;;  %v19049_v62 = vand.u32 2147483647, %v14650_v15  ;;  %v4514_v18 = vsub.f32 1.0, %v4513_v36  ;;  %v15197_v24 = vadd.f32 %v15018_v23, %v14684_v60 }
 0x4dd   : > { %19045 = vst [vmem:[#allocation49_spill] sm:$0xff] %v15169_v4  ;;  %v9506_v34 = vpop.eup %9505  ;;  %9513 = vpow2.f32 %v8519_v61  ;;  %v4633_v28 = vmul.f32 %v15148_v6, %v15087_v41  ;;  %v4648_v27 = vmul.f32 %v15166_v9, %v15098_v14  ;;  %v15207_v15 = vadd.f32 1.0, %v9502_v45  ;;  %v19053_v45 = vld [vmem:[#allocation28_spill] sm:$0xff] }
 0x4de   : > { %v15109_v16 = vpop.f32.mrf.mxu3  ;;  %19047 = vst [vmem:[#allocation61_spill] sm:$0xff] %v15173_v63  ;;  %vm4477_vm2 = vcmp.eq.f32.partialorder %v19049_v62, 8.507059e+37  ;;  %v9508_v25 = vpop.eup %9507  ;;  %9515 = vrcp.f32 %v15177_v57  ;;  %v4529_v36 = vsub.f32 1.0, %v4528_v49  ;;  %v5365_v61 = vmul.f32 %v15189_v12, %v15124_v40  ;;  %v19052_v63 = vld [vmem:[#allocation52_spill] sm:$0xff] }
 0x4df   : > { %19050 = vst [vmem:[#allocation15_spill] sm:$0xff] %v15197_v24  ;;  %v15200_v3 = vsel %vm4477_vm2, %v15081_v35, %v4475_v13  ;;  %9517 = vrcp.f32 %v15184_v8  ;;  %v4989_v35 = vand.u32 2147483647, %v15187_v48  ;;  %v15215_v13 = vadd.f32 %v15089_v50, %v14660_v2 }
 0x4e0   : > { %v15218_v56 = vadd.f32 1.0, %v9506_v34  ;;  %v15222_v24 = vadd.f32 %v19053_v45, %v19052_v63  ;;  %v15226_v14 = vadd.f32 %v15109_v16, %v19046_v7  ;;  %v15229_v33 = vmul.f32 %v15126_v52, %v4514_v18  ;;  %v19062_v52 = vld [vmem:[#allocation29_spill] sm:$0xff] }
 0x4e1   : > { %19051 = vst [vmem:[#allocation50_spill] sm:$0xff] %v15215_v13  ;;  %v9510_v49 = vpop.eup %9509  ;;  %v5366_v41 = vsub.f32 1.0, %v5365_v61  ;;  %v15231_v59 = vadd.f32 1.0, %v9508_v25  ;;  %v4634_v13 = vsub.f32 1.0, %v4633_v28  ;;  %9519 = vrcp.f32 %v15207_v15 }
 0x4e2   : > { %19054 = vst [vmem:[#allocation14_spill] sm:$0xff] %v15226_v14  ;;  %v9512_v50 = vpop.eup %9511  ;;  %v15237_v31 = vmul.f32 %v15132_v0, %v4529_v36  ;;  %vm5370_vm13 = vweird.f32 %v15189_v12  ;;  %v8547_v7 = vmul.f32 -1.442695, %v4989_v35  ;;  %vm5369_vm4 = vweird.f32 %v15124_v40 }
 0x4e3   : > { %v15140_v39 = vpop.f32.mrf.mxu2  ;;  %19055 = vst [vmem:[#allocation16_spill] sm:$0xff] %v15229_v33  ;;  %v9514_v63 = vpop.eup %9513  ;;  %v5367_v16 = vmul.f32 %v15189_v12, %v5366_v41  ;;  %v5375_v25 = vand.u32 2147483648, %v15124_v40  ;;  %v5373_v36 = vand.u32 2147483647, %v15124_v40  ;;  %v15254_v35 = vmul.f32 %v15148_v6, %v4634_v13  ;;  %vm15263_vm1 = vmor %vm5369_vm4, %vm5370_vm13 }
 0x4e4   : > { %19056 = vst [vmem:[#allocation53_spill] sm:$0xff] %v15237_v31  ;;  %v15241_v18 = vpop.eup %9515  ;;  %v15272_v13 = vadd.f32 1.0, %v9510_v49  ;;  %vm5129_vm0 = vweird.f32 %v15218_v56  ;;  %vm5489_vm6 = vweird.f32 %v15207_v15  ;;  %v19065_v54 = vand.u32 2147483647, %v15218_v56 }
 0x4e5   : > { %v15247_v61 = vpop.eup %9517  ;;  %v5368_v41 = vadd.f32 %v15189_v12, %v5367_v16  ;;  %19057 = vst [vmem:[#allocation78_spill] sm:$0xff] %v15254_v35  ;;  %v15276_v16 = vmul.f32 %v15241_v18, %v15177_v57  ;;  %v5376_v28 = vor.u32 1.1754944e-38, %v5375_v25  ;;  %vm5374_vm8 = vcmp.eq.f32.partialorder %v5373_v36, 8.507059e+37 }
 0x4e6   : > { %v15175_v38 = vpop.f32.mrf.mxu3  ;;  %v15280_v0 = vmul.f32 %v15247_v61, %v15184_v8  ;;  %v5493_v36 = vand.u32 2147483647, %v15207_v15  ;;  %v5388_v49 = vand.u32 2147483647, %v15272_v13  ;;  %vm5384_vm9 = vweird.f32 %v15272_v13 }
 0x4e7   : > { %v5372_v40 = vsel %vm15263_vm1, %v15189_v12, %v5368_v41  ;;  %vm15331_vm11 = vcmp.eq.f32.partialorder %v19065_v54, 8.507059e+37  ;;  %v19068_v54 = vld [vmem:[#allocation41_spill] sm:$0xff]  ;;  %vm5249_vm5 = vweird.f32 %v15231_v59 }
 0x4e8   : > { %vm5494_vm7 = vcmp.eq.f32.partialorder %v5493_v36, 8.507059e+37  ;;  %vm15325_vm3 = vcmp.eq.f32.partialorder %v5388_v49, 8.507059e+37 }
 0x4eb   : > { %v4285_v23 = vpop.f32.mrf.mxu2 }
 0x4ec   : > { %v4286_v62 = vadd.f32 %v4285_v23, %v14630_v55  ;;  %v4649_v23 = vsub.f32 1.0, %v4648_v27  ;;  %v5390_v27 = vand.u32 2147483648, %v15272_v13 }
 0x4ee   : > { %v15233_v34 = vpop.f32.mrf.mxu3  ;;  %v8496_v44 = vmul.f32 -1.442695, %v4286_v62  ;;  %v15249_v62 = vadd.f32 1.0, %v9512_v50  ;;  %v15257_v14 = vmul.f32 %v15166_v9, %v4649_v23  ;;  %v9520_v23 = vpop.eup %9519  ;;  %v5377_v50 = vsel %vm5374_vm8, %v5376_v28, %v5372_v40 }
 0x4ef   : > { %v5485_v12 = vmul.f32 %v9520_v23, %v15207_v15  ;;  %vm5490_vm14 = vweird.f32 %v9520_v23  ;;  %v5620_v31 = vmul.f32 %v5377_v50, %v14984_v17  ;;  %v5391_v36 = vor.u32 1.1754944e-38, %v5390_v27 }
 0x4f0   : > { %9521 = vpow2.f32 %v8496_v44  ;;  %19058 = vst [vmem:[#allocation19_spill] sm:$0xff] %v15257_v14  ;;  %v15267_v44 = vadd.f32 1.0, %v9514_v63  ;;  %vm5491_vm15 = vmor %vm5489_vm6, %vm5490_vm14 }
 0x4f1   : > { %9523 = vpow2.f32 %v8547_v7  ;;  %v15289_v7 = vadd.f32 %v15140_v39, %v14720_v53  ;;  %v5486_v63 = vsub.f32 1.0, %v5485_v12  ;;  %v5495_v39 = vand.u32 2147483648, %v15207_v15 }
 0x4f2   : > { %9525 = vrcp.f32 %v15218_v56 }
 0x4f3   : > { %9527 = vrcp.f32 %v15249_v62  ;;  %19061 = vst [vmem:[#allocation91_spill] sm:$0xff] %v15289_v7  ;;  %v4287_v9 = vpop.f32.mrf.mxu2  ;;  %v5487_v40 = vmul.f32 %v9520_v23, %v5486_v63 }
 0x4f4   : > { %9529 = vrcp.f32 %v15272_v13  ;;  %v4288_v7 = vadd.f32 %v4287_v9, %v14633_v11 }
 0x4f5   : > { %9531 = vrcp.f32 %v15267_v44  ;;  %v5488_v63 = vadd.f32 %v9520_v23, %v5487_v40  ;;  %v5652_v40 = vadd.f32 %v5620_v31, %v19062_v52 }
 0x4f6   : > { %v15291_v41 = vpop.f32.mrf.mxu3  ;;  %v9522_v25 = vpop.eup %9521  ;;  %9533 = vrcp.f32 %v15231_v59 }
 0x4f7   : > { %v9524_v28 = vpop.eup %9523  ;;  %v15305_v12 = vadd.f32 1.0, %v9522_v25  ;;  %v5496_v25 = vor.u32 1.1754944e-38, %v5495_v39  ;;  %v5492_v33 = vsel %vm5491_vm15, %v9520_v23, %v5488_v63 }
 0x4f8   : > { %v15303_v35 = vpop.eup %9525  ;;  %v15307_v6 = vadd.f32 1.0, %v9524_v28  ;;  %v8504_v28 = vmul.f32 -1.442695, %v4288_v7 }
 0x4f9   : > { %v15312_v9 = vpop.eup %9527  ;;  %v5125_v17 = vmul.f32 %v15303_v35, %v15218_v56  ;;  %v5497_v58 = vsel %vm5494_vm7, %v5496_v25, %v5492_v33  ;;  %vm5130_vm12 = vweird.f32 %v15303_v35  ;;  %vm4593_vm7 = vweird.f32 %v19053_v45 }
 0x4fa   : > { %v9530_v50 = vpop.eup %9529  ;;  %9535 = vrcp.f32 %v15307_v6  ;;  %v5628_v31 = vmul.f32 %v5497_v58, %v15077_v51  ;;  %v5508_v33 = vand.u32 2147483647, %v15307_v6  ;;  %v5510_v49 = vand.u32 2147483648, %v15307_v6  ;;  %vm15356_vm13 = vmor %vm5129_vm0, %vm5130_vm12 }
 0x4fb   : > { %v15320_v14 = vpop.eup %9531  ;;  %v5380_v15 = vmul.f32 %v9530_v50, %v15272_v13  ;;  %9537 = vrcp.f32 %v15305_v12  ;;  %v5126_v39 = vsub.f32 1.0, %v5125_v17  ;;  %vm5385_vm10 = vweird.f32 %v9530_v50 }
 0x4fc   : > { %v15338_v23 = vpop.eup %9533  ;;  %9539 = vpow2.f32 %v8504_v28  ;;  %v5660_v17 = vadd.f32 %v5628_v31, %v19068_v54  ;;  %vm5504_vm2 = vweird.f32 %v15307_v6  ;;  %vm15364_vm4 = vmor %vm5384_vm9, %vm5385_vm10  ;;  %vm15368_vm1 = vcmp.eq.f32.partialorder %v5508_v33, 8.507059e+37 }
 0x4fd   : > { %v5381_v27 = vsub.f32 1.0, %v5380_v15  ;;  %v5127_v63 = vmul.f32 %v15303_v35, %v5126_v39  ;;  %v19069_v15 = vand.u32 2147483648, %v15218_v56  ;;  %v5255_v54 = vand.u32 2147483648, %v15231_v59 }
 0x4fe   : > { %v4314_v4 = vpop.f32.mrf.mxu3  ;;  %v5680_v19 = vpack.c.bf16 %v5660_v17, %v5652_v40  ;;  %vm5250_vm8 = vweird.f32 %v15338_v23  ;;  %v5253_v31 = vand.u32 2147483647, %v15231_v59  ;;  %vm4727_vm10 = vweird.f32 %v14891_v5 }
 0x4ff   : > { %v4315_v52 = vadd.f32 %v4314_v4, %v14630_v55  ;;  %v5382_v25 = vmul.f32 %v9530_v50, %v5381_v27  ;;  %v5245_v55 = vmul.f32 %v15338_v23, %v15231_v59  ;;  %v5128_v4 = vadd.f32 %v15303_v35, %v5127_v63  ;;  %vm15388_vm0 = vmor %vm5249_vm5, %vm5250_vm8 }
 0x500   : > { %v9536_v51 = vpop.eup %9535  ;;  %v5136_v42 = vor.u32 1.1754944e-38, %v19069_v15  ;;  %v5511_v63 = vor.u32 1.1754944e-38, %v5510_v49  ;;  %5734 = vmatpush.bf16.msra.mxu0 %v5680_v19  ;;  %v19094_v59 = vsub.f32 1.0, %v15276_v16  ;;  %v15462_v16 = vadd.f32 %v15175_v38, %v14684_v60 }
 0x501   : > { %v8497_v58 = vmul.f32 -1.442695, %v4315_v52  ;;  %v5383_v28 = vadd.f32 %v9530_v50, %v5382_v25  ;;  %v5500_v39 = vmul.f32 %v9536_v51, %v15307_v6  ;;  %v15360_v52 = vpop.eup %9537  ;;  %v5132_v56 = vsel %vm15356_vm13, %v15303_v35, %v5128_v4  ;;  %v19083_v6 = vld [vmem:[#allocation75_spill] sm:$0xff] }
 0x502   : > { %19072 = vst [vmem:[#allocation77_spill] sm:$0xff] %v15360_v52  ;;  %v5246_v25 = vsub.f32 1.0, %v5245_v55  ;;  %v9540_v15 = vpop.eup %9539  ;;  %vm5505_vm14 = vweird.f32 %v9536_v51  ;;  %v5137_v49 = vsel %vm15331_vm11, %v5136_v42, %v5132_v56  ;;  %vm5254_vm11 = vcmp.eq.f32.partialorder %v5253_v31, 8.507059e+37  ;;  %v19090_v55 = vld [vmem:[#allocation7_spill] sm:$0xff] }
 0x503   : > { %v5387_v17 = vsel %vm15364_vm4, %v9530_v50, %v5383_v28  ;;  %v5501_v13 = vsub.f32 1.0, %v5500_v39  ;;  %9541 = vpow2.f32 %v8497_v58  ;;  %v19079_v58 = vld [vmem:[#allocation88_spill] sm:$0xff]  ;;  %v15396_v7 = vadd.f32 1.0, %v9540_v15  ;;  %vm5506_vm9 = vmor %vm5504_vm2, %vm5505_vm14  ;;  %19097 = vst [vmem:[#allocation41_spill] sm:$0xff] %v15462_v16 }
 0x504   : > { %v5392_v35 = vsel %vm15325_vm3, %v5391_v36, %v5387_v17  ;;  %v5247_v50 = vmul.f32 %v15338_v23, %v5246_v25  ;;  %vm4592_vm6 = vweird.f32 %v19079_v58  ;;  %v4596_v42 = vand.u32 2147483647, %v19079_v58 }
 0x505   : > { %v5502_v19 = vmul.f32 %v9536_v51, %v5501_v13  ;;  %v4598_v29 = vand.u32 2147483648, %v19079_v58  ;;  %19080 = vst [vmem:[#allocation52_spill] sm:$0xff] %v15396_v7  ;;  %v5256_v28 = vor.u32 1.1754944e-38, %v5255_v54  ;;  %vm15399_vm15 = vmor %vm4592_vm6, %vm4593_vm7  ;;  %v5621_v39 = vmul.f32 %v5392_v35, %v15093_v20 }
 0x506   : > { %v4316_v33 = vpop.f32.mrf.mxu3  ;;  %v5604_v56 = vmul.f32 %v5137_v49, %v15055_v47  ;;  %v4595_v17 = vsel %vm15399_vm15, %v19053_v45, %v15222_v24  ;;  %vm4728_vm3 = vweird.f32 %v14979_v22  ;;  %v15418_v15 = vmul.f32 %v15200_v3, %v19083_v6  ;;  %v19084_v49 = vld [vmem:[#allocation63_spill] sm:$0xff] }
 0x507   : > { %v4317_v4 = vadd.f32 %v4316_v33, %v14633_v11  ;;  %v5503_v36 = vadd.f32 %v9536_v51, %v5502_v19  ;;  %v5248_v11 = vadd.f32 %v15338_v23, %v5247_v50  ;;  %v4599_v25 = vor.u32 1.1754944e-38, %v4598_v29 }
 0x508   : > { %v4873_v47 = vmul.f32 %v15312_v9, %v15249_v62  ;;  %vm4597_vm12 = vcmp.eq.f32.partialorder %v4596_v42, 8.507059e+37  ;;  %9543 = vrcp.f32 %v15396_v7  ;;  %v4888_v3 = vmul.f32 %v15320_v14, %v15267_v44 }
 0x509   : > { %v8505_v27 = vmul.f32 -1.442695, %v4317_v4  ;;  %v5507_v54 = vsel %vm5506_vm9, %v9536_v51, %v5503_v36  ;;  %v5252_v13 = vsel %vm15388_vm0, %v15338_v23, %v5248_v11  ;;  %v9542_v20 = vpop.eup %9541  ;;  %v4600_v23 = vsel %vm4597_vm12, %v4599_v25, %v4595_v17  ;;  %v19089_v4 = vld [vmem:[#allocation30_spill] sm:$0xff] }
 0x50a   : > { %v5512_v33 = vsel %vm15368_vm1, %v5511_v63, %v5507_v54  ;;  %v5257_v45 = vsel %vm5254_vm11, %v5256_v28, %v5252_v13  ;;  %v15431_v35 = vmul.f32 %v4600_v23, %v19084_v49  ;;  %v4965_v40 = vand.u32 2147483647, %v15418_v15  ;;  %v19093_v28 = vld [vmem:[#allocation55_spill] sm:$0xff]  ;;  %vm15495_vm1 = vmor %vm4727_vm10, %vm4728_vm3 }
 0x50b   : > { %v5629_v24 = vmul.f32 %v5512_v33, %v15187_v48  ;;  %v5612_v51 = vmul.f32 %v5257_v45, %v15066_v21  ;;  %v19085_v63 = vand.u32 2147483647, %v14891_v5  ;;  %v19088_v48 = vld [vmem:[#allocation31_spill] sm:$0xff]  ;;  %9545 = vpow2.f32 %v8505_v27  ;;  %v19092_v21 = vld [vmem:[#allocation5_spill] sm:$0xff] }
 0x50c   : > { %v5653_v19 = vadd.f32 %v5621_v39, %v19088_v48  ;;  %v5636_v58 = vadd.f32 %v5604_v56, %v19090_v55  ;;  %v15443_v42 = vadd.f32 1.0, %v9542_v20  ;;  %v4973_v36 = vand.u32 2147483647, %v15431_v35 }
 0x50d   : > { %vm15436_vm5 = vcmp.eq.f32.partialorder %v19085_v63, 8.507059e+37  ;;  %v5661_v50 = vadd.f32 %v5629_v24, %v19089_v4  ;;  %v5644_v29 = vadd.f32 %v5612_v51, %v19092_v21  ;;  %v8523_v11 = vmul.f32 -1.442695, %v4965_v40  ;;  %v19106_v21 = vld [vmem:[#allocation27_spill] sm:$0xff]  ;;  %v19133_v40 = vld [vmem:[#allocation10_spill] sm:$0xff] }
 0x50e   : > { %19091 = vst [vmem:[#allocation28_spill] sm:$0xff] %v15443_v42  ;;  %vm4487_vm2 = vweird.f32 %v19093_v28  ;;  %v4755_v17 = vmul.f32 %v15241_v18, %v19094_v59  ;;  %v19095_v39 = vsub.f32 1.0, %v15280_v0  ;;  %v4898_v27 = vand.u32 2147483648, %v15267_v44  ;;  %v15457_v20 = vpop.eup %9543 }
 0x50f   : > { %v5681_v56 = vpack.c.bf16 %v5661_v50, %v5653_v19  ;;  %v4543_v13 = vmul.f32 %v15360_v52, %v15305_v12  ;;  %v5672_v25 = vpack.c.bf16 %v5644_v29, %v5636_v58  ;;  %9547 = vpow2.f32 %v8523_v11  ;;  %19096 = vst [vmem:[#allocation29_spill] sm:$0xff] %v15457_v20  ;;  %v19105_v58 = vld [vmem:[#allocation39_spill] sm:$0xff] }
 0x510   : > { %v4770_v54 = vmul.f32 %v15247_v61, %v19095_v39  ;;  %v8531_v6 = vmul.f32 -1.442695, %v4973_v36  ;;  %vm4848_vm13 = vweird.f32 %v15057_v26  ;;  %v19098_v0 = vand.u32 2147483648, %v15177_v57  ;;  %v4319_v39 = vpop.f32.mrf.mxu3 }
 0x511   : > { %v19099_v24 = vand.u32 2147483648, %v15184_v8  ;;  %v4874_v23 = vsub.f32 1.0, %v4873_v47  ;;  %5753 = vmatpush.bf16.msra.mxu1 %v5681_v56  ;;  %v4889_v49 = vsub.f32 1.0, %v4888_v3  ;;  %9549 = vrcp.f32 %v15443_v42  ;;  %5735 = vmatpush.bf16.msra.mxu0 %v5672_v25  ;;  %v9546_v60 = vpop.eup %9545  ;;  %v15489_v3 = vld [vmem:[%s17903_s5] sm:$0xff] }
 0x512   : > { %v15466_v33 = vor.u32 1.1754944e-38, %v19098_v0  ;;  %vm4847_vm4 = vweird.f32 %v14952_v37  ;;  %v15478_v38 = vadd.f32 %v15233_v34, %v14660_v2  ;;  %v19101_v63 = vand.u32 2147483648, %v15249_v62 }
 0x513   : > { %v15470_v45 = vor.u32 1.1754944e-38, %v19099_v24  ;;  %v15484_v47 = vor.u32 1.1754944e-38, %v4898_v27  ;;  %9551 = vpow2.f32 %v8531_v6  ;;  %v15500_v2 = vadd.f32 %v15241_v18, %v4755_v17  ;;  %v4290_v17 = vpop.f32.mrf.mxu2  ;;  %vm4849_vm9 = vmor %vm4847_vm4, %vm4848_vm13 }
 0x514   : > { %19100 = vst [vmem:[#allocation88_spill] sm:$0xff] %v15478_v38  ;;  %v15482_v48 = vor.u32 1.1754944e-38, %v19101_v63  ;;  %v15503_v34 = vadd.f32 %v15247_v61, %v4770_v54  ;;  %v4544_v4 = vsub.f32 1.0, %v4543_v13  ;;  %v4663_v50 = vmul.f32 %v15457_v20, %v15396_v7  ;;  %v19108_v13 = vld [vmem:[#allocation81_spill] sm:$0xff]  ;;  %v19139_v38 = vld [vmem:[#allocation48_spill] sm:$0xff] }
 0x515   : > { %v15508_v55 = vmul.f32 %v15312_v9, %v4874_v23  ;;  %vm19104_vm8 = vcmask 261120   ;;  %v4730_v5 = vsel %vm15495_vm1, %v14979_v22, %v15145_v30  ;;  %v4486_v29 = vadd.f32 %v19106_v21, %v19105_v58  ;;  %v9548_v36 = vpop.eup %9547 }
 0x516   : > { %8562 = vmatmul.msk.bf16.vlgmr.msra.gmra.mxu0 %vm19104_vm8, %v15489_v3  ;;  %vm4488_vm14 = vweird.f32 %v19106_v21  ;;  %v15520_v11 = vmul.f32 %v15320_v14, %v4889_v49  ;;  %v15522_v59 = vadd.f32 1.0, %v9546_v60  ;;  %v4735_v54 = vsel %vm15436_vm5, %v14999_v43, %v4730_v5 }
 0x517   : > { %v4491_v27 = vand.u32 2147483647, %v19093_v28  ;;  %vm4743_vm0 = vweird.f32 %v14997_v46  ;;  %v15529_v22 = vadd.f32 1.0, %v9548_v36  ;;  %v4291_v30 = vadd.f32 %v4290_v17, %v14622_v1  ;;  %v15536_v6 = vpop.eup %9549  ;;  %vm15550_vm6 = vmor %vm4487_vm2, %vm4488_vm14  ;;  %v19118_v17 = vld [vmem:[#allocation37_spill] sm:$0xff] }
 0x518   : > { %19107 = vst [vmem:[#allocation75_spill] sm:$0xff] %v15522_v59  ;;  %v4320_v56 = vadd.f32 %v4319_v39, %v14622_v1  ;;  %v15534_v25 = vmul.f32 %v4735_v54, %v19108_v13  ;;  %v15540_v0 = vadd.f32 %v15291_v41, %v14720_v53  ;;  %v15543_v43 = vmul.f32 %v15360_v52, %v4544_v4  ;;  %v19119_v54 = vld [vmem:[#allocation93_spill] sm:$0xff] }
 0x519   : > { %19109 = vst [vmem:[#allocation63_spill] sm:$0xff] %v15536_v6  ;;  %v4664_v24 = vsub.f32 1.0, %v4663_v50  ;;  %v9552_v23 = vpop.eup %9551  ;;  %vm4742_vm7 = vweird.f32 %v14894_v10  ;;  %9553 = vrcp.f32 %v15529_v22  ;;  %v4490_v41 = vsel %vm15550_vm6, %v19106_v21, %v4486_v29 }
 0x51a   : > { %19110 = vst [vmem:[#allocation31_spill] sm:$0xff] %v15540_v0  ;;  %v19114_v49 = vand.u32 2147483648, %v19093_v28  ;;  %v15562_v63 = vadd.f32 1.0, %v9552_v23  ;;  %v8512_v19 = vmul.f32 -1.442695, %v4291_v30  ;;  %vm4492_vm15 = vcmp.eq.f32.partialorder %v4491_v27, 8.507059e+37  ;;  %v4321_v30 = vpop.f32.mrf.mxu3  ;;  %vm15630_vm4 = vmor %vm4742_vm7, %vm4743_vm0 }
 0x51b   : > { %19111 = vst [vmem:[#allocation30_spill] sm:$0xff] %v15543_v43  ;;  %v8513_v4 = vmul.f32 -1.442695, %v4320_v56  ;;  %v15566_v50 = vmul.f32 %v15536_v6, %v15443_v42  ;;  %9555 = vrcp.f32 %v15522_v59  ;;  %v4846_v5 = vadd.f32 %v15057_v26, %v15154_v32  ;;  %v19117_v32 = vld [vmem:[#allocation62_spill] sm:$0xff]  ;;  %v4292_v27 = vpop.f32.mrf.mxu2  ;;  %v19135_v23 = vld [vmem:[#allocation72_spill] sm:$0xff] }
 0x51c   : > { %v4494_v60 = vor.u32 1.1754944e-38, %v19114_v49  ;;  %v4982_v58 = vand.u32 2147483647, %v15534_v25  ;;  %v15577_v28 = vmul.f32 %v15457_v20, %v4664_v24  ;;  %9557 = vrcp.f32 %v15562_v63  ;;  %v19120_v56 = vld [vmem:[#allocation90_spill] sm:$0xff] }
 0x51d   : > { %v19116_v21 = vand.u32 2147483647, %v14952_v37  ;;  %9559 = vpow2.f32 %v8512_v19  ;;  %v4850_v36 = vsel %vm4849_vm9, %v15057_v26, %v4846_v5  ;;  %v15585_v39 = vadd.f32 %v19118_v17, %v19117_v32  ;;  %v19121_v37 = vld [vmem:[#allocation23_spill] sm:$0xff] }
 0x51e   : > { %19115 = vst [vmem:[#allocation7_spill] sm:$0xff] %v15577_v28  ;;  %v4495_v29 = vsel %vm4492_vm15, %v4494_v60, %v4490_v41  ;;  %vm4608_vm11 = vweird.f32 %v19118_v17  ;;  %vm4863_vm12 = vweird.f32 %v19119_v54  ;;  %9561 = vpow2.f32 %v8513_v4  ;;  %v19122_v26 = vld [vmem:[#allocation59_spill] sm:$0xff]  ;;  %v19123_v60 = vld [vmem:[#allocation26_spill] sm:$0xff] }
 0x51f   : > { %vm4852_vm3 = vcmp.eq.f32.partialorder %v19116_v21, 8.507059e+37  ;;  %v8540_v24 = vmul.f32 -1.442695, %v4982_v58  ;;  %vm4607_vm10 = vweird.f32 %v19121_v37  ;;  %v9554_v1 = vpop.eup %9553  ;;  %v4293_v41 = vadd.f32 %v4292_v27, %v19122_v26  ;;  %v19124_v5 = vld [vmem:[#allocation35_spill] sm:$0xff]  ;;  %v19134_v21 = vld [vmem:[#allocation32_spill] sm:$0xff] }
 0x520   : > { %v4855_v13 = vsel %vm4852_vm3, %v19120_v56, %v4850_v36  ;;  %v4322_v49 = vadd.f32 %v4321_v30, %v19122_v26  ;;  %vm4862_vm5 = vweird.f32 %v19124_v5  ;;  %v5140_v4 = vmul.f32 %v9554_v1, %v15529_v22  ;;  %vm15601_vm2 = vmor %vm4607_vm10, %vm4608_vm11 }
 0x521   : > { %v15595_v19 = vmul.f32 %v4855_v13, %v19123_v60  ;;  %9563 = vpow2.f32 %v8540_v24  ;;  %v4613_v36 = vand.u32 2147483648, %v19121_v37  ;;  %v15607_v32 = vpop.eup %9555  ;;  %v19128_v27 = vand.u32 2147483647, %v14894_v10  ;;  %v15619_v24 = vld [vmem:[%s17903_s5 + $0x8] sm:$0xff]  ;;  %v19136_v10 = vld [vmem:[#allocation86_spill] sm:$0xff]  ;;  %vm15667_vm9 = vmor %vm4862_vm5, %vm4863_vm12 }
 0x522   : > { %19127 = vst [vmem:[#allocation5_spill] sm:$0xff] %v15607_v32  ;;  %v5150_v56 = vand.u32 2147483648, %v15529_v22  ;;  %v8520_v13 = vmul.f32 -1.442695, %v4293_v41  ;;  %v9558_v53 = vpop.eup %9557  ;;  %v5141_v41 = vsub.f32 1.0, %v5140_v4  ;;  %v15635_v51 = vmul.f32 %v4495_v29, %v19133_v40 }
 0x523   : > { %vm15611_vm13 = vcmp.eq.f32.partialorder %v19128_v27, 8.507059e+37  ;;  %v4990_v26 = vand.u32 2147483647, %v15595_v19  ;;  %v8521_v31 = vmul.f32 -1.442695, %v4322_v49  ;;  %v15639_v16 = vadd.f32 %v19135_v23, %v19134_v21  ;;  %v9560_v7 = vpop.eup %9559 }
 0x524   : > { %vm5144_vm1 = vweird.f32 %v15529_v22  ;;  %v5260_v60 = vmul.f32 %v9558_v53, %v15562_v63  ;;  %v4745_v28 = vsel %vm15630_vm4, %v14997_v46, %v19136_v10  ;;  %v9562_v4 = vpop.eup %9561  ;;  %v5142_v49 = vmul.f32 %v9554_v1, %v5141_v41 }
 0x525   : > { %v8548_v20 = vmul.f32 -1.442695, %v4990_v26  ;;  %vm5145_vm8 = vweird.f32 %v9554_v1  ;;  %v5148_v40 = vand.u32 2147483647, %v15529_v22  ;;  %v15648_v29 = vadd.f32 1.0, %v9560_v7 }
 0x526   : > { %v5151_v21 = vor.u32 1.1754944e-38, %v5150_v56  ;;  %v5261_v42 = vsub.f32 1.0, %v5260_v60  ;;  %v5268_v0 = vand.u32 2147483647, %v15562_v63  ;;  %9565 = vpow2.f32 %v8520_v13  ;;  %vm5146_vm6 = vmor %vm5144_vm1, %vm5145_vm8  ;;  %v19141_v56 = vld [vmem:[#allocation49_spill] sm:$0xff] }
 0x527   : > { %19137 = vst [vmem:[#allocation55_spill] sm:$0xff] %v15648_v29  ;;  %vm19138_vm14 = vcmask 261120   ;;  %v9564_v26 = vpop.eup %9563  ;;  %vm4502_vm0 = vweird.f32 %v19139_v38  ;;  %v5143_v27 = vadd.f32 %v9554_v1, %v5142_v49  ;;  %v5270_v46 = vand.u32 2147483648, %v15562_v63 }
 0x528   : > { %8563 = vmatmul.msk.bf16.gmra.mxu0 %vm19138_vm14, %v15619_v24  ;;  %v15655_v41 = vadd.f32 1.0, %v9562_v4  ;;  %9567 = vpow2.f32 %v8521_v31  ;;  %v5262_v7 = vmul.f32 %v9558_v53, %v5261_v42  ;;  %vm5265_vm7 = vweird.f32 %v9558_v53  ;;  %v19144_v4 = vld [vmem:[#allocation43_spill] sm:$0xff]  ;;  %v19150_v31 = vld [vmem:[#allocation60_spill] sm:$0xff] }
 0x529   : > { %9569 = vpow2.f32 %v8548_v20  ;;  %v4861_v13 = vadd.f32 %v19119_v54, %v19141_v56  ;;  %v5147_v60 = vsel %vm5146_vm6, %v9554_v1, %v5143_v27  ;;  %vm5149_vm15 = vcmp.eq.f32.partialorder %v5148_v40, 8.507059e+37 }
 0x52a   : > { %19140 = vst [vmem:[#allocation39_spill] sm:$0xff] %v15655_v41  ;;  %9571 = vrcp.f32 %v15648_v29  ;;  %v4966_v10 = vand.u32 2147483647, %v15635_v51  ;;  %v5152_v42 = vsel %vm5149_vm15, %v5151_v21, %v5147_v60  ;;  %v5263_v22 = vadd.f32 %v9558_v53, %v5262_v7 }
 0x52b   : > { %vm5264_vm3 = vweird.f32 %v15562_v63  ;;  %v15672_v20 = vadd.f32 1.0, %v9564_v26  ;;  %vm5269_vm10 = vcmp.eq.f32.partialorder %v5268_v0, 8.507059e+37  ;;  %v5271_v1 = vor.u32 1.1754944e-38, %v5270_v46 }
 0x52c   : > { %vm5266_vm11 = vmor %vm5264_vm3, %vm5265_vm7  ;;  %9573 = vrcp.f32 %v15655_v41  ;;  %v4750_v49 = vsel %vm15611_vm13, %v19144_v4, %v4745_v28  ;;  %v9566_v40 = vpop.eup %9565  ;;  %v5605_v56 = vmul.f32 %v5152_v42, %v15418_v15  ;;  %v4865_v63 = vsel %vm15667_vm9, %v19119_v54, %v4861_v13  ;;  %v19149_v13 = vld [vmem:[#allocation92_spill] sm:$0xff] }
 0x52d   : > { %v5267_v27 = vsel %vm5266_vm11, %v9558_v53, %v5263_v22  ;;  %9575 = vrcp.f32 %v15672_v20  ;;  %v4614_v0 = vor.u32 1.1754944e-38, %v4613_v36  ;;  %v8524_v46 = vmul.f32 -1.442695, %v4966_v10 }
 0x52e   : > { %v9568_v21 = vpop.eup %9567  ;;  %v5272_v26 = vsel %vm5269_vm10, %v5271_v1, %v5267_v27  ;;  %vm4503_vm12 = vweird.f32 %v19135_v23  ;;  %v19145_v30 = vsub.f32 1.0, %v15566_v50  ;;  %v19147_v53 = vand.u32 2147483647, %v19124_v5  ;;  %v19152_v5 = vld [vmem:[#allocation47_spill] sm:$0xff]  ;;  %v19153_v1 = vld [vmem:[#allocation6_spill] sm:$0xff] }
 0x52f   : > { %v9570_v7 = vpop.eup %9569  ;;  %v5613_v15 = vmul.f32 %v5272_v26, %v15431_v35  ;;  %v19148_v60 = vand.u32 2147483647, %v19121_v37  ;;  %v4793_v36 = vand.u32 2147483648, %v15648_v29  ;;  %v15699_v42 = vmul.f32 %v4750_v49, %v19150_v31  ;;  %vm15715_vm4 = vmor %vm4502_vm0, %vm4503_vm12  ;;  %v19172_v49 = vld [vmem:[#allocation25_spill] sm:$0xff] }
 0x530   : > { %v15687_v28 = vmul.f32 %v15536_v6, %v19145_v30  ;;  %vm4867_vm5 = vcmp.eq.f32.partialorder %v19147_v53, 8.507059e+37  ;;  %v15694_v54 = vpop.eup %9571  ;;  %v19151_v35 = vsel %vm15601_vm2, %v19118_v17, %v15585_v39  ;;  %v5637_v22 = vadd.f32 %v5605_v56, %v19152_v5  ;;  %v19158_v30 = vld [vmem:[#allocation8_spill] sm:$0xff]  ;;  %vm19162_vm2 = vmmov %vm19138_vm14 }
 0x531   : > { %vm4612_vm13 = vcmp.eq.f32.partialorder %v19148_v60, 8.507059e+37  ;;  %v4870_v10 = vsel %vm4867_vm5, %v19149_v13, %v4865_v63  ;;  %v5645_v37 = vadd.f32 %v5613_v15, %v19153_v1  ;;  %v4808_v4 = vand.u32 2147483648, %v15655_v41 }
 0x532   : > { %19146 = vst [vmem:[#allocation27_spill] sm:$0xff] %v15687_v28  ;;  %v4615_v50 = vsel %vm4612_vm13, %v4614_v0, %v19151_v35  ;;  %v15709_v27 = vadd.f32 1.0, %v9566_v40  ;;  %v15719_v58 = vpop.eup %9573  ;;  %v15723_v17 = vmul.f32 %v15607_v32, %v15522_v59  ;;  %v15725_v39 = vadd.f32 1.0, %v9570_v7  ;;  %v19170_v32 = vld [vmem:[#allocation45_spill] sm:$0xff] }
 0x533   : > { %9577 = vpow2.f32 %v8524_v46  ;;  %v9576_v56 = vpop.eup %9575  ;;  %v5673_v63 = vpack.c.bf16 %v5645_v37, %v5637_v22  ;;  %v4783_v26 = vmul.f32 %v15694_v54, %v15648_v29  ;;  %v15733_v0 = vadd.f32 1.0, %v9568_v21  ;;  %v19159_v46 = vld [vmem:[#allocation34_spill] sm:$0xff]  ;;  %v19189_v29 = vld [vmem:[#allocation67_spill] sm:$0xff] }
 0x534   : > { %19154 = vst [vmem:[#allocation81_spill] sm:$0xff] %v15709_v27  ;;  %v15736_v15 = vmul.f32 %v4615_v50, %v19158_v30  ;;  %v5395_v7 = vmul.f32 %v9576_v56, %v15672_v20  ;;  %v15741_v60 = vmul.f32 %v4870_v10, %v19159_v46  ;;  %v4983_v13 = vand.u32 2147483647, %v15699_v42 }
 0x535   : > { %19157 = vst [vmem:[#allocation62_spill] sm:$0xff] %v15723_v17  ;;  %5754 = vmatpush.bf16.msra.mxu1 %v5673_v63  ;;  %v15744_v31 = vor.u32 1.1754944e-38, %v4793_v36  ;;  %v15747_v5 = vor.u32 1.1754944e-38, %v4808_v4  ;;  %9579 = vrcp.f32 %v15709_v27  ;;  %v4798_v21 = vmul.f32 %v15719_v58, %v15655_v41  ;;  %v19171_v17 = vld [vmem:[#allocation44_spill] sm:$0xff] }
 0x536   : > { %v4913_v50 = vand.u32 2147483648, %v15709_v27  ;;  %v5396_v22 = vsub.f32 1.0, %v5395_v7  ;;  %9581 = vrcp.f32 %v15725_v39  ;;  %v4784_v10 = vsub.f32 1.0, %v4783_v26 }
 0x537   : > { %19160 = vst [vmem:[#allocation37_spill] sm:$0xff] %v15744_v31  ;;  %9583 = vrcp.f32 %v15733_v0  ;;  %v5405_v36 = vand.u32 2147483648, %v15672_v20  ;;  %vm5400_vm1 = vweird.f32 %v9576_v56  ;;  %v4991_v30 = vand.u32 2147483647, %v15741_v60 }
 0x538   : > { %19161 = vst [vmem:[#allocation93_spill] sm:$0xff] %v15747_v5  ;;  %8564 = vmatmul.msk.bf16.vlgmr.msra.gmra.mxu1 %vm19162_vm2, %v15489_v3  ;;  %v5397_v63 = vmul.f32 %v9576_v56, %v5396_v22  ;;  %vm5399_vm8 = vweird.f32 %v15672_v20  ;;  %v5403_v26 = vand.u32 2147483647, %v15672_v20  ;;  %v8541_v7 = vmul.f32 -1.442695, %v4983_v13 }
 0x539   : > { %v9578_v37 = vpop.eup %9577  ;;  %v4974_v46 = vand.u32 2147483647, %v15736_v15  ;;  %v4799_v35 = vsub.f32 1.0, %v4798_v21  ;;  %v15764_v1 = vor.u32 1.1754944e-38, %v4913_v50  ;;  %v8549_v40 = vmul.f32 -1.442695, %v4991_v30  ;;  %vm15768_vm14 = vmor %vm5399_vm8, %vm5400_vm1 }
 0x53a   : > { %v5398_v53 = vadd.f32 %v9576_v56, %v5397_v63  ;;  %v5406_v22 = vor.u32 1.1754944e-38, %v5405_v36  ;;  %9585 = vpow2.f32 %v8541_v7  ;;  %v15772_v28 = vadd.f32 1.0, %v9578_v37 }
 0x53b   : > { %19163 = vst [vmem:[#allocation90_spill] sm:$0xff] %v15764_v1  ;;  %v15766_v59 = vpop.eup %9579  ;;  %v8532_v6 = vmul.f32 -1.442695, %v4974_v46  ;;  %v5523_v21 = vand.u32 2147483647, %v15725_v39  ;;  %9587 = vpow2.f32 %v8549_v40  ;;  %vm5404_vm0 = vcmp.eq.f32.partialorder %v5403_v26, 8.507059e+37 }
 0x53c   : > { %v9582_v20 = vpop.eup %9581  ;;  %v5402_v13 = vsel %vm15768_vm14, %v9576_v56, %v5398_v53  ;;  %v4506_v50 = vand.u32 2147483647, %v19139_v38  ;;  %v15783_v37 = vmul.f32 %v15694_v54, %v4784_v10  ;;  %v15786_v7 = vmul.f32 %v15719_v58, %v4799_v35 }
 0x53d   : > { %v15778_v63 = vpop.eup %9583  ;;  %v5515_v36 = vmul.f32 %v9582_v20, %v15725_v39  ;;  %9589 = vpow2.f32 %v8532_v6  ;;  %v5407_v56 = vsel %vm5404_vm0, %v5406_v22, %v5402_v13  ;;  %v15791_v40 = vmul.f32 %v15766_v59, %v15709_v27 }
 0x53e   : > { %9591 = vrcp.f32 %v15772_v28  ;;  %v5525_v4 = vand.u32 2147483648, %v15725_v39  ;;  %v19166_v26 = vand.u32 2147483648, %v19139_v38  ;;  %v15798_v6 = vmul.f32 %v15778_v63, %v15733_v0 }
 0x53f   : > { %v5516_v53 = vsub.f32 1.0, %v5515_v36  ;;  %vm5519_vm6 = vweird.f32 %v15725_v39  ;;  %vm15801_vm7 = vcmp.eq.f32.partialorder %v5523_v21, 8.507059e+37  ;;  %vm4507_vm15 = vcmp.eq.f32.partialorder %v4506_v50, 8.507059e+37 }
 0x540   : > { %v4509_v46 = vor.u32 1.1754944e-38, %v19166_v26  ;;  %v9586_v10 = vpop.eup %9585  ;;  %vm5520_vm9 = vweird.f32 %v9582_v20  ;;  %v5622_v13 = vmul.f32 %v5407_v56, %v15534_v25  ;;  %v19169_v38 = vsel %vm15715_vm4, %v19135_v23, %v15639_v16  ;;  %v19173_v23 = vld [vmem:[#allocation42_spill] sm:$0xff]  ;;  %vm19177_vm4 = vmmov %vm19162_vm2 }
 0x541   : > { %v5517_v22 = vmul.f32 %v9582_v20, %v5516_v53  ;;  %v9588_v26 = vpop.eup %9587  ;;  %v15811_v30 = vadd.f32 1.0, %v9586_v10  ;;  %v5165_v21 = vand.u32 2147483648, %v15772_v28  ;;  %v4621_v5 = vadd.f32 %v19171_v17, %v19170_v32  ;;  %vm5521_vm11 = vmor %vm5519_vm6, %vm5520_vm9 }
 0x542   : > { %v4510_v36 = vsel %vm4507_vm15, %v4509_v46, %v19169_v38  ;;  %vm4623_vm3 = vweird.f32 %v19171_v17  ;;  %v5526_v1 = vor.u32 1.1754944e-38, %v5525_v4  ;;  %v15817_v25 = vadd.f32 1.0, %v9588_v26 }
 0x543   : > { %v9590_v50 = vpop.eup %9589  ;;  %v5518_v53 = vadd.f32 %v9582_v20, %v5517_v22  ;;  %v4626_v56 = vand.u32 2147483647, %v19172_v49  ;;  %9593 = vrcp.f32 %v15811_v30  ;;  %vm4622_vm10 = vweird.f32 %v19172_v49  ;;  %v19176_v22 = vld [vmem:[#allocation38_spill] sm:$0xff] }
 0x544   : > { %v15820_v41 = vpop.eup %9591  ;;  %v4628_v16 = vand.u32 2147483648, %v19172_v49  ;;  %v15828_v32 = vmul.f32 %v4510_v36, %v19173_v23  ;;  %9595 = vrcp.f32 %v15817_v25  ;;  %vm5159_vm12 = vweird.f32 %v15772_v28  ;;  %vm15835_vm5 = vmor %vm4622_vm10, %vm4623_vm3  ;;  %v19178_v23 = vld [vmem:[#allocation73_spill] sm:$0xff] }
 0x545   : > { %v5522_v46 = vsel %vm5521_vm11, %v9582_v20, %v5518_v53  ;;  %v5163_v4 = vand.u32 2147483647, %v15772_v28  ;;  %v5654_v38 = vadd.f32 %v5622_v13, %v19176_v22  ;;  %v5166_v36 = vor.u32 1.1754944e-38, %v5165_v21  ;;  %v19181_v22 = vld [vmem:[#allocation13_spill] sm:$0xff] }
 0x546   : > { %v5527_v10 = vsel %vm15801_vm7, %v5526_v1, %v5522_v46  ;;  %v4625_v20 = vsel %vm15835_vm5, %v19171_v17, %v4621_v5  ;;  %v15846_v53 = vadd.f32 1.0, %v9590_v50  ;;  %v5155_v49 = vmul.f32 %v15820_v41, %v15772_v28 }
 0x547   : > { %v5630_v26 = vmul.f32 %v5527_v10, %v15595_v19  ;;  %vm4627_vm13 = vcmp.eq.f32.partialorder %v4626_v56, 8.507059e+37  ;;  %v5418_v1 = vand.u32 2147483647, %v15811_v30  ;;  %v5420_v35 = vand.u32 2147483648, %v15811_v30 }
 0x548   : > { %8565 = vmatmul.msk.bf16.gmra.mxu1 %vm19177_vm4, %v15619_v24  ;;  %v4629_v13 = vor.u32 1.1754944e-38, %v4628_v16  ;;  %v4967_v21 = vand.u32 2147483647, %v15828_v32  ;;  %vm5414_vm2 = vweird.f32 %v15811_v30  ;;  %v5156_v19 = vsub.f32 1.0, %v5155_v49 }
 0x549   : > { %v5662_v17 = vadd.f32 %v5630_v26, %v19178_v23  ;;  %vm15857_vm1 = vcmp.eq.f32.partialorder %v5163_v4, 8.507059e+37  ;;  %9597 = vrcp.f32 %v15846_v53  ;;  %v9594_v50 = vpop.eup %9593  ;;  %v5538_v56 = vand.u32 2147483647, %v15817_v25 }
 0x54a   : > { %v5540_v46 = vand.u32 2147483648, %v15817_v25  ;;  %v4630_v39 = vsel %vm4627_vm13, %v4629_v13, %v4625_v20  ;;  %v8525_v16 = vmul.f32 -1.442695, %v4967_v21  ;;  %v9596_v10 = vpop.eup %9595  ;;  %vm4517_vm8 = vweird.f32 %v19181_v22 }
 0x54b   : > { %v5682_v26 = vpack.c.bf16 %v5662_v17, %v5654_v38  ;;  %v5410_v23 = vmul.f32 %v9594_v50, %v15811_v30  ;;  %v5157_v4 = vmul.f32 %v15820_v41, %v5156_v19  ;;  %vm5160_vm14 = vweird.f32 %v15820_v41  ;;  %v19184_v38 = vld [vmem:[#allocation95_spill] sm:$0xff] }
 0x54c   : > { %vm15868_vm0 = vcmp.eq.f32.partialorder %v5418_v1, 8.507059e+37  ;;  %v5421_v27 = vor.u32 1.1754944e-38, %v5420_v35  ;;  %v5530_v31 = vmul.f32 %v9596_v10, %v15817_v25  ;;  %vm5534_vm6 = vweird.f32 %v15817_v25  ;;  %vm15884_vm15 = vmor %vm5159_vm12, %vm5160_vm14 }
 0x54d   : > { %5772 = vmatpush.bf16.msra.mxu2 %v5682_v26  ;;  %v5411_v20 = vsub.f32 1.0, %v5410_v23  ;;  %v5158_v13 = vadd.f32 %v15820_v41, %v5157_v4  ;;  %v15876_v21 = vmul.f32 %v4630_v39, %v19184_v38  ;;  %9599 = vpow2.f32 %v8525_v16 }
 0x54e   : > { %v5531_v17 = vsub.f32 1.0, %v5530_v31  ;;  %vm15878_vm7 = vcmp.eq.f32.partialorder %v5538_v56, 8.507059e+37  ;;  %v5541_v1 = vor.u32 1.1754944e-38, %v5540_v46  ;;  %vm5279_vm9 = vweird.f32 %v15846_v53 }
 0x54f   : > { %v9598_v26 = vpop.eup %9597  ;;  %v5412_v23 = vmul.f32 %v9594_v50, %v5411_v20  ;;  %vm5415_vm3 = vweird.f32 %v9594_v50  ;;  %v5162_v31 = vsel %vm15884_vm15, %v15820_v41, %v5158_v13  ;;  %v4975_v56 = vand.u32 2147483647, %v15876_v21 }
 0x550   : > { %v5532_v39 = vmul.f32 %v9596_v10, %v5531_v17  ;;  %vm5535_vm11 = vweird.f32 %v9596_v10  ;;  %v5275_v46 = vmul.f32 %v9598_v26, %v15846_v53  ;;  %v5283_v28 = vand.u32 2147483647, %v15846_v53  ;;  %vm5416_vm12 = vmor %vm5414_vm2, %vm5415_vm3 }
 0x551   : > { %v5413_v16 = vadd.f32 %v9594_v50, %v5412_v23  ;;  %v5285_v4 = vand.u32 2147483648, %v15846_v53  ;;  %v8533_v38 = vmul.f32 -1.442695, %v4975_v56  ;;  %vm4518_vm10 = vweird.f32 %v19189_v29  ;;  %vm5536_vm5 = vmor %vm5534_vm6, %vm5535_vm11  ;;  %v19190_v23 = vld [vmem:[#allocation16_spill] sm:$0xff] }
 0x552   : > { %v5533_v20 = vadd.f32 %v9596_v10, %v5532_v39  ;;  %v5167_v41 = vsel %vm15857_vm1, %v5166_v36, %v5162_v31  ;;  %v5276_v13 = vsub.f32 1.0, %v5275_v46  ;;  %v4521_v17 = vand.u32 2147483647, %v19181_v22  ;;  %vm4519_vm4 = vmor %vm4517_vm8, %vm4518_vm10  ;;  %v19194_v46 = vld [vmem:[#allocation64_spill] sm:$0xff] }
 0x553   : > { %v9600_v35 = vpop.eup %9599  ;;  %v5417_v52 = vsel %vm5416_vm12, %v9594_v50, %v5413_v16  ;;  %vm5280_vm13 = vweird.f32 %v9598_v26  ;;  %9601 = vpow2.f32 %v8533_v38  ;;  %v4516_v56 = vadd.f32 %v19189_v29, %v19190_v23 }
 0x554   : > { %v5422_v30 = vsel %vm15868_vm0, %v5421_v27, %v5417_v52  ;;  %v5537_v39 = vsel %vm5536_vm5, %v9596_v10, %v5533_v20  ;;  %v5277_v43 = vmul.f32 %v9598_v26, %v5276_v13  ;;  %v15908_v5 = vadd.f32 1.0, %v9600_v35  ;;  %vm5281_vm8 = vmor %vm5279_vm9, %vm5280_vm13  ;;  %v19195_v20 = vld [vmem:[#allocation36_spill] sm:$0xff] }
 0x555   : > { %v5542_v25 = vsel %vm15878_vm7, %v5541_v1, %v5537_v39  ;;  %v5623_v36 = vmul.f32 %v5422_v30, %v15699_v42  ;;  %v4520_v50 = vsel %vm4519_vm4, %v19189_v29, %v4516_v56  ;;  %v19191_v31 = vand.u32 2147483648, %v19181_v22  ;;  %v19192_v22 = vld [vmem:[#allocation46_spill] sm:$0xff] }
 0x556   : > { %vm4758_vm2 = vweird.f32 %v15241_v18  ;;  %v5631_v52 = vmul.f32 %v5542_v25, %v15741_v60  ;;  %v5278_v27 = vadd.f32 %v9598_v26, %v5277_v43  ;;  %9603 = vrcp.f32 %v15908_v5  ;;  %v19193_v60 = vld [vmem:[#allocation83_spill] sm:$0xff]  ;;  %v19199_v30 = vld [vmem:[#allocation78_spill] sm:$0xff] }
 0x557   : > { %v4524_v49 = vor.u32 1.1754944e-38, %v19191_v31  ;;  %vm4522_vm1 = vcmp.eq.f32.partialorder %v4521_v17, 8.507059e+37  ;;  %vm5284_vm14 = vcmp.eq.f32.partialorder %v5283_v28, 8.507059e+37  ;;  %v5286_v10 = vor.u32 1.1754944e-38, %v5285_v4  ;;  %v19196_v28 = vld [vmem:[#allocation70_spill] sm:$0xff] }
 0x558   : > { %v5606_v42 = vmul.f32 %v5167_v41, %v15635_v51  ;;  %vm4757_vm0 = vweird.f32 %v15177_v57  ;;  %vm4773_vm6 = vweird.f32 %v15247_v61  ;;  %v5655_v19 = vadd.f32 %v5623_v36, %v19192_v22  ;;  %v19197_v4 = vld [vmem:[#allocation66_spill] sm:$0xff] }
 0x559   : > { %v4525_v29 = vsel %vm4522_vm1, %v4524_v49, %v4520_v50  ;;  %v5663_v43 = vadd.f32 %v5631_v52, %v19193_v60  ;;  %v5282_v1 = vsel %vm5281_vm8, %v9598_v26, %v5278_v27  ;;  %v4643_v16 = vand.u32 2147483648, %v19194_v46  ;;  %v9602_v38 = vpop.eup %9601  ;;  %v19198_v26 = vld [vmem:[#allocation74_spill] sm:$0xff]  ;;  %v19200_v50 = vld [vmem:[#allocation85_spill] sm:$0xff]  ;;  %v19208_v60 = vld [vmem:[#allocation79_spill] sm:$0xff] }
 0x55a   : > { %vm4532_vm7 = vweird.f32 %v19195_v20  ;;  %v5287_v53 = vsel %vm5284_vm14, %v5286_v10, %v5282_v1  ;;  %vm4638_vm15 = vweird.f32 %v19196_v28  ;;  %v4641_v51 = vand.u32 2147483647, %v19194_v46  ;;  %vm15992_vm8 = vmor %vm4757_vm0, %vm4758_vm2  ;;  %v19235_v27 = vld [vmem:[#allocation33_spill] sm:$0xff] }
 0x55b   : > { %v15936_v41 = vmul.f32 %v4525_v29, %v19197_v4  ;;  %vm4772_vm9 = vweird.f32 %v15184_v8  ;;  %v5683_v13 = vpack.c.bf16 %v5663_v43, %v5655_v19  ;;  %v5614_v17 = vmul.f32 %v5287_v53, %v15736_v15  ;;  %v19207_v19 = vld [vmem:[#allocation53_spill] sm:$0xff] }
 0x55c   : > { %v15940_v35 = vadd.f32 1.0, %v9602_v38  ;;  %vm4637_vm3 = vweird.f32 %v19194_v46  ;;  %v5638_v23 = vadd.f32 %v5606_v42, %v19198_v26  ;;  %v5178_v56 = vand.u32 2147483647, %v15908_v5  ;;  %v15948_v36 = vpop.eup %9603 }
 0x55d   : > { %v4636_v39 = vadd.f32 %v19196_v28, %v19199_v30  ;;  %v4968_v25 = vand.u32 2147483647, %v15936_v41  ;;  %vm4878_vm11 = vweird.f32 %v15312_v9  ;;  %5791 = vmatpush.bf16.msra.mxu3 %v5683_v13  ;;  %v5646_v15 = vadd.f32 %v5614_v17, %v19200_v50  ;;  %vm4639_vm10 = vmor %vm4637_vm3, %vm4638_vm15  ;;  %v19209_v13 = vld [vmem:[#allocation51_spill] sm:$0xff] }
 0x55e   : > { %v5180_v31 = vand.u32 2147483648, %v15908_v5  ;;  %9605 = vrcp.f32 %v15940_v35  ;;  %v4644_v49 = vor.u32 1.1754944e-38, %v4643_v16  ;;  %v19201_v52 = vand.u32 2147483647, %v15177_v57 }
 0x55f   : > { %v19204_v10 = vand.u32 2147483647, %v15184_v8  ;;  %v5170_v29 = vmul.f32 %v15948_v36, %v15908_v5  ;;  %v4640_v22 = vsel %vm4639_vm10, %v19196_v28, %v4636_v39  ;;  %vm4642_vm13 = vcmp.eq.f32.partialorder %v4641_v51, 8.507059e+37 }
 0x560   : > { %vm15958_vm12 = vcmp.eq.f32.partialorder %v19201_v52, 8.507059e+37  ;;  %v15973_v43 = vadd.f32 %v19208_v60, %v19207_v19  ;;  %vm4877_vm4 = vweird.f32 %v15249_v62  ;;  %v5674_v1 = vpack.c.bf16 %v5646_v15, %v5638_v23 }
 0x561   : > { %vm15964_vm5 = vcmp.eq.f32.partialorder %v19204_v10, 8.507059e+37  ;;  %v4645_v46 = vsel %vm4642_vm13, %v4644_v49, %v4640_v22  ;;  %v8526_v16 = vmul.f32 -1.442695, %v4968_v25  ;;  %vm4533_vm1 = vweird.f32 %v19208_v60  ;;  %vm16019_vm13 = vmor %vm4772_vm9, %vm4773_vm6  ;;  %v19239_v22 = vld [vmem:[#allocation17_spill] sm:$0xff] }
 0x562   : > { %v5171_v38 = vsub.f32 1.0, %v5170_v29  ;;  %v5298_v53 = vand.u32 2147483647, %v15940_v35  ;;  %v5300_v4 = vand.u32 2147483648, %v15940_v35  ;;  %v15980_v17 = vmul.f32 %v4645_v46, %v19209_v13  ;;  %5773 = vmatpush.bf16.msra.mxu2 %v5674_v1  ;;  %vm16011_vm0 = vmor %vm4532_vm7, %vm4533_vm1 }
 0x563   : > { %v4904_v28 = vsub.f32 1.0, %v15791_v40  ;;  %v19210_v51 = vand.u32 2147483648, %v15733_v0  ;;  %9607 = vpow2.f32 %v8526_v16  ;;  %v4536_v23 = vand.u32 2147483647, %v19195_v20 }
 0x564   : > { %v4919_v39 = vsub.f32 1.0, %v15798_v6  ;;  %v5172_v25 = vmul.f32 %v15948_v36, %v5171_v38  ;;  %vm5175_vm15 = vweird.f32 %v15948_v36  ;;  %v4976_v50 = vand.u32 2147483647, %v15980_v17  ;;  %v9606_v15 = vpop.eup %9605 }
 0x565   : > { %v15985_v26 = vor.u32 1.1754944e-38, %v19210_v51  ;;  %vm5174_vm3 = vweird.f32 %v15908_v5  ;;  %vm16002_vm10 = vcmp.eq.f32.partialorder %v5178_v56, 8.507059e+37  ;;  %v5181_v57 = vor.u32 1.1754944e-38, %v5180_v31 }
 0x566   : > { %vm4892_vm14 = vweird.f32 %v15267_v44  ;;  %v5173_v56 = vadd.f32 %v15948_v36, %v5172_v25  ;;  %v5290_v31 = vmul.f32 %v9606_v15, %v15940_v35  ;;  %vm16026_vm2 = vcmp.eq.f32.partialorder %v5298_v53, 8.507059e+37  ;;  %vm16038_vm6 = vmor %vm5174_vm3, %vm5175_vm15 }
 0x567   : > { %v5301_v29 = vor.u32 1.1754944e-38, %v5300_v4  ;;  %vm19221_vm7 = vcmask 261120   ;;  %v4535_v8 = vsel %vm16011_vm0, %v19208_v60, %v15973_v43  ;;  %v19224_v19 = vand.u32 2147483647, %v15249_v62 }
 0x568   : > { %8566 = vmatmul.msk.bf16.vlgmr.msra.gmra.mxu2 %vm19221_vm7, %v15489_v3  ;;  %v8534_v46 = vmul.f32 -1.442695, %v4976_v50  ;;  %vm16048_vm1 = vcmp.eq.f32.partialorder %v4536_v23, 8.507059e+37  ;;  %v19229_v38 = vand.u32 2147483648, %v19195_v20  ;;  %v5177_v43 = vsel %vm16038_vm6, %v15948_v36, %v5173_v56  ;;  %v19236_v50 = vld [vmem:[#allocation69_spill] sm:$0xff]  ;;  %v19246_v20 = vld [vmem:[#allocation24_spill] sm:$0xff] }
 0x569   : > { %vm16044_vm9 = vcmp.eq.f32.partialorder %v19224_v19, 8.507059e+37  ;;  %v5291_v53 = vsub.f32 1.0, %v5290_v31  ;;  %v4760_v4 = vsel %vm15992_vm8, %v15241_v18, %v15500_v2  ;;  %v4775_v13 = vsel %vm16019_vm13, %v15247_v61, %v15503_v34  ;;  %v9608_v23 = vpop.eup %9607  ;;  %v19233_v2 = vld [vmem:[#allocation19_spill] sm:$0xff]  ;;  %v19234_v61 = vld [vmem:[#allocation9_spill] sm:$0xff]  ;;  %vm4879_vm8 = vmor %vm4877_vm4, %vm4878_vm11 }
 0x56a   : > { %v4539_v60 = vor.u32 1.1754944e-38, %v19229_v38  ;;  %v19230_v51 = vand.u32 2147483647, %v15267_v44  ;;  %v4765_v36 = vsel %vm15958_vm12, %v15466_v33, %v4760_v4  ;;  %v4876_v30 = vadd.f32 %v15312_v9, %v15508_v55  ;;  %v19237_v31 = vld [vmem:[#allocation40_spill] sm:$0xff] }
 0x56b   : > { %v4780_v18 = vsel %vm15964_vm5, %v15470_v45, %v4775_v13  ;;  %v16081_v34 = vadd.f32 %v19234_v61, %v19233_v2  ;;  %v5292_v25 = vmul.f32 %v9606_v15, %v5291_v53  ;;  %vm5295_vm3 = vweird.f32 %v9606_v15 }
 0x56c   : > { %vm16067_vm15 = vcmp.eq.f32.partialorder %v19230_v51, 8.507059e+37  ;;  %v16088_v33 = vmul.f32 %v4765_v36, %v19235_v27  ;;  %v16091_v55 = vmul.f32 %v4780_v18, %v19236_v50  ;;  %v5182_v45 = vsel %vm16002_vm10, %v5181_v57, %v5177_v43  ;;  %v19242_v51 = vld [vmem:[#allocation76_spill] sm:$0xff] }
 0x56d   : > { %v4880_v42 = vsel %vm4879_vm8, %v15312_v9, %v4876_v30  ;;  %9609 = vpow2.f32 %v8534_v46  ;;  %v16096_v52 = vadd.f32 1.0, %v9608_v23  ;;  %v5293_v5 = vadd.f32 %v9606_v15, %v5292_v25 }
 0x56e   : > { %v4885_v62 = vsel %vm16044_vm9, %v15482_v48, %v4880_v42  ;;  %v4984_v56 = vand.u32 2147483647, %v16088_v33  ;;  %vm4652_vm11 = vweird.f32 %v19237_v31  ;;  %vm19238_vm12 = vweird.f32 %v15940_v35 }
 0x56f   : > { %vm5296_vm5 = vmor %vm19238_vm12, %vm5295_vm3  ;;  %v16106_v49 = vmul.f32 %v4885_v62, %v19239_v22  ;;  %v4985_v9 = vand.u32 2147483647, %v16091_v55  ;;  %9611 = vrcp.f32 %v16096_v52  ;;  %vm4653_vm4 = vweird.f32 %v19234_v61  ;;  %v19248_v22 = vld [vmem:[#allocation65_spill] sm:$0xff] }
 0x570   : > { %v5297_v57 = vsel %vm5296_vm5, %v9606_v15, %v5293_v5  ;;  %v5607_v19 = vmul.f32 %v5182_v45, %v15828_v32  ;;  %v8542_v48 = vmul.f32 -1.442695, %v4984_v56  ;;  %v4891_v1 = vadd.f32 %v15320_v14, %v15520_v11 }
 0x571   : > { %vm19240_vm10 = vweird.f32 %v15320_v14  ;;  %v5302_v35 = vsel %vm16026_vm2, %v5301_v29, %v5297_v57  ;;  %v4992_v46 = vand.u32 2147483647, %v16106_v49  ;;  %v8543_v38 = vmul.f32 -1.442695, %v4985_v9  ;;  %v19241_v29 = vld [vmem:[#allocation21_spill] sm:$0xff]  ;;  %v19249_v57 = vld [vmem:[#allocation30_spill] sm:$0xff] }
 0x572   : > { %vm4894_vm0 = vmor %vm4892_vm14, %vm19240_vm10  ;;  %v4658_v43 = vand.u32 2147483648, %v19237_v31  ;;  %v5615_v15 = vmul.f32 %v5302_v35, %v15876_v21  ;;  %9613 = vpow2.f32 %v8542_v48  ;;  %v4540_v11 = vsel %vm16048_vm1, %v4539_v60, %v4535_v8  ;;  %v19243_v21 = vld [vmem:[#allocation71_spill] sm:$0xff] }
 0x573   : > { %v4895_v32 = vsel %vm4894_vm0, %v15320_v14, %v4891_v1  ;;  %v9610_v53 = vpop.eup %9609  ;;  %v8550_v4 = vmul.f32 -1.442695, %v4992_v46  ;;  %9615 = vpow2.f32 %v8543_v38  ;;  %v4656_v10 = vand.u32 2147483647, %v19237_v31  ;;  %vm16141_vm14 = vmor %vm4652_vm11, %vm4653_vm4  ;;  %v19251_v38 = vld [vmem:[#allocation55_spill] sm:$0xff] }
 0x574   : > { %v4900_v44 = vsel %vm16067_vm15, %v15484_v47, %v4895_v32  ;;  %v5639_v13 = vadd.f32 %v5607_v19, %v19241_v29  ;;  %v5647_v23 = vadd.f32 %v5615_v15, %v19242_v51  ;;  %v16135_v14 = vadd.f32 1.0, %v9610_v53  ;;  %vm19247_vm1 = vmmov %vm19221_vm7  ;;  %v19250_v19 = vld [vmem:[#allocation77_spill] sm:$0xff] }
 0x575   : > { %v16133_v36 = vmul.f32 %v4900_v44, %v19243_v21  ;;  %v16145_v47 = vpop.eup %9611  ;;  %vm4547_vm2 = vweird.f32 %v15305_v12  ;;  %v16150_v16 = vadd.f32 %v15694_v54, %v15783_v37  ;;  %9617 = vpow2.f32 %v8550_v4 }
 0x576   : > { %v4655_v60 = vsel %vm16141_vm14, %v19234_v61, %v16081_v34  ;;  %v16157_v30 = vmul.f32 %v4540_v11, %v19246_v20  ;;  %v5675_v18 = vpack.c.bf16 %v5647_v23, %v5639_v13  ;;  %v5185_v25 = vmul.f32 %v16145_v47, %v16096_v52 }
 0x577   : > { %v4993_v2 = vand.u32 2147483647, %v16133_v36  ;;  %v4659_v27 = vor.u32 1.1754944e-38, %v4658_v43  ;;  %v16164_v37 = vadd.f32 %v15719_v58, %v15786_v7  ;;  %v16169_v50 = vmul.f32 %v15766_v59, %v4904_v28 }
 0x578   : > { %9619 = vrcp.f32 %v16135_v14  ;;  %vm4657_vm13 = vcmp.eq.f32.partialorder %v4656_v10, 8.507059e+37  ;;  %v9614_v61 = vpop.eup %9613  ;;  %v16175_v34 = vmul.f32 %v15778_v63, %v4919_v39  ;;  %5792 = vmatpush.bf16.msra.mxu3 %v5675_v18  ;;  %8567 = vmatmul.msk.bf16.gmra.mxu2 %vm19221_vm7, %v15619_v24  ;;  %v5186_v45 = vsub.f32 1.0, %v5185_v25 }
 0x579   : > { %v8551_v7 = vmul.f32 -1.442695, %v4993_v2  ;;  %v4660_v42 = vsel %vm4657_vm13, %v4659_v27, %v4655_v60  ;;  %v9616_v40 = vpop.eup %9615  ;;  %v16179_v5 = vadd.f32 1.0, %v9614_v61  ;;  %v5193_v28 = vand.u32 2147483647, %v16096_v52 }
 0x57a   : > { %v5195_v62 = vand.u32 2147483648, %v16096_v52  ;;  %v4969_v56 = vand.u32 2147483647, %v16157_v30  ;;  %v16184_v6 = vadd.f32 1.0, %v9616_v40  ;;  %v5187_v39 = vmul.f32 %v16145_v47, %v5186_v45 }
 0x57b   : > { %9621 = vpow2.f32 %v8551_v7  ;;  %vm5189_vm6 = vweird.f32 %v16096_v52  ;;  %v9618_v31 = vpop.eup %9617  ;;  %vm4788_vm9 = vweird.f32 %v15694_v54  ;;  %8568 = vmatmul.msk.bf16.vlgmr.msra.gmra.mxu3 %vm19247_vm1, %v15489_v3  ;;  %v16193_v9 = vmul.f32 %v4660_v42, %v19248_v22 }
 0x57c   : > { %9623 = vrcp.f32 %v16179_v5  ;;  %v16197_v48 = vadd.f32 %v19250_v19, %v19249_v57  ;;  %vm4548_vm15 = vweird.f32 %v19250_v19  ;;  %v16200_v1 = vadd.f32 1.0, %v9618_v31 }
 0x57d   : > { %9625 = vrcp.f32 %v16184_v6  ;;  %v5313_v35 = vand.u32 2147483647, %v16135_v14  ;;  %v5315_v46 = vand.u32 2147483648, %v16135_v14  ;;  %vm4787_vm8 = vweird.f32 %v19251_v38  ;;  %vm16222_vm5 = vmor %vm4547_vm2, %vm4548_vm15 }
 0x57e   : > { %v16205_v3 = vpop.eup %9619  ;;  %vm5190_vm3 = vweird.f32 %v16145_v47  ;;  %vm16209_vm11 = vcmp.eq.f32.partialorder %v5193_v28, 8.507059e+37  ;;  %v5196_v15 = vor.u32 1.1754944e-38, %v5195_v62  ;;  %v8527_v32 = vmul.f32 -1.442695, %v4969_v56  ;;  %v19280_v28 = vld [vmem:[#allocation50_spill] sm:$0xff] }
 0x57f   : > { %v5433_v11 = vand.u32 2147483647, %v16179_v5  ;;  %v5435_v53 = vand.u32 2147483648, %v16179_v5  ;;  %9627 = vrcp.f32 %v16200_v1  ;;  %v5188_v4 = vadd.f32 %v16145_v47, %v5187_v39  ;;  %vm16255_vm2 = vmor %vm5189_vm6, %vm5190_vm3 }
 0x580   : > { %vm5309_vm12 = vweird.f32 %v16135_v14  ;;  %v5448_v10 = vand.u32 2147483647, %v16184_v6  ;;  %v5305_v29 = vmul.f32 %v16205_v3, %v16135_v14  ;;  %v4977_v13 = vand.u32 2147483647, %v16193_v9  ;;  %vm16287_vm3 = vmor %vm4787_vm8, %vm4788_vm9 }
 0x581   : > { %v4550_v51 = vsel %vm16222_vm5, %v19250_v19, %v16197_v48  ;;  %v9622_v23 = vpop.eup %9621  ;;  %v19256_v21 = vand.u32 2147483647, %v19251_v38  ;;  %vm5429_vm10 = vweird.f32 %v16179_v5  ;;  %v5553_v60 = vand.u32 2147483647, %v16200_v1  ;;  %v19310_v19 = vld [vmem:[#allocation52_spill] sm:$0xff] }
 0x582   : > { %v5450_v20 = vand.u32 2147483648, %v16184_v6  ;;  %vm16243_vm0 = vcmp.eq.f32.partialorder %v5313_v35, 8.507059e+37  ;;  %v5316_v2 = vor.u32 1.1754944e-38, %v5315_v46  ;;  %v9624_v25 = vpop.eup %9623  ;;  %v5555_v27 = vand.u32 2147483648, %v16200_v1 }
 0x583   : > { %vm16236_vm4 = vcmp.eq.f32.partialorder %v19256_v21, 8.507059e+37  ;;  %v16248_v61 = vadd.f32 1.0, %v9622_v23  ;;  %v5306_v45 = vsub.f32 1.0, %v5305_v29  ;;  %9629 = vpow2.f32 %v8527_v32  ;;  %v9626_v42 = vpop.eup %9625 }
 0x584   : > { %v5425_v40 = vmul.f32 %v9624_v25, %v16179_v5  ;;  %vm16260_vm13 = vcmp.eq.f32.partialorder %v5433_v11, 8.507059e+37  ;;  %v5436_v62 = vor.u32 1.1754944e-38, %v5435_v53  ;;  %v5192_v56 = vsel %vm16255_vm2, %v16145_v47, %v5188_v4 }
 0x585   : > { %v5440_v52 = vmul.f32 %v9626_v42, %v16184_v6  ;;  %vm16269_vm6 = vcmp.eq.f32.partialorder %v5448_v10, 8.507059e+37  ;;  %9631 = vrcp.f32 %v16248_v61  ;;  %v8535_v31 = vmul.f32 -1.442695, %v4977_v13  ;;  %v9628_v22 = vpop.eup %9627 }
 0x586   : > { %v5426_v57 = vsub.f32 1.0, %v5425_v40  ;;  %v5451_v35 = vor.u32 1.1754944e-38, %v5450_v20  ;;  %v5307_v46 = vmul.f32 %v16205_v3, %v5306_v45  ;;  %vm5310_vm1 = vweird.f32 %v16205_v3  ;;  %v19272_v40 = vld [vmem:[#allocation81_spill] sm:$0xff] }
 0x587   : > { %v5545_v47 = vmul.f32 %v9628_v22, %v16200_v1  ;;  %vm16277_vm15 = vcmp.eq.f32.partialorder %v5553_v60, 8.507059e+37  ;;  %v5556_v11 = vor.u32 1.1754944e-38, %v5555_v27  ;;  %v5441_v53 = vsub.f32 1.0, %v5440_v52  ;;  %vm5311_vm14 = vmor %vm5309_vm12, %vm5310_vm1 }
 0x588   : > { %v5197_v4 = vsel %vm16209_vm11, %v5196_v15, %v5192_v56  ;;  %v5427_v29 = vmul.f32 %v9624_v25, %v5426_v57  ;;  %vm5430_vm2 = vweird.f32 %v9624_v25  ;;  %vm5445_vm7 = vweird.f32 %v9626_v42 }
 0x589   : > { %v5308_v13 = vadd.f32 %v16205_v3, %v5307_v46  ;;  %v9630_v23 = vpop.eup %9629  ;;  %v5546_v21 = vsub.f32 1.0, %v5545_v47  ;;  %v5442_v60 = vmul.f32 %v9626_v42, %v5441_v53  ;;  %9633 = vpow2.f32 %v8535_v31  ;;  %vm5431_vm12 = vmor %vm5429_vm10, %vm5430_vm2  ;;  %v19274_v31 = vld [vmem:[#allocation39_spill] sm:$0xff] }
 0x58a   : > { %v4790_v38 = vsel %vm16287_vm3, %v15694_v54, %v16150_v16  ;;  %vm4908_vm9 = vweird.f32 %v15766_v59  ;;  %v5428_v43 = vadd.f32 %v9624_v25, %v5427_v29  ;;  %vm5550_vm8 = vweird.f32 %v9628_v22  ;;  %v19271_v16 = vld [vmem:[#allocation37_spill] sm:$0xff]  ;;  %v19285_v29 = vld [vmem:[#allocation56_spill] sm:$0xff] }
 0x58b   : > { %v5312_v15 = vsel %vm5311_vm14, %v16205_v3, %v5308_v13  ;;  %v16300_v20 = vadd.f32 1.0, %v9630_v23  ;;  %v9632_v27 = vpop.eup %9631  ;;  %vm4803_vm11 = vweird.f32 %v15719_v58  ;;  %v5547_v14 = vmul.f32 %v9628_v22, %v5546_v21 }
 0x58c   : > { %v5443_v7 = vadd.f32 %v9626_v42, %v5442_v60  ;;  %v5317_v54 = vsel %vm16243_vm0, %v5316_v2, %v5312_v15  ;;  %v4795_v45 = vsel %vm16236_vm4, %v19271_v16, %v4790_v38  ;;  %vm4907_vm14 = vweird.f32 %v19272_v40  ;;  %v19286_v38 = vld [vmem:[#allocation87_spill] sm:$0xff]  ;;  %v19287_v15 = vld [vmem:[#allocation20_spill] sm:$0xff] }
 0x58d   : > { %v5432_v3 = vsel %vm5431_vm12, %v9624_v25, %v5428_v43  ;;  %vm19273_vm1 = vweird.f32 %v16184_v6  ;;  %v5560_v56 = vmul.f32 %v9632_v27, %v16248_v61  ;;  %v5608_v5 = vmul.f32 %v5197_v4, %v15936_v41  ;;  %v19284_v4 = vld [vmem:[#allocation54_spill] sm:$0xff] }
 0x58e   : > { %vm5446_vm3 = vmor %vm19273_vm1, %vm5445_vm7  ;;  %v5616_v52 = vmul.f32 %v5317_v54, %v15980_v17  ;;  %vm4802_vm10 = vweird.f32 %v19274_v31  ;;  %vm4923_vm0 = vweird.f32 %v15778_v63  ;;  %vm19275_vm2 = vcmask 261120  }
 0x58f   : > { %8569 = vmatmul.msk.bf16.gmra.mxu3 %vm19275_vm2, %v15619_v24  ;;  %v5437_v8 = vsel %vm16260_vm13, %v5436_v62, %v5432_v3  ;;  %v5548_v18 = vadd.f32 %v9628_v22, %v5547_v14  ;;  %v5447_v2 = vsel %vm5446_vm3, %v9626_v42, %v5443_v7  ;;  %9635 = vrcp.f32 %v16300_v20  ;;  %v9634_v62 = vpop.eup %9633  ;;  %v19298_v24 = vld [vmem:[#allocation93_spill] sm:$0xff] }
 0x590   : > { %vm19276_vm4 = vweird.f32 %v16200_v1  ;;  %v5452_v41 = vsel %vm16269_vm6, %v5451_v35, %v5447_v2  ;;  %v5561_v17 = vsub.f32 1.0, %v5560_v56  ;;  %v5568_v6 = vand.u32 2147483647, %v16248_v61 }
 0x591   : > { %vm5551_vm7 = vmor %vm19276_vm4, %vm5550_vm8  ;;  %v19277_v25 = vand.u32 2147483647, %v19272_v40  ;;  %v16338_v42 = vmul.f32 %v4795_v45, %v19280_v28  ;;  %vm4922_vm13 = vweird.f32 %v15733_v0  ;;  %v5624_v57 = vmul.f32 %v5437_v8, %v16088_v33  ;;  %v19291_v8 = vld [vmem:[#allocation90_spill] sm:$0xff] }
 0x592   : > { %v5552_v1 = vsel %vm5551_vm7, %v9628_v22, %v5548_v18  ;;  %vm5564_vm6 = vweird.f32 %v16248_v61  ;;  %v5570_v39 = vand.u32 2147483648, %v16248_v61  ;;  %v19281_v35 = vand.u32 2147483647, %v19274_v31  ;;  %vm4909_vm4 = vmor %vm4907_vm14, %vm4908_vm9  ;;  %v19288_v61 = vld [vmem:[#allocation89_spill] sm:$0xff] }
 0x593   : > { %vm16333_vm12 = vcmp.eq.f32.partialorder %v19277_v25, 8.507059e+37  ;;  %v5557_v47 = vsel %vm16277_vm15, %v5556_v11, %v5552_v1  ;;  %v5562_v53 = vmul.f32 %v9632_v27, %v5561_v17  ;;  %vm5565_vm1 = vweird.f32 %v9632_v27  ;;  %vm16381_vm7 = vmor %vm4802_vm10, %vm4803_vm11 }
 0x594   : > { %vm16346_vm8 = vcmp.eq.f32.partialorder %v19281_v35, 8.507059e+37  ;;  %v5640_v10 = vadd.f32 %v5608_v5, %v19284_v4  ;;  %v5632_v22 = vmul.f32 %v5557_v47, %v16106_v49  ;;  %v5625_v33 = vmul.f32 %v5452_v41, %v16091_v55  ;;  %vm5566_vm15 = vmor %vm5564_vm6, %vm5565_vm1  ;;  %v19302_v4 = vld [vmem:[#allocation88_spill] sm:$0xff] }
 0x595   : > { %v5648_v13 = vadd.f32 %v5616_v52, %v19285_v29  ;;  %v16356_v23 = vadd.f32 1.0, %v9634_v62  ;;  %v5563_v21 = vadd.f32 %v9632_v27, %v5562_v53  ;;  %vm5569_vm3 = vcmp.eq.f32.partialorder %v5568_v6, 8.507059e+37  ;;  %v16361_v11 = vpop.eup %9635  ;;  %vm16401_vm11 = vmor %vm4922_vm13, %vm4923_vm0  ;;  %v19295_v6 = vld [vmem:[#allocation91_spill] sm:$0xff] }
 0x596   : > { %v4906_v60 = vadd.f32 %v15766_v59, %v16169_v50  ;;  %v4986_v32 = vand.u32 2147483647, %v16338_v42  ;;  %v5656_v43 = vadd.f32 %v5624_v57, %v19286_v38  ;;  %v5664_v14 = vadd.f32 %v5632_v22, %v19287_v15 }
 0x597   : > { %v5571_v55 = vor.u32 1.1754944e-38, %v5570_v39  ;;  %9637 = vrcp.f32 %v16356_v23  ;;  %v5567_v49 = vsel %vm5566_vm15, %v9632_v27, %v5563_v21  ;;  %v5200_v7 = vmul.f32 %v16361_v11, %v16300_v20 }
 0x598   : > { %vm5204_vm2 = vweird.f32 %v16300_v20  ;;  %v5208_v50 = vand.u32 2147483647, %v16300_v20  ;;  %v5684_v54 = vpack.c.bf16 %v5664_v14, %v5656_v43  ;;  %v5657_v45 = vadd.f32 %v5625_v33, %v19288_v61  ;;  %v16451_v43 = vld [vmem:[%s17903_s5] sm:$0xff] }
 0x599   : > { %v5572_v16 = vsel %vm5569_vm3, %v5571_v55, %v5567_v49  ;;  %v5676_v3 = vpack.c.bf16 %v5648_v13, %v5640_v10  ;;  %v5201_v5 = vsub.f32 1.0, %v5200_v7  ;;  %v4910_v52 = vsel %vm4909_vm4, %v15766_v59, %v4906_v60 }
 0x59a   : > { %v5633_v56 = vmul.f32 %v5572_v16, %v16133_v36  ;;  %v8544_v40 = vmul.f32 -1.442695, %v4986_v32  ;;  %5810 = vmatpush.bf16.msrb.mxu0 %v5684_v54  ;;  %vm5205_vm9 = vweird.f32 %v16361_v11  ;;  %v4915_v18 = vsel %vm16333_vm12, %v19291_v8, %v4910_v52  ;;  %v19294_v36 = vld [vmem:[#allocation12_spill] sm:$0xff]  ;;  %v19306_v16 = vld [vmem:[#allocation62_spill] sm:$0xff]  ;;  %v19309_v52 = vld [vmem:[#allocation29_spill] sm:$0xff] }
 0x59b   : > { %v4805_v31 = vsel %vm16381_vm7, %v15719_v58, %v16164_v37  ;;  %v4921_v2 = vadd.f32 %v15778_v63, %v16175_v34  ;;  %v5202_v17 = vmul.f32 %v16361_v11, %v5201_v5  ;;  %v16408_v25 = vmul.f32 %v4915_v18, %v19295_v6  ;;  %vm16429_vm0 = vmor %vm5204_vm2, %vm5205_vm9  ;;  %v19308_v5 = vld [vmem:[#allocation7_spill] sm:$0xff]  ;;  %v19314_v6 = vld [vmem:[#allocation94_spill] sm:$0xff] }
 0x59c   : > { %v5665_v41 = vadd.f32 %v5633_v56, %v19294_v36  ;;  %9639 = vpow2.f32 %v8544_v40  ;;  %vm16410_vm14 = vcmp.eq.f32.partialorder %v5208_v50, 8.507059e+37  ;;  %v5210_v34 = vand.u32 2147483648, %v16300_v20  ;;  %v19303_v20 = vld [vmem:[#allocation31_spill] sm:$0xff] }
 0x59d   : > { %v9638_v58 = vpop.eup %9637  ;;  %v4810_v28 = vsel %vm16346_vm8, %v19298_v24, %v4805_v31  ;;  %v4925_v62 = vsel %vm16401_vm11, %v15778_v63, %v4921_v2  ;;  %v5203_v57 = vadd.f32 %v16361_v11, %v5202_v17  ;;  %v19299_v35 = vand.u32 2147483647, %v15733_v0  ;;  %v19312_v2 = vld [vmem:[#allocation5_spill] sm:$0xff] }
 0x59e   : > { %v5685_v1 = vpack.c.bf16 %v5665_v41, %v5657_v45  ;;  %v5320_v39 = vmul.f32 %v9638_v58, %v16356_v23  ;;  %5811 = vmatpush.bf16.msrb.mxu0 %v5676_v3  ;;  %v5328_v47 = vand.u32 2147483647, %v16356_v23  ;;  %v4994_v63 = vand.u32 2147483647, %v16408_v25  ;;  %v19307_v3 = vld [vmem:[#allocation28_spill] sm:$0xff]  ;;  %v19313_v41 = vld [vmem:[#allocation82_spill] sm:$0xff] }
 0x59f   : > { %vm4927_vm10 = vcmp.eq.f32.partialorder %v19299_v35, 8.507059e+37  ;;  %v16437_v10 = vmul.f32 %v4810_v28, %v19302_v4  ;;  %v5207_v0 = vsel %vm16429_vm0, %v16361_v11, %v5203_v57  ;;  %v4551_v29 = vand.u32 2147483647, %v15305_v12 }
 0x5a0   : > { %v4930_v53 = vsel %vm4927_vm10, %v15985_v26, %v4925_v62  ;;  %5829 = vmatpush.bf16.msrb.mxu1 %v5685_v1  ;;  %v5321_v22 = vsub.f32 1.0, %v5320_v39  ;;  %v5211_v13 = vor.u32 1.1754944e-38, %v5210_v34  ;;  %v5330_v21 = vand.u32 2147483648, %v16356_v23  ;;  %v19317_v62 = vld [vmem:[#allocation27_spill] sm:$0xff] }
 0x5a1   : > { %v16443_v33 = vmul.f32 %v4930_v53, %v19303_v20  ;;  %v8552_v60 = vmul.f32 -1.442695, %v4994_v63  ;;  %v4987_v26 = vand.u32 2147483647, %v16437_v10  ;;  %vm5325_vm12 = vweird.f32 %v9638_v58  ;;  %v19318_v1 = vld [vmem:[#allocation63_spill] sm:$0xff] }
 0x5a2   : > { %v9640_v32 = vpop.eup %9639  ;;  %v5322_v38 = vmul.f32 %v9638_v58, %v5321_v22  ;;  %vm19304_vm13 = vcmask 261120   ;;  %v19305_v15 = vand.u32 2147483648, %v15305_v12  ;;  %v5212_v55 = vsel %vm16410_vm14, %v5211_v13, %v5207_v0 }
 0x5a3   : > { %8570 = vmatmul.msk.bf16.vlgmr.msrb.gmra.mxu0 %vm19304_vm13, %v16451_v43  ;;  %v4995_v11 = vand.u32 2147483647, %v16443_v33  ;;  %9641 = vpow2.f32 %v8552_v60  ;;  %v16460_v49 = vadd.f32 1.0, %v9640_v32  ;;  %v8545_v7 = vmul.f32 -1.442695, %v4987_v26  ;;  %v19339_v32 = vld [vmem:[#allocation22_spill] sm:$0xff] }
 0x5a4   : > { %v4554_v14 = vor.u32 1.1754944e-38, %v19305_v15  ;;  %v5323_v50 = vadd.f32 %v9638_v58, %v5322_v38  ;;  %vm5324_vm6 = vweird.f32 %v16356_v23  ;;  %vm4552_vm8 = vcmp.eq.f32.partialorder %v4551_v29, 8.507059e+37 }
 0x5a5   : > { %v8553_v54 = vmul.f32 -1.442695, %v4995_v11  ;;  %v4679_v61 = vsub.f32 1.0, %v19306_v16  ;;  %vm5326_vm1 = vmor %vm5324_vm6, %vm5325_vm12  ;;  %v5331_v45 = vor.u32 1.1754944e-38, %v5330_v21  ;;  %9643 = vrcp.f32 %v16460_v49 }
 0x5a6   : > { %v4555_v12 = vsel %vm4552_vm8, %v4554_v14, %v4550_v51  ;;  %vm4562_vm3 = vweird.f32 %v19307_v3  ;;  %v5327_v27 = vsel %vm5326_vm1, %v9638_v58, %v5323_v50  ;;  %vm5329_vm15 = vcmp.eq.f32.partialorder %v5328_v47, 8.507059e+37  ;;  %v19311_v51 = vld [vmem:[#allocation61_spill] sm:$0xff]  ;;  %vm19324_vm12 = vmmov %vm19304_vm13 }
 0x5a7   : > { %v5609_v23 = vmul.f32 %v5212_v55, %v16157_v30  ;;  %9645 = vpow2.f32 %v8545_v7  ;;  %v5332_v56 = vsel %vm5329_vm15, %v5331_v45, %v5327_v27  ;;  %v4666_v40 = vadd.f32 %v19309_v52, %v19308_v5  ;;  %v19325_v7 = vld [vmem:[#allocation15_spill] sm:$0xff]  ;;  %v16546_v45 = vld [vmem:[%s17903_s5 + $0x8] sm:$0xff]  ;;  %vm19328_vm6 = vmmov %vm19324_vm12 }
 0x5a8   : > { %9647 = vpow2.f32 %v8553_v54  ;;  %vm4668_vm2 = vweird.f32 %v19309_v52  ;;  %v5617_v44 = vmul.f32 %v5332_v56, %v16193_v9  ;;  %v5463_v8 = vand.u32 2147483647, %v16460_v49  ;;  %v19329_v27 = vld [vmem:[#allocation75_spill] sm:$0xff] }
 0x5a9   : > { %v4673_v48 = vand.u32 2147483648, %v19310_v19  ;;  %v16479_v18 = vmul.f32 %v4555_v12, %v19311_v51  ;;  %v9642_v31 = vpop.eup %9641  ;;  %v4680_v30 = vmul.f32 %v19312_v2, %v4679_v61  ;;  %v5465_v59 = vand.u32 2147483648, %v16460_v49 }
 0x5aa   : > { %vm4667_vm5 = vweird.f32 %v19310_v19  ;;  %v4671_v36 = vand.u32 2147483647, %v19310_v19  ;;  %v5641_v17 = vadd.f32 %v5609_v23, %v19313_v41  ;;  %v5649_v9 = vadd.f32 %v5617_v44, %v19314_v6 }
 0x5ab   : > { %v16487_v58 = vadd.f32 1.0, %v9642_v31  ;;  %vm16489_vm4 = vmor %vm4667_vm5, %vm4668_vm2  ;;  %v4970_v34 = vand.u32 2147483647, %v16479_v18  ;;  %v9644_v24 = vpop.eup %9643  ;;  %vm5459_vm7 = vweird.f32 %v16460_v49  ;;  %v16500_v57 = vadd.f32 %v19318_v1, %v19317_v62 }
 0x5ac   : > { %v4670_v28 = vsel %vm16489_vm4, %v19309_v52, %v4666_v40  ;;  %vm4563_vm9 = vweird.f32 %v19318_v1  ;;  %v5677_v35 = vpack.c.bf16 %v5649_v9, %v5641_v17  ;;  %v5455_v46 = vmul.f32 %v9644_v24, %v16460_v49 }
 0x5ad   : > { %v9646_v39 = vpop.eup %9645  ;;  %vm16504_vm11 = vcmp.eq.f32.partialorder %v5463_v8, 8.507059e+37  ;;  %9649 = vrcp.f32 %v16487_v58  ;;  %v4674_v63 = vor.u32 1.1754944e-38, %v4673_v48  ;;  %v5466_v4 = vor.u32 1.1754944e-38, %v5465_v59  ;;  %vm16521_vm10 = vmor %vm4562_vm3, %vm4563_vm9 }
 0x5ae   : > { %v9648_v53 = vpop.eup %9647  ;;  %v16509_v0 = vadd.f32 1.0, %v9646_v39  ;;  %vm4672_vm14 = vcmp.eq.f32.partialorder %v4671_v36, 8.507059e+37  ;;  %v4566_v22 = vand.u32 2147483647, %v19307_v3  ;;  %5830 = vmatpush.bf16.msrb.mxu1 %v5677_v35  ;;  %v5456_v20 = vsub.f32 1.0, %v5455_v46  ;;  %v19336_v46 = vld [vmem:[#allocation14_spill] sm:$0xff] }
 0x5af   : > { %v16512_v29 = vadd.f32 1.0, %v9648_v53  ;;  %v4675_v13 = vsel %vm4672_vm14, %v4674_v63, %v4670_v28  ;;  %v8528_v21 = vmul.f32 -1.442695, %v4970_v34  ;;  %v5583_v60 = vand.u32 2147483647, %v16487_v58 }
 0x5b0   : > { %v5585_v26 = vand.u32 2147483648, %v16487_v58  ;;  %9651 = vrcp.f32 %v16509_v0  ;;  %v19323_v38 = vand.u32 2147483648, %v19307_v3  ;;  %v5457_v15 = vmul.f32 %v9644_v24, %v5456_v20 }
 0x5b1   : > { %vm5460_vm0 = vweird.f32 %v9644_v24  ;;  %9653 = vrcp.f32 %v16512_v29  ;;  %v4565_v14 = vsel %vm16521_vm10, %v19318_v1, %v16500_v57  ;;  %8572 = vmatmul.msk.bf16.vlgmr.msrb.gmra.mxu1 %vm19324_vm12, %v16451_v43  ;;  %v5480_v55 = vand.u32 2147483648, %v16509_v0 }
 0x5b2   : > { %v4569_v11 = vor.u32 1.1754944e-38, %v19323_v38  ;;  %v16536_v50 = vmul.f32 %v4675_v13, %v19325_v7  ;;  %vm16538_vm13 = vcmp.eq.f32.partialorder %v4566_v22, 8.507059e+37  ;;  %v4681_v16 = vadd.f32 %v19312_v2, %v4680_v30  ;;  %vm5461_vm1 = vmor %vm5459_vm7, %vm5460_vm0 }
 0x5b3   : > { %v9650_v61 = vpop.eup %9649  ;;  %8571 = vmatmul.msk.bf16.gmra.mxu0 %vm19328_vm6, %v16546_v45  ;;  %v5458_v12 = vadd.f32 %v9644_v24, %v5457_v15  ;;  %v5478_v3 = vand.u32 2147483647, %v16509_v0  ;;  %9655 = vpow2.f32 %v8528_v21  ;;  %vm4682_vm8 = vweird.f32 %v19329_v27 }
 0x5b4   : > { %v5575_v23 = vmul.f32 %v9650_v61, %v16487_v58  ;;  %vm5579_vm3 = vweird.f32 %v16487_v58  ;;  %vm16557_vm15 = vcmp.eq.f32.partialorder %v5583_v60, 8.507059e+37  ;;  %v5586_v5 = vor.u32 1.1754944e-38, %v5585_v26 }
 0x5b5   : > { %v5462_v52 = vsel %vm5461_vm1, %v9644_v24, %v5458_v12  ;;  %vm5474_vm2 = vweird.f32 %v16509_v0  ;;  %v5598_v40 = vand.u32 2147483647, %v16512_v29  ;;  %v4978_v44 = vand.u32 2147483647, %v16536_v50 }
 0x5b6   : > { %v9652_v8 = vpop.eup %9651  ;;  %v5467_v49 = vsel %vm16504_vm11, %v5466_v4, %v5462_v52  ;;  %v5576_v19 = vsub.f32 1.0, %v5575_v23  ;;  %v5481_v48 = vor.u32 1.1754944e-38, %v5480_v55  ;;  %vm5594_vm5 = vweird.f32 %v16512_v29  ;;  %v19343_v52 = vld [vmem:[#allocation80_spill] sm:$0xff] }
 0x5b7   : > { %v5600_v51 = vand.u32 2147483648, %v16512_v29  ;;  %v9654_v31 = vpop.eup %9653  ;;  %vm5580_vm4 = vweird.f32 %v9650_v61  ;;  %v5470_v30 = vmul.f32 %v9652_v8, %v16509_v0  ;;  %vm16569_vm7 = vcmp.eq.f32.partialorder %v5478_v3, 8.507059e+37 }
 0x5b8   : > { %v8536_v36 = vmul.f32 -1.442695, %v4978_v44  ;;  %vm4683_vm9 = vweird.f32 %v19312_v2  ;;  %v5577_v41 = vmul.f32 %v9650_v61, %v5576_v19  ;;  %v5590_v17 = vmul.f32 %v9654_v31, %v16512_v29  ;;  %vm5581_vm10 = vmor %vm5579_vm3, %vm5580_vm4  ;;  %v19344_v44 = vld [vmem:[#allocation57_spill] sm:$0xff] }
 0x5b9   : > { %v4570_v6 = vsel %vm16538_vm13, %v4569_v11, %v4565_v14  ;;  %v4688_v9 = vand.u32 2147483648, %v19329_v27  ;;  %v9656_v37 = vpop.eup %9655  ;;  %v5626_v34 = vmul.f32 %v5467_v49, %v16338_v42  ;;  %v5471_v24 = vsub.f32 1.0, %v5470_v30  ;;  %vm16584_vm14 = vmor %vm4682_vm8, %vm4683_vm9  ;;  %v19340_v14 = vld [vmem:[#allocation41_spill] sm:$0xff] }
 0x5ba   : > { %9657 = vpow2.f32 %v8536_v36  ;;  %v4686_v28 = vand.u32 2147483647, %v19329_v27  ;;  %v5578_v62 = vadd.f32 %v9650_v61, %v5577_v41  ;;  %vm5475_vm11 = vweird.f32 %v9652_v8 }
 0x5bb   : > { %v5591_v1 = vsub.f32 1.0, %v5590_v17  ;;  %v16580_v57 = vadd.f32 1.0, %v9656_v37  ;;  %v5472_v42 = vmul.f32 %v9652_v8, %v5471_v24  ;;  %vm5595_vm0 = vweird.f32 %v9654_v31  ;;  %vm5476_vm6 = vmor %vm5474_vm2, %vm5475_vm11 }
 0x5bc   : > { %v4685_v35 = vsel %vm16584_vm14, %v19312_v2, %v4681_v16  ;;  %v16595_v47 = vmul.f32 %v4570_v6, %v19336_v46  ;;  %v5582_v63 = vsel %vm5581_vm10, %v9650_v61, %v5578_v62  ;;  %v4689_v4 = vor.u32 1.1754944e-38, %v4688_v9  ;;  %vm5596_vm8 = vmor %vm5594_vm5, %vm5595_vm0 }
 0x5bd   : > { %v5592_v53 = vmul.f32 %v9654_v31, %v5591_v1  ;;  %9659 = vrcp.f32 %v16580_v57  ;;  %v5587_v22 = vsel %vm16557_vm15, %v5586_v5, %v5582_v63  ;;  %v5473_v20 = vadd.f32 %v9652_v8, %v5472_v42 }
 0x5be   : > { %vm16600_vm12 = vcmp.eq.f32.partialorder %v5598_v40, 8.507059e+37  ;;  %vm4687_vm13 = vcmp.eq.f32.partialorder %v4686_v28, 8.507059e+37  ;;  %v5634_v13 = vmul.f32 %v5587_v22, %v16408_v25  ;;  %v4971_v60 = vand.u32 2147483647, %v16595_v47  ;;  %v19341_v25 = vld [vmem:[#allocation11_spill] sm:$0xff] }
 0x5bf   : > { %v5593_v2 = vadd.f32 %v9654_v31, %v5592_v53  ;;  %v4690_v21 = vsel %vm4687_vm13, %v4689_v4, %v4685_v35  ;;  %v5658_v38 = vadd.f32 %v5626_v34, %v19339_v32  ;;  %v5477_v11 = vsel %vm5476_vm6, %v9652_v8, %v5473_v20  ;;  %v19345_v20 = vld [vmem:[#allocation68_spill] sm:$0xff] }
 0x5c0   : > { %v9658_v26 = vpop.eup %9657  ;;  %v5601_v15 = vor.u32 1.1754944e-38, %v5600_v51  ;;  %v16614_v55 = vmul.f32 %v4690_v21, %v19340_v14  ;;  %v5666_v7 = vadd.f32 %v5634_v13, %v19341_v25  ;;  %v5482_v0 = vsel %vm16569_vm7, %v5481_v48, %v5477_v11  ;;  %v19346_v13 = vld [vmem:[#allocation18_spill] sm:$0xff]  ;;  %v5737_v14 = vpop.f32.mrf.mxu0 }
 0x5c1   : > { %v5597_v54 = vsel %vm5596_vm8, %v9654_v31, %v5593_v2  ;;  %v5106_v16 = vadd.f32 1.0, %v9658_v26  ;;  %v5627_v12 = vmul.f32 %v5482_v0, %v16437_v10  ;;  %v8529_v29 = vmul.f32 -1.442695, %v4971_v60  ;;  %v5756_v25 = vpop.f32.mrf.mxu1 }
 0x5c2   : > { %v5602_v61 = vsel %vm16600_vm12, %v5601_v15, %v5597_v54  ;;  %v4979_v3 = vand.u32 2147483647, %v16614_v55  ;;  %vm19342_vm1 = vcmask 261120   ;;  %v5686_v23 = vpack.c.bf16 %v5666_v7, %v5658_v38 }
 0x5c3   : > { %v9660_v27 = vpop.eup %9659  ;;  %8573 = vmatmul.msk.bf16.gmra.mxu1 %vm19342_vm1, %v16546_v45  ;;  %v5635_v56 = vmul.f32 %v5602_v61, %v16443_v33  ;;  %9661 = vrcp.f32 %v5106_v16  ;;  %v5659_v40 = vadd.f32 %v5627_v12, %v19343_v52  ;;  %v5223_v31 = vand.u32 2147483647, %v16580_v57  ;;  %vm19347_vm8 = vmmov %vm19342_vm1 }
 0x5c4   : > { %v5215_v5 = vmul.f32 %v9660_v27, %v16580_v57  ;;  %5848 = vmatpush.bf16.msrb.mxu2 %v5686_v23  ;;  %9663 = vpow2.f32 %v8529_v29  ;;  %v8537_v10 = vmul.f32 -1.442695, %v4979_v3  ;;  %vm5220_vm3 = vweird.f32 %v9660_v27 }
 0x5c5   : > { %v5667_v8 = vadd.f32 %v5635_v56, %v19344_v44  ;;  %v5225_v33 = vand.u32 2147483648, %v16580_v57  ;;  %vm5219_vm15 = vweird.f32 %v16580_v57  ;;  %vm5224_vm5 = vcmp.eq.f32.partialorder %v5223_v31, 8.507059e+37 }
 0x5c6   : > { %v5216_v49 = vsub.f32 1.0, %v5215_v5  ;;  %9665 = vpow2.f32 %v8537_v10  ;;  %vm5221_vm2 = vmor %vm5219_vm15, %vm5220_vm3  ;;  %v5343_v34 = vand.u32 2147483647, %v5106_v16  ;;  %v5345_v24 = vand.u32 2147483648, %v5106_v16 }
 0x5c7   : > { %v5687_v19 = vpack.c.bf16 %v5667_v8, %v5659_v40  ;;  %v5226_v37 = vor.u32 1.1754944e-38, %v5225_v33  ;;  %vm5339_vm7 = vweird.f32 %v5106_v16  ;;  %v19348_v40 = vld [vmem:[#allocation84_spill] sm:$0xff]  ;;  %v19349_v8 = vld [vmem:[#allocation58_spill] sm:$0xff]  ;;  %vm19350_vm15 = vmmov %vm19347_vm8 }
 0x5c8   : > { %v5217_v48 = vmul.f32 %v9660_v27, %v5216_v49  ;;  %v5346_v57 = vor.u32 1.1754944e-38, %v5345_v24  ;;  %vm5344_vm11 = vcmp.eq.f32.partialorder %v5343_v34, 8.507059e+37  ;;  %v5739_v5 = vpop.f32.mrf.mxu0  ;;  %v16658_v34 = vpop.permute.xlu0 %5694 }
 0x5c9   : > { %v9662_v51 = vpop.eup %9661  ;;  %5867 = vmatpush.bf16.msrb.mxu3 %v5687_v19  ;;  %v5758_v52 = vpop.f32.mrf.mxu1  ;;  %v5738_v24 = vadd.f32 %v5737_v14, %v16658_v34 }
 0x5ca   : > { %v5218_v30 = vadd.f32 %v9660_v27, %v5217_v48  ;;  %v5335_v59 = vmul.f32 %v9662_v51, %v5106_v16  ;;  %v9664_v36 = vpop.eup %9663  ;;  %vm5340_vm4 = vweird.f32 %v9662_v51  ;;  %v16642_v19 = vpop.permute.xlu1 %5704 }
 0x5cb   : > { %v5099_v6 = vadd.f32 1.0, %v9664_v36  ;;  %vm5341_vm9 = vmor %vm5339_vm7, %vm5340_vm4 }
 0x5cc   : > { %v5222_v41 = vsel %vm5221_vm2, %v9660_v27, %v5218_v30  ;;  %v5336_v17 = vsub.f32 1.0, %v5335_v59  ;;  %v9666_v9 = vpop.eup %9665  ;;  %vm19351_vm2 = vmmov %vm19347_vm8 }
 0x5cd   : > { %v5107_v62 = vadd.f32 1.0, %v9666_v9  ;;  %9667 = vrcp.f32 %v5099_v6  ;;  %v5227_v1 = vsel %vm5224_vm5, %v5226_v37, %v5222_v41  ;;  %v5240_v32 = vand.u32 2147483648, %v5099_v6  ;;  %vm19352_vm5 = vmmov %vm19351_vm2 }
 0x5ce   : > { %v5337_v28 = vmul.f32 %v9662_v51, %v5336_v17  ;;  %v5610_v35 = vmul.f32 %v5227_v1, %v16479_v18  ;;  %v5238_v11 = vand.u32 2147483647, %v5099_v6  ;;  %vm5234_vm10 = vweird.f32 %v5099_v6  ;;  %vm19353_vm4 = vmmov %vm19351_vm2 }
 0x5cf   : > { %9669 = vrcp.f32 %v5107_v62  ;;  %v5360_v18 = vand.u32 2147483648, %v5107_v62  ;;  %v5358_v0 = vand.u32 2147483647, %v5107_v62  ;;  %v5241_v54 = vor.u32 1.1754944e-38, %v5240_v32  ;;  %vm19354_vm7 = vmmov %vm19351_vm2 }
 0x5d0   : > { %v5338_v39 = vadd.f32 %v9662_v51, %v5337_v28  ;;  %v5642_v58 = vadd.f32 %v5610_v35, %v19345_v20  ;;  %vm5239_vm13 = vcmp.eq.f32.partialorder %v5238_v11, 8.507059e+37  ;;  %vm5354_vm6 = vweird.f32 %v5107_v62  ;;  %v5742_v48 = vpop.f32.mrf.mxu0 }
 0x5d1   : > { %v5361_v3 = vor.u32 1.1754944e-38, %v5360_v18  ;;  %vm5359_vm3 = vcmp.eq.f32.partialorder %v5358_v0, 8.507059e+37  ;;  %v5743_v33 = vadd.f32 %v5742_v48, %v16642_v19  ;;  %v5757_v28 = vadd.f32 %v5756_v25, %v16658_v34 }
 0x5d2   : > { %v5342_v42 = vsel %vm5341_vm9, %v9662_v51, %v5338_v39  ;;  %v5761_v51 = vpop.f32.mrf.mxu1  ;;  %v16654_v17 = vpop.permute.xlu1 %5699  ;;  %v16667_v39 = vld [vmem:[%s17905_s7] sm:$0xff]  ;;  %vm19355_vm9 = vmmov %vm19351_vm2 }
 0x5d3   : > { %v5347_v46 = vsel %vm5344_vm11, %v5346_v57, %v5342_v42  ;;  %v9668_v63 = vpop.eup %9667  ;;  %v5762_v30 = vadd.f32 %v5761_v51, %v16642_v19  ;;  %vm19356_vm11 = vmmov %vm19351_vm2 }
 0x5d4   : > { %v5618_v53 = vmul.f32 %v5347_v46, %v16536_v50  ;;  %v5230_v4 = vmul.f32 %v9668_v63, %v5099_v6  ;;  %vm5235_vm14 = vweird.f32 %v9668_v63  ;;  %v5759_v6 = vadd.f32 %v5758_v52, %v16654_v17 }
 0x5d5   : > { %v9670_v22 = vpop.eup %9669  ;;  %vm5236_vm12 = vmor %vm5234_vm10, %vm5235_vm14 }
 0x5d6   : > { %v5650_v2 = vadd.f32 %v5618_v53, %v19346_v13  ;;  %v5231_v21 = vsub.f32 1.0, %v5230_v4  ;;  %v5350_v60 = vmul.f32 %v9670_v22, %v5107_v62  ;;  %vm5355_vm0 = vweird.f32 %v9670_v22  ;;  %vm19357_vm14 = vmmov %vm19351_vm2 }
 0x5d7   : > { %vm5356_vm1 = vmor %vm5354_vm6, %vm5355_vm0  ;;  %v5889_v1 = vpack.c.bf16 %v5759_v6, %v5757_v28 }
 0x5d8   : > { %v5678_v26 = vpack.c.bf16 %v5650_v2, %v5642_v58  ;;  %v5232_v38 = vmul.f32 %v9668_v63, %v5231_v21  ;;  %v5351_v15 = vsub.f32 1.0, %v5350_v60  ;;  %v16691_v21 = vld [vmem:[%s17905_s7 + $0x10] sm:$0xff]  ;;  %vm19358_vm10 = vmmov %vm19351_vm2 }
 0x5d9   : > { %vm19359_vm0 = vmmov %vm19351_vm2 }
 0x5da   : > { %5849 = vmatpush.bf16.msrb.mxu2 %v5678_v26  ;;  %v5233_v50 = vadd.f32 %v9668_v63, %v5232_v38  ;;  %v5352_v7 = vmul.f32 %v9670_v22, %v5351_v15  ;;  %v5763_v31 = vpop.f32.mrf.mxu1  ;;  %vm19362_vm6 = vmmov %vm19359_vm0 }
 0x5dc   : > { %v5237_v16 = vsel %vm5236_vm12, %v9668_v63, %v5233_v50  ;;  %v5353_v61 = vadd.f32 %v9670_v22, %v5352_v7  ;;  %vm19360_vm12 = vmmov %vm19359_vm0  ;;  %v16708_v50 = vld [vmem:[%s17905_s7 + $0x18] sm:$0xff] }
 0x5dd   : > { %8574 = vmatmul.msk.bf16.vlgmr.msrb.gmra.mxu2 %vm19347_vm8, %v16451_v43  ;;  %v5242_v12 = vsel %vm5239_vm13, %v5241_v54, %v5237_v16  ;;  %vm19361_vm13 = vmmov %vm19359_vm0 }
 0x5de   : > { %v5357_v29 = vsel %vm5356_vm1, %v9670_v22, %v5353_v61  ;;  %v5611_v27 = vmul.f32 %v5242_v12, %v16595_v47  ;;  %v16648_v47 = vpop.permute.xlu2 %5709  ;;  %vm19363_vm8 = vmmov %vm19359_vm0 }
 0x5df   : > { %v5362_v23 = vsel %vm5359_vm3, %v5361_v3, %v5357_v29  ;;  %v5764_v36 = vadd.f32 %v5763_v31, %v16648_v47  ;;  %vm19364_vm1 = vmmov %vm19359_vm0 }
 0x5e0   : > { %v5619_v56 = vmul.f32 %v5362_v23, %v16614_v55  ;;  %v5643_v44 = vadd.f32 %v5611_v27, %v19348_v40  ;;  %v5744_v55 = vpop.f32.mrf.mxu0  ;;  %vm19365_vm3 = vmmov %vm19359_vm0 }
 0x5e1   : > { %v5745_v59 = vadd.f32 %v5744_v55, %v16648_v47  ;;  %v5897_v37 = vpack.c.bf16 %v5764_v36, %v5762_v30 }
 0x5e2   : > { %v5651_v10 = vadd.f32 %v5619_v56, %v19349_v8 }
 0x5e3   : > { %v5896_v9 = vpack.c.bf16 %v5745_v59, %v5743_v33  ;;  %6019 = vmatpush.bf16.msra.mxu1 %v5897_v37 }
 0x5e4   : > { %v5679_v49 = vpack.c.bf16 %v5651_v10, %v5643_v44 }
 0x5e5   : > { %5990 = vmatpush.bf16.msra.mxu0 %v5896_v9 }
 0x5e6   : > { %5868 = vmatpush.bf16.msrb.mxu3 %v5679_v49 }
 0x5e7   : > { %6020 = vmatpush.bf16.msra.mxu1 %v5889_v1 }
 0x5e9   : > { %8576 = vmatmul.msk.bf16.vlgmr.msrb.gmra.mxu3 %vm19350_vm15, %v16451_v43  ;;  %v5740_v43 = vadd.f32 %v5739_v5, %v16654_v17  ;;  %vm19366_vm15 = vmmov %vm19359_vm0 }
 0x5ea   : > { %8598 = vmatmul.msk.bf16.vlgmr.msra.gmra.mxu1 %vm19354_vm7, %v16667_v39  ;;  %vm19370_vm7 = vmmov %vm19359_vm0 }
 0x5eb   : > { %v5775_v41 = vpop.f32.mrf.mxu2  ;;  %v5888_v62 = vpack.c.bf16 %v5740_v43, %v5738_v24 }
 0x5ec   : > { %v5776_v58 = vadd.f32 %v5775_v41, %v16658_v34 }
 0x5ed   : > { %8575 = vmatmul.msk.bf16.gmra.mxu2 %vm19351_vm2, %v16546_v45  ;;  %5991 = vmatpush.bf16.msra.mxu0 %v5888_v62  ;;  %vm19367_vm2 = vmmov %vm19359_vm0 }
 0x5f0   : > { %8594 = vmatmul.msk.bf16.vlgmr.msra.gmra.mxu0 %vm19353_vm4, %v16667_v39  ;;  %vm19369_vm4 = vmmov %vm19359_vm0 }
 0x5f3   : > { %v5777_v57 = vpop.f32.mrf.mxu2 }
 0x5f4   : > { %v5778_v4 = vadd.f32 %v5777_v57, %v16654_v17 }
 0x5f6   : > { %v5890_v13 = vpack.c.bf16 %v5778_v4, %v5776_v58 }
 0x5f9   : > { %8577 = vmatmul.msk.bf16.gmra.mxu3 %vm19352_vm5, %v16546_v45  ;;  %v16676_v45 = vld [vmem:[%s17905_s7 + $0x8] sm:$0xff]  ;;  %vm19368_vm5 = vmmov %vm19359_vm0 }
 0x5fa   : > { %8599 = vmatmul.msk.bf16.gmra.mxu1 %vm19356_vm11, %v16676_v45  ;;  %vm19372_vm11 = vmmov %vm19359_vm0 }
 0x5fb   : > { %v5780_v42 = vpop.f32.mrf.mxu2 }
 0x5fc   : > { %v5781_v63 = vadd.f32 %v5780_v42, %v16642_v19 }
 0x5fe   : > { %v5794_v35 = vpop.f32.mrf.mxu3 }
 0x5ff   : > { %v5795_v18 = vadd.f32 %v5794_v35, %v16658_v34 }
 0x600   : > { %8595 = vmatmul.msk.bf16.gmra.mxu0 %vm19355_vm9, %v16676_v45  ;;  %vm19371_vm9 = vmmov %vm19359_vm0 }
 0x603   : > { %v5782_v46 = vpop.f32.mrf.mxu2 }
 0x604   : > { %v5783_v53 = vadd.f32 %v5782_v46, %v16648_v47 }
 0x606   : > { %v5796_v22 = vpop.f32.mrf.mxu3  ;;  %v5898_v20 = vpack.c.bf16 %v5783_v53, %v5781_v63 }
 0x607   : > { %v5797_v38 = vadd.f32 %v5796_v22, %v16654_v17 }
 0x608   : > { %6048 = vmatpush.bf16.msra.mxu2 %v5898_v20 }
 0x609   : > { %v5891_v14 = vpack.c.bf16 %v5797_v38, %v5795_v18 }
 0x60a   : > { %8600 = vmatmul.msk.bf16.gmra.mxu1 %vm19359_vm0, %v16691_v21 }
 0x60c   : > { %6049 = vmatpush.bf16.msra.mxu2 %v5890_v13 }
 0x60f   : > { %8602 = vmatmul.msk.bf16.vlgmr.msra.gmra.mxu2 %vm19357_vm14, %v16667_v39  ;;  %vm19373_vm14 = vmmov %vm19359_vm0 }
 0x610   : > { %8596 = vmatmul.msk.bf16.gmra.mxu0 %vm19358_vm10, %v16691_v21  ;;  %vm19374_vm10 = vmmov %vm19359_vm0 }
 0x612   : > { %v5799_v2 = vpop.f32.mrf.mxu3 }
 0x613   : > { %v5800_v26 = vadd.f32 %v5799_v2, %v16642_v19 }
 0x61a   : > { %v5801_v60 = vpop.f32.mrf.mxu3  ;;  %8601 = vmatmul.msk.bf16.gmra.mxu1 %vm19363_vm8, %v16708_v50  ;;  %vm19378_vm8 = vmmov %vm19359_vm0 }
 0x61b   : > { %v5802_v32 = vadd.f32 %v5801_v60, %v16648_v47 }
 0x61d   : > { %v5899_v11 = vpack.c.bf16 %v5802_v32, %v5800_v26  ;;  %v16796_v32 = vpop.permute.xlu2 %5944 }
 0x61f   : > { %6077 = vmatpush.bf16.msra.mxu3 %v5899_v11  ;;  %8603 = vmatmul.msk.bf16.gmra.mxu2 %vm19360_vm12, %v16676_v45  ;;  %vm19375_vm12 = vmmov %vm19359_vm0 }
 0x620   : > { %v5813_v15 = vpop.f32.mrf.mxu0  ;;  %8597 = vmatmul.msk.bf16.gmra.mxu0 %vm19362_vm6, %v16708_v50  ;;  %vm19377_vm6 = vmmov %vm19359_vm0 }
 0x621   : > { %v5814_v27 = vadd.f32 %v5813_v15, %v16658_v34 }
 0x623   : > { %6078 = vmatpush.bf16.msra.mxu3 %v5891_v14  ;;  %v16802_v14 = vpop.permute.xlu0 %5949 }
 0x626   : > { %8606 = vmatmul.msk.bf16.vlgmr.msra.gmra.mxu3 %vm19361_vm13, %v16667_v39  ;;  %vm19376_vm13 = vmmov %vm19359_vm0 }
 0x628   : > { %v5815_v25 = vpop.f32.mrf.mxu0 }
 0x629   : > { %v5816_v3 = vadd.f32 %v5815_v25, %v16654_v17 }
 0x62b   : > { %v5892_v23 = vpack.c.bf16 %v5816_v3, %v5814_v27 }
 0x62e   : > { %v5832_v7 = vpop.f32.mrf.mxu1 }
 0x62f   : > { %8604 = vmatmul.msk.bf16.gmra.mxu2 %vm19364_vm1, %v16691_v21  ;;  %v5833_v10 = vadd.f32 %v5832_v7, %v16658_v34  ;;  %vm19379_vm1 = vmmov %vm19359_vm0 }
 0x630   : > { %v5818_v0 = vpop.f32.mrf.mxu0 }
 0x631   : > { %v5819_v61 = vadd.f32 %v5818_v0, %v16642_v19 }
 0x636   : > { %v5834_v54 = vpop.f32.mrf.mxu1  ;;  %8607 = vmatmul.msk.bf16.gmra.mxu3 %vm19365_vm3, %v16676_v45  ;;  %vm19380_vm3 = vmmov %vm19359_vm0 }
 0x637   : > { %v5835_v44 = vadd.f32 %v5834_v54, %v16654_v17 }
 0x638   : > { %v5820_v16 = vpop.f32.mrf.mxu0 }
 0x639   : > { %v5821_v12 = vadd.f32 %v5820_v16, %v16648_v47  ;;  %v5893_v49 = vpack.c.bf16 %v5835_v44, %v5833_v10  ;;  %v16825_v10 = vld [vmem:[%s17907_s9] sm:$0xff] }
 0x63b   : > { %v5900_v29 = vpack.c.bf16 %v5821_v12, %v5819_v61  ;;  %v16810_v12 = vpop.permute.xlu2 %5939 }
 0x63d   : > { %6106 = vmatpush.bf16.msrb.mxu0 %v5900_v29 }
 0x63f   : > { %8605 = vmatmul.msk.bf16.gmra.mxu2 %vm19367_vm2, %v16708_v50  ;;  %vm19382_vm2 = vmmov %vm19359_vm0 }
 0x640   : > { %v5837_v56 = vpop.f32.mrf.mxu1 }
 0x641   : > { %6107 = vmatpush.bf16.msrb.mxu0 %v5892_v23  ;;  %v5838_v52 = vadd.f32 %v5837_v56, %v16642_v19 }
 0x644   : > { %8610 = vmatmul.msk.bf16.vlgmr.msrb.gmra.mxu0 %vm19366_vm15, %v16667_v39  ;;  %vm19381_vm15 = vmmov %vm19359_vm0 }
 0x646   : > { %8608 = vmatmul.msk.bf16.gmra.mxu3 %vm19368_vm5, %v16691_v21  ;;  %vm19383_vm5 = vmmov %vm19359_vm0 }
 0x648   : > { %v5839_v5 = vpop.f32.mrf.mxu1 }
 0x649   : > { %v5840_v40 = vadd.f32 %v5839_v5, %v16648_v47 }
 0x64b   : > { %v5901_v8 = vpack.c.bf16 %v5840_v40, %v5838_v52 }
 0x64d   : > { %6135 = vmatpush.bf16.msrb.mxu1 %v5901_v8 }
 0x651   : > { %6136 = vmatpush.bf16.msrb.mxu1 %v5893_v49 }
 0x654   : > { %8614 = vmatmul.msk.bf16.vlgmr.msrb.gmra.mxu1 %vm19369_vm4, %v16667_v39  ;;  %8611 = vmatmul.msk.bf16.gmra.mxu0 %vm19370_vm7, %v16676_v45  ;;  %vm19384_vm4 = vmmov %vm19359_vm0 }
 0x655   : > { %vm19385_vm7 = vmmov %vm19359_vm0 }
 0x656   : > { %8609 = vmatmul.msk.bf16.gmra.mxu3 %vm19371_vm9, %v16708_v50  ;;  %vm19386_vm9 = vmmov %vm19359_vm0 }
 0x660   : > { %v5851_v48 = vpop.f32.mrf.mxu2 }
 0x661   : > { %v5852_v6 = vadd.f32 %v5851_v48, %v16658_v34 }
 0x664   : > { %8615 = vmatmul.msk.bf16.gmra.mxu1 %vm19372_vm11, %v16676_v45  ;;  %8612 = vmatmul.msk.bf16.gmra.mxu0 %vm19373_vm14, %v16691_v21  ;;  %vm19387_vm11 = vmmov %vm19359_vm0 }
 0x665   : > { %vm19388_vm14 = vmmov %vm19359_vm0 }
 0x667   : > { %v16758_v57 = vpop.f32.mrf.mxu1 }
 0x668   : > { %v5853_v51 = vpop.f32.mrf.mxu2 }
 0x669   : > { %v5854_v41 = vadd.f32 %v5853_v51, %v16654_v17 }
 0x66b   : > { %v5894_v37 = vpack.c.bf16 %v5854_v41, %v5852_v6 }
 0x66c   : > { %v5870_v55 = vpop.f32.mrf.mxu3 }
 0x66d   : > { %v16756_v1 = vpop.f32.mrf.mxu0  ;;  %v5871_v46 = vadd.f32 %v5870_v55, %v16658_v34 }
 0x670   : > { %v5856_v31 = vpop.f32.mrf.mxu2 }
 0x671   : > { %v5857_v59 = vadd.f32 %v5856_v31, %v16642_v19 }
 0x674   : > { %8616 = vmatmul.msk.bf16.gmra.mxu1 %vm19374_vm10, %v16691_v21  ;;  %v5872_v33 = vpop.f32.mrf.mxu3  ;;  %8613 = vmatmul.msk.bf16.gmra.mxu0 %vm19359_vm0, %v16708_v50  ;;  %vm19389_vm10 = vmmov %vm19359_vm0 }
 0x675   : > { %v5873_v42 = vadd.f32 %v5872_v33, %v16654_v17  ;;  %v16764_v53 = vpop.f32.mrf.mxu0 }
 0x677   : > { %v5895_v63 = vpack.c.bf16 %v5873_v42, %v5871_v46 }
 0x678   : > { %v5858_v30 = vpop.f32.mrf.mxu2 }
 0x679   : > { %v5859_v36 = vadd.f32 %v5858_v30, %v16648_v47 }
 0x67b   : > { %v5902_v43 = vpack.c.bf16 %v5859_v36, %v5857_v59  ;;  %v16842_v36 = vld [vmem:[%s17907_s9 + $0x8] sm:$0xff] }
 0x67c   : > { %v5875_v9 = vpop.f32.mrf.mxu3 }
 0x67d   : > { %6164 = vmatpush.bf16.msrb.mxu2 %v5902_v43  ;;  %v5876_v28 = vadd.f32 %v5875_v9, %v16642_v19  ;;  %v16766_v19 = vpop.f32.mrf.mxu1 }
 0x681   : > { %6165 = vmatpush.bf16.msrb.mxu2 %v5894_v37 }
 0x684   : > { %8618 = vmatmul.msk.bf16.vlgmr.msrb.gmra.mxu2 %vm19375_vm12, %v16667_v39  ;;  %8617 = vmatmul.msk.bf16.gmra.mxu1 %vm19376_vm13, %v16708_v50  ;;  %v5877_v24 = vpop.f32.mrf.mxu3  ;;  %vm19390_vm12 = vmmov %vm19359_vm0 }
 0x685   : > { %v5878_v62 = vadd.f32 %v5877_v24, %v16648_v47  ;;  %v16770_v47 = vpop.f32.mrf.mxu0  ;;  %v16772_v4 = vpop.f32.mrf.mxu1  ;;  %vm19391_vm13 = vmmov %vm19359_vm0 }
 0x687   : > { %v5903_v35 = vpack.c.bf16 %v5878_v62, %v5876_v28 }
 0x689   : > { %6193 = vmatpush.bf16.msrb.mxu3 %v5903_v35 }
 0x68d   : > { %6194 = vmatpush.bf16.msrb.mxu3 %v5895_v63  ;;  %v16776_v17 = vpop.f32.mrf.mxu0  ;;  %v16778_v34 = vpop.f32.mrf.mxu1 }
 0x690   : > { %8622 = vmatmul.msk.bf16.vlgmr.msrb.gmra.mxu3 %vm19377_vm6, %v16667_v39  ;;  %vm19392_vm6 = vmmov %vm19359_vm0 }
 0x692   : > { %v16780_v22 = vpop.f32.mrf.mxu2 }
 0x694   : > { %8619 = vmatmul.msk.bf16.gmra.mxu2 %vm19378_vm8, %v16676_v45  ;;  %vm19393_vm8 = vmmov %vm19359_vm0 }
 0x695   : > { %v6003_v39 = vpop.f32.mrf.mxu0  ;;  %v6032_v20 = vpop.f32.mrf.mxu1 }
 0x69a   : > { %v16784_v58 = vpop.f32.mrf.mxu2 }
 0x69d   : > { %v6005_v2 = vpop.f32.mrf.mxu0 }
 0x69e   : > { %v6006_v3 = vadd.f32 %v6005_v2, %v16810_v12 }
 0x6a0   : > { %8623 = vmatmul.msk.bf16.gmra.mxu3 %vm19379_vm1, %v16676_v45  ;;  %v6034_v45 = vpop.f32.mrf.mxu1  ;;  %vm19395_vm1 = vmmov %vm19359_vm0 }
 0x6a1   : > { %v6035_v29 = vadd.f32 %v6034_v45, %v16810_v12 }
 0x6a2   : > { %v16790_v60 = vpop.f32.mrf.mxu2 }
 0x6a4   : > { %8620 = vmatmul.msk.bf16.gmra.mxu2 %vm19380_vm3, %v16691_v21  ;;  %vm19396_vm3 = vmmov %vm19359_vm0 }
 0x6a5   : > { %v6008_v38 = vpop.f32.mrf.mxu0 }
 0x6a6   : > { %v6009_v7 = vadd.f32 %v6008_v38, %v16796_v32 }
 0x6a8   : > { %v6037_v11 = vpop.f32.mrf.mxu1 }
 0x6a9   : > { %v16786_v13 = vpop.f32.mrf.mxu3  ;;  %v6038_v0 = vadd.f32 %v6037_v11, %v16796_v32 }
 0x6aa   : > { %v16798_v15 = vpop.f32.mrf.mxu2 }
 0x6b0   : > { %8624 = vmatmul.msk.bf16.gmra.mxu3 %vm19381_vm15, %v16691_v21  ;;  %v6010_v21 = vpop.f32.mrf.mxu0  ;;  %v6039_v25 = vpop.f32.mrf.mxu1  ;;  %vm19398_vm15 = vmmov %vm19359_vm0 }
 0x6b1   : > { %v16794_v26 = vpop.f32.mrf.mxu3  ;;  %v6011_v54 = vadd.f32 %v6010_v21, %v16802_v14  ;;  %v6040_v16 = vadd.f32 %v6039_v25, %v16802_v14 }
 0x6b2   : > { %v6061_v61 = vpop.f32.mrf.mxu2 }
 0x6b3   : > { %v6256_v27 = vpack.c.bf16 %v6011_v54, %v6009_v7  ;;  %v6257_v23 = vpack.c.bf16 %v6040_v16, %v6038_v0  ;;  %v16869_v7 = vld [vmem:[%s17907_s9 + $0x10] sm:$0xff] }
 0x6b4   : > { %8621 = vmatmul.msk.bf16.gmra.mxu2 %vm19382_vm2, %v16708_v50  ;;  %vm19400_vm2 = vmmov %vm19359_vm0 }
 0x6b5   : > { %6398 = vmatpush.bf16.msra.mxu0 %v6256_v27  ;;  %6487 = vmatpush.bf16.msra.mxu1 %v6257_v23 }
 0x6b9   : > { %v16800_v18 = vpop.f32.mrf.mxu3 }
 0x6ba   : > { %v6063_v49 = vpop.f32.mrf.mxu2 }
 0x6bb   : > { %v6064_v9 = vadd.f32 %v6063_v49, %v16810_v12 }
 0x6c0   : > { %8625 = vmatmul.msk.bf16.gmra.mxu3 %vm19383_vm5, %v16708_v50  ;;  %v16814_v50 = vpop.permute.xlu1 %5934  ;;  %vm19402_vm5 = vmmov %vm19359_vm0 }
 0x6c1   : > { %v16816_v56 = vpop.f32.mrf.mxu3  ;;  %v6004_v5 = vadd.f32 %v6003_v39, %v16814_v50  ;;  %v6033_v52 = vadd.f32 %v6032_v20, %v16814_v50  ;;  %v16820_v8 = vpop.f32.mrf.mxu0  ;;  %v6062_v28 = vadd.f32 %v6061_v61, %v16814_v50 }
 0x6c2   : > { %v6066_v31 = vpop.f32.mrf.mxu2 }
 0x6c3   : > { %v6248_v40 = vpack.c.bf16 %v6006_v3, %v6004_v5  ;;  %v6249_v44 = vpack.c.bf16 %v6035_v29, %v6033_v52  ;;  %v6067_v43 = vadd.f32 %v6066_v31, %v16796_v32  ;;  %v6250_v62 = vpack.c.bf16 %v6064_v9, %v6062_v28  ;;  %v16882_v3 = vld [vmem:[%s17907_s9 + $0x18] sm:$0xff]  ;;  %v8847_v28 = vld [vmem:[%s17907_s9 + $0x20] sm:$0xff] }
 0x6c5   : > { %6399 = vmatpush.bf16.msra.mxu0 %v6248_v40  ;;  %6488 = vmatpush.bf16.msra.mxu1 %v6249_v44 }
 0x6c8   : > { %8690 = vmatmul.msk.bf16.vlgmr.msra.gmra.mxu0 %vm19384_vm4, %v16825_v10  ;;  %8706 = vmatmul.msk.bf16.vlgmr.msra.gmra.mxu1 %vm19385_vm7, %v16825_v10  ;;  %vm19403_vm4 = vmmov %vm19359_vm0 }
 0x6c9   : > { %v6090_v48 = vpop.f32.mrf.mxu3  ;;  %v16833_v55 = vpop.f32.mrf.mxu0  ;;  %vm19406_vm7 = vmmov %vm19359_vm0 }
 0x6ca   : > { %v6068_v41 = vpop.f32.mrf.mxu2  ;;  %v6091_v38 = vadd.f32 %v6090_v48, %v16814_v50 }
 0x6cb   : > { %v6069_v6 = vadd.f32 %v6068_v41, %v16802_v14 }
 0x6cd   : > { %v6258_v24 = vpack.c.bf16 %v6069_v6, %v6067_v43 }
 0x6cf   : > { %6576 = vmatpush.bf16.msra.mxu2 %v6258_v24 }
 0x6d1   : > { %v16831_v51 = vpop.f32.mrf.mxu1  ;;  %v6092_v33 = vpop.f32.mrf.mxu3 }
 0x6d2   : > { %v16837_v59 = vpop.f32.mrf.mxu0  ;;  %v6093_v20 = vadd.f32 %v6092_v33, %v16810_v12 }
 0x6d3   : > { %6577 = vmatpush.bf16.msra.mxu2 %v6250_v62 }
 0x6d4   : > { %v6251_v21 = vpack.c.bf16 %v6093_v20, %v6091_v38  ;;  %v8848_v20 = vld [vmem:[%s17907_s9 + $0x28] sm:$0xff] }
 0x6d6   : > { %8722 = vmatmul.msk.bf16.vlgmr.msra.gmra.mxu2 %vm19388_vm14, %v16825_v10  ;;  %vm19410_vm14 = vmmov %vm19359_vm0 }
 0x6d8   : > { %8691 = vmatmul.msk.bf16.gmra.mxu0 %vm19386_vm9, %v16842_v36  ;;  %8707 = vmatmul.msk.bf16.gmra.mxu1 %vm19387_vm11, %v16842_v36  ;;  %vm19408_vm9 = vmmov %vm19359_vm0 }
 0x6d9   : > { %v16835_v30 = vpop.f32.mrf.mxu1  ;;  %v6095_v37 = vpop.f32.mrf.mxu3  ;;  %vm19409_vm11 = vmmov %vm19359_vm0 }
 0x6da   : > { %v16854_v35 = vpop.f32.mrf.mxu0  ;;  %v6096_v63 = vadd.f32 %v6095_v37, %v16796_v32 }
 0x6e1   : > { %v16852_v42 = vpop.f32.mrf.mxu1  ;;  %v6097_v46 = vpop.f32.mrf.mxu3 }
 0x6e2   : > { %v6098_v39 = vadd.f32 %v6097_v46, %v16802_v14  ;;  %v6119_v11 = vpop.f32.mrf.mxu0 }
 0x6e3   : > { %v6120_v49 = vadd.f32 %v6119_v11, %v16814_v50 }
 0x6e4   : > { %v6259_v2 = vpack.c.bf16 %v6098_v39, %v6096_v63 }
 0x6e6   : > { %6665 = vmatpush.bf16.msra.mxu3 %v6259_v2  ;;  %8723 = vmatmul.msk.bf16.gmra.mxu2 %vm19359_vm0, %v16842_v36 }
 0x6e8   : > { %8692 = vmatmul.msk.bf16.gmra.mxu0 %vm19390_vm12, %v16869_v7  ;;  %8708 = vmatmul.msk.bf16.gmra.mxu1 %vm19391_vm13, %v16869_v7  ;;  %vm19413_vm12 = vmmov %vm19359_vm0 }
 0x6e9   : > { %v16861_v45 = vpop.f32.mrf.mxu1  ;;  %vm19414_vm13 = vmmov %vm19359_vm0 }
 0x6ea   : > { %6666 = vmatpush.bf16.msra.mxu3 %v6251_v21  ;;  %v6121_v0 = vpop.f32.mrf.mxu0  ;;  %v8849_v21 = vld [vmem:[%s17907_s9 + $0x30] sm:$0xff] }
 0x6eb   : > { %v6122_v52 = vadd.f32 %v6121_v0, %v16810_v12 }
 0x6ed   : > { %8738 = vmatmul.msk.bf16.vlgmr.msra.gmra.mxu3 %vm19389_vm10, %v16825_v10  ;;  %v6252_v33 = vpack.c.bf16 %v6122_v52, %v6120_v49  ;;  %vm19412_vm10 = vmmov %vm19359_vm0  ;;  %v8850_v52 = vld [vmem:[%s17907_s9 + $0x38] sm:$0xff] }
 0x6f1   : > { %v6148_v25 = vpop.f32.mrf.mxu1 }
 0x6f2   : > { %v6124_v16 = vpop.f32.mrf.mxu0  ;;  %v6149_v6 = vadd.f32 %v6148_v25, %v16814_v50 }
 0x6f3   : > { %v6125_v27 = vadd.f32 %v6124_v16, %v16796_v32 }
 0x6f6   : > { %8724 = vmatmul.msk.bf16.gmra.mxu2 %vm19393_vm8, %v16869_v7  ;;  %vm19416_vm8 = vmmov %vm19359_vm0 }
 0x6f8   : > { %8693 = vmatmul.msk.bf16.gmra.mxu0 %vm19395_vm1, %v16882_v3  ;;  %8709 = vmatmul.msk.bf16.gmra.mxu1 %vm19396_vm3, %v16882_v3  ;;  %vm19417_vm1 = vmmov %vm19359_vm0 }
 0x6f9   : > { %v6150_v54 = vpop.f32.mrf.mxu1  ;;  %vm19418_vm3 = vmmov %vm19359_vm0 }
 0x6fa   : > { %v6126_v29 = vpop.f32.mrf.mxu0  ;;  %v6151_v41 = vadd.f32 %v6150_v54, %v16810_v12 }
 0x6fb   : > { %v6127_v23 = vadd.f32 %v6126_v29, %v16802_v14 }
 0x6fc   : > { %v6253_v37 = vpack.c.bf16 %v6151_v41, %v6149_v6 }
 0x6fd   : > { %8739 = vmatmul.msk.bf16.gmra.mxu3 %vm19392_vm6, %v16842_v36  ;;  %v6260_v40 = vpack.c.bf16 %v6127_v23, %v6125_v27  ;;  %vm19415_vm6 = vmmov %vm19359_vm0 }
 0x6ff   : > { %6754 = vmatpush.bf16.msrb.mxu0 %v6260_v40 }
 0x701   : > { %v6153_v61 = vpop.f32.mrf.mxu1 }
 0x702   : > { %v6154_v48 = vadd.f32 %v6153_v61, %v16796_v32 }
 0x703   : > { %6755 = vmatpush.bf16.msrb.mxu0 %v6252_v33 }
 0x706   : > { %8725 = vmatmul.msk.bf16.gmra.mxu2 %vm19400_vm2, %v16882_v3  ;;  %vm19420_vm2 = vmmov %vm19359_vm0 }
 0x707   : > { %v16888_v5 = vpop.f32.mrf.mxu2 }
 0x708   : > { %19394 = vst [vmem:[#allocation23_spill] sm:$0xff] %v16888_v5  ;;  %8694 = vmatmul.msk.bf16.gmra.mxu0 %vm19402_vm5, %v8847_v28  ;;  %8710 = vmatmul.msk.bf16.gmra.mxu1 %vm19403_vm4, %v8847_v28  ;;  %vm19421_vm5 = vmmov %vm19359_vm0 }
 0x709   : > { %v6155_v44 = vpop.f32.mrf.mxu1  ;;  %vm19422_vm4 = vmmov %vm19359_vm0 }
 0x70a   : > { %v6156_v31 = vadd.f32 %v6155_v44, %v16802_v14 }
 0x70c   : > { %v6261_v43 = vpack.c.bf16 %v6156_v31, %v6154_v48  ;;  %v16949_v48 = vpop.permute.xlu0 %5914 }
 0x70d   : > { %8740 = vmatmul.msk.bf16.gmra.mxu3 %vm19398_vm15, %v16869_v7  ;;  %v16953_v31 = vadd.f32 %v16756_v1, %v16949_v48  ;;  %v16957_v33 = vadd.f32 %v16758_v57, %v16949_v48  ;;  %vm19419_vm15 = vmmov %vm19359_vm0 }
 0x70e   : > { %6843 = vmatpush.bf16.msrb.mxu1 %v6261_v43 }
 0x70f   : > { %v16900_v9 = vpop.f32.mrf.mxu2 }
 0x710   : > { %19397 = vst [vmem:[#allocation59_spill] sm:$0xff] %v16900_v9 }
 0x712   : > { %6844 = vmatpush.bf16.msrb.mxu1 %v6253_v37 }
 0x713   : > { %v16904_v24 = vpop.f32.mrf.mxu3 }
 0x714   : > { %19399 = vst [vmem:[#allocation26_spill] sm:$0xff] %v16904_v24 }
 0x716   : > { %8726 = vmatmul.msk.bf16.gmra.mxu2 %vm19408_vm9, %v8847_v28  ;;  %vm19424_vm9 = vmmov %vm19359_vm0 }
 0x717   : > { %v16911_v62 = vpop.f32.mrf.mxu2 }
 0x718   : > { %19401 = vst [vmem:[#allocation35_spill] sm:$0xff] %v16911_v62  ;;  %8695 = vmatmul.msk.bf16.gmra.mxu0 %vm19409_vm11, %v8848_v20  ;;  %8711 = vmatmul.msk.bf16.gmra.mxu1 %vm19410_vm14, %v8848_v20  ;;  %vm19425_vm11 = vmmov %vm19359_vm0 }
 0x719   : > { %vm19426_vm14 = vmmov %vm19359_vm0 }
 0x71b   : > { %v16915_v46 = vpop.f32.mrf.mxu3 }
 0x71c   : > { %19404 = vst [vmem:[#allocation10_spill] sm:$0xff] %v16915_v46 }
 0x71d   : > { %8741 = vmatmul.msk.bf16.gmra.mxu3 %vm19406_vm7, %v16882_v3  ;;  %vm19423_vm7 = vmmov %vm19359_vm0 }
 0x71f   : > { %v16917_v63 = vpop.f32.mrf.mxu2 }
 0x720   : > { %19405 = vst [vmem:[#allocation32_spill] sm:$0xff] %v16917_v63 }
 0x723   : > { %v16921_v39 = vpop.f32.mrf.mxu3 }
 0x724   : > { %19407 = vst [vmem:[#allocation72_spill] sm:$0xff] %v16921_v39 }
 0x726   : > { %8727 = vmatmul.msk.bf16.gmra.mxu2 %vm19359_vm0, %v8848_v20 }
 0x727   : > { %v6177_v2 = vpop.f32.mrf.mxu2 }
 0x728   : > { %8696 = vmatmul.msk.bf16.gmra.mxu0 %vm19413_vm12, %v8849_v21  ;;  %8712 = vmatmul.msk.bf16.gmra.mxu1 %vm19414_vm13, %v8849_v21  ;;  %v6178_v40 = vadd.f32 %v6177_v2, %v16814_v50  ;;  %vm19428_vm12 = vmmov %vm19359_vm0 }
 0x729   : > { %vm19429_vm13 = vmmov %vm19359_vm0 }
 0x72b   : > { %v16929_v38 = vpop.f32.mrf.mxu3 }
 0x72c   : > { %19411 = vst [vmem:[#allocation86_spill] sm:$0xff] %v16929_v38 }
 0x72d   : > { %8742 = vmatmul.msk.bf16.gmra.mxu3 %vm19412_vm10, %v8847_v28  ;;  %vm19427_vm10 = vmmov %vm19359_vm0 }
 0x72f   : > { %v6179_v11 = vpop.f32.mrf.mxu2 }
 0x730   : > { %v6180_v27 = vadd.f32 %v6179_v11, %v16810_v12 }
 0x732   : > { %v6254_v49 = vpack.c.bf16 %v6180_v27, %v6178_v40  ;;  %v16969_v27 = vpop.permute.xlu1 %5919 }
 0x733   : > { %v6206_v25 = vpop.f32.mrf.mxu3 }
 0x734   : > { %v6207_v1 = vadd.f32 %v6206_v25, %v16814_v50 }
 0x736   : > { %8728 = vmatmul.msk.bf16.gmra.mxu2 %vm19416_vm8, %v8849_v21  ;;  %vm19431_vm8 = vmmov %vm19359_vm0 }
 0x737   : > { %v6182_v0 = vpop.f32.mrf.mxu2 }
 0x738   : > { %v6183_v61 = vadd.f32 %v6182_v0, %v16796_v32  ;;  %8697 = vmatmul.msk.bf16.gmra.mxu0 %vm19417_vm1, %v8850_v52  ;;  %8713 = vmatmul.msk.bf16.gmra.mxu1 %vm19418_vm3, %v8850_v52  ;;  %vm19432_vm1 = vmmov %vm19359_vm0 }
 0x739   : > { %vm19433_vm3 = vmmov %vm19359_vm0 }
 0x73b   : > { %v6208_v54 = vpop.f32.mrf.mxu3 }
 0x73c   : > { %v6209_v11 = vadd.f32 %v6208_v54, %v16810_v12 }
 0x73d   : > { %8743 = vmatmul.msk.bf16.gmra.mxu3 %vm19415_vm6, %v8848_v20  ;;  %vm19430_vm6 = vmmov %vm19359_vm0 }
 0x73f   : > { %v6184_v16 = vpop.f32.mrf.mxu2 }
 0x740   : > { %v6185_v29 = vadd.f32 %v6184_v16, %v16802_v14 }
 0x742   : > { %v6262_v23 = vpack.c.bf16 %v6185_v29, %v6183_v61  ;;  %v6255_v61 = vpack.c.bf16 %v6209_v11, %v6207_v1  ;;  %v8851_v29 = vld [vmem:[%s17907_s9 + $0x40] sm:$0xff] }
 0x743   : > { %v6211_v44 = vpop.f32.mrf.mxu3 }
 0x744   : > { %6932 = vmatpush.bf16.msrb.mxu2 %v6262_v23  ;;  %v6212_v20 = vadd.f32 %v6211_v44, %v16796_v32  ;;  %v16973_v32 = vadd.f32 %v16764_v53, %v16969_v27 }
 0x745   : > { %v6401_v41 = vpop.f32.mrf.mxu0  ;;  %v6490_v43 = vpop.f32.mrf.mxu1 }
 0x746   : > { %v7104_v6 = vmul.f32 %v6401_v41, %v16953_v31  ;;  %v7105_v37 = vmul.f32 %v6490_v43, %v16957_v33  ;;  %8729 = vmatmul.msk.bf16.gmra.mxu2 %vm19420_vm2, %v8850_v52  ;;  %vm19435_vm2 = vmmov %vm19359_vm0 }
 0x748   : > { %6933 = vmatpush.bf16.msrb.mxu2 %v6254_v49  ;;  %8698 = vmatmul.msk.bf16.gmra.mxu0 %vm19421_vm5, %v8851_v29  ;;  %vm19436_vm5 = vmmov %vm19359_vm0 }
 0x749   : > { %8714 = vmatmul.msk.bf16.gmra.mxu1 %vm19422_vm4, %v8851_v29  ;;  %vm19437_vm4 = vmmov %vm19359_vm0 }
 0x74b   : > { %v6213_v28 = vpop.f32.mrf.mxu3 }
 0x74c   : > { %v6214_v2 = vadd.f32 %v6213_v28, %v16802_v14  ;;  %v16977_v14 = vadd.f32 %v16766_v19, %v16969_v27 }
 0x74d   : > { %8744 = vmatmul.msk.bf16.gmra.mxu3 %vm19419_vm15, %v8849_v21  ;;  %v6403_v57 = vpop.f32.mrf.mxu0  ;;  %v6492_v16 = vpop.f32.mrf.mxu1  ;;  %vm19434_vm15 = vmmov %vm19359_vm0 }
 0x74e   : > { %v6263_v0 = vpack.c.bf16 %v6214_v2, %v6212_v20  ;;  %v7112_v12 = vmul.f32 %v6403_v57, %v16973_v32  ;;  %v7113_v50 = vmul.f32 %v6492_v16, %v16977_v14  ;;  %v16984_v21 = vpop.permute.xlu2 %5924 }
 0x74f   : > { %v16988_v53 = vadd.f32 %v16770_v47, %v16984_v21  ;;  %v16992_v19 = vadd.f32 %v16772_v4, %v16984_v21  ;;  %v8852_v47 = vld [vmem:[%s17907_s9 + $0x48] sm:$0xff]  ;;  %v17005_v4 = vadd.f32 %v16780_v22, %v16949_v48  ;;  %v17021_v22 = vadd.f32 %v16786_v13, %v16949_v48  ;;  %v17031_v13 = vpop.permute.xlu0 %5929 }
 0x750   : > { %7021 = vmatpush.bf16.msrb.mxu3 %v6263_v0  ;;  %v7360_v23 = vadd.f32 %v7112_v12, %v7104_v6  ;;  %v7369_v40 = vadd.f32 %v7113_v50, %v7105_v37  ;;  %v17017_v0 = vld [vmem:[%s17907_s9 + $0x50] sm:$0xff]  ;;  %v17035_v50 = vadd.f32 %v16794_v26, %v16969_v27 }
 0x754   : > { %7022 = vmatpush.bf16.msrb.mxu3 %v6255_v61 }
 0x755   : > { %v6406_v25 = vpop.f32.mrf.mxu0  ;;  %v6495_v54 = vpop.f32.mrf.mxu1 }
 0x756   : > { %v7120_v44 = vmul.f32 %v6406_v25, %v16988_v53  ;;  %v7121_v49 = vmul.f32 %v6495_v54, %v16992_v19  ;;  %8730 = vmatmul.msk.bf16.gmra.mxu2 %vm19424_vm9, %v8851_v29  ;;  %v17039_v25 = vadd.f32 %v16790_v60, %v16984_v21  ;;  %vm19438_vm9 = vmmov %vm19359_vm0 }
 0x758   : > { %v7361_v41 = vadd.f32 %v7360_v23, %v7120_v44  ;;  %v7370_v43 = vadd.f32 %v7369_v40, %v7121_v49  ;;  %8699 = vmatmul.msk.bf16.gmra.mxu0 %vm19425_vm11, %v8852_v47  ;;  %v17043_v40 = vadd.f32 %v16776_v17, %v17031_v13  ;;  %v17047_v44 = vadd.f32 %v16778_v34, %v17031_v13  ;;  %vm19439_vm11 = vmmov %vm19359_vm0 }
 0x759   : > { %8715 = vmatmul.msk.bf16.gmra.mxu1 %vm19426_vm14, %v8852_v47  ;;  %v6579_v6 = vpop.f32.mrf.mxu2  ;;  %vm19440_vm14 = vmmov %vm19359_vm0 }
 0x75a   : > { %v7106_v20 = vmul.f32 %v6579_v6, %v17005_v4 }
 0x75d   : > { %8745 = vmatmul.msk.bf16.gmra.mxu3 %vm19423_vm7, %v8850_v52  ;;  %v6408_v37 = vpop.f32.mrf.mxu0  ;;  %v6497_v28 = vpop.f32.mrf.mxu1  ;;  %v17010_v52 = vadd.f32 %v16784_v58, %v16969_v27  ;;  %vm8000_vm7 = vcmask 1041409  }
 0x761   : > { %v6581_v2 = vpop.f32.mrf.mxu2 }
 0x762   : > { %v7114_v11 = vmul.f32 %v6581_v2, %v17010_v52 }
 0x764   : > { %v7378_v16 = vadd.f32 %v7114_v11, %v7106_v20  ;;  %v7128_v11 = vmul.f32 %v6408_v37, %v17043_v40  ;;  %v17067_v37 = vadd.f32 %v16798_v15, %v17031_v13 }
 0x765   : > { %v6411_v1 = vpop.f32.mrf.mxu0  ;;  %v6500_v57 = vpop.f32.mrf.mxu1 }
 0x766   : > { %v7136_v58 = vmul.f32 %v6411_v1, %v16953_v31  ;;  %v7137_v61 = vmul.f32 %v6500_v57, %v16957_v33  ;;  %8731 = vmatmul.msk.bf16.gmra.mxu2 %vm19359_vm0, %v8852_v47  ;;  %v7129_v1 = vmul.f32 %v6497_v28, %v17047_v44  ;;  %v7362_v34 = vadd.f32 %v7361_v41, %v7128_v11 }
 0x768   : > { %8700 = vmatmul.msk.bf16.gmra.mxu0 %vm19428_vm12, %v17017_v0  ;;  %vm19442_vm12 = vmmov %vm19359_vm0 }
 0x769   : > { %8716 = vmatmul.msk.bf16.gmra.mxu1 %vm19429_vm13, %v17017_v0  ;;  %v6584_v20 = vpop.f32.mrf.mxu2  ;;  %vm19443_vm13 = vmmov %vm19359_vm0 }
 0x76a   : > { %v7122_v60 = vmul.f32 %v6584_v20, %v17039_v25 }
 0x76c   : > { %v7379_v38 = vadd.f32 %v7378_v16, %v7122_v60 }
 0x76d   : > { %8746 = vmatmul.msk.bf16.gmra.mxu3 %vm19427_vm10, %v8851_v29  ;;  %v6413_v54 = vpop.f32.mrf.mxu0  ;;  %v6502_v23 = vpop.f32.mrf.mxu1  ;;  %vm19441_vm10 = vmmov %vm19359_vm0 }
 0x76e   : > { %v7144_v49 = vmul.f32 %v6413_v54, %v16973_v32  ;;  %v7145_v6 = vmul.f32 %v6502_v23, %v16977_v14  ;;  %v7371_v54 = vadd.f32 %v7370_v43, %v7129_v1  ;;  %v17059_v23 = vld [vmem:[%s17907_s9 + $0x58] sm:$0xff]  ;;  %v17083_v1 = vadd.f32 %v16816_v56, %v17031_v13 }
 0x770   : > { %v6668_v12 = vpop.f32.mrf.mxu3  ;;  %v7432_v17 = vadd.f32 %v7144_v49, %v7136_v58  ;;  %v7441_v57 = vadd.f32 %v7145_v6, %v7137_v61  ;;  %v7372_v49 = vrot.slane %v7371_v54, 4 }
 0x771   : > { %v7107_v29 = vmul.f32 %v6668_v12, %v17021_v22 }
 0x772   : > { %v7373_v11 = vadd.f32 %v7372_v49, %v7371_v54 }
 0x775   : > { %v6416_v28 = vpop.f32.mrf.mxu0  ;;  %v6505_v58 = vpop.f32.mrf.mxu1 }
 0x776   : > { %v7152_v16 = vmul.f32 %v6416_v28, %v16988_v53  ;;  %v7153_v41 = vmul.f32 %v6505_v58, %v16992_v19  ;;  %8732 = vmatmul.msk.bf16.gmra.mxu2 %vm19431_vm8, %v17017_v0  ;;  %vm8002_vm8 = vcmask 1042434  }
 0x778   : > { %v6670_v26 = vpop.f32.mrf.mxu3  ;;  %v7433_v6 = vadd.f32 %v7432_v17, %v7152_v16  ;;  %v7442_v15 = vadd.f32 %v7441_v57, %v7153_v41  ;;  %8701 = vmatmul.msk.bf16.gmra.mxu0 %vm19432_vm1, %v17059_v23  ;;  %vm19445_vm1 = vmmov %vm19359_vm0 }
 0x779   : > { %v7115_v2 = vmul.f32 %v6670_v26, %v17035_v50  ;;  %v17063_v26 = vadd.f32 %v16800_v18, %v16984_v21  ;;  %v7363_v18 = vrot.slane %v7362_v34, 4  ;;  %8717 = vmatmul.msk.bf16.gmra.mxu1 %vm19433_vm3, %v17059_v23  ;;  %vm19446_vm3 = vmmov %vm19359_vm0 }
 0x77b   : > { %v7387_v12 = vadd.f32 %v7115_v2, %v7107_v29  ;;  %v7364_v60 = vadd.f32 %v7363_v18, %v7362_v34 }
 0x77d   : > { %8747 = vmatmul.msk.bf16.gmra.mxu3 %vm19430_vm6, %v8852_v47  ;;  %v6586_v47 = vpop.f32.mrf.mxu2  ;;  %v6418_v28 = vpop.f32.mrf.mxu0  ;;  %vm19444_vm6 = vmmov %vm19359_vm0 }
 0x77e   : > { %v7130_v29 = vmul.f32 %v6586_v47, %v17067_v37  ;;  %v6507_v58 = vpop.f32.mrf.mxu1  ;;  %v7160_v17 = vmul.f32 %v6418_v28, %v17043_v40  ;;  %v7374_v47 = vrot.slane %v7373_v11, 2 }
 0x77f   : > { %v7161_v57 = vmul.f32 %v6507_v58, %v17047_v44 }
 0x780   : > { %v6673_v43 = vpop.f32.mrf.mxu3  ;;  %v17079_v2 = vadd.f32 %v7379_v38, %v7130_v29  ;;  %v7365_v38 = vrot.slane %v7364_v60, 2  ;;  %v7434_v34 = vadd.f32 %v7433_v6, %v7160_v17  ;;  %v7375_v49 = vadd.f32 %v7374_v47, %v7373_v11 }
 0x781   : > { %v7123_v61 = vmul.f32 %v6673_v43, %v17063_v26  ;;  %v7443_v54 = vadd.f32 %v7442_v15, %v7161_v57 }
 0x782   : > { %v7435_v56 = vrot.slane %v7434_v34, 4  ;;  %v7366_v18 = vadd.f32 %v7365_v38, %v7364_v60  ;;  %v7376_v38 = vrot.slane %v7375_v49, 1 }
 0x783   : > { %v7388_v20 = vadd.f32 %v7387_v12, %v7123_v61  ;;  %v7444_v29 = vrot.slane %v7443_v54, 4 }
 0x784   : > { %v7436_v28 = vadd.f32 %v7435_v56, %v7434_v34  ;;  %v7367_v11 = vrot.slane %v7366_v18, 1 }
 0x785   : > { %v6589_v41 = vpop.f32.mrf.mxu2  ;;  %v7445_v58 = vadd.f32 %v7444_v29, %v7443_v54 }
 0x786   : > { %v7138_v12 = vmul.f32 %v6589_v41, %v17005_v4  ;;  %v6421_v41 = vpop.f32.mrf.mxu0  ;;  %v6510_v63 = vpop.f32.mrf.mxu1  ;;  %v7437_v6 = vrot.slane %v7436_v28, 2  ;;  %8733 = vmatmul.msk.bf16.gmra.mxu2 %vm19435_vm2, %v17059_v23  ;;  %v7368_v29 = vadd.f32 %v7367_v11, %v7366_v18  ;;  %vm19448_vm2 = vmmov %vm19359_vm0 }
 0x787   : > { %v7446_v15 = vrot.slane %v7445_v58, 2  ;;  %v7169_v17 = vmul.f32 %v6510_v63, %v16957_v33 }
 0x788   : > { %v6675_v16 = vpop.f32.mrf.mxu3  ;;  %v7438_v47 = vadd.f32 %v7437_v6, %v7436_v28 }
 0x789   : > { %v7131_v43 = vmul.f32 %v6675_v16, %v17083_v1  ;;  %v17096_v16 = vld [vmem:[%s17907_s9 + $0x60] sm:$0xff]  ;;  %v7447_v34 = vadd.f32 %v7446_v15, %v7445_v58 }
 0x78a   : > { %8702 = vmatmul.msk.bf16.gmra.mxu0 %vm19436_vm5, %v17096_v16  ;;  %8718 = vmatmul.msk.bf16.gmra.mxu1 %vm19437_vm4, %v17096_v16  ;;  %v7439_v54 = vrot.slane %v7438_v47, 1  ;;  %vm19449_vm5 = vmmov %vm19359_vm0 }
 0x78b   : > { %v17089_v61 = vadd.f32 %v7388_v20, %v7131_v43  ;;  %v7168_v20 = vmul.f32 %v6421_v41, %v16953_v31  ;;  %v7448_v56 = vrot.slane %v7447_v34, 1  ;;  %v7377_v41 = vadd.f32 %v7376_v38, %v7375_v49  ;;  %vm19450_vm4 = vmmov %vm19359_vm0 }
 0x78c   : > { %v7381_v38 = vrot.slane %v17079_v2, 4 }
 0x78d   : > { %8748 = vmatmul.msk.bf16.gmra.mxu3 %vm19434_vm15, %v17017_v0  ;;  %v6591_v43 = vpop.f32.mrf.mxu2  ;;  %vm19447_vm15 = vmmov %vm19359_vm0 }
 0x78e   : > { %v7146_v60 = vmul.f32 %v6591_v43, %v17010_v52  ;;  %v7449_v43 = vadd.f32 %v7448_v56, %v7447_v34  ;;  %v6423_v39 = vpop.f32.mrf.mxu0  ;;  %v6512_v62 = vpop.f32.mrf.mxu1 }
 0x78f   : > { %v7176_v58 = vmul.f32 %v6423_v39, %v16973_v32  ;;  %v7177_v6 = vmul.f32 %v6512_v62, %v16977_v14  ;;  %v17124_v39 = vld [vmem:[%s17907_s9 + $0x68] sm:$0xff]  ;;  %v7382_v62 = vadd.f32 %v7381_v38, %v17079_v2 }
 0x790   : > { %v6678_v57 = vpop.f32.mrf.mxu3  ;;  %v7450_v63 = vadd.f32 %v7146_v60, %v7138_v12  ;;  %v17112_v28 = vsel %vm8000_vm7, %v7449_v43, %v7377_v41  ;;  %v7390_v43 = vrot.slane %v17089_v61, 4 }
 0x791   : > { %v7139_v0 = vmul.f32 %v6678_v57, %v17021_v22  ;;  %v7440_v57 = vadd.f32 %v7439_v54, %v7438_v47  ;;  %v7504_v49 = vadd.f32 %v7176_v58, %v7168_v20  ;;  %v7513_v11 = vadd.f32 %v7177_v6, %v7169_v17 }
 0x792   : > { %v7383_v2 = vrot.slane %v7382_v62, 2 }
 0x793   : > { %v17109_v46 = vsel %vm8000_vm7, %v7440_v57, %v7368_v29 }
 0x795   : > { %v6594_v15 = vpop.f32.mrf.mxu2 }
 0x796   : > { %v7154_v18 = vmul.f32 %v6594_v15, %v17039_v25  ;;  %v6426_v54 = vpop.f32.mrf.mxu0  ;;  %v6515_v56 = vpop.f32.mrf.mxu1  ;;  %8734 = vmatmul.msk.bf16.gmra.mxu2 %vm19439_vm11, %v17096_v16  ;;  %v7384_v15 = vadd.f32 %v7383_v2, %v7382_v62  ;;  %vm19452_vm11 = vmmov %vm19359_vm0 }
 0x797   : > { %v7184_v29 = vmul.f32 %v6426_v54, %v16988_v53  ;;  %v7185_v20 = vmul.f32 %v6515_v56, %v16992_v19 }
 0x798   : > { %v6680_v12 = vpop.f32.mrf.mxu3  ;;  %v7451_v34 = vadd.f32 %v7450_v63, %v7154_v18 }
 0x799   : > { %v7147_v60 = vmul.f32 %v6680_v12, %v17035_v50  ;;  %v7514_v57 = vadd.f32 %v7513_v11, %v7185_v20 }
 0x79a   : > { %8703 = vmatmul.msk.bf16.gmra.mxu0 %vm19440_vm14, %v17124_v39  ;;  %8719 = vmatmul.msk.bf16.gmra.mxu1 %vm19441_vm10, %v17124_v39  ;;  %vm8004_vm14 = vcmask 1043459   ;;  %vm19453_vm10 = vmmov %vm19359_vm0 }
 0x79b   : > { %v7459_v47 = vadd.f32 %v7147_v60, %v7139_v0  ;;  %v7391_v60 = vadd.f32 %v7390_v43, %v17089_v61 }
 0x79d   : > { %8749 = vmatmul.msk.bf16.gmra.mxu3 %vm19438_vm9, %v17059_v23  ;;  %v6596_v41 = vpop.f32.mrf.mxu2  ;;  %v7505_v23 = vadd.f32 %v7504_v49, %v7184_v29  ;;  %v7392_v62 = vrot.slane %v7391_v60, 2  ;;  %vm19451_vm9 = vmmov %vm19359_vm0 }
 0x79e   : > { %v7162_v63 = vmul.f32 %v6596_v41, %v17067_v37  ;;  %v6428_v18 = vpop.f32.mrf.mxu0  ;;  %v6517_v38 = vpop.f32.mrf.mxu1 }
 0x79f   : > { %v7192_v49 = vmul.f32 %v6428_v18, %v17043_v40  ;;  %v7193_v11 = vmul.f32 %v6517_v38, %v17047_v44 }
 0x7a0   : > { %v6683_v17 = vpop.f32.mrf.mxu3  ;;  %v7452_v6 = vadd.f32 %v7451_v34, %v7162_v63 }
 0x7a1   : > { %v7155_v0 = vmul.f32 %v6683_v17, %v17063_v26  ;;  %v7515_v34 = vadd.f32 %v7514_v57, %v7193_v11  ;;  %v7393_v57 = vadd.f32 %v7392_v62, %v7391_v60 }
 0x7a2   : > { %v7453_v12 = vrot.slane %v7452_v6, 4 }
 0x7a3   : > { %v7460_v58 = vadd.f32 %v7459_v47, %v7155_v0  ;;  %v7506_v47 = vadd.f32 %v7505_v23, %v7192_v49  ;;  %v7385_v0 = vrot.slane %v7384_v15, 1  ;;  %v7516_v43 = vrot.slane %v7515_v34, 4 }
 0x7a4   : > { %v7454_v54 = vadd.f32 %v7453_v12, %v7452_v6  ;;  %v7394_v62 = vrot.slane %v7393_v57, 1 }
 0x7a5   : > { %v6599_v29 = vpop.f32.mrf.mxu2  ;;  %v7507_v2 = vrot.slane %v7506_v47, 4  ;;  %v7517_v38 = vadd.f32 %v7516_v43, %v7515_v34  ;;  %v7386_v23 = vadd.f32 %v7385_v0, %v7384_v15 }
 0x7a6   : > { %v7455_v20 = vrot.slane %v7454_v54, 2  ;;  %v7170_v41 = vmul.f32 %v6599_v29, %v17005_v4  ;;  %v6431_v49 = vpop.f32.mrf.mxu0  ;;  %v6520_v11 = vpop.f32.mrf.mxu1  ;;  %8735 = vmatmul.msk.bf16.gmra.mxu2 %vm19442_vm12, %v17124_v39  ;;  %vm19454_vm12 = vmmov %vm19359_vm0 }
 0x7a7   : > { %v7508_v18 = vadd.f32 %v7507_v2, %v7506_v47  ;;  %v7201_v9 = vmul.f32 %v6520_v11, %v16957_v33 }
 0x7a8   : > { %v6685_v56 = vpop.f32.mrf.mxu3  ;;  %v7456_v63 = vadd.f32 %v7455_v20, %v7454_v54  ;;  %v7518_v20 = vrot.slane %v7517_v38, 2 }
 0x7a9   : > { %v7163_v17 = vmul.f32 %v6685_v56, %v17083_v1  ;;  %v17148_v56 = vld [vmem:[%s17907_s9 + $0x70] sm:$0xff]  ;;  %v7509_v29 = vrot.slane %v7508_v18, 2 }
 0x7aa   : > { %v7457_v6 = vrot.slane %v7456_v63, 1  ;;  %v7519_v0 = vadd.f32 %v7518_v20, %v7517_v38  ;;  %8704 = vmatmul.msk.bf16.gmra.mxu0 %vm19443_vm13, %v17148_v56  ;;  %8720 = vmatmul.msk.bf16.gmra.mxu1 %vm19444_vm6, %v17148_v56  ;;  %vm19455_vm13 = vmmov %vm19359_vm0 }
 0x7ab   : > { %v7461_v61 = vadd.f32 %v7460_v58, %v7163_v17  ;;  %v7200_v17 = vmul.f32 %v6431_v49, %v16953_v31  ;;  %v7510_v60 = vadd.f32 %v7509_v29, %v7508_v18  ;;  %vm19456_vm6 = vmmov %vm19359_vm0 }
 0x7ac   : > { %v7458_v54 = vadd.f32 %v7457_v6, %v7456_v63 }
 0x7ad   : > { %v7462_v12 = vrot.slane %v7461_v61, 4  ;;  %8750 = vmatmul.msk.bf16.gmra.mxu3 %vm19359_vm0, %v17096_v16  ;;  %v6601_v47 = vpop.f32.mrf.mxu2  ;;  %v7511_v6 = vrot.slane %v7510_v60, 1 }
 0x7ae   : > { %v17153_v34 = vsel %vm8000_vm7, %v7458_v54, %v7386_v23  ;;  %v7178_v15 = vmul.f32 %v6601_v47, %v17010_v52  ;;  %v7395_v54 = vadd.f32 %v7394_v62, %v7393_v57  ;;  %v6433_v47 = vpop.f32.mrf.mxu0  ;;  %v6522_v18 = vpop.f32.mrf.mxu1 }
 0x7af   : > { %v7463_v58 = vadd.f32 %v7462_v12, %v7461_v61  ;;  %v7520_v12 = vrot.slane %v7519_v0, 1  ;;  %v7512_v49 = vadd.f32 %v7511_v6, %v7510_v60 }
 0x7b0   : > { %v6688_v16 = vpop.f32.mrf.mxu3  ;;  %v7522_v61 = vadd.f32 %v7178_v15, %v7170_v41  ;;  %v7208_v41 = vmul.f32 %v6433_v47, %v16973_v32 }
 0x7b1   : > { %v7464_v2 = vrot.slane %v7463_v58, 2  ;;  %v7171_v43 = vmul.f32 %v6688_v16, %v17021_v22  ;;  %v7521_v11 = vadd.f32 %v7520_v12, %v7519_v0  ;;  %v17165_v38 = vsel %vm8002_vm8, %v7512_v49, %v17109_v46 }
 0x7b2   : > { %v7576_v0 = vadd.f32 %v7208_v41, %v7200_v17 }
 0x7b3   : > { %v7465_v63 = vadd.f32 %v7464_v2, %v7463_v58  ;;  %v17169_v29 = vsel %vm8002_vm8, %v7521_v11, %v17112_v28  ;;  %v7209_v58 = vmul.f32 %v6522_v18, %v16977_v14  ;;  %v17183_v28 = vld [vmem:[%s17907_s9 + $0x78] sm:$0xff] }
 0x7b5   : > { %v7466_v23 = vrot.slane %v7465_v63, 1  ;;  %v6604_v2 = vpop.f32.mrf.mxu2  ;;  %v7585_v46 = vadd.f32 %v7209_v58, %v7201_v9 }
 0x7b6   : > { %v7186_v60 = vmul.f32 %v6604_v2, %v17039_v25  ;;  %v6436_v6 = vpop.f32.mrf.mxu0  ;;  %v6525_v12 = vpop.f32.mrf.mxu1  ;;  %8736 = vmatmul.msk.bf16.gmra.mxu2 %vm19446_vm3, %v17148_v56  ;;  %vm19458_vm3 = vmmov %vm19359_vm0 }
 0x7b7   : > { %v7467_v16 = vadd.f32 %v7466_v23, %v7465_v63  ;;  %v7216_v23 = vmul.f32 %v6436_v6, %v16988_v53  ;;  %v7217_v49 = vmul.f32 %v6525_v12, %v16992_v19 }
 0x7b8   : > { %v6690_v20 = vpop.f32.mrf.mxu3  ;;  %v7523_v63 = vadd.f32 %v7522_v61, %v7186_v60 }
 0x7b9   : > { %v17174_v15 = vsel %vm8000_vm7, %v7467_v16, %v7395_v54  ;;  %v7179_v57 = vmul.f32 %v6690_v20, %v17035_v50 }
 0x7ba   : > { %8705 = vmatmul.msk.bf16.gmra.mxu0 %vm19447_vm15, %v17183_v28  ;;  %8721 = vmatmul.msk.bf16.gmra.mxu1 %vm19448_vm2, %v17183_v28  ;;  %vm19459_vm15 = vmmov %vm19359_vm0  ;;  %vm8006_vm2 = vcmask 1044484  }
 0x7bb   : > { %v7531_v62 = vadd.f32 %v7179_v57, %v7171_v43  ;;  %v7586_v43 = vadd.f32 %v7585_v46, %v7217_v49 }
 0x7bd   : > { %8751 = vmatmul.msk.bf16.gmra.mxu3 %vm19445_vm1, %v17124_v39  ;;  %v6606_v54 = vpop.f32.mrf.mxu2  ;;  %v7577_v39 = vadd.f32 %v7576_v0, %v7216_v23  ;;  %vm19457_vm1 = vmmov %vm19359_vm0 }
 0x7be   : > { %v7194_v17 = vmul.f32 %v6606_v54, %v17067_v37  ;;  %v6438_v18 = vpop.f32.mrf.mxu0  ;;  %v6527_v41 = vpop.f32.mrf.mxu1 }
 0x7bf   : > { %v7224_v20 = vmul.f32 %v6438_v18, %v17043_v40  ;;  %v7225_v2 = vmul.f32 %v6527_v41, %v17047_v44 }
 0x7c0   : > { %v6693_v11 = vpop.f32.mrf.mxu3  ;;  %v7524_v16 = vadd.f32 %v7523_v63, %v7194_v17 }
 0x7c1   : > { %v7187_v9 = vmul.f32 %v6693_v11, %v17063_v26  ;;  %v7578_v12 = vadd.f32 %v7577_v39, %v7224_v20  ;;  %v7587_v23 = vadd.f32 %v7586_v43, %v7225_v2 }
 0x7c2   : > { %v7525_v47 = vrot.slane %v7524_v16, 4 }
 0x7c3   : > { %v7532_v61 = vadd.f32 %v7531_v62, %v7187_v9  ;;  %v7579_v63 = vrot.slane %v7578_v12, 4  ;;  %v7588_v11 = vrot.slane %v7587_v23, 4 }
 0x7c4   : > { %v7526_v58 = vadd.f32 %v7525_v47, %v7524_v16 }
 0x7c5   : > { %v6609_v60 = vpop.f32.mrf.mxu2  ;;  %v7580_v17 = vadd.f32 %v7579_v63, %v7578_v12  ;;  %v7589_v16 = vadd.f32 %v7588_v11, %v7587_v23 }
 0x7c6   : > { %v7527_v0 = vrot.slane %v7526_v58, 2  ;;  %v7202_v6 = vmul.f32 %v6609_v60, %v17005_v4  ;;  %v6441_v47 = vpop.f32.mrf.mxu0  ;;  %v6530_v18 = vpop.f32.mrf.mxu1  ;;  %8737 = vmatmul.msk.bf16.gmra.mxu2 %vm19450_vm4, %v17183_v28  ;;  %vm19461_vm4 = vmmov %vm19359_vm0 }
 0x7c7   : > { %v7590_v5 = vrot.slane %v7589_v16, 2  ;;  %v7232_v39 = vmul.f32 %v6441_v47, %v16953_v31  ;;  %v7233_v43 = vmul.f32 %v6530_v18, %v16957_v33 }
 0x7c8   : > { %v6695_v57 = vpop.f32.mrf.mxu3  ;;  %v7528_v49 = vadd.f32 %v7527_v0, %v7526_v58 }
 0x7c9   : > { %v7195_v46 = vmul.f32 %v6695_v57, %v17083_v1  ;;  %v7581_v57 = vrot.slane %v7580_v17, 2 }
 0x7ca   : > { %v7529_v54 = vrot.slane %v7528_v49, 1  ;;  %8754 = vmatmul.msk.bf16.vlgmr.msrb.gmra.mxu0 %vm19451_vm9, %v16825_v10  ;;  %8770 = vmatmul.msk.bf16.vlgmr.msrb.gmra.mxu1 %vm19452_vm11, %v16825_v10  ;;  %vm19462_vm9 = vmmov %vm19359_vm0 }
 0x7cb   : > { %v7533_v62 = vadd.f32 %v7532_v61, %v7195_v46  ;;  %v7582_v0 = vadd.f32 %v7581_v57, %v7580_v17  ;;  %v7591_v46 = vadd.f32 %v7590_v5, %v7589_v16  ;;  %vm19463_vm11 = vmmov %vm19359_vm0 }
 0x7cc   : > { %v7530_v41 = vadd.f32 %v7529_v54, %v7528_v49 }
 0x7cd   : > { %v7534_v9 = vrot.slane %v7533_v62, 4  ;;  %8752 = vmatmul.msk.bf16.gmra.mxu3 %vm19449_vm5, %v17148_v56  ;;  %v6611_v58 = vpop.f32.mrf.mxu2  ;;  %v7592_v49 = vrot.slane %v7591_v46, 1  ;;  %vm19460_vm5 = vmmov %vm19359_vm0 }
 0x7ce   : > { %v17205_v20 = vsel %vm8002_vm8, %v7530_v41, %v17153_v34  ;;  %v7210_v60 = vmul.f32 %v6611_v58, %v17010_v52  ;;  %v7583_v34 = vrot.slane %v7582_v0, 1  ;;  %v6532_v47 = vpop.f32.mrf.mxu1 }
 0x7cf   : > { %v7535_v24 = vadd.f32 %v7534_v9, %v7533_v62  ;;  %v7593_v11 = vadd.f32 %v7592_v49, %v7591_v46  ;;  %v6443_v9 = vpop.f32.mrf.mxu0 }
 0x7d0   : > { %v6698_v61 = vpop.f32.mrf.mxu3  ;;  %v7594_v23 = vadd.f32 %v7210_v60, %v7202_v6  ;;  %v7584_v63 = vadd.f32 %v7583_v34, %v7582_v0  ;;  %v7241_v6 = vmul.f32 %v6532_v47, %v16977_v14 }
 0x7d1   : > { %v7536_v2 = vrot.slane %v7535_v24, 2  ;;  %v7203_v56 = vmul.f32 %v6698_v61, %v17021_v22  ;;  %v17221_v17 = vsel %vm8004_vm14, %v7593_v11, %v17169_v29 }
 0x7d2   : > { %v17217_v5 = vsel %vm8004_vm14, %v7584_v63, %v17165_v38  ;;  %v7657_v58 = vadd.f32 %v7241_v6, %v7233_v43 }
 0x7d3   : > { %v7537_v12 = vadd.f32 %v7536_v2, %v7535_v24  ;;  %v7240_v24 = vmul.f32 %v6443_v9, %v16973_v32 }
 0x7d5   : > { %v7538_v62 = vrot.slane %v7537_v12, 1  ;;  %v6614_v18 = vpop.f32.mrf.mxu2  ;;  %v7648_v38 = vadd.f32 %v7240_v24, %v7232_v39 }
 0x7d6   : > { %v7218_v61 = vmul.f32 %v6614_v18, %v17039_v25  ;;  %v6535_v0 = vpop.f32.mrf.mxu1  ;;  %8786 = vmatmul.msk.bf16.vlgmr.msrb.gmra.mxu2 %vm19359_vm0, %v16825_v10 }
 0x7d7   : > { %v7539_v54 = vadd.f32 %v7538_v62, %v7537_v12  ;;  %v6446_v29 = vpop.f32.mrf.mxu0  ;;  %v7249_v12 = vmul.f32 %v6535_v0, %v16992_v19 }
 0x7d8   : > { %v6700_v16 = vpop.f32.mrf.mxu3  ;;  %v7595_v60 = vadd.f32 %v7594_v23, %v7218_v61  ;;  %v7248_v46 = vmul.f32 %v6446_v29, %v16988_v53 }
 0x7d9   : > { %v17227_v41 = vsel %vm8002_vm8, %v7539_v54, %v17174_v15  ;;  %v7211_v57 = vmul.f32 %v6700_v16, %v17035_v50  ;;  %v7658_v43 = vadd.f32 %v7657_v58, %v7249_v12 }
 0x7da   : > { %v7649_v39 = vadd.f32 %v7648_v38, %v7248_v46  ;;  %8755 = vmatmul.msk.bf16.gmra.mxu0 %vm19454_vm12, %v16842_v36  ;;  %8771 = vmatmul.msk.bf16.gmra.mxu1 %vm19455_vm13, %v16842_v36  ;;  %vm19465_vm12 = vmmov %vm19359_vm0 }
 0x7db   : > { %v7603_v2 = vadd.f32 %v7211_v57, %v7203_v56  ;;  %vm19466_vm13 = vmmov %vm19359_vm0 }
 0x7dd   : > { %8753 = vmatmul.msk.bf16.gmra.mxu3 %vm19453_vm10, %v17183_v28  ;;  %v6616_v15 = vpop.f32.mrf.mxu2  ;;  %vm19464_vm10 = vmmov %vm19359_vm0 }
 0x7de   : > { %v7226_v62 = vmul.f32 %v6616_v15, %v17067_v37  ;;  %v6537_v11 = vpop.f32.mrf.mxu1 }
 0x7df   : > { %v6448_v63 = vpop.f32.mrf.mxu0  ;;  %v7257_v47 = vmul.f32 %v6537_v11, %v17047_v44 }
 0x7e0   : > { %v6703_v34 = vpop.f32.mrf.mxu3  ;;  %v7596_v56 = vadd.f32 %v7595_v60, %v7226_v62  ;;  %v7256_v9 = vmul.f32 %v6448_v63, %v17043_v40 }
 0x7e1   : > { %v7219_v49 = vmul.f32 %v6703_v34, %v17063_v26  ;;  %v7659_v38 = vadd.f32 %v7658_v43, %v7257_v47 }
 0x7e2   : > { %v7597_v23 = vrot.slane %v7596_v56, 4  ;;  %v7650_v61 = vadd.f32 %v7649_v39, %v7256_v9 }
 0x7e3   : > { %v7604_v28 = vadd.f32 %v7603_v2, %v7219_v49  ;;  %v7660_v29 = vrot.slane %v7659_v38, 4 }
 0x7e4   : > { %v7598_v54 = vadd.f32 %v7597_v23, %v7596_v56  ;;  %v7651_v60 = vrot.slane %v7650_v61, 4 }
 0x7e5   : > { %v6619_v6 = vpop.f32.mrf.mxu2  ;;  %v7661_v34 = vadd.f32 %v7660_v29, %v7659_v38 }
 0x7e6   : > { %v7599_v16 = vrot.slane %v7598_v54, 2  ;;  %v7234_v57 = vmul.f32 %v6619_v6, %v17005_v4  ;;  %v7652_v12 = vadd.f32 %v7651_v60, %v7650_v61  ;;  %v6540_v49 = vpop.f32.mrf.mxu1  ;;  %8787 = vmatmul.msk.bf16.gmra.mxu2 %vm19457_vm1, %v16842_v36  ;;  %vm19467_vm1 = vmmov %vm19359_vm0 }
 0x7e7   : > { %v6451_v15 = vpop.f32.mrf.mxu0  ;;  %v7662_v63 = vrot.slane %v7661_v34, 2  ;;  %v7265_v43 = vmul.f32 %v6540_v49, %v16957_v33 }
 0x7e8   : > { %v6705_v24 = vpop.f32.mrf.mxu3  ;;  %v7600_v58 = vadd.f32 %v7599_v16, %v7598_v54  ;;  %v7653_v23 = vrot.slane %v7652_v12, 2  ;;  %v7264_v39 = vmul.f32 %v6451_v15, %v16953_v31 }
 0x7e9   : > { %v7227_v18 = vmul.f32 %v6705_v24, %v17083_v1  ;;  %v7663_v6 = vadd.f32 %v7662_v63, %v7661_v34 }
 0x7ea   : > { %v7601_v0 = vrot.slane %v7600_v58, 1  ;;  %v7654_v24 = vadd.f32 %v7653_v23, %v7652_v12  ;;  %8756 = vmatmul.msk.bf16.gmra.mxu0 %vm19458_vm3, %v16869_v7  ;;  %8772 = vmatmul.msk.bf16.gmra.mxu1 %vm19459_vm15, %v16869_v7  ;;  %vm19468_vm3 = vmmov %vm19359_vm0 }
 0x7eb   : > { %v7605_v2 = vadd.f32 %v7604_v28, %v7227_v18  ;;  %v7664_v61 = vrot.slane %v7663_v6, 1  ;;  %vm19469_vm15 = vmmov %vm19359_vm0 }
 0x7ec   : > { %v7602_v62 = vadd.f32 %v7601_v0, %v7600_v58 }
 0x7ed   : > { %v7606_v46 = vrot.slane %v7605_v2, 4  ;;  %8802 = vmatmul.msk.bf16.vlgmr.msrb.gmra.mxu3 %vm19456_vm6, %v16825_v10  ;;  %v6621_v11 = vpop.f32.mrf.mxu2  ;;  %vm8008_vm6 = vcmask 1045509  }
 0x7ee   : > { %v17253_v54 = vsel %vm8004_vm14, %v7602_v62, %v17205_v20  ;;  %v7242_v47 = vmul.f32 %v6621_v11, %v17010_v52  ;;  %v7655_v20 = vrot.slane %v7654_v24, 1  ;;  %v6542_v0 = vpop.f32.mrf.mxu1 }
 0x7ef   : > { %v7607_v56 = vadd.f32 %v7606_v46, %v7605_v2  ;;  %v7665_v2 = vadd.f32 %v7664_v61, %v7663_v6  ;;  %v6453_v29 = vpop.f32.mrf.mxu0 }
 0x7f0   : > { %v6708_v28 = vpop.f32.mrf.mxu3  ;;  %v7666_v18 = vadd.f32 %v7242_v47, %v7234_v57  ;;  %v7656_v58 = vadd.f32 %v7655_v20, %v7654_v24  ;;  %v7272_v12 = vmul.f32 %v6453_v29, %v16973_v32  ;;  %v7273_v57 = vmul.f32 %v6542_v0, %v16977_v14 }
 0x7f1   : > { %v7608_v9 = vrot.slane %v7607_v56, 2  ;;  %v7235_v10 = vmul.f32 %v6708_v28, %v17021_v22  ;;  %v17269_v46 = vsel %vm8006_vm2, %v7665_v2, %v17221_v17  ;;  %v9679_v17 = vld [vmem:[%s17907_s9 + $0x8] sm:$0xff] }
 0x7f2   : > { %v17265_v36 = vsel %vm8006_vm2, %v7656_v58, %v17217_v5  ;;  %v7720_v5 = vadd.f32 %v7272_v12, %v7264_v39  ;;  %v7729_v23 = vadd.f32 %v7273_v57, %v7265_v43 }
 0x7f3   : > { %v7609_v16 = vadd.f32 %v7608_v9, %v7607_v56 }
 0x7f5   : > { %v7610_v38 = vrot.slane %v7609_v16, 1  ;;  %v6624_v15 = vpop.f32.mrf.mxu2 }
 0x7f6   : > { %v7250_v56 = vmul.f32 %v6624_v15, %v17039_v25  ;;  %v6545_v9 = vpop.f32.mrf.mxu1  ;;  %8788 = vmatmul.msk.bf16.gmra.mxu2 %vm19461_vm4, %v16869_v7  ;;  %vm19471_vm4 = vmmov %vm19359_vm0 }
 0x7f7   : > { %v7611_v60 = vadd.f32 %v7610_v38, %v7609_v16  ;;  %v6456_v11 = vpop.f32.mrf.mxu0 }
 0x7f8   : > { %v6710_v34 = vpop.f32.mrf.mxu3  ;;  %v7667_v28 = vadd.f32 %v7666_v18, %v7250_v56  ;;  %v7280_v47 = vmul.f32 %v6456_v11, %v16988_v53 }
 0x7f9   : > { %v17275_v49 = vsel %vm8004_vm14, %v7611_v60, %v17227_v41  ;;  %v7243_v62 = vmul.f32 %v6710_v34, %v17035_v50  ;;  %v7281_v41 = vmul.f32 %v6545_v9, %v16992_v19 }
 0x7fa   : > { %v7721_v43 = vadd.f32 %v7720_v5, %v7280_v47  ;;  %8757 = vmatmul.msk.bf16.gmra.mxu0 %vm19462_vm9, %v16882_v3  ;;  %8773 = vmatmul.msk.bf16.gmra.mxu1 %vm19463_vm11, %v16882_v3  ;;  %vm19472_vm9 = vmmov %vm19359_vm0 }
 0x7fb   : > { %v7675_v63 = vadd.f32 %v7243_v62, %v7235_v10  ;;  %v7730_v10 = vadd.f32 %v7729_v23, %v7281_v41  ;;  %vm19473_vm11 = vmmov %vm19359_vm0 }
 0x7fd   : > { %8803 = vmatmul.msk.bf16.gmra.mxu3 %vm19460_vm5, %v9679_v17  ;;  %v6626_v6 = vpop.f32.mrf.mxu2  ;;  %v9680_v17 = vld [vmem:[%s17907_s9 + $0x10] sm:$0xff]  ;;  %vm19470_vm5 = vmmov %vm19359_vm0 }
 0x7fe   : > { %v7258_v39 = vmul.f32 %v6626_v6, %v17067_v37  ;;  %v6547_v58 = vpop.f32.mrf.mxu1 }
 0x7ff   : > { %v6458_v38 = vpop.f32.mrf.mxu0  ;;  %v7289_v29 = vmul.f32 %v6547_v58, %v17047_v44  ;;  %v9681_v58 = vld [vmem:[%s17907_s9 + $0x18] sm:$0xff] }
 0x800   : > { %v6713_v24 = vpop.f32.mrf.mxu3  ;;  %v7668_v20 = vadd.f32 %v7667_v28, %v7258_v39  ;;  %v7288_v60 = vmul.f32 %v6458_v38, %v17043_v40 }
 0x801   : > { %v7251_v16 = vmul.f32 %v6713_v24, %v17063_v26  ;;  %v7731_v62 = vadd.f32 %v7730_v10, %v7289_v29  ;;  %v17314_v29 = vld [vmem:[%s17907_s9 + $0x20] sm:$0xff] }
 0x802   : > { %v7669_v61 = vrot.slane %v7668_v20, 4  ;;  %v7722_v15 = vadd.f32 %v7721_v43, %v7288_v60 }
 0x803   : > { %v7676_v18 = vadd.f32 %v7675_v63, %v7251_v16  ;;  %v7732_v23 = vrot.slane %v7731_v62, 4 }
 0x804   : > { %v7670_v2 = vadd.f32 %v7669_v61, %v7668_v20  ;;  %v7723_v5 = vrot.slane %v7722_v15, 4 }
 0x805   : > { %v6629_v7 = vpop.f32.mrf.mxu2  ;;  %v7733_v9 = vadd.f32 %v7732_v23, %v7731_v62 }
 0x806   : > { %v7671_v12 = vrot.slane %v7670_v2, 2  ;;  %v7266_v34 = vmul.f32 %v6629_v7, %v17005_v4  ;;  %v7724_v11 = vadd.f32 %v7723_v5, %v7722_v15  ;;  %8789 = vmatmul.msk.bf16.gmra.mxu2 %vm19359_vm0, %v9681_v58 }
 0x807   : > { %v6461_v47 = vpop.f32.mrf.mxu0  ;;  %v6550_v41 = vpop.f32.mrf.mxu1  ;;  %v7734_v39 = vrot.slane %v7733_v9, 2 }
 0x808   : > { %v6715_v0 = vpop.f32.mrf.mxu3  ;;  %v7672_v3 = vadd.f32 %v7671_v12, %v7670_v2  ;;  %v7725_v16 = vrot.slane %v7724_v11, 2 }
 0x809   : > { %v7259_v57 = vmul.f32 %v6715_v0, %v17083_v1  ;;  %v7735_v60 = vadd.f32 %v7734_v39, %v7733_v9  ;;  %v7297_v39 = vmul.f32 %v6550_v41, %v16957_v33  ;;  %v17348_v41 = vld [vmem:[%s17907_s9 + $0x28] sm:$0xff] }
 0x80a   : > { %v7673_v63 = vrot.slane %v7672_v3, 1  ;;  %v7726_v2 = vadd.f32 %v7725_v16, %v7724_v11  ;;  %8758 = vmatmul.msk.bf16.gmra.mxu0 %vm19465_vm12, %v17314_v29  ;;  %8774 = vmatmul.msk.bf16.gmra.mxu1 %vm19466_vm13, %v17314_v29  ;;  %vm19475_vm12 = vmmov %vm19467_vm1 }
 0x80b   : > { %v7677_v56 = vadd.f32 %v7676_v18, %v7259_v57  ;;  %v7736_v12 = vrot.slane %v7735_v60, 1  ;;  %vm19476_vm13 = vmmov %vm19467_vm1 }
 0x80c   : > { %v7674_v24 = vadd.f32 %v7673_v63, %v7672_v3  ;;  %v7727_v7 = vrot.slane %v7726_v2, 1 }
 0x80d   : > { %v7678_v28 = vrot.slane %v7677_v56, 4  ;;  %8804 = vmatmul.msk.bf16.gmra.mxu3 %vm19464_vm10, %v9680_v17  ;;  %v6631_v10 = vpop.f32.mrf.mxu2  ;;  %v7737_v62 = vadd.f32 %v7736_v12, %v7735_v60  ;;  %vm19474_vm10 = vmmov %vm19359_vm0  ;;  %vm8010_vm0 = vcmask 1046534  }
 0x80e   : > { %v17303_v18 = vsel %vm8006_vm2, %v7674_v24, %v17253_v54  ;;  %v7274_v38 = vmul.f32 %v6631_v10, %v17010_v52  ;;  %v7728_v15 = vadd.f32 %v7727_v7, %v7726_v2 }
 0x80f   : > { %v7679_v6 = vadd.f32 %v7678_v28, %v7677_v56  ;;  %v6463_v56 = vpop.f32.mrf.mxu0  ;;  %v6552_v5 = vpop.f32.mrf.mxu1  ;;  %v17326_v63 = vsel %vm8008_vm6, %v7737_v62, %v17269_v46  ;;  %v7296_v46 = vmul.f32 %v6461_v47, %v16953_v31 }
 0x810   : > { %v6718_v43 = vpop.f32.mrf.mxu3  ;;  %v7738_v0 = vadd.f32 %v7274_v38, %v7266_v34  ;;  %v17322_v23 = vsel %vm8008_vm6, %v7728_v15, %v17265_v36  ;;  %v7304_v16 = vmul.f32 %v6463_v56, %v16973_v32  ;;  %v7305_v36 = vmul.f32 %v6552_v5, %v16977_v14 }
 0x811   : > { %v7680_v20 = vrot.slane %v7679_v6, 2  ;;  %v7267_v61 = vmul.f32 %v6718_v43, %v17021_v22 }
 0x813   : > { %v7681_v54 = vadd.f32 %v7680_v20, %v7679_v6  ;;  %v7801_v20 = vadd.f32 %v7305_v36, %v7297_v39 }
 0x815   : > { %v7682_v57 = vrot.slane %v7681_v54, 1  ;;  %v6634_v17 = vpop.f32.mrf.mxu2 }
 0x816   : > { %v7282_v9 = vmul.f32 %v6634_v17, %v17039_v25  ;;  %8790 = vmatmul.msk.bf16.gmra.mxu2 %vm19468_vm3, %v17314_v29  ;;  %vm19477_vm3 = vmmov %vm19467_vm1 }
 0x817   : > { %v7683_v3 = vadd.f32 %v7682_v57, %v7681_v54  ;;  %v6466_v43 = vpop.f32.mrf.mxu0  ;;  %v6555_v10 = vpop.f32.mrf.mxu1 }
 0x818   : > { %v6720_v28 = vpop.f32.mrf.mxu3  ;;  %v7739_v6 = vadd.f32 %v7738_v0, %v7282_v9  ;;  %v7312_v38 = vmul.f32 %v6466_v43, %v16988_v53  ;;  %v7313_v2 = vmul.f32 %v6555_v10, %v16992_v19 }
 0x819   : > { %v17330_v34 = vsel %vm8006_vm2, %v7683_v3, %v17275_v49  ;;  %v7275_v11 = vmul.f32 %v6720_v28, %v17035_v50  ;;  %v7792_v49 = vadd.f32 %v7304_v16, %v7296_v46 }
 0x81a   : > { %8759 = vmatmul.msk.bf16.gmra.mxu0 %vm19469_vm15, %v17348_v41  ;;  %8775 = vmatmul.msk.bf16.gmra.mxu1 %vm19470_vm5, %v17348_v41  ;;  %vm19478_vm15 = vmmov %vm19467_vm1 }
 0x81b   : > { %v7747_v24 = vadd.f32 %v7275_v11, %v7267_v61  ;;  %v7793_v47 = vadd.f32 %v7792_v49, %v7312_v38  ;;  %vm19479_vm5 = vmmov %vm19467_vm1 }
 0x81d   : > { %8805 = vmatmul.msk.bf16.gmra.mxu3 %vm19467_vm1, %v9681_v58  ;;  %v6636_v60 = vpop.f32.mrf.mxu2  ;;  %v7802_v58 = vadd.f32 %v7801_v20, %v7313_v2 }
 0x81e   : > { %v7290_v0 = vmul.f32 %v6636_v60, %v17067_v37 }
 0x81f   : > { %v6468_v15 = vpop.f32.mrf.mxu0  ;;  %v6557_v62 = vpop.f32.mrf.mxu1 }
 0x820   : > { %v6723_v61 = vpop.f32.mrf.mxu3  ;;  %v7740_v12 = vadd.f32 %v7739_v6, %v7290_v0  ;;  %v7320_v56 = vmul.f32 %v6468_v15, %v17043_v40  ;;  %v7321_v5 = vmul.f32 %v6557_v62, %v17047_v44  ;;  %v17368_v15 = vld [vmem:[%s17907_s9 + $0x30] sm:$0xff] }
 0x821   : > { %v7283_v54 = vmul.f32 %v6723_v61, %v17063_v26 }
 0x822   : > { %v7741_v57 = vrot.slane %v7740_v12, 4  ;;  %v7794_v16 = vadd.f32 %v7793_v47, %v7320_v56  ;;  %v7803_v36 = vadd.f32 %v7802_v58, %v7321_v5 }
 0x823   : > { %v7748_v7 = vadd.f32 %v7747_v24, %v7283_v54 }
 0x824   : > { %v7742_v3 = vadd.f32 %v7741_v57, %v7740_v12  ;;  %v7795_v43 = vrot.slane %v7794_v16, 4  ;;  %v7804_v24 = vrot.slane %v7803_v36, 4 }
 0x825   : > { %v6639_v17 = vpop.f32.mrf.mxu2 }
 0x826   : > { %v7743_v11 = vrot.slane %v7742_v3, 2  ;;  %v7796_v49 = vadd.f32 %v7795_v43, %v7794_v16  ;;  %v7805_v20 = vadd.f32 %v7804_v24, %v7803_v36  ;;  %8791 = vmatmul.msk.bf16.gmra.mxu2 %vm19472_vm9, %v17348_v41  ;;  %vm19481_vm9 = vmmov %vm19467_vm1 }
 0x827   : > { %v6471_v38 = vpop.f32.mrf.mxu0  ;;  %v6560_v2 = vpop.f32.mrf.mxu1 }
 0x828   : > { %v6725_v28 = vpop.f32.mrf.mxu3  ;;  %v7744_v46 = vadd.f32 %v7743_v11, %v7742_v3  ;;  %v7797_v54 = vrot.slane %v7796_v49, 2  ;;  %v7806_v0 = vrot.slane %v7805_v20, 2 }
 0x829   : > { %v7291_v9 = vmul.f32 %v6725_v28, %v17083_v1 }
 0x82a   : > { %v7745_v6 = vrot.slane %v7744_v46, 1  ;;  %v7798_v57 = vadd.f32 %v7797_v54, %v7796_v49  ;;  %8760 = vmatmul.msk.bf16.gmra.mxu0 %vm19473_vm11, %v17368_v15  ;;  %8776 = vmatmul.msk.bf16.gmra.mxu1 %vm19474_vm10, %v17368_v15  ;;  %v7328_v54 = vmul.f32 %v6471_v38, %v16953_v31  ;;  %vm8012_vm11 = vcmask 1047559   ;;  %vm19482_vm10 = vmmov %vm19467_vm1 }
 0x82b   : > { %v7749_v39 = vadd.f32 %v7748_v7, %v7291_v9 }
 0x82c   : > { %v7746_v61 = vadd.f32 %v7745_v6, %v7744_v46  ;;  %v7298_v6 = vmul.f32 %v6639_v17, %v17005_v4 }
 0x82d   : > { %v7750_v10 = vrot.slane %v7749_v39, 4  ;;  %8806 = vmatmul.msk.bf16.gmra.mxu3 %vm19471_vm4, %v17314_v29  ;;  %v6641_v47 = vpop.f32.mrf.mxu2  ;;  %v7807_v29 = vadd.f32 %v7806_v0, %v7805_v20  ;;  %vm19480_vm4 = vmmov %vm19467_vm1 }
 0x82e   : > { %v17361_v58 = vsel %vm8008_vm6, %v7746_v61, %v17303_v18  ;;  %v7799_v18 = vrot.slane %v7798_v57, 1  ;;  %v7306_v36 = vmul.f32 %v6641_v47, %v17010_v52 }
 0x82f   : > { %v7751_v60 = vadd.f32 %v7750_v10, %v7749_v39  ;;  %v7808_v3 = vrot.slane %v7807_v29, 1  ;;  %v6473_v9 = vpop.f32.mrf.mxu0  ;;  %v6562_v16 = vpop.f32.mrf.mxu1 }
 0x830   : > { %v6728_v12 = vpop.f32.mrf.mxu3  ;;  %v7800_v5 = vadd.f32 %v7799_v18, %v7798_v57  ;;  %v7810_v49 = vadd.f32 %v7306_v36, %v7298_v6  ;;  %v7336_v61 = vmul.f32 %v6473_v9, %v16973_v32 }
 0x831   : > { %v7752_v7 = vrot.slane %v7751_v60, 2  ;;  %v7809_v28 = vadd.f32 %v7808_v3, %v7807_v29  ;;  %v7299_v17 = vmul.f32 %v6728_v12, %v17021_v22 }
 0x832   : > { %v17377_v46 = vsel %vm8010_vm0, %v7800_v5, %v17322_v23  ;;  %v7337_v23 = vmul.f32 %v6562_v16, %v16977_v14 }
 0x833   : > { %v7753_v62 = vadd.f32 %v7752_v7, %v7751_v60  ;;  %v17381_v39 = vsel %vm8010_vm0, %v7809_v28, %v17326_v63  ;;  %v7864_v7 = vadd.f32 %v7336_v61, %v7328_v54 }
 0x835   : > { %v7754_v56 = vrot.slane %v7753_v62, 1  ;;  %v6644_v10 = vpop.f32.mrf.mxu2 }
 0x836   : > { %v7314_v20 = vmul.f32 %v6644_v10, %v17039_v25  ;;  %8792 = vmatmul.msk.bf16.gmra.mxu2 %vm19476_vm13, %v17368_v15  ;;  %vm19484_vm13 = vmmov %vm19467_vm1 }
 0x837   : > { %v7755_v11 = vadd.f32 %v7754_v56, %v7753_v62  ;;  %v6476_v0 = vpop.f32.mrf.mxu0  ;;  %v6565_v47 = vpop.f32.mrf.mxu1 }
 0x838   : > { %v6730_v43 = vpop.f32.mrf.mxu3  ;;  %v7811_v63 = vadd.f32 %v7810_v49, %v7314_v20  ;;  %v7344_v32 = vmul.f32 %v6476_v0, %v16988_v53  ;;  %v7345_v14 = vmul.f32 %v6565_v47, %v16992_v19 }
 0x839   : > { %v17385_v24 = vsel %vm8008_vm6, %v7755_v11, %v17330_v34  ;;  %v7307_v60 = vmul.f32 %v6730_v43, %v17035_v50  ;;  %v7329_v34 = vmul.f32 %v6560_v2, %v16957_v33  ;;  %v17405_v33 = vld [vmem:[%s17907_s9 + $0x38] sm:$0xff] }
 0x83a   : > { %v7865_v31 = vadd.f32 %v7864_v7, %v7344_v32  ;;  %8761 = vmatmul.msk.bf16.gmra.mxu0 %vm19467_vm1, %v17405_v33  ;;  %8777 = vmatmul.msk.bf16.gmra.mxu1 %vm19477_vm3, %v17405_v33  ;;  %vm19486_vm3 = vmmov %vm19467_vm1 }
 0x83b   : > { %v7873_v57 = vadd.f32 %v7337_v23, %v7329_v34  ;;  %v7819_v62 = vadd.f32 %v7307_v60, %v7299_v17 }
 0x83d   : > { %8807 = vmatmul.msk.bf16.gmra.mxu3 %vm19475_vm12, %v17348_v41  ;;  %v7874_v41 = vadd.f32 %v7873_v57, %v7345_v14  ;;  %v6646_v53 = vpop.f32.mrf.mxu2  ;;  %vm19483_vm12 = vmmov %vm19467_vm1 }
 0x83e   : > { %v7322_v38 = vmul.f32 %v6646_v53, %v17067_v37 }
 0x83f   : > { %v6478_v12 = vpop.f32.mrf.mxu0  ;;  %v6567_v3 = vpop.f32.mrf.mxu1 }
 0x840   : > { %v6733_v29 = vpop.f32.mrf.mxu3  ;;  %v7812_v2 = vadd.f32 %v7811_v63, %v7322_v38  ;;  %v7352_v5 = vmul.f32 %v6478_v12, %v17043_v40  ;;  %v7353_v28 = vmul.f32 %v6567_v3, %v17047_v44  ;;  %v17419_v40 = vadd.f32 %v16820_v8, %v16949_v48 }
 0x841   : > { %v7315_v18 = vmul.f32 %v6733_v29, %v17063_v26  ;;  %v17423_v44 = vadd.f32 %v16831_v51, %v16949_v48  ;;  %v17447_v12 = vadd.f32 %v16833_v55, %v16969_v27  ;;  %v17451_v3 = vadd.f32 %v16835_v30, %v16969_v27 }
 0x842   : > { %v7813_v56 = vrot.slane %v7812_v2, 4  ;;  %v7866_v36 = vadd.f32 %v7865_v31, %v7352_v5  ;;  %v7875_v43 = vadd.f32 %v7874_v41, %v7353_v28 }
 0x843   : > { %v7820_v19 = vadd.f32 %v7819_v62, %v7315_v18  ;;  %v17433_v18 = vld [vmem:[%s17907_s9 + $0x40] sm:$0xff] }
 0x844   : > { %v7814_v9 = vadd.f32 %v7813_v56, %v7812_v2  ;;  %v7867_v20 = vrot.slane %v7866_v36, 4  ;;  %v7876_v61 = vrot.slane %v7875_v43, 4 }
 0x845   : > { %v6649_v6 = vpop.f32.mrf.mxu2 }
 0x846   : > { %v7815_v10 = vrot.slane %v7814_v9, 2  ;;  %v7868_v63 = vadd.f32 %v7867_v20, %v7866_v36  ;;  %v7877_v54 = vadd.f32 %v7876_v61, %v7875_v43  ;;  %8793 = vmatmul.msk.bf16.gmra.mxu2 %vm19479_vm5, %v17405_v33  ;;  %vm19490_vm5 = vmmov %vm19467_vm1 }
 0x847   : > { %v6757_v34 = vpop.f32.mrf.mxu0  ;;  %v6846_v17 = vpop.f32.mrf.mxu1 }
 0x848   : > { %v6735_v11 = vpop.f32.mrf.mxu3  ;;  %v7816_v23 = vadd.f32 %v7815_v10, %v7814_v9  ;;  %v7869_v7 = vrot.slane %v7868_v63, 2  ;;  %v7878_v57 = vrot.slane %v7877_v54, 2  ;;  %v7109_v32 = vmul.f32 %v6846_v17, %v17423_v44 }
 0x849   : > { %v7323_v16 = vmul.f32 %v6735_v11, %v17083_v1 }
 0x84a   : > { %v7817_v0 = vrot.slane %v7816_v23, 1  ;;  %v7870_v51 = vadd.f32 %v7869_v7, %v7868_v63  ;;  %v7879_v62 = vadd.f32 %v7878_v57, %v7877_v54  ;;  %8762 = vmatmul.msk.bf16.gmra.mxu0 %vm19480_vm4, %v17433_v18  ;;  %8778 = vmatmul.msk.bf16.gmra.mxu1 %vm19481_vm9, %v17433_v18  ;;  %v17475_v63 = vadd.f32 %v16837_v59, %v16984_v21  ;;  %vm19491_vm4 = vmmov %vm19467_vm1 }
 0x84b   : > { %v7821_v49 = vadd.f32 %v7820_v19, %v7323_v16  ;;  %v17499_v57 = vadd.f32 %v16854_v35, %v17031_v13  ;;  %vm19494_vm9 = vmmov %vm19467_vm1 }
 0x84c   : > { %v7818_v14 = vadd.f32 %v7817_v0, %v7816_v23  ;;  %v7871_v19 = vrot.slane %v7870_v51, 1  ;;  %v7880_v38 = vrot.slane %v7879_v62, 1 }
 0x84d   : > { %v7822_v60 = vrot.slane %v7821_v49, 4  ;;  %8808 = vmatmul.msk.bf16.gmra.mxu3 %vm19478_vm15, %v17368_v15  ;;  %v7108_v15 = vmul.f32 %v6757_v34, %v17419_v40  ;;  %v6651_v31 = vpop.f32.mrf.mxu2  ;;  %vm19489_vm15 = vmmov %vm19467_vm1 }
 0x84e   : > { %v17443_v41 = vsel %vm8010_vm0, %v7818_v14, %v17361_v58  ;;  %v7872_v56 = vadd.f32 %v7871_v19, %v7870_v51  ;;  %v7881_v5 = vadd.f32 %v7880_v38, %v7879_v62  ;;  %v7338_v58 = vmul.f32 %v6651_v31, %v17010_v52  ;;  %v19485_v31 = vld [vmem:[#allocation23_spill] sm:$0xff] }
 0x84f   : > { %v7823_v47 = vadd.f32 %v7822_v60, %v7821_v49  ;;  %v6759_v11 = vpop.f32.mrf.mxu0  ;;  %v6848_v9 = vpop.f32.mrf.mxu1  ;;  %v7330_v52 = vmul.f32 %v6649_v6, %v17005_v4  ;;  %v17479_v4 = vadd.f32 %v16852_v42, %v16984_v21  ;;  %v17490_v42 = vld [vmem:[%s17907_s9 + $0x48] sm:$0xff] }
 0x850   : > { %v6738_v8 = vpop.f32.mrf.mxu3  ;;  %v8013_v16 = vsel %vm8012_vm11, %v7872_v56, %v17377_v46  ;;  %v8020_v36 = vsel %vm8012_vm11, %v7881_v5, %v17381_v39  ;;  %v7116_v55 = vmul.f32 %v6759_v11, %v17447_v12  ;;  %v7117_v43 = vmul.f32 %v6848_v9, %v17451_v3  ;;  %v19487_v9 = vld [vmem:[#allocation26_spill] sm:$0xff] }
 0x851   : > { %v7824_v29 = vrot.slane %v7823_v47, 2  ;;  %8071 = vst [vmem:[%s17460_s29] sm:$0xff] %v8013_v16  ;;  %v7882_v20 = vadd.f32 %v7338_v58, %v7330_v52  ;;  %v17521_v58 = vadd.f32 %v19487_v9, %v16949_v48 }
 0x852   : > { %8072 = vst [vmem:[%s17460_s29 + $0x8] sm:$0xff] %v8020_v36  ;;  %v7396_v46 = vadd.f32 %v7116_v55, %v7108_v15  ;;  %v7405_v49 = vadd.f32 %v7117_v43, %v7109_v32  ;;  %v17503_v15 = vadd.f32 %v16861_v45, %v17031_v13 }
 0x853   : > { %v7825_v53 = vadd.f32 %v7824_v29, %v7823_v47 }
 0x855   : > { %v7826_v2 = vrot.slane %v7825_v53, 1  ;;  %v6654_v39 = vpop.f32.mrf.mxu2 }
 0x856   : > { %v7346_v61 = vmul.f32 %v6654_v39, %v17039_v25  ;;  %8794 = vmatmul.msk.bf16.gmra.mxu2 %vm19483_vm12, %v17433_v18  ;;  %vm19498_vm12 = vmmov %vm19467_vm1 }
 0x857   : > { %v7827_v28 = vadd.f32 %v7826_v2, %v7825_v53  ;;  %v6762_v6 = vpop.f32.mrf.mxu0  ;;  %v6851_v54 = vpop.f32.mrf.mxu1 }
 0x858   : > { %v6740_v10 = vpop.f32.mrf.mxu3  ;;  %v7883_v60 = vadd.f32 %v7882_v20, %v7346_v61  ;;  %v7124_v25 = vmul.f32 %v6762_v6, %v17475_v63 }
 0x859   : > { %v17465_v30 = vsel %vm8010_vm0, %v7827_v28, %v17385_v24  ;;  %v7339_v23 = vmul.f32 %v6740_v10, %v17035_v50  ;;  %v7331_v24 = vmul.f32 %v6738_v8, %v17021_v22  ;;  %v7125_v50 = vmul.f32 %v6851_v54, %v17479_v4 }
 0x85a   : > { %v7397_v59 = vadd.f32 %v7396_v46, %v7124_v25  ;;  %8763 = vmatmul.msk.bf16.gmra.mxu0 %vm19484_vm13, %v17490_v42  ;;  %8779 = vmatmul.msk.bf16.gmra.mxu1 %vm19467_vm1, %v17490_v42  ;;  %v19488_v46 = vld [vmem:[#allocation59_spill] sm:$0xff]  ;;  %v19492_v25 = vld [vmem:[#allocation10_spill] sm:$0xff]  ;;  %vm19499_vm13 = vmmov %vm19467_vm1 }
 0x85b   : > { %v7891_v17 = vadd.f32 %v7339_v23, %v7331_v24  ;;  %v7406_v0 = vadd.f32 %v7405_v49, %v7125_v50  ;;  %v17527_v49 = vadd.f32 %v19488_v46, %v16969_v27  ;;  %v17547_v50 = vadd.f32 %v19492_v25, %v16969_v27  ;;  %v19500_v46 = vld [vmem:[#allocation86_spill] sm:$0xff] }
 0x85d   : > { %8809 = vmatmul.msk.bf16.gmra.mxu3 %vm19482_vm10, %v17405_v33  ;;  %v6656_v22 = vpop.f32.mrf.mxu2  ;;  %vm19497_vm10 = vmmov %vm19467_vm1 }
 0x85f   : > { %v6764_v32 = vpop.f32.mrf.mxu0  ;;  %v6853_v8 = vpop.f32.mrf.mxu1 }
 0x860   : > { %v6743_v34 = vpop.f32.mrf.mxu3  ;;  %v7132_v29 = vmul.f32 %v6764_v32, %v17499_v57  ;;  %v7133_v51 = vmul.f32 %v6853_v8, %v17503_v15 }
 0x861   : > { %v7347_v33 = vmul.f32 %v6743_v34, %v17063_v26  ;;  %v7354_v26 = vmul.f32 %v6656_v22, %v17067_v37  ;;  %v17509_v37 = vadd.f32 %v19485_v31, %v16949_v48  ;;  %v17535_v48 = vld [vmem:[%s17907_s9 + $0x50] sm:$0xff] }
 0x862   : > { %v17512_v19 = vadd.f32 %v7397_v59, %v7132_v29  ;;  %v17514_v38 = vadd.f32 %v7406_v0, %v7133_v51 }
 0x863   : > { %v7892_v47 = vadd.f32 %v7891_v17, %v7347_v33  ;;  %v7884_v7 = vadd.f32 %v7883_v60, %v7354_v26 }
 0x865   : > { %v7885_v14 = vrot.slane %v7884_v7, 4  ;;  %v6935_v45 = vpop.f32.mrf.mxu2 }
 0x866   : > { %v7110_v5 = vmul.f32 %v6935_v45, %v17509_v37  ;;  %8795 = vmatmul.msk.bf16.gmra.mxu2 %vm19489_vm15, %v17490_v42  ;;  %vm19502_vm15 = vmmov %vm19467_vm1 }
 0x867   : > { %v7886_v53 = vadd.f32 %v7885_v14, %v7884_v7  ;;  %v6767_v16 = vpop.f32.mrf.mxu0 }
 0x868   : > { %v6745_v62 = vpop.f32.mrf.mxu3  ;;  %v7140_v43 = vmul.f32 %v6767_v16, %v17419_v40  ;;  %v17580_v16 = vld [vmem:[%s17907_s9 + $0x58] sm:$0xff] }
 0x869   : > { %v7355_v35 = vmul.f32 %v6745_v62, %v17083_v1  ;;  %v7887_v2 = vrot.slane %v7886_v53, 2  ;;  %v6856_v1 = vpop.f32.mrf.mxu1  ;;  %v19495_v62 = vld [vmem:[#allocation72_spill] sm:$0xff] }
 0x86a   : > { %v7141_v10 = vmul.f32 %v6856_v1, %v17423_v44  ;;  %8764 = vmatmul.msk.bf16.gmra.mxu0 %vm19490_vm5, %v17535_v48  ;;  %8780 = vmatmul.msk.bf16.gmra.mxu1 %vm19491_vm4, %v17535_v48  ;;  %v17564_v31 = vadd.f32 %v19495_v62, %v16984_v21  ;;  %vm19503_vm5 = vmmov %vm19467_vm1 }
 0x86b   : > { %v7893_v56 = vadd.f32 %v7892_v47, %v7355_v35  ;;  %v7888_v28 = vadd.f32 %v7887_v2, %v7886_v53  ;;  %vm19504_vm4 = vmmov %vm19467_vm1 }
 0x86d   : > { %v7894_v11 = vrot.slane %v7893_v56, 4  ;;  %8810 = vmatmul.msk.bf16.gmra.mxu3 %vm19486_vm3, %v17433_v18  ;;  %v7889_v36 = vrot.slane %v7888_v28, 1  ;;  %v6937_v61 = vpop.f32.mrf.mxu2  ;;  %vm19501_vm3 = vmmov %vm19467_vm1 }
 0x86e   : > { %v7118_v24 = vmul.f32 %v6937_v61, %v17527_v49 }
 0x86f   : > { %v7895_v55 = vadd.f32 %v7894_v11, %v7893_v56  ;;  %v7890_v39 = vadd.f32 %v7889_v36, %v7888_v28  ;;  %v6769_v17 = vpop.f32.mrf.mxu0  ;;  %v19496_v56 = vld [vmem:[#allocation32_spill] sm:$0xff] }
 0x870   : > { %v7024_v52 = vpop.f32.mrf.mxu3  ;;  %v7414_v54 = vadd.f32 %v7118_v24, %v7110_v5  ;;  %v7148_v59 = vmul.f32 %v6769_v17, %v17447_v12  ;;  %v17570_v5 = vadd.f32 %v19496_v56, %v17031_v13 }
 0x871   : > { %v7896_v18 = vrot.slane %v7895_v55, 2  ;;  %v7111_v20 = vmul.f32 %v7024_v52, %v17521_v58  ;;  %v8027_v23 = vsel %vm8012_vm11, %v7890_v39, %v17443_v41  ;;  %v6858_v33 = vpop.f32.mrf.mxu1  ;;  %v19493_v41 = vld [vmem:[#allocation35_spill] sm:$0xff]  ;;  %v17593_v39 = vadd.f32 %v19500_v46, %v17031_v13 }
 0x872   : > { %8073 = vst [vmem:[%s17460_s29 + $0x10] sm:$0xff] %v8027_v23  ;;  %v7149_v0 = vmul.f32 %v6858_v33, %v17451_v3  ;;  %v17553_v47 = vadd.f32 %v19493_v41, %v16984_v21  ;;  %v7468_v27 = vadd.f32 %v7148_v59, %v7140_v43  ;;  %v7408_v21 = vrot.slane %v17514_v38, 4 }
 0x873   : > { %v7897_v60 = vadd.f32 %v7896_v18, %v7895_v55 }
 0x874   : > { %v7477_v32 = vadd.f32 %v7149_v0, %v7141_v10  ;;  %v7409_v52 = vadd.f32 %v7408_v21, %v17514_v38 }
 0x875   : > { %v7898_v6 = vrot.slane %v7897_v60, 1  ;;  %v6940_v8 = vpop.f32.mrf.mxu2 }
 0x876   : > { %v7126_v29 = vmul.f32 %v6940_v8, %v17553_v47  ;;  %8796 = vmatmul.msk.bf16.gmra.mxu2 %vm19497_vm10, %v17535_v48  ;;  %vm19506_vm10 = vmmov %vm19467_vm1 }
 0x877   : > { %v7899_v34 = vadd.f32 %v7898_v6, %v7897_v60  ;;  %v6772_v53 = vpop.f32.mrf.mxu0 }
 0x878   : > { %v7026_v22 = vpop.f32.mrf.mxu3  ;;  %v7415_v51 = vadd.f32 %v7414_v54, %v7126_v29  ;;  %v7410_v54 = vrot.slane %v7409_v52, 2 }
 0x879   : > { %v8034_v26 = vsel %vm8012_vm11, %v7899_v34, %v17465_v30  ;;  %v7119_v7 = vmul.f32 %v7026_v22, %v17547_v50  ;;  %v6861_v35 = vpop.f32.mrf.mxu1  ;;  %v7156_v30 = vmul.f32 %v6772_v53, %v17475_v63 }
 0x87a   : > { %8074 = vst [vmem:[%s17460_s29 + $0x18] sm:$0xff] %v8034_v26  ;;  %v7157_v45 = vmul.f32 %v6861_v35, %v17479_v4  ;;  %8765 = vmatmul.msk.bf16.gmra.mxu0 %vm19498_vm12, %v17580_v16  ;;  %8781 = vmatmul.msk.bf16.gmra.mxu1 %vm19499_vm13, %v17580_v16  ;;  %v7411_v0 = vadd.f32 %v7410_v54, %v7409_v52  ;;  %vm19507_vm12 = vmmov %vm19467_vm1 }
 0x87b   : > { %v7423_v14 = vadd.f32 %v7119_v7, %v7111_v20  ;;  %v7469_v11 = vadd.f32 %v7468_v27, %v7156_v30  ;;  %v17611_v30 = vld [vmem:[%s17907_s9 + $0x60] sm:$0xff]  ;;  %vm19508_vm13 = vmmov %vm19467_vm1 }
 0x87c   : > { %v7478_v9 = vadd.f32 %v7477_v32, %v7157_v45 }
 0x87d   : > { %8811 = vmatmul.msk.bf16.gmra.mxu3 %vm19494_vm9, %v17490_v42  ;;  %v7399_v42 = vrot.slane %v17512_v19, 4  ;;  %v6942_v1 = vpop.f32.mrf.mxu2  ;;  %vm19505_vm9 = vmmov %vm19467_vm1 }
 0x87e   : > { %v7134_v55 = vmul.f32 %v6942_v1, %v17570_v5 }
 0x87f   : > { %v7400_v10 = vadd.f32 %v7399_v42, %v17512_v19  ;;  %v6774_v18 = vpop.f32.mrf.mxu0 }
 0x880   : > { %v7029_v2 = vpop.f32.mrf.mxu3  ;;  %v17587_v43 = vadd.f32 %v7415_v51, %v7134_v55  ;;  %v7164_v61 = vmul.f32 %v6774_v18, %v17499_v57 }
 0x881   : > { %v7127_v28 = vmul.f32 %v7029_v2, %v17564_v31  ;;  %v6863_v20 = vpop.f32.mrf.mxu1  ;;  %v7401_v6 = vrot.slane %v7400_v10, 2 }
 0x882   : > { %v7165_v23 = vmul.f32 %v6863_v20, %v17503_v15  ;;  %v7470_v25 = vadd.f32 %v7469_v11, %v7164_v61 }
 0x883   : > { %v7424_v36 = vadd.f32 %v7423_v14, %v7127_v28  ;;  %v7402_v59 = vadd.f32 %v7401_v6, %v7400_v10 }
 0x884   : > { %v7479_v34 = vadd.f32 %v7478_v9, %v7165_v23  ;;  %v7471_v13 = vrot.slane %v7470_v25, 4 }
 0x885   : > { %v6945_v19 = vpop.f32.mrf.mxu2  ;;  %v7403_v62 = vrot.slane %v7402_v59, 1 }
 0x886   : > { %v7142_v38 = vmul.f32 %v6945_v19, %v17509_v37  ;;  %v7480_v33 = vrot.slane %v7479_v34, 4  ;;  %v7472_v22 = vadd.f32 %v7471_v13, %v7470_v25  ;;  %8797 = vmatmul.msk.bf16.gmra.mxu2 %vm19501_vm3, %v17580_v16  ;;  %v7417_v25 = vrot.slane %v17587_v43, 4  ;;  %vm19509_vm3 = vmmov %vm19467_vm1 }
 0x887   : > { %v6777_v26 = vpop.f32.mrf.mxu0  ;;  %v7404_v21 = vadd.f32 %v7403_v62, %v7402_v59 }
 0x888   : > { %v7031_v60 = vpop.f32.mrf.mxu3  ;;  %v7481_v41 = vadd.f32 %v7480_v33, %v7479_v34  ;;  %v7473_v27 = vrot.slane %v7472_v22, 2  ;;  %v7172_v8 = vmul.f32 %v6777_v26, %v17419_v40 }
 0x889   : > { %v7135_v24 = vmul.f32 %v7031_v60, %v17593_v39  ;;  %v6866_v7 = vpop.f32.mrf.mxu1 }
 0x88a   : > { %v7482_v32 = vrot.slane %v7481_v41, 2  ;;  %v7173_v14 = vmul.f32 %v6866_v7, %v17423_v44  ;;  %v7474_v53 = vadd.f32 %v7473_v27, %v7472_v22  ;;  %8766 = vmatmul.msk.bf16.gmra.mxu0 %vm19502_vm15, %v17611_v30  ;;  %8782 = vmatmul.msk.bf16.gmra.mxu1 %vm19503_vm5, %v17611_v30  ;;  %vm19510_vm15 = vmmov %vm19467_vm1 }
 0x88b   : > { %v17598_v17 = vadd.f32 %v7424_v36, %v7135_v24  ;;  %vm19511_vm5 = vmmov %vm19467_vm1 }
 0x88c   : > { %v7483_v35 = vadd.f32 %v7482_v32, %v7481_v41  ;;  %v7475_v56 = vrot.slane %v7474_v53, 1 }
 0x88d   : > { %8812 = vmatmul.msk.bf16.gmra.mxu3 %vm19467_vm1, %v17535_v48  ;;  %v7412_v48 = vrot.slane %v7411_v0, 1  ;;  %v6947_v45 = vpop.f32.mrf.mxu2 }
 0x88e   : > { %v7150_v2 = vmul.f32 %v6947_v45, %v17527_v49  ;;  %v7484_v28 = vrot.slane %v7483_v35, 1  ;;  %v7476_v9 = vadd.f32 %v7475_v56, %v7474_v53 }
 0x88f   : > { %v7413_v11 = vadd.f32 %v7412_v48, %v7411_v0  ;;  %v6779_v36 = vpop.f32.mrf.mxu0  ;;  %v7418_v0 = vadd.f32 %v7417_v25, %v17587_v43  ;;  %v7426_v43 = vrot.slane %v17598_v17, 4 }
 0x890   : > { %v7034_v29 = vpop.f32.mrf.mxu3  ;;  %v7486_v42 = vadd.f32 %v7150_v2, %v7142_v38  ;;  %v7485_v1 = vadd.f32 %v7484_v28, %v7483_v35  ;;  %v17619_v10 = vsel %vm8000_vm7, %v7476_v9, %v7404_v21  ;;  %v7180_v46 = vmul.f32 %v6779_v36, %v17447_v12 }
 0x891   : > { %v7143_v51 = vmul.f32 %v7034_v29, %v17521_v58  ;;  %v6868_v55 = vpop.f32.mrf.mxu1  ;;  %v7427_v29 = vadd.f32 %v7426_v43, %v17598_v17  ;;  %v17663_v43 = vld [vmem:[%s17907_s9 + $0x70] sm:$0xff] }
 0x892   : > { %v17622_v52 = vsel %vm8000_vm7, %v7485_v1, %v7413_v11  ;;  %v7181_v18 = vmul.f32 %v6868_v55, %v17451_v3  ;;  %v7540_v23 = vadd.f32 %v7180_v46, %v7172_v8  ;;  %v7419_v8 = vrot.slane %v7418_v0, 2 }
 0x893   : > { %v7428_v9 = vrot.slane %v7427_v29, 2 }
 0x894   : > { %v7549_v60 = vadd.f32 %v7181_v18, %v7173_v14  ;;  %v7420_v2 = vadd.f32 %v7419_v8, %v7418_v0 }
 0x895   : > { %v6950_v24 = vpop.f32.mrf.mxu2 }
 0x896   : > { %v7158_v54 = vmul.f32 %v6950_v24, %v17553_v47  ;;  %8798 = vmatmul.msk.bf16.gmra.mxu2 %vm19505_vm9, %v17611_v30  ;;  %v7421_v18 = vrot.slane %v7420_v2, 1  ;;  %v7429_v24 = vadd.f32 %v7428_v9, %v7427_v29  ;;  %vm19514_vm9 = vmmov %vm19467_vm1 }
 0x897   : > { %v6782_v19 = vpop.f32.mrf.mxu0 }
 0x898   : > { %v7036_v20 = vpop.f32.mrf.mxu3  ;;  %v7487_v34 = vadd.f32 %v7486_v42, %v7158_v54  ;;  %v7188_v13 = vmul.f32 %v6782_v19, %v17475_v63  ;;  %v7422_v0 = vadd.f32 %v7421_v18, %v7420_v2 }
 0x899   : > { %v7151_v61 = vmul.f32 %v7036_v20, %v17547_v50  ;;  %v6871_v38 = vpop.f32.mrf.mxu1 }
 0x89a   : > { %v7189_v33 = vmul.f32 %v6871_v38, %v17479_v4  ;;  %v7541_v41 = vadd.f32 %v7540_v23, %v7188_v13 }
 0x89b   : > { %v7495_v6 = vadd.f32 %v7151_v61, %v7143_v51 }
 0x89c   : > { %v7550_v26 = vadd.f32 %v7549_v60, %v7189_v33 }
 0x89d   : > { %8813 = vmatmul.msk.bf16.gmra.mxu3 %vm19504_vm4, %v17580_v16  ;;  %v17640_v16 = vld [vmem:[%s17907_s9 + $0x68] sm:$0xff]  ;;  %v6952_v7 = vpop.f32.mrf.mxu2  ;;  %vm19513_vm4 = vmmov %vm19467_vm1 }
 0x89e   : > { %8767 = vmatmul.msk.bf16.gmra.mxu0 %vm19506_vm10, %v17640_v16  ;;  %8783 = vmatmul.msk.bf16.gmra.mxu1 %vm19507_vm12, %v17640_v16  ;;  %v7166_v32 = vmul.f32 %v6952_v7, %v17570_v5  ;;  %vm19515_vm10 = vmmov %vm19467_vm1 }
 0x89f   : > { %v6784_v51 = vpop.f32.mrf.mxu0  ;;  %vm19516_vm12 = vmmov %vm19467_vm1 }
 0x8a0   : > { %v7039_v59 = vpop.f32.mrf.mxu3  ;;  %v7488_v14 = vadd.f32 %v7487_v34, %v7166_v32  ;;  %v7196_v53 = vmul.f32 %v6784_v51, %v17499_v57  ;;  %v7430_v32 = vrot.slane %v7429_v24, 1 }
 0x8a1   : > { %v7159_v22 = vmul.f32 %v7039_v59, %v17564_v31  ;;  %v6873_v62 = vpop.f32.mrf.mxu1 }
 0x8a2   : > { %v7489_v48 = vrot.slane %v7488_v14, 4  ;;  %v7197_v35 = vmul.f32 %v6873_v62, %v17503_v15  ;;  %v7542_v42 = vadd.f32 %v7541_v41, %v7196_v53  ;;  %v7431_v2 = vadd.f32 %v7430_v32, %v7429_v24 }
 0x8a3   : > { %v7496_v27 = vadd.f32 %v7495_v6, %v7159_v22 }
 0x8a4   : > { %v7490_v56 = vadd.f32 %v7489_v48, %v7488_v14  ;;  %v7551_v21 = vadd.f32 %v7550_v26, %v7197_v35  ;;  %v7543_v55 = vrot.slane %v7542_v42, 4 }
 0x8a5   : > { %v6955_v11 = vpop.f32.mrf.mxu2 }
 0x8a6   : > { %v7491_v1 = vrot.slane %v7490_v56, 2  ;;  %v7174_v17 = vmul.f32 %v6955_v11, %v17509_v37  ;;  %v7552_v46 = vrot.slane %v7551_v21, 4  ;;  %v7544_v23 = vadd.f32 %v7543_v55, %v7542_v42  ;;  %8799 = vmatmul.msk.bf16.gmra.mxu2 %vm19467_vm1, %v17640_v16 }
 0x8a7   : > { %v6787_v6 = vpop.f32.mrf.mxu0 }
 0x8a8   : > { %v7041_v45 = vpop.f32.mrf.mxu3  ;;  %v7492_v20 = vadd.f32 %v7491_v1, %v7490_v56  ;;  %v7553_v60 = vadd.f32 %v7552_v46, %v7551_v21  ;;  %v7545_v19 = vrot.slane %v7544_v23, 2  ;;  %v7204_v13 = vmul.f32 %v6787_v6, %v17419_v40 }
 0x8a9   : > { %v7167_v28 = vmul.f32 %v7041_v45, %v17593_v39  ;;  %v6876_v54 = vpop.f32.mrf.mxu1 }
 0x8aa   : > { %v7493_v25 = vrot.slane %v7492_v20, 1  ;;  %v7554_v38 = vrot.slane %v7553_v60, 2  ;;  %v7205_v33 = vmul.f32 %v6876_v54, %v17423_v44 }
 0x8ab   : > { %v7497_v36 = vadd.f32 %v7496_v27, %v7167_v28 }
 0x8ac   : > { %v7494_v22 = vadd.f32 %v7493_v25, %v7492_v20  ;;  %v7555_v7 = vadd.f32 %v7554_v38, %v7553_v60  ;;  %v17698_v38 = vld [vmem:[%s17907_s9 + $0x78] sm:$0xff] }
 0x8ad   : > { %v7498_v61 = vrot.slane %v7497_v36, 4  ;;  %8814 = vmatmul.msk.bf16.gmra.mxu3 %vm19508_vm13, %v17611_v30  ;;  %v7546_v30 = vadd.f32 %v7545_v19, %v7544_v23  ;;  %v6957_v27 = vpop.f32.mrf.mxu2  ;;  %vm19517_vm13 = vmmov %vm19467_vm1 }
 0x8ae   : > { %8768 = vmatmul.msk.bf16.gmra.mxu0 %vm19509_vm3, %v17663_v43  ;;  %8784 = vmatmul.msk.bf16.gmra.mxu1 %vm19510_vm15, %v17663_v43  ;;  %v17670_v8 = vsel %vm8000_vm7, %v7494_v22, %v7422_v0  ;;  %v7182_v29 = vmul.f32 %v6957_v27, %v17527_v49  ;;  %v7556_v62 = vrot.slane %v7555_v7, 1 }
 0x8af   : > { %v7499_v34 = vadd.f32 %v7498_v61, %v7497_v36  ;;  %v7547_v51 = vrot.slane %v7546_v30, 1  ;;  %v6789_v28 = vpop.f32.mrf.mxu0 }
 0x8b0   : > { %v7044_v59 = vpop.f32.mrf.mxu3  ;;  %v7558_v53 = vadd.f32 %v7182_v29, %v7174_v17  ;;  %v7557_v45 = vadd.f32 %v7556_v62, %v7555_v7  ;;  %v7212_v9 = vmul.f32 %v6789_v28, %v17447_v12 }
 0x8b1   : > { %v7500_v41 = vrot.slane %v7499_v34, 2  ;;  %v7175_v26 = vmul.f32 %v7044_v59, %v17521_v58  ;;  %v7548_v35 = vadd.f32 %v7547_v51, %v7546_v30  ;;  %v6878_v42 = vpop.f32.mrf.mxu1 }
 0x8b2   : > { %v17679_v11 = vsel %vm8002_vm8, %v7557_v45, %v17622_v52  ;;  %v7213_v1 = vmul.f32 %v6878_v42, %v17451_v3  ;;  %v7612_v46 = vadd.f32 %v7212_v9, %v7204_v13 }
 0x8b3   : > { %v7501_v14 = vadd.f32 %v7500_v41, %v7499_v34  ;;  %v17675_v21 = vsel %vm8002_vm8, %v7548_v35, %v17619_v10 }
 0x8b4   : > { %v7621_v18 = vadd.f32 %v7213_v1, %v7205_v33 }
 0x8b5   : > { %v7502_v48 = vrot.slane %v7501_v14, 1  ;;  %v6960_v20 = vpop.f32.mrf.mxu2 }
 0x8b6   : > { %v7190_v10 = vmul.f32 %v6960_v20, %v17553_v47 }
 0x8b7   : > { %v7503_v56 = vadd.f32 %v7502_v48, %v7501_v14  ;;  %v6792_v23 = vpop.f32.mrf.mxu0 }
 0x8b8   : > { %v7046_v36 = vpop.f32.mrf.mxu3  ;;  %v7559_v52 = vadd.f32 %v7558_v53, %v7190_v10  ;;  %v7220_v24 = vmul.f32 %v6792_v23, %v17475_v63 }
 0x8b9   : > { %v17684_v17 = vsel %vm8000_vm7, %v7503_v56, %v7431_v2  ;;  %v7183_v55 = vmul.f32 %v7046_v36, %v17547_v50  ;;  %v6881_v60 = vpop.f32.mrf.mxu1  ;;  %vm19512_vm7 = vmmov %vm19467_vm1 }
 0x8ba   : > { %v7221_v6 = vmul.f32 %v6881_v60, %v17479_v4  ;;  %8800 = vmatmul.msk.bf16.gmra.mxu2 %vm19512_vm7, %v17663_v43  ;;  %v7613_v34 = vadd.f32 %v7612_v46, %v7220_v24 }
 0x8bb   : > { %v7567_v61 = vadd.f32 %v7183_v55, %v7175_v26 }
 0x8bc   : > { %v7622_v19 = vadd.f32 %v7621_v18, %v7221_v6 }
 0x8bd   : > { %8815 = vmatmul.msk.bf16.gmra.mxu3 %vm19511_vm5, %v17640_v16  ;;  %v6962_v16 = vpop.f32.mrf.mxu2 }
 0x8be   : > { %8769 = vmatmul.msk.bf16.gmra.mxu0 %vm19513_vm4, %v17698_v38  ;;  %8785 = vmatmul.msk.bf16.gmra.mxu1 %vm19514_vm9, %v17698_v38  ;;  %v7198_v33 = vmul.f32 %v6962_v16, %v17570_v5 }
 0x8bf   : > { %v6794_v0 = vpop.f32.mrf.mxu0 }
 0x8c0   : > { %v7049_v54 = vpop.f32.mrf.mxu3  ;;  %v7560_v59 = vadd.f32 %v7559_v52, %v7198_v33  ;;  %v7228_v26 = vmul.f32 %v6794_v0, %v17499_v57 }
 0x8c1   : > { %v7191_v25 = vmul.f32 %v7049_v54, %v17564_v31  ;;  %v6883_v22 = vpop.f32.mrf.mxu1 }
 0x8c2   : > { %v7561_v41 = vrot.slane %v7560_v59, 4  ;;  %v7229_v30 = vmul.f32 %v6883_v22, %v17503_v15  ;;  %v7614_v14 = vadd.f32 %v7613_v34, %v7228_v26 }
 0x8c3   : > { %v7568_v13 = vadd.f32 %v7567_v61, %v7191_v25 }
 0x8c4   : > { %v7562_v27 = vadd.f32 %v7561_v41, %v7560_v59  ;;  %v7623_v29 = vadd.f32 %v7622_v19, %v7229_v30  ;;  %v7615_v35 = vrot.slane %v7614_v14, 4 }
 0x8c5   : > { %v6965_v51 = vpop.f32.mrf.mxu2 }
 0x8c6   : > { %v7563_v62 = vrot.slane %v7562_v27, 2  ;;  %v7206_v53 = vmul.f32 %v6965_v51, %v17509_v37  ;;  %v7624_v45 = vrot.slane %v7623_v29, 4  ;;  %v7616_v28 = vadd.f32 %v7615_v35, %v7614_v14 }
 0x8c7   : > { %v6797_v9 = vpop.f32.mrf.mxu0 }
 0x8c8   : > { %v7051_v7 = vpop.f32.mrf.mxu3  ;;  %v7564_v2 = vadd.f32 %v7563_v62, %v7562_v27  ;;  %v7625_v42 = vadd.f32 %v7624_v45, %v7623_v29  ;;  %v7617_v46 = vrot.slane %v7616_v28, 2  ;;  %v7236_v20 = vmul.f32 %v6797_v9, %v17419_v40 }
 0x8c9   : > { %v7199_v32 = vmul.f32 %v7051_v7, %v17593_v39  ;;  %v6886_v1 = vpop.f32.mrf.mxu1 }
 0x8ca   : > { %v7565_v36 = vrot.slane %v7564_v2, 1  ;;  %v7626_v18 = vrot.slane %v7625_v42, 2  ;;  %v7237_v61 = vmul.f32 %v6886_v1, %v17423_v44  ;;  %8801 = vmatmul.msk.bf16.gmra.mxu2 %vm19516_vm12, %v17698_v38 }
 0x8cb   : > { %v7569_v48 = vadd.f32 %v7568_v13, %v7199_v32 }
 0x8cc   : > { %v7566_v52 = vadd.f32 %v7565_v36, %v7564_v2  ;;  %v7627_v24 = vadd.f32 %v7626_v18, %v7625_v42 }
 0x8cd   : > { %v7570_v56 = vrot.slane %v7569_v48, 4  ;;  %8816 = vmatmul.msk.bf16.gmra.mxu3 %vm19515_vm10, %v17663_v43  ;;  %v7618_v43 = vadd.f32 %v7617_v46, %v7616_v28  ;;  %v6967_v6 = vpop.f32.mrf.mxu2 }
 0x8ce   : > { %v17718_v54 = vsel %vm8002_vm8, %v7566_v52, %v17670_v8  ;;  %v7214_v34 = vmul.f32 %v6967_v6, %v17527_v49  ;;  %v7628_v16 = vrot.slane %v7627_v24, 1 }
 0x8cf   : > { %v7571_v55 = vadd.f32 %v7570_v56, %v7569_v48  ;;  %v7619_v19 = vrot.slane %v7618_v43, 1  ;;  %v6799_v41 = vpop.f32.mrf.mxu0 }
 0x8d0   : > { %v7054_v10 = vpop.f32.mrf.mxu3  ;;  %v7630_v33 = vadd.f32 %v7214_v34, %v7206_v53  ;;  %v7629_v0 = vadd.f32 %v7628_v16, %v7627_v24  ;;  %v7244_v7 = vmul.f32 %v6799_v41, %v17447_v12 }
 0x8d1   : > { %v7572_v23 = vrot.slane %v7571_v55, 2  ;;  %v7207_v60 = vmul.f32 %v7054_v10, %v17521_v58  ;;  %v7620_v59 = vadd.f32 %v7619_v19, %v7618_v43  ;;  %v6888_v26 = vpop.f32.mrf.mxu1 }
 0x8d2   : > { %v17727_v8 = vsel %vm8004_vm14, %v7629_v0, %v17679_v11  ;;  %v7245_v27 = vmul.f32 %v6888_v26, %v17451_v3  ;;  %v7684_v51 = vadd.f32 %v7244_v7, %v7236_v20 }
 0x8d3   : > { %v7573_v25 = vadd.f32 %v7572_v23, %v7571_v55  ;;  %v17723_v30 = vsel %vm8004_vm14, %v7620_v59, %v17675_v21 }
 0x8d4   : > { %v7693_v62 = vadd.f32 %v7245_v27, %v7237_v61 }
 0x8d5   : > { %v7574_v13 = vrot.slane %v7573_v25, 1  ;;  %v6970_v48 = vpop.f32.mrf.mxu2 }
 0x8d6   : > { %v7222_v53 = vmul.f32 %v6970_v48, %v17553_v47 }
 0x8d7   : > { %v7575_v22 = vadd.f32 %v7574_v13, %v7573_v25  ;;  %v6802_v35 = vpop.f32.mrf.mxu0 }
 0x8d8   : > { %v7056_v32 = vpop.f32.mrf.mxu3  ;;  %v7631_v11 = vadd.f32 %v7630_v33, %v7222_v53  ;;  %v7252_v2 = vmul.f32 %v6802_v35, %v17475_v63 }
 0x8d9   : > { %v17733_v14 = vsel %vm8002_vm8, %v7575_v22, %v17684_v17  ;;  %v7215_v29 = vmul.f32 %v7056_v32, %v17547_v50  ;;  %v6891_v45 = vpop.f32.mrf.mxu1 }
 0x8da   : > { %v7253_v56 = vmul.f32 %v6891_v45, %v17479_v4  ;;  %v7685_v42 = vadd.f32 %v7684_v51, %v7252_v2 }
 0x8db   : > { %v7639_v21 = vadd.f32 %v7215_v29, %v7207_v60 }
 0x8dc   : > { %v7694_v9 = vadd.f32 %v7693_v62, %v7253_v56 }
 0x8dd   : > { %8817 = vmatmul.msk.bf16.gmra.mxu3 %vm19517_vm13, %v17698_v38  ;;  %v6972_v1 = vpop.f32.mrf.mxu2 }
 0x8de   : > { %v7230_v55 = vmul.f32 %v6972_v1, %v17570_v5 }
 0x8df   : > { %v6804_v18 = vpop.f32.mrf.mxu0 }
 0x8e0   : > { %v7059_v17 = vpop.f32.mrf.mxu3  ;;  %v7632_v46 = vadd.f32 %v7631_v11, %v7230_v55  ;;  %v7260_v61 = vmul.f32 %v6804_v18, %v17499_v57 }
 0x8e1   : > { %v7223_v28 = vmul.f32 %v7059_v17, %v17564_v31  ;;  %v6893_v20 = vpop.f32.mrf.mxu1 }
 0x8e2   : > { %v7633_v38 = vrot.slane %v7632_v46, 4  ;;  %v7261_v10 = vmul.f32 %v6893_v20, %v17503_v15  ;;  %v7686_v43 = vadd.f32 %v7685_v42, %v7260_v61 }
 0x8e3   : > { %v7640_v36 = vadd.f32 %v7639_v21, %v7223_v28 }
 0x8e4   : > { %v7634_v23 = vadd.f32 %v7633_v38, %v7632_v46  ;;  %v7695_v24 = vadd.f32 %v7694_v9, %v7261_v10  ;;  %v7687_v16 = vrot.slane %v7686_v43, 4 }
 0x8e5   : > { %v6975_v6 = vpop.f32.mrf.mxu2 }
 0x8e6   : > { %v7635_v25 = vrot.slane %v7634_v23, 2  ;;  %v7238_v19 = vmul.f32 %v6975_v6, %v17509_v37  ;;  %v7696_v13 = vrot.slane %v7695_v24, 4  ;;  %v7688_v0 = vadd.f32 %v7687_v16, %v7686_v43 }
 0x8e7   : > { %v6807_v41 = vpop.f32.mrf.mxu0 }
 0x8e8   : > { %v7061_v52 = vpop.f32.mrf.mxu3  ;;  %v7636_v33 = vadd.f32 %v7635_v25, %v7634_v23  ;;  %v7697_v22 = vadd.f32 %v7696_v13, %v7695_v24  ;;  %v7689_v32 = vrot.slane %v7688_v0, 2  ;;  %v7268_v51 = vmul.f32 %v6807_v41, %v17419_v40 }
 0x8e9   : > { %v7231_v60 = vmul.f32 %v7061_v52, %v17593_v39  ;;  %v6896_v26 = vpop.f32.mrf.mxu1 }
 0x8ea   : > { %v7637_v7 = vrot.slane %v7636_v33, 1  ;;  %v7698_v29 = vrot.slane %v7697_v22, 2  ;;  %v7269_v62 = vmul.f32 %v6896_v26, %v17423_v44  ;;  %v7690_v35 = vadd.f32 %v7689_v32, %v7688_v0 }
 0x8eb   : > { %v7641_v34 = vadd.f32 %v7640_v36, %v7231_v60 }
 0x8ec   : > { %v7638_v21 = vadd.f32 %v7637_v7, %v7636_v33  ;;  %v7699_v45 = vadd.f32 %v7698_v29, %v7697_v22  ;;  %v7691_v42 = vrot.slane %v7690_v35, 1 }
 0x8ed   : > { %v7642_v59 = vrot.slane %v7641_v34, 4  ;;  %v6977_v2 = vpop.f32.mrf.mxu2 }
 0x8ee   : > { %v17752_v56 = vsel %vm8004_vm14, %v7638_v21, %v17718_v54  ;;  %v7246_v28 = vmul.f32 %v6977_v2, %v17527_v49  ;;  %v7700_v9 = vrot.slane %v7699_v45, 1  ;;  %v7692_v55 = vadd.f32 %v7691_v42, %v7690_v35 }
 0x8ef   : > { %v7643_v27 = vadd.f32 %v7642_v59, %v7641_v34  ;;  %v6809_v20 = vpop.f32.mrf.mxu0 }
 0x8f0   : > { %v7064_v48 = vpop.f32.mrf.mxu3  ;;  %v7702_v36 = vadd.f32 %v7246_v28, %v7238_v19  ;;  %v7701_v46 = vadd.f32 %v7700_v9, %v7699_v45  ;;  %v17757_v61 = vsel %vm8006_vm2, %v7692_v55, %v17723_v30  ;;  %v7276_v10 = vmul.f32 %v6809_v20, %v17447_v12 }
 0x8f1   : > { %v7644_v53 = vrot.slane %v7643_v27, 2  ;;  %v7239_v11 = vmul.f32 %v7064_v48, %v17521_v58  ;;  %v6898_v38 = vpop.f32.mrf.mxu1 }
 0x8f2   : > { %v17761_v54 = vsel %vm8006_vm2, %v7701_v46, %v17727_v8  ;;  %v7277_v52 = vmul.f32 %v6898_v38, %v17451_v3  ;;  %v7756_v24 = vadd.f32 %v7276_v10, %v7268_v51 }
 0x8f3   : > { %v7645_v17 = vadd.f32 %v7644_v53, %v7643_v27 }
 0x8f4   : > { %v7765_v6 = vadd.f32 %v7277_v52, %v7269_v62 }
 0x8f5   : > { %v7646_v1 = vrot.slane %v7645_v17, 1  ;;  %v6980_v25 = vpop.f32.mrf.mxu2 }
 0x8f6   : > { %v7254_v34 = vmul.f32 %v6980_v25, %v17553_v47 }
 0x8f7   : > { %v7647_v18 = vadd.f32 %v7646_v1, %v7645_v17  ;;  %v6812_v8 = vpop.f32.mrf.mxu0 }
 0x8f8   : > { %v7066_v23 = vpop.f32.mrf.mxu3  ;;  %v7703_v19 = vadd.f32 %v7702_v36, %v7254_v34  ;;  %v7284_v13 = vmul.f32 %v6812_v8, %v17475_v63 }
 0x8f9   : > { %v17767_v60 = vsel %vm8004_vm14, %v7647_v18, %v17733_v14  ;;  %v7247_v43 = vmul.f32 %v7066_v23, %v17547_v50  ;;  %v6901_v16 = vpop.f32.mrf.mxu1 }
 0x8fa   : > { %v7285_v33 = vmul.f32 %v6901_v16, %v17479_v4  ;;  %v7757_v14 = vadd.f32 %v7756_v24, %v7284_v13 }
 0x8fb   : > { %v7711_v30 = vadd.f32 %v7247_v43, %v7239_v11 }
 0x8fc   : > { %v7766_v22 = vadd.f32 %v7765_v6, %v7285_v33 }
 0x8fd   : > { %v6982_v41 = vpop.f32.mrf.mxu2 }
 0x8fe   : > { %v7262_v7 = vmul.f32 %v6982_v41, %v17570_v5 }
 0x8ff   : > { %v6814_v32 = vpop.f32.mrf.mxu0 }
 0x900   : > { %v7069_v59 = vpop.f32.mrf.mxu3  ;;  %v7704_v27 = vadd.f32 %v7703_v19, %v7262_v7  ;;  %v7292_v62 = vmul.f32 %v6814_v32, %v17499_v57 }
 0x901   : > { %v7255_v0 = vmul.f32 %v7069_v59, %v17564_v31  ;;  %v6903_v29 = vpop.f32.mrf.mxu1 }
 0x902   : > { %v7705_v51 = vrot.slane %v7704_v27, 4  ;;  %v7293_v48 = vmul.f32 %v6903_v29, %v17503_v15  ;;  %v7758_v35 = vadd.f32 %v7757_v14, %v7292_v62 }
 0x903   : > { %v7712_v26 = vadd.f32 %v7711_v30, %v7255_v0 }
 0x904   : > { %v7706_v53 = vadd.f32 %v7705_v51, %v7704_v27  ;;  %v7767_v45 = vadd.f32 %v7766_v22, %v7293_v48  ;;  %v7759_v9 = vrot.slane %v7758_v35, 4 }
 0x905   : > { %v6985_v2 = vpop.f32.mrf.mxu2 }
 0x906   : > { %v7707_v17 = vrot.slane %v7706_v53, 2  ;;  %v7270_v42 = vmul.f32 %v6985_v2, %v17509_v37  ;;  %v7768_v1 = vrot.slane %v7767_v45, 4  ;;  %v7760_v46 = vadd.f32 %v7759_v9, %v7758_v35 }
 0x907   : > { %v6817_v20 = vpop.f32.mrf.mxu0 }
 0x908   : > { %v7071_v21 = vpop.f32.mrf.mxu3  ;;  %v7708_v36 = vadd.f32 %v7707_v17, %v7706_v53  ;;  %v7769_v18 = vadd.f32 %v7768_v1, %v7767_v45  ;;  %v7761_v23 = vrot.slane %v7760_v46, 2  ;;  %v7300_v2 = vmul.f32 %v6817_v20, %v17419_v40 }
 0x909   : > { %v7263_v11 = vmul.f32 %v7071_v21, %v17593_v39  ;;  %v6906_v38 = vpop.f32.mrf.mxu1 }
 0x90a   : > { %v7709_v10 = vrot.slane %v7708_v36, 1  ;;  %v7770_v43 = vrot.slane %v7769_v18, 2  ;;  %v7762_v34 = vadd.f32 %v7761_v23, %v7760_v46 }
 0x90b   : > { %v7713_v28 = vadd.f32 %v7712_v26, %v7263_v11 }
 0x90c   : > { %v7710_v6 = vadd.f32 %v7709_v10, %v7708_v36  ;;  %v7771_v19 = vadd.f32 %v7770_v43, %v7769_v18  ;;  %v7763_v59 = vrot.slane %v7762_v34, 1 }
 0x90d   : > { %v7714_v55 = vrot.slane %v7713_v28, 4  ;;  %v6987_v8 = vpop.f32.mrf.mxu2 }
 0x90e   : > { %v17782_v16 = vsel %vm8006_vm2, %v7710_v6, %v17752_v56  ;;  %v7278_v33 = vmul.f32 %v6987_v8, %v17527_v49  ;;  %v7772_v0 = vrot.slane %v7771_v19, 1  ;;  %v7764_v41 = vadd.f32 %v7763_v59, %v7762_v34 }
 0x90f   : > { %v7715_v52 = vadd.f32 %v7714_v55, %v7713_v28  ;;  %v6819_v27 = vpop.f32.mrf.mxu0 }
 0x910   : > { %v7074_v24 = vpop.f32.mrf.mxu3  ;;  %v7774_v22 = vadd.f32 %v7278_v33, %v7270_v42  ;;  %v7773_v26 = vadd.f32 %v7772_v0, %v7771_v19  ;;  %v17787_v29 = vsel %vm8008_vm6, %v7764_v41, %v17757_v61  ;;  %v7308_v35 = vmul.f32 %v6819_v27, %v17447_v12 }
 0x911   : > { %v7716_v25 = vrot.slane %v7715_v52, 2  ;;  %v7271_v30 = vmul.f32 %v7074_v24, %v17521_v58  ;;  %v6908_v32 = vpop.f32.mrf.mxu1 }
 0x912   : > { %v17791_v56 = vsel %vm8008_vm6, %v7773_v26, %v17761_v54  ;;  %v7309_v61 = vmul.f32 %v6908_v32, %v17451_v3  ;;  %v7301_v54 = vmul.f32 %v6906_v38, %v17423_v44  ;;  %v7828_v42 = vadd.f32 %v7308_v35, %v7300_v2 }
 0x913   : > { %v7717_v13 = vadd.f32 %v7716_v25, %v7715_v52 }
 0x915   : > { %v7718_v14 = vrot.slane %v7717_v13, 1  ;;  %v6990_v21 = vpop.f32.mrf.mxu2 }
 0x916   : > { %v7286_v11 = vmul.f32 %v6990_v21, %v17553_v47 }
 0x917   : > { %v7719_v7 = vadd.f32 %v7718_v14, %v7717_v13 }
 0x918   : > { %v7076_v51 = vpop.f32.mrf.mxu3  ;;  %v7775_v45 = vadd.f32 %v7774_v22, %v7286_v11 }
 0x919   : > { %v17795_v62 = vsel %vm8006_vm2, %v7719_v7, %v17767_v60  ;;  %v7279_v48 = vmul.f32 %v7076_v51, %v17547_v50  ;;  %v7837_v60 = vadd.f32 %v7309_v61, %v7301_v54 }
 0x91b   : > { %v7783_v53 = vadd.f32 %v7279_v48, %v7271_v30  ;;  %v6822_v17 = vpop.f32.mrf.mxu0  ;;  %v6911_v28 = vpop.f32.mrf.mxu1 }
 0x91c   : > { %v7316_v9 = vmul.f32 %v6822_v17, %v17475_v63  ;;  %v7317_v1 = vmul.f32 %v6911_v28, %v17479_v4 }
 0x91d   : > { %v6992_v10 = vpop.f32.mrf.mxu2 }
 0x91e   : > { %v7829_v46 = vadd.f32 %v7828_v42, %v7316_v9  ;;  %v7838_v18 = vadd.f32 %v7837_v60, %v7317_v1  ;;  %v7294_v23 = vmul.f32 %v6992_v10, %v17570_v5 }
 0x920   : > { %v7079_v36 = vpop.f32.mrf.mxu3  ;;  %v7776_v20 = vadd.f32 %v7775_v45, %v7294_v23 }
 0x921   : > { %v7287_v55 = vmul.f32 %v7079_v36, %v17564_v31 }
 0x922   : > { %v7777_v24 = vrot.slane %v7776_v20, 4 }
 0x923   : > { %v7784_v52 = vadd.f32 %v7783_v53, %v7287_v55  ;;  %v6824_v43 = vpop.f32.mrf.mxu0  ;;  %v6913_v38 = vpop.f32.mrf.mxu1 }
 0x924   : > { %v7324_v6 = vmul.f32 %v6824_v43, %v17499_v57  ;;  %v7325_v25 = vmul.f32 %v6913_v38, %v17503_v15  ;;  %v7778_v34 = vadd.f32 %v7777_v24, %v7776_v20 }
 0x925   : > { %v6995_v33 = vpop.f32.mrf.mxu2 }
 0x926   : > { %v7830_v8 = vadd.f32 %v7829_v46, %v7324_v6  ;;  %v7839_v13 = vadd.f32 %v7838_v18, %v7325_v25  ;;  %v7779_v59 = vrot.slane %v7778_v34, 2  ;;  %v7302_v38 = vmul.f32 %v6995_v33, %v17509_v37 }
 0x928   : > { %v7081_v30 = vpop.f32.mrf.mxu3  ;;  %v7831_v14 = vrot.slane %v7830_v8, 4  ;;  %v7840_v22 = vrot.slane %v7839_v13, 4  ;;  %v7780_v41 = vadd.f32 %v7779_v59, %v7778_v34 }
 0x929   : > { %v7295_v19 = vmul.f32 %v7081_v30, %v17593_v39 }
 0x92a   : > { %v7832_v7 = vadd.f32 %v7831_v14, %v7830_v8  ;;  %v7841_v27 = vadd.f32 %v7840_v22, %v7839_v13  ;;  %v7781_v48 = vrot.slane %v7780_v41, 1 }
 0x92b   : > { %v7785_v0 = vadd.f32 %v7784_v52, %v7295_v19  ;;  %v6827_v32 = vpop.f32.mrf.mxu0  ;;  %v6916_v51 = vpop.f32.mrf.mxu1 }
 0x92c   : > { %v7833_v53 = vrot.slane %v7832_v7, 2  ;;  %v7842_v11 = vrot.slane %v7841_v27, 2  ;;  %v7782_v61 = vadd.f32 %v7781_v48, %v7780_v41  ;;  %v7333_v8 = vmul.f32 %v6916_v51, %v17423_v44 }
 0x92d   : > { %v7786_v26 = vrot.slane %v7785_v0, 4  ;;  %v6997_v17 = vpop.f32.mrf.mxu2 }
 0x92e   : > { %v7834_v2 = vadd.f32 %v7833_v53, %v7832_v7  ;;  %v7843_v54 = vadd.f32 %v7842_v11, %v7841_v27  ;;  %v17812_v28 = vsel %vm8008_vm6, %v7782_v61, %v17782_v16  ;;  %v7310_v52 = vmul.f32 %v6997_v17, %v17527_v49 }
 0x92f   : > { %v7787_v21 = vadd.f32 %v7786_v26, %v7785_v0 }
 0x930   : > { %v7084_v35 = vpop.f32.mrf.mxu3  ;;  %v7835_v60 = vrot.slane %v7834_v2, 1  ;;  %v7844_v9 = vrot.slane %v7843_v54, 1  ;;  %v7846_v6 = vadd.f32 %v7310_v52, %v7302_v38 }
 0x931   : > { %v7788_v45 = vrot.slane %v7787_v21, 2 }
 0x932   : > { %v7836_v36 = vadd.f32 %v7835_v60, %v7834_v2  ;;  %v7845_v55 = vadd.f32 %v7844_v9, %v7843_v54 }
 0x933   : > { %v7789_v42 = vadd.f32 %v7788_v45, %v7787_v21  ;;  %v6829_v18 = vpop.f32.mrf.mxu0  ;;  %v6918_v10 = vpop.f32.mrf.mxu1 }
 0x934   : > { %v17817_v23 = vsel %vm8010_vm0, %v7836_v36, %v17787_v29  ;;  %v17821_v20 = vsel %vm8010_vm0, %v7845_v55, %v17791_v56  ;;  %v7340_v30 = vmul.f32 %v6829_v18, %v17447_v12  ;;  %v7341_v29 = vmul.f32 %v6918_v10, %v17451_v3 }
 0x935   : > { %v7790_v1 = vrot.slane %v7789_v42, 1  ;;  %v7000_v24 = vpop.f32.mrf.mxu2  ;;  %v7332_v56 = vmul.f32 %v6827_v32, %v17419_v40 }
 0x936   : > { %v7318_v25 = vmul.f32 %v7000_v24, %v17553_v47  ;;  %v7909_v0 = vadd.f32 %v7341_v29, %v7333_v8 }
 0x937   : > { %v7791_v46 = vadd.f32 %v7790_v1, %v7789_v42  ;;  %v7900_v33 = vadd.f32 %v7340_v30, %v7332_v56 }
 0x938   : > { %v7086_v16 = vpop.f32.mrf.mxu3  ;;  %v7847_v19 = vadd.f32 %v7846_v6, %v7318_v25 }
 0x939   : > { %v17825_v43 = vsel %vm8008_vm6, %v7791_v46, %v17795_v62  ;;  %v7311_v34 = vmul.f32 %v7086_v16, %v17547_v50  ;;  %v7303_v62 = vmul.f32 %v7084_v35, %v17521_v58 }
 0x93b   : > { %v6832_v13 = vpop.f32.mrf.mxu0  ;;  %v6921_v59 = vpop.f32.mrf.mxu1  ;;  %v7855_v41 = vadd.f32 %v7311_v34, %v7303_v62 }
 0x93c   : > { %v7348_v14 = vmul.f32 %v6832_v13, %v17475_v63  ;;  %v7349_v22 = vmul.f32 %v6921_v59, %v17479_v4 }
 0x93d   : > { %v7002_v27 = vpop.f32.mrf.mxu2 }
 0x93e   : > { %v7901_v26 = vadd.f32 %v7900_v33, %v7348_v14  ;;  %v7910_v7 = vadd.f32 %v7909_v0, %v7349_v22  ;;  %v7326_v44 = vmul.f32 %v7002_v27, %v17570_v5 }
 0x940   : > { %v7089_v12 = vpop.f32.mrf.mxu3  ;;  %v7848_v32 = vadd.f32 %v7847_v19, %v7326_v44 }
 0x941   : > { %v7319_v3 = vmul.f32 %v7089_v12, %v17564_v31 }
 0x942   : > { %v7849_v21 = vrot.slane %v7848_v32, 4 }
 0x943   : > { %v7856_v40 = vadd.f32 %v7855_v41, %v7319_v3  ;;  %v6834_v51 = vpop.f32.mrf.mxu0  ;;  %v6923_v48 = vpop.f32.mrf.mxu1 }
 0x944   : > { %v7356_v53 = vmul.f32 %v6834_v51, %v17499_v57  ;;  %v7357_v63 = vmul.f32 %v6923_v48, %v17503_v15  ;;  %v7850_v4 = vadd.f32 %v7849_v21, %v7848_v32 }
 0x945   : > { %v7005_v2 = vpop.f32.mrf.mxu2 }
 0x946   : > { %v7902_v61 = vadd.f32 %v7901_v26, %v7356_v53  ;;  %v7911_v45 = vadd.f32 %v7910_v7, %v7357_v63  ;;  %v7851_v54 = vrot.slane %v7850_v4, 2  ;;  %v7334_v14 = vmul.f32 %v7005_v2, %v17509_v37 }
 0x948   : > { %v7091_v11 = vpop.f32.mrf.mxu3  ;;  %v7903_v42 = vrot.slane %v7902_v61, 4  ;;  %v7912_v60 = vrot.slane %v7911_v45, 4  ;;  %v7852_v9 = vadd.f32 %v7851_v54, %v7850_v4 }
 0x949   : > { %v7327_v35 = vmul.f32 %v7091_v11, %v17593_v39 }
 0x94a   : > { %v7904_v36 = vadd.f32 %v7903_v42, %v7902_v61  ;;  %v7913_v55 = vadd.f32 %v7912_v60, %v7911_v45  ;;  %v7853_v46 = vrot.slane %v7852_v9, 1 }
 0x94b   : > { %v7857_v17 = vadd.f32 %v7856_v40, %v7327_v35 }
 0x94c   : > { %v7905_v57 = vrot.slane %v7904_v36, 2  ;;  %v7914_v10 = vrot.slane %v7913_v55, 2  ;;  %v7854_v52 = vadd.f32 %v7853_v46, %v7852_v9 }
 0x94d   : > { %v7858_v1 = vrot.slane %v7857_v17, 4  ;;  %v7007_v6 = vpop.f32.mrf.mxu2 }
 0x94e   : > { %v7906_v38 = vadd.f32 %v7905_v57, %v7904_v36  ;;  %v7915_v24 = vadd.f32 %v7914_v10, %v7913_v55  ;;  %v8054_v25 = vsel %vm8010_vm0, %v7854_v52, %v17812_v28  ;;  %v7342_v13 = vmul.f32 %v7007_v6, %v17527_v49 }
 0x94f   : > { %v7859_v18 = vadd.f32 %v7858_v1, %v7857_v17 }
 0x950   : > { %v7094_v15 = vpop.f32.mrf.mxu3  ;;  %v7907_v29 = vrot.slane %v7906_v38, 1  ;;  %v7916_v34 = vrot.slane %v7915_v24, 1  ;;  %v7918_v12 = vadd.f32 %v7342_v13, %v7334_v14 }
 0x951   : > { %v7860_v16 = vrot.slane %v7859_v18, 2 }
 0x952   : > { %v7908_v56 = vadd.f32 %v7907_v29, %v7906_v38  ;;  %v7917_v8 = vadd.f32 %v7916_v34, %v7915_v24 }
 0x953   : > { %v7861_v30 = vadd.f32 %v7860_v16, %v7859_v18 }
 0x954   : > { %v8041_v59 = vsel %vm8012_vm11, %v7908_v56, %v17817_v23  ;;  %v8048_v33 = vsel %vm8012_vm11, %v7917_v8, %v17821_v20  ;;  %v7335_v23 = vmul.f32 %v7094_v15, %v17521_v58 }
 0x955   : > { %v7862_v19 = vrot.slane %v7861_v30, 1  ;;  %8075 = vst [vmem:[%s17460_s29 + $0x20] sm:$0xff] %v8041_v59  ;;  %v7010_v22 = vpop.f32.mrf.mxu2 }
 0x956   : > { %8076 = vst [vmem:[%s17460_s29 + $0x28] sm:$0xff] %v8048_v33  ;;  %v7350_v41 = vmul.f32 %v7010_v22, %v17553_v47 }
 0x957   : > { %v7863_v62 = vadd.f32 %v7862_v19, %v7861_v30 }
 0x958   : > { %v7096_v0 = vpop.f32.mrf.mxu3  ;;  %v7919_v3 = vadd.f32 %v7918_v12, %v7350_v41 }
 0x959   : > { %v8061_v28 = vsel %vm8010_vm0, %v7863_v62, %v17825_v43  ;;  %v7343_v49 = vmul.f32 %v7096_v0, %v17547_v50 }
 0x95b   : > { %v7927_v7 = vadd.f32 %v7343_v49, %v7335_v23 }
 0x95d   : > { %v7012_v27 = vpop.f32.mrf.mxu2 }
 0x95e   : > { %v7358_v43 = vmul.f32 %v7012_v27, %v17570_v5 }
 0x960   : > { %v7099_v26 = vpop.f32.mrf.mxu3  ;;  %v7920_v37 = vadd.f32 %v7919_v3, %v7358_v43 }
 0x961   : > { %v7351_v20 = vmul.f32 %v7099_v26, %v17564_v31 }
 0x962   : > { %v7921_v44 = vrot.slane %v7920_v37, 4 }
 0x963   : > { %v7928_v40 = vadd.f32 %v7927_v7, %v7351_v20 }
 0x964   : > { %v7922_v51 = vadd.f32 %v7921_v44, %v7920_v37 }
 0x966   : > { %v7923_v47 = vrot.slane %v7922_v51, 2 }
 0x968   : > { %v7101_v32 = vpop.f32.mrf.mxu3  ;;  %v7924_v58 = vadd.f32 %v7923_v47, %v7922_v51 }
 0x969   : > { %v7359_v50 = vmul.f32 %v7101_v32, %v17593_v39 }
 0x96a   : > { %v7925_v53 = vrot.slane %v7924_v58, 1 }
 0x96b   : > { %v7929_v48 = vadd.f32 %v7928_v40, %v7359_v50 }
 0x96c   : > { %v7926_v31 = vadd.f32 %v7925_v53, %v7924_v58 }
 0x96d   : > { %v7930_v21 = vrot.slane %v7929_v48, 4 }
 0x96e   : > { %v8055_v5 = vsel %vm8012_vm11, %v7926_v31, %v8054_v25 }
 0x96f   : > { %v7931_v63 = vadd.f32 %v7930_v21, %v7929_v48  ;;  %8077 = vst [vmem:[%s17460_s29 + $0x30] sm:$0xff] %v8055_v5 }
 0x971   : > { %v7932_v11 = vrot.slane %v7931_v63, 2 }
 0x973   : > { %v7933_v4 = vadd.f32 %v7932_v11, %v7931_v63 }
 0x975   : > { %v7934_v39 = vrot.slane %v7933_v4, 1 }
 0x977   : > { %v7935_v35 = vadd.f32 %v7934_v39, %v7933_v4 }
 0x979   : > { %v8062_v61 = vsel %vm8012_vm11, %v7935_v35, %v8061_v28 }
 0x97a   : > { %8078 = vst [vmem:[%s17460_s29 + $0x38] sm:$0xff] %v8062_v61 }
 0x97b   : > { %9721 = shalt.err (!%p9718_p3)
}
 0x97c   : > { %8860 = dma.vmem_to_hbm [thread:$0]  (%p9852_p5), %s8094_s30, 1024, %s8096_s11, %s8080_s17  }
 0x97d PF: > { %p8866_p4 = scmp.ge.s32.totalorder %s9756_s16, 2  ;;  %s8107_s25 = sand.u32 1, %s9744_s13  }
 0x97e   : > { %s8108_s29 = scalar_lea.sflag [#allocation3], %s8107_s25 }
 0x97f   : > { %p8863_p7 = pnand %p8866_p4, %p9856_p6 }
 0x981   : > { %p8864_p8 = pneg %p8863_p7 }
 0x983   : > { %9739 = dma.done.wait (%p8864_p8), %s8108_s29, 1024  }
 0x984   : > { %9741 = vsyncadd (%p8864_p8), %s8108_s29, 4294966272  ;;  %p20_p9 = scmp.ge.s32.totalorder %s9839_s19, 4   ;;  %s19518_s13 = smov %s9748_s14 }
 0x985   : > { %s19519_s14 = smov %s9752_s15  ;;  %s19520_s15 = smov %s9850_s22 }
 0x986   : > { %s19521_s16 = smov %s9839_s19  ;;  %22 = sbr.rel (!%p20_p9) target bundleno = 3 (0x3), region = 102 }
 0x98b   :  { %8114 = vsyncpa [#allocation3], 1 }
 0x98c   :  { %8116 = vsyncpa [#allocation3 + $0x1], 1 }

</bundles_post_ra>
